<compile_context>
chip_gen: v6e
topology: v6e:2x2x1
jax: 0.10.0
libtpu: 0.0.40
codegen_flags: <defaults>
</compile_context>

<pallas_src>
import functools

import jax
import jax.numpy as jnp
from jax.experimental import pallas as pl
from jax.experimental.pallas import tpu as pltpu

# ----------------------------- hyper-parameters ------------------------------
N_EMOJIS = 64
EMBED_DIM = 12
ENC_OUT = 32          # encoder out_dim == Enc2Image in_dim
LC = 4                # last_channels
IMG_SIZE = LC * LC    # = 16; keeps the .view() invariant: 8*img_size*lc == (8lc)*lc*lc
BATCH = 2


def _rup8(c):
    """Round a channel count up to the 8-sublane tile."""
    return ((c + 7) // 8) * 8


# ========================= in-kernel building blocks ==========================
def _conv3x3(x, wmat, bias, W):
    """3x3 conv, stride 1, pad 1, on a flattened row-major (C, H*W) image.

    x:    (Cin_p, H*W)   activations (spatial on lanes)
    wmat: (Cout_p, 9*Cin_p), column index = tap*Cin_p + cin, tap = (dy+1)*3+(dx+1)
    bias: (Cout_p, 1) or None
    Returns (Cout_p, H*W).  Single MXU matmul with K = 9*Cin_p.
    """
    C, HW = x.shape
    P = W + 1  # covers max |dy*W + dx|
    zpad = jnp.zeros((C, P), x.dtype)
    xp = jnp.concatenate([zpad, x, zpad], axis=1)          # (C, HW + 2P), zero halo
    col = jax.lax.broadcasted_iota(jnp.int32, (C, HW), 1)
    col = (col & (W - 1)) if (W & (W - 1)) == 0 else (col % W)

    taps = []
    for dy in (-1, 0, 1):
        for dx in (-1, 0, 1):
            off = P + dy * W + dx
            t = xp[:, off:off + HW]                        # shifted tap image
            # mask columns that wrapped across a row boundary (conv zero padding)
            if dx == 1:
                t = jnp.where(col < W - 1, t, 0.0)
            elif dx == -1:
                t = jnp.where(col > 0, t, 0.0)
            taps.append(t)
    taps = jnp.concatenate(taps, axis=0)                   # (9*Cin_p, HW), aligned
    y = jnp.dot(wmat, taps, preferred_element_type=jnp.float32)
    if bias is not None:
        y = y + bias
    return y


def _inorm_silu(y):
    """InstanceNorm2d(affine=False, eps=1e-5) over spatial + SiLU, on (C, H*W)."""
    mean = jnp.mean(y, axis=1, keepdims=True)
    var = jnp.mean((y - mean) ** 2, axis=1, keepdims=True)
    y = (y - mean) * jax.lax.rsqrt(var + 1e-5)
    return y * jax.nn.sigmoid(y)


# ============================ Pallas kernel bodies ============================
def _stage_kernel(x_ref, upw_ref, upb_ref, b1w_ref, b2w_ref, rw_ref, rb_ref,
                  o_ref, *, W):
    """One backbone stage (per batch element): UpBlock conv + ResnetBlock."""
    x = x_ref[0]                                                    # (Cin_p, HW)
    x = _conv3x3(x, upw_ref[...], upb_ref[...], W)                  # UpBlock conv
    h = _inorm_silu(_conv3x3(x, b1w_ref[...], None, W))             # Block1 (bias=False)
    h = _inorm_silu(_conv3x3(h, b2w_ref[...], None, W))             # Block2 (bias=False)
    res = jnp.dot(rw_ref[...], x, preferred_element_type=jnp.float32) + rb_ref[...]
    o_ref[0] = (h + res).astype(o_ref.dtype)


def _final_kernel(x_ref, upw_ref, upb_ref, fw_ref, fb_ref, o_ref, *, W):
    """Last UpBlock conv + 1x1 conv to RGB (lane-dense (Cout_p, H*W) output)."""
    x = _conv3x3(x_ref[0], upw_ref[...], upb_ref[...], W)           # LC -> LC conv
    y = jnp.dot(fw_ref[...], x, preferred_element_type=jnp.float32) + fb_ref[...]
    o_ref[0] = y.astype(o_ref.dtype)


def _head_kernel(x_ref,
                 w1_ref, b1_ref, g1_ref, be1_ref,
                 w2_ref, b2_ref, g2_ref, be2_ref,
                 w3_ref, b3_ref,
                 gw1_ref, gb1_ref, gw2_ref, gb2_ref,
                 o_ref):
    """Fused Encoder MLP (3 linears + 2 batchnorms) + Enc2Image head (2 linears)."""

    def lin(h, w_ref, b_ref):
        return jnp.dot(h, w_ref[...], preferred_element_type=jnp.float32) + b_ref[...]

    def silu(h):
        return h * jax.nn.sigmoid(h)

    def bn(h, g_ref, b_ref):
        # PyTorch BatchNorm1d in training mode: batch mean / biased variance.
        mean = jnp.mean(h, axis=0, keepdims=True)
        var = jnp.mean((h - mean) ** 2, axis=0, keepdims=True)
        return (h - mean) * jax.lax.rsqrt(var + 1e-5) * g_ref[...] + b_ref[...]

    h = x_ref[...]
    h = bn(silu(lin(h, w1_ref, b1_ref)), g1_ref, be1_ref)   # Encoder block 1
    h = bn(silu(lin(h, w2_ref, b2_ref)), g2_ref, be2_ref)   # Encoder block 2
    h = lin(h, w3_ref, b3_ref)                              # Encoder final Linear
    h = silu(lin(h, gw1_ref, gb1_ref))                      # Enc2Image Linear 1
    h = silu(lin(h, gw2_ref, gb2_ref))                      # Enc2Image Linear 2
    o_ref[...] = h.astype(o_ref.dtype)


# ============================== pallas_call wrappers ===========================
def _replicated_spec(a):
    """Whole-array block, same block for every grid step (weights / biases)."""
    return pl.BlockSpec(a.shape, lambda b: (0,) * a.ndim)


def head_forward(params, x):
    B = x.shape[0]
    out_dim = params["g_l2_w"].shape[1]
    # single invocation, whole (tiny) arrays in VMEM -> no grid / specs needed
    return pl.pallas_call(
        _head_kernel,
        out_shape=jax.ShapeDtypeStruct((B, out_dim), jnp.float32),
    )(x,
      params["enc_l1_w"], params["enc_l1_b"], params["enc_bn1_g"], params["enc_bn1_b"],
      params["enc_l2_w"], params["enc_l2_b"], params["enc_bn2_g"], params["enc_bn2_b"],
      params["enc_l3_w"], params["enc_l3_b"],
      params["g_l1_w"], params["g_l1_b"],
      params["g_l2_w"], params["g_l2_b"])


def stage_forward(x, upw, upb, b1w, b2w, rw, rb, *, W):
    """x: (B, Cin_p, H*W) already nearest-upsampled; returns (B, Cout_p, H*W)."""
    B, cin_p, HW = x.shape
    cout_p = b1w.shape[0]
    return pl.pallas_call(
        functools.partial(_stage_kernel, W=W),
        out_shape=jax.ShapeDtypeStruct((B, cout_p, HW), jnp.float32),
        grid=(B,),
        in_specs=[
            pl.BlockSpec((1, cin_p, HW), lambda b: (b, 0, 0)),
            _replicated_spec(upw), _replicated_spec(upb),
            _replicated_spec(b1w), _replicated_spec(b2w),
            _replicated_spec(rw), _replicated_spec(rb),
        ],
        out_specs=pl.BlockSpec((1, cout_p, HW), lambda b: (b, 0, 0)),
        compiler_params=pltpu.CompilerParams(dimension_semantics=("parallel",)),
    )(x, upw, upb, b1w, b2w, rw, rb)


def final_forward(x, upw, upb, fw, fb, *, W):
    """Last UpBlock conv + 1x1 RGB conv.  Returns channel-padded (B, 8, H*W)."""
    B, cin_p, HW = x.shape
    cout_p = fw.shape[0]
    return pl.pallas_call(
        functools.partial(_final_kernel, W=W),
        out_shape=jax.ShapeDtypeStruct((B, cout_p, HW), jnp.float32),
        grid=(B,),
        in_specs=[
            pl.BlockSpec((1, cin_p, HW), lambda b: (b, 0, 0)),
            _replicated_spec(upw), _replicated_spec(upb),
            _replicated_spec(fw), _replicated_spec(fb),
        ],
        out_specs=pl.BlockSpec((1, cout_p, HW), lambda b: (b, 0, 0)),
        compiler_params=pltpu.CompilerParams(dimension_semantics=("parallel",)),
    )(x, upw, upb, fw, fb)


# ------------------------------- XLA glue ops ---------------------------------
def upsample2x_flat(x_bchw):
    """Nearest 2x upsample + flatten spatial: (B,C,H,W) -> (B,C,(2H)*(2W))."""
    # TODO(synk): nearest-2x upsample stays as (tiny) XLA glue — it is a pure index
    # remap on a <=64 KB tensor with no clean reshape-free in-kernel equivalent.
    B, C, H, Wd = x_bchw.shape
    x = jnp.repeat(jnp.repeat(x_bchw, 2, axis=2), 2, axis=3)
    return x.reshape(B, C, 4 * H * Wd)


# ------------------------------ parameter init --------------------------------
def init_params(seed=42):
    key = jax.random.PRNGKey(seed)
    p = {}

    def nxt():
        nonlocal key
        key, sub = jax.random.split(key)
        return sub

    def w(shape, scale=0.1):
        return jax.random.normal(nxt(), shape, jnp.float32) * scale

    def conv3x3_w(cin, cout, scale=0.1):
        cin_p, cout_p = _rup8(cin), _rup8(cout)
        m = jax.random.normal(nxt(), (cout, 9, cin), jnp.float32) * scale
        m = jnp.pad(m, ((0, cout_p - cout), (0, 0), (0, cin_p - cin)))
        return m.reshape(cout_p, 9 * cin_p)      # col idx = tap*cin_p + cin

    def conv1x1_w(cin, cout, scale=0.1):
        cin_p, cout_p = _rup8(cin), _rup8(cout)
        m = jax.random.normal(nxt(), (cout, cin), jnp.float32) * scale
        return jnp.pad(m, ((0, cout_p - cout), (0, cin_p - cin)))

    def conv_bias(cout, scale=0.1):
        cout_p = _rup8(cout)
        b = jax.random.normal(nxt(), (cout, 1), jnp.float32) * scale
        return jnp.pad(b, ((0, cout_p - cout), (0, 0)))

    # ----- Encoder -----
    p["embed"] = w((N_EMOJIS, EMBED_DIM), 1.0)
    d1, d2 = ENC_OUT // 8, ENC_OUT // 2
    p["enc_l1_w"], p["enc_l1_b"] = w((EMBED_DIM + 4, d1)), w((1, d1))
    p["enc_bn1_g"], p["enc_bn1_b"] = jnp.ones((1, d1), jnp.float32), jnp.zeros((1, d1), jnp.float32)
    p["enc_l2_w"], p["enc_l2_b"] = w((d1, d2)), w((1, d2))
    p["enc_bn2_g"], p["enc_bn2_b"] = jnp.ones((1, d2), jnp.float32), jnp.zeros((1, d2), jnp.float32)
    p["enc_l3_w"], p["enc_l3_b"] = w((d2, ENC_OUT)), w((1, ENC_OUT))

    # ----- Enc2Image linear head -----
    p["g_l1_w"], p["g_l1_b"] = w((ENC_OUT, ENC_OUT * 2)), w((1, ENC_OUT * 2))
    out_flat = 8 * IMG_SIZE * LC                         # == (8*LC) * LC * LC
    p["g_l2_w"], p["g_l2_b"] = w((ENC_OUT * 2, out_flat)), w((1, out_flat))

    # ----- Backbone: UpBlock / ResnetBlock chain -----
    chans = [8 * LC, 4 * LC, 2 * LC, LC]                 # 32, 16, 8, 4
    for i, (cin, cout) in enumerate(zip(chans[:-1], chans[1:]), start=1):
        p[f"up{i}_w"] = conv3x3_w(cin, cin)              # UpBlock conv (with bias)
        p[f"up{i}_b"] = conv_bias(cin)
        p[f"rb{i}_b1_w"] = conv3x3_w(cin, cout)          # Block convs: bias=False
        p[f"rb{i}_b2_w"] = conv3x3_w(cout, cout)
        p[f"rb{i}_res_w"] = conv1x1_w(cin, cout)         # residual 1x1 (with bias)
        p[f"rb{i}_res_b"] = conv_bias(cout)
    p["up4_w"] = conv3x3_w(LC, LC)
    p["up4_b"] = conv_bias(LC)
    p["final_w"] = conv1x1_w(LC, 3)                      # 1x1 conv to RGB
    p["final_b"] = conv_bias(3)
    return p


# ------------------------------- forward pass ---------------------------------
def generator_forward(params, emoji_idx, pos):
    # Encoder input glue: embedding gather + concat (tiny, XLA).
    emb = jnp.take(params["embed"], emoji_idx, axis=0)
    x = jnp.concatenate([emb, pos.astype(jnp.float32)], axis=-1)     # (B, 16)

    # Fused Encoder MLP + Enc2Image linear head: ONE pallas_call.
    # Note: BatchNorm1d uses batch statistics (PyTorch .train() mode behavior).
    x = head_forward(params, x)                                      # (B, 512)

    B = x.shape[0]
    # PyTorch: x.view(B, 8*lc, lc, lc) — channels-first, so a plain reshape here.
    x = x.reshape(B, 8 * LC, LC, LC)                                 # (B, 32, 4, 4)

    chans = [8 * LC, 4 * LC, 2 * LC, LC]
    H = W = LC
    for i in range(1, 4):
        x = upsample2x_flat(x)                                       # (B, C, (2H)*(2W))
        H, W = 2 * H, 2 * W
        x = stage_forward(x,
                          params[f"up{i}_w"], params[f"up{i}_b"],
                          params[f"rb{i}_b1_w"], params[f"rb{i}_b2_w"],
                          params[f"rb{i}_res_w"], params[f"rb{i}_res_b"],
                          W=W)                                       # (B, Cout_p, H*W)
        x = x.reshape(B, _rup8(chans[i]), H, W)

    # final stage: UpBlock(lc) conv + 1x1 conv to RGB, fused in one kernel
    x = upsample2x_flat(x)
    H, W = 2 * H, 2 * W                                              # 64, 64
    x = final_forward(x, params["up4_w"], params["up4_b"],
                      params["final_w"], params["final_b"], W=W)     # (B, 8, 4096)

    # drop channel padding -> NCHW (already channels-first, no transpose needed)
    return x[:, :3, :].reshape(B, 3, H, W)


# ----------------------------------- main --------------------------------------
if __name__ == "__main__":
    params = init_params(seed=42)

    key = jax.random.PRNGKey(0)
    k1, k2 = jax.random.split(key)
    emoji_idx = jax.random.randint(k1, (BATCH,), 0, N_EMOJIS)
    pos = jax.random.normal(k2, (BATCH, 4), jnp.float32)

    fwd = jax.jit(generator_forward)
    out = jax.block_until_ready(fwd(params, emoji_idx, pos))

    assert out.shape == (BATCH, 3, 4 * IMG_SIZE, 4 * IMG_SIZE), out.shape
    assert bool(jnp.all(jnp.isfinite(out)))
    print("KERNEL_OK")
</pallas_src>

<mosaic_0001>
module attributes {stable_mosaic.version = 11 : i64} {
  func.func @_head_kernel(%arg0: memref<2x16xf32, #tpu.memory_space<vmem>>, %arg1: memref<16x4xf32, #tpu.memory_space<vmem>>, %arg2: memref<1x4xf32, #tpu.memory_space<vmem>>, %arg3: memref<1x4xf32, #tpu.memory_space<vmem>>, %arg4: memref<1x4xf32, #tpu.memory_space<vmem>>, %arg5: memref<4x16xf32, #tpu.memory_space<vmem>>, %arg6: memref<1x16xf32, #tpu.memory_space<vmem>>, %arg7: memref<1x16xf32, #tpu.memory_space<vmem>>, %arg8: memref<1x16xf32, #tpu.memory_space<vmem>>, %arg9: memref<16x32xf32, #tpu.memory_space<vmem>>, %arg10: memref<1x32xf32, #tpu.memory_space<vmem>>, %arg11: memref<32x64xf32, #tpu.memory_space<vmem>>, %arg12: memref<1x64xf32, #tpu.memory_space<vmem>>, %arg13: memref<64x512xf32, #tpu.memory_space<vmem>>, %arg14: memref<1x512xf32, #tpu.memory_space<vmem>>, %arg15: memref<2x512xf32, #tpu.memory_space<vmem>>) attributes {dimension_semantics = [], scalar_prefetch = 0 : i64, scratch_operands = 0 : i64, tpu.core_type = #tpu.core_type<tc>} {
    %c0 = arith.constant 0 : index
    %c0_0 = arith.constant 0 : index
    %0 = vector.load %arg0[%c0, %c0_0] : memref<2x16xf32, #tpu.memory_space<vmem>>, vector<2x16xf32>
    %c0_1 = arith.constant 0 : index
    %c0_2 = arith.constant 0 : index
    %1 = vector.load %arg1[%c0_1, %c0_2] : memref<16x4xf32, #tpu.memory_space<vmem>>, vector<16x4xf32>
    %cst = arith.constant dense<0.000000e+00> : vector<2x4xf32>
    %2 = tpu.matmul %0, %1, %cst {dimension_numbers = #tpu.dot_dimension_numbers<[1], [0], [0], [1], [0, 0, 1, 1], [], []>} : vector<2x16xf32>, vector<16x4xf32>, vector<2x4xf32> -> vector<2x4xf32>
    %c0_3 = arith.constant 0 : index
    %c0_4 = arith.constant 0 : index
    %3 = vector.load %arg2[%c0_3, %c0_4] : memref<1x4xf32, #tpu.memory_space<vmem>>, vector<1x4xf32>
    %4 = vector.broadcast %3 : vector<1x4xf32> to vector<2x4xf32>
    %5 = arith.addf %2, %4 : vector<2x4xf32>
    %6 = arith.negf %5 : vector<2x4xf32>
    %7 = math.exp %6 : vector<2x4xf32>
    %cst_5 = arith.constant 1.000000e+00 : f32
    %8 = vector.broadcast %cst_5 : f32 to vector<2x4xf32>
    %9 = arith.addf %8, %7 : vector<2x4xf32>
    %10 = arith.divf %8, %9 : vector<2x4xf32>
    %11 = arith.mulf %5, %10 : vector<2x4xf32>
    %cst_6 = arith.constant dense<0.000000e+00> : vector<4xf32>
    %12 = vector.multi_reduction <add>, %11, %cst_6 [0] : vector<2x4xf32> to vector<4xf32>
    %13 = vector.shape_cast %12 : vector<4xf32> to vector<1x4xf32>
    %cst_7 = arith.constant 2.000000e+00 : f32
    %14 = vector.broadcast %cst_7 : f32 to vector<1x4xf32>
    %15 = arith.divf %13, %14 : vector<1x4xf32>
    %16 = vector.broadcast %15 : vector<1x4xf32> to vector<2x4xf32>
    %17 = arith.subf %11, %16 : vector<2x4xf32>
    %18 = arith.mulf %17, %17 : vector<2x4xf32>
    %cst_8 = arith.constant dense<0.000000e+00> : vector<4xf32>
    %19 = vector.multi_reduction <add>, %18, %cst_8 [0] : vector<2x4xf32> to vector<4xf32>
    %20 = vector.shape_cast %19 : vector<4xf32> to vector<1x4xf32>
    %cst_9 = arith.constant 2.000000e+00 : f32
    %21 = vector.broadcast %cst_9 : f32 to vector<1x4xf32>
    %22 = arith.divf %20, %21 : vector<1x4xf32>
    %23 = vector.broadcast %15 : vector<1x4xf32> to vector<2x4xf32>
    %24 = arith.subf %11, %23 : vector<2x4xf32>
    %cst_10 = arith.constant 9.99999974E-6 : f32
    %25 = vector.broadcast %cst_10 : f32 to vector<1x4xf32>
    %26 = arith.addf %22, %25 : vector<1x4xf32>
    %27 = math.rsqrt %26 : vector<1x4xf32>
    %28 = vector.broadcast %27 : vector<1x4xf32> to vector<2x4xf32>
    %29 = arith.mulf %24, %28 : vector<2x4xf32>
    %c0_11 = arith.constant 0 : index
    %c0_12 = arith.constant 0 : index
    %30 = vector.load %arg3[%c0_11, %c0_12] : memref<1x4xf32, #tpu.memory_space<vmem>>, vector<1x4xf32>
    %31 = vector.broadcast %30 : vector<1x4xf32> to vector<2x4xf32>
    %32 = arith.mulf %29, %31 : vector<2x4xf32>
    %c0_13 = arith.constant 0 : index
    %c0_14 = arith.constant 0 : index
    %33 = vector.load %arg4[%c0_13, %c0_14] : memref<1x4xf32, #tpu.memory_space<vmem>>, vector<1x4xf32>
    %34 = vector.broadcast %33 : vector<1x4xf32> to vector<2x4xf32>
    %35 = arith.addf %32, %34 : vector<2x4xf32>
    %c0_15 = arith.constant 0 : index
    %c0_16 = arith.constant 0 : index
    %36 = vector.load %arg5[%c0_15, %c0_16] : memref<4x16xf32, #tpu.memory_space<vmem>>, vector<4x16xf32>
    %cst_17 = arith.constant dense<0.000000e+00> : vector<2x16xf32>
    %37 = tpu.matmul %35, %36, %cst_17 {dimension_numbers = #tpu.dot_dimension_numbers<[1], [0], [0], [1], [0, 0, 1, 1], [], []>} : vector<2x4xf32>, vector<4x16xf32>, vector<2x16xf32> -> vector<2x16xf32>
    %c0_18 = arith.constant 0 : index
    %c0_19 = arith.constant 0 : index
    %38 = vector.load %arg6[%c0_18, %c0_19] : memref<1x16xf32, #tpu.memory_space<vmem>>, vector<1x16xf32>
    %39 = vector.broadcast %38 : vector<1x16xf32> to vector<2x16xf32>
    %40 = arith.addf %37, %39 : vector<2x16xf32>
    %41 = arith.negf %40 : vector<2x16xf32>
    %42 = math.exp %41 : vector<2x16xf32>
    %cst_20 = arith.constant 1.000000e+00 : f32
    %43 = vector.broadcast %cst_20 : f32 to vector<2x16xf32>
    %44 = arith.addf %43, %42 : vector<2x16xf32>
    %45 = arith.divf %43, %44 : vector<2x16xf32>
    %46 = arith.mulf %40, %45 : vector<2x16xf32>
    %cst_21 = arith.constant dense<0.000000e+00> : vector<16xf32>
    %47 = vector.multi_reduction <add>, %46, %cst_21 [0] : vector<2x16xf32> to vector<16xf32>
    %48 = vector.shape_cast %47 : vector<16xf32> to vector<1x16xf32>
    %cst_22 = arith.constant 2.000000e+00 : f32
    %49 = vector.broadcast %cst_22 : f32 to vector<1x16xf32>
    %50 = arith.divf %48, %49 : vector<1x16xf32>
    %51 = vector.broadcast %50 : vector<1x16xf32> to vector<2x16xf32>
    %52 = arith.subf %46, %51 : vector<2x16xf32>
    %53 = arith.mulf %52, %52 : vector<2x16xf32>
    %cst_23 = arith.constant dense<0.000000e+00> : vector<16xf32>
    %54 = vector.multi_reduction <add>, %53, %cst_23 [0] : vector<2x16xf32> to vector<16xf32>
    %55 = vector.shape_cast %54 : vector<16xf32> to vector<1x16xf32>
    %cst_24 = arith.constant 2.000000e+00 : f32
    %56 = vector.broadcast %cst_24 : f32 to vector<1x16xf32>
    %57 = arith.divf %55, %56 : vector<1x16xf32>
    %58 = vector.broadcast %50 : vector<1x16xf32> to vector<2x16xf32>
    %59 = arith.subf %46, %58 : vector<2x16xf32>
    %cst_25 = arith.constant 9.99999974E-6 : f32
    %60 = vector.broadcast %cst_25 : f32 to vector<1x16xf32>
    %61 = arith.addf %57, %60 : vector<1x16xf32>
    %62 = math.rsqrt %61 : vector<1x16xf32>
    %63 = vector.broadcast %62 : vector<1x16xf32> to vector<2x16xf32>
    %64 = arith.mulf %59, %63 : vector<2x16xf32>
    %c0_26 = arith.constant 0 : index
    %c0_27 = arith.constant 0 : index
    %65 = vector.load %arg7[%c0_26, %c0_27] : memref<1x16xf32, #tpu.memory_space<vmem>>, vector<1x16xf32>
    %66 = vector.broadcast %65 : vector<1x16xf32> to vector<2x16xf32>
    %67 = arith.mulf %64, %66 : vector<2x16xf32>
    %c0_28 = arith.constant 0 : index
    %c0_29 = arith.constant 0 : index
    %68 = vector.load %arg8[%c0_28, %c0_29] : memref<1x16xf32, #tpu.memory_space<vmem>>, vector<1x16xf32>
    %69 = vector.broadcast %68 : vector<1x16xf32> to vector<2x16xf32>
    %70 = arith.addf %67, %69 : vector<2x16xf32>
    %c0_30 = arith.constant 0 : index
    %c0_31 = arith.constant 0 : index
    %71 = vector.load %arg9[%c0_30, %c0_31] : memref<16x32xf32, #tpu.memory_space<vmem>>, vector<16x32xf32>
    %cst_32 = arith.constant dense<0.000000e+00> : vector<2x32xf32>
    %72 = tpu.matmul %70, %71, %cst_32 {dimension_numbers = #tpu.dot_dimension_numbers<[1], [0], [0], [1], [0, 0, 1, 1], [], []>} : vector<2x16xf32>, vector<16x32xf32>, vector<2x32xf32> -> vector<2x32xf32>
    %c0_33 = arith.constant 0 : index
    %c0_34 = arith.constant 0 : index
    %73 = vector.load %arg10[%c0_33, %c0_34] : memref<1x32xf32, #tpu.memory_space<vmem>>, vector<1x32xf32>
    %74 = vector.broadcast %73 : vector<1x32xf32> to vector<2x32xf32>
    %75 = arith.addf %72, %74 : vector<2x32xf32>
    %c0_35 = arith.constant 0 : index
    %c0_36 = arith.constant 0 : index
    %76 = vector.load %arg11[%c0_35, %c0_36] : memref<32x64xf32, #tpu.memory_space<vmem>>, vector<32x64xf32>
    %cst_37 = arith.constant dense<0.000000e+00> : vector<2x64xf32>
    %77 = tpu.matmul %75, %76, %cst_37 {dimension_numbers = #tpu.dot_dimension_numbers<[1], [0], [0], [1], [0, 0, 1, 1], [], []>} : vector<2x32xf32>, vector<32x64xf32>, vector<2x64xf32> -> vector<2x64xf32>
    %c0_38 = arith.constant 0 : index
    %c0_39 = arith.constant 0 : index
    %78 = vector.load %arg12[%c0_38, %c0_39] : memref<1x64xf32, #tpu.memory_space<vmem>>, vector<1x64xf32>
    %79 = vector.broadcast %78 : vector<1x64xf32> to vector<2x64xf32>
    %80 = arith.addf %77, %79 : vector<2x64xf32>
    %81 = arith.negf %80 : vector<2x64xf32>
    %82 = math.exp %81 : vector<2x64xf32>
    %cst_40 = arith.constant 1.000000e+00 : f32
    %83 = vector.broadcast %cst_40 : f32 to vector<2x64xf32>
    %84 = arith.addf %83, %82 : vector<2x64xf32>
    %85 = arith.divf %83, %84 : vector<2x64xf32>
    %86 = arith.mulf %80, %85 : vector<2x64xf32>
    %c0_41 = arith.constant 0 : index
    %c0_42 = arith.constant 0 : index
    %87 = vector.load %arg13[%c0_41, %c0_42] : memref<64x512xf32, #tpu.memory_space<vmem>>, vector<64x512xf32>
    %cst_43 = arith.constant dense<0.000000e+00> : vector<2x512xf32>
    %88 = tpu.matmul %86, %87, %cst_43 {dimension_numbers = #tpu.dot_dimension_numbers<[1], [0], [0], [1], [0, 0, 1, 1], [], []>} : vector<2x64xf32>, vector<64x512xf32>, vector<2x512xf32> -> vector<2x512xf32>
    %c0_44 = arith.constant 0 : index
    %c0_45 = arith.constant 0 : index
    %89 = vector.load %arg14[%c0_44, %c0_45] : memref<1x512xf32, #tpu.memory_space<vmem>>, vector<1x512xf32>
    %90 = vector.broadcast %89 : vector<1x512xf32> to vector<2x512xf32>
    %91 = arith.addf %88, %90 : vector<2x512xf32>
    %92 = arith.negf %91 : vector<2x512xf32>
    %93 = math.exp %92 : vector<2x512xf32>
    %cst_46 = arith.constant 1.000000e+00 : f32
    %94 = vector.broadcast %cst_46 : f32 to vector<2x512xf32>
    %95 = arith.addf %94, %93 : vector<2x512xf32>
    %96 = arith.divf %94, %95 : vector<2x512xf32>
    %97 = arith.mulf %91, %96 : vector<2x512xf32>
    %c0_47 = arith.constant 0 : index
    %c0_48 = arith.constant 0 : index
    %98 = vector.load %arg15[%c0_47, %c0_48] : memref<2x512xf32, #tpu.memory_space<vmem>>, vector<2x512xf32>
    tpu.vector_store %arg15[%c0_47, %c0_48], %97 {strides = array<i32>} : memref<2x512xf32, #tpu.memory_space<vmem>>, vector<2x512xf32>,
    return
  }
}

module attributes {stable_mosaic.version = 11 : i64} {
  func.func @_stage_kernel(%arg0: i32, %arg1: memref<1x32x64xf32, #tpu.memory_space<vmem>>, %arg2: memref<32x288xf32, #tpu.memory_space<vmem>>, %arg3: memref<32x1xf32, #tpu.memory_space<vmem>>, %arg4: memref<16x288xf32, #tpu.memory_space<vmem>>, %arg5: memref<16x144xf32, #tpu.memory_space<vmem>>, %arg6: memref<16x32xf32, #tpu.memory_space<vmem>>, %arg7: memref<16x1xf32, #tpu.memory_space<vmem>>, %arg8: memref<1x16x64xf32, #tpu.memory_space<vmem>>) attributes {dimension_semantics = [#tpu.dimension_semantics<parallel>], iteration_bounds = array<i64: 2>, scalar_prefetch = 0 : i64, scratch_operands = 0 : i64, tpu.core_type = #tpu.core_type<tc>, window_params = [{transform_indices = @transform_0, window_bounds = array<i64: 1, 32, 64>}, {pipeline_mode = #tpu.pipeline_mode<synchronous>, transform_indices = @transform_1, window_bounds = array<i64: 32, 288>}, {pipeline_mode = #tpu.pipeline_mode<synchronous>, transform_indices = @transform_2, window_bounds = array<i64: 32, 1>}, {pipeline_mode = #tpu.pipeline_mode<synchronous>, transform_indices = @transform_3, window_bounds = array<i64: 16, 288>}, {pipeline_mode = #tpu.pipeline_mode<synchronous>, transform_indices = @transform_4, window_bounds = array<i64: 16, 144>}, {pipeline_mode = #tpu.pipeline_mode<synchronous>, transform_indices = @transform_5, window_bounds = array<i64: 16, 32>}, {pipeline_mode = #tpu.pipeline_mode<synchronous>, transform_indices = @transform_6, window_bounds = array<i64: 16, 1>}, {transform_indices = @transform_7, window_bounds = array<i64: 1, 16, 64>}]} {
    %c0 = arith.constant 0 : index
    %c0_0 = arith.constant 0 : index
    %c0_1 = arith.constant 0 : index
    %0 = vector.load %arg1[%c0, %c0_0, %c0_1] : memref<1x32x64xf32, #tpu.memory_space<vmem>>, vector<1x32x64xf32>
    %1 = vector.shape_cast %0 : vector<1x32x64xf32> to vector<32x64xf32>
    %c0_2 = arith.constant 0 : index
    %c0_3 = arith.constant 0 : index
    %2 = vector.load %arg2[%c0_2, %c0_3] : memref<32x288xf32, #tpu.memory_space<vmem>>, vector<32x288xf32>
    %c0_4 = arith.constant 0 : index
    %c0_5 = arith.constant 0 : index
    %3 = vector.load %arg3[%c0_4, %c0_5] : memref<32x1xf32, #tpu.memory_space<vmem>>, vector<32x1xf32>
    %cst = arith.constant 0.000000e+00 : f32
    %4 = vector.broadcast %cst : f32 to vector<32x9xf32>
    %5 = tpu.concatenate %4, %1, %4 in 1 : vector<32x9xf32>, vector<32x64xf32>, vector<32x9xf32> -> vector<32x82xf32>
    %6 = tpu.iota {dimensions = array<i32: 1>} : vector<32x64xi32>
    %c7_i32 = arith.constant 7 : i32
    %7 = vector.broadcast %c7_i32 : i32 to vector<32x64xi32>
    %8 = arith.andi %6, %7 : vector<32x64xi32>
    %9 = vector.extract_strided_slice %5 {offsets = [0, 0], sizes = [32, 64], strides = [1, 1]} : vector<32x82xf32> to vector<32x64xf32>
    %c0_i32 = arith.constant 0 : i32
    %10 = vector.broadcast %c0_i32 : i32 to vector<32x64xi32>
    %11 = arith.cmpi sgt, %8, %10 : vector<32x64xi32>
    %cst_6 = arith.constant 0.000000e+00 : f32
    %12 = vector.broadcast %cst_6 : f32 to vector<32x64xf32>
    %13 = arith.select %11, %9, %12 : vector<32x64xi1>, vector<32x64xf32>
    %14 = vector.extract_strided_slice %5 {offsets = [0, 1], sizes = [32, 64], strides = [1, 1]} : vector<32x82xf32> to vector<32x64xf32>
    %15 = vector.extract_strided_slice %5 {offsets = [0, 2], sizes = [32, 64], strides = [1, 1]} : vector<32x82xf32> to vector<32x64xf32>
    %c7_i32_7 = arith.constant 7 : i32
    %16 = vector.broadcast %c7_i32_7 : i32 to vector<32x64xi32>
    %17 = arith.cmpi slt, %8, %16 : vector<32x64xi32>
    %cst_8 = arith.constant 0.000000e+00 : f32
    %18 = vector.broadcast %cst_8 : f32 to vector<32x64xf32>
    %19 = arith.select %17, %15, %18 : vector<32x64xi1>, vector<32x64xf32>
    %20 = vector.extract_strided_slice %5 {offsets = [0, 8], sizes = [32, 64], strides = [1, 1]} : vector<32x82xf32> to vector<32x64xf32>
    %c0_i32_9 = arith.constant 0 : i32
    %21 = vector.broadcast %c0_i32_9 : i32 to vector<32x64xi32>
    %22 = arith.cmpi sgt, %8, %21 : vector<32x64xi32>
    %cst_10 = arith.constant 0.000000e+00 : f32
    %23 = vector.broadcast %cst_10 : f32 to vector<32x64xf32>
    %24 = arith.select %22, %20, %23 : vector<32x64xi1>, vector<32x64xf32>
    %25 = vector.extract_strided_slice %5 {offsets = [0, 9], sizes = [32, 64], strides = [1, 1]} : vector<32x82xf32> to vector<32x64xf32>
    %26 = vector.extract_strided_slice %5 {offsets = [0, 10], sizes = [32, 64], strides = [1, 1]} : vector<32x82xf32> to vector<32x64xf32>
    %c7_i32_11 = arith.constant 7 : i32
    %27 = vector.broadcast %c7_i32_11 : i32 to vector<32x64xi32>
    %28 = arith.cmpi slt, %8, %27 : vector<32x64xi32>
    %cst_12 = arith.constant 0.000000e+00 : f32
    %29 = vector.broadcast %cst_12 : f32 to vector<32x64xf32>
    %30 = arith.select %28, %26, %29 : vector<32x64xi1>, vector<32x64xf32>
    %31 = vector.extract_strided_slice %5 {offsets = [0, 16], sizes = [32, 64], strides = [1, 1]} : vector<32x82xf32> to vector<32x64xf32>
    %c0_i32_13 = arith.constant 0 : i32
    %32 = vector.broadcast %c0_i32_13 : i32 to vector<32x64xi32>
    %33 = arith.cmpi sgt, %8, %32 : vector<32x64xi32>
    %cst_14 = arith.constant 0.000000e+00 : f32
    %34 = vector.broadcast %cst_14 : f32 to vector<32x64xf32>
    %35 = arith.select %33, %31, %34 : vector<32x64xi1>, vector<32x64xf32>
    %36 = vector.extract_strided_slice %5 {offsets = [0, 17], sizes = [32, 64], strides = [1, 1]} : vector<32x82xf32> to vector<32x64xf32>
    %37 = vector.extract_strided_slice %5 {offsets = [0, 18], sizes = [32, 64], strides = [1, 1]} : vector<32x82xf32> to vector<32x64xf32>
    %c7_i32_15 = arith.constant 7 : i32
    %38 = vector.broadcast %c7_i32_15 : i32 to vector<32x64xi32>
    %39 = arith.cmpi slt, %8, %38 : vector<32x64xi32>
    %cst_16 = arith.constant 0.000000e+00 : f32
    %40 = vector.broadcast %cst_16 : f32 to vector<32x64xf32>
    %41 = arith.select %39, %37, %40 : vector<32x64xi1>, vector<32x64xf32>
    %42 = tpu.concatenate %13, %14, %19, %24, %25, %30, %35, %36, %41 in 0 : vector<32x64xf32>, vector<32x64xf32>, vector<32x64xf32>, vector<32x64xf32>, vector<32x64xf32>, vector<32x64xf32>, vector<32x64xf32>, vector<32x64xf32>, vector<32x64xf32> -> vector<288x64xf32>
    %cst_17 = arith.constant dense<0.000000e+00> : vector<32x64xf32>
    %43 = tpu.matmul %2, %42, %cst_17 {dimension_numbers = #tpu.dot_dimension_numbers<[1], [0], [0], [1], [0, 0, 1, 1], [], []>} : vector<32x288xf32>, vector<288x64xf32>, vector<32x64xf32> -> vector<32x64xf32>
    %44 = vector.broadcast %3 : vector<32x1xf32> to vector<32x64xf32>
    %45 = arith.addf %43, %44 : vector<32x64xf32>
    %c0_18 = arith.constant 0 : index
    %c0_19 = arith.constant 0 : index
    %46 = vector.load %arg4[%c0_18, %c0_19] : memref<16x288xf32, #tpu.memory_space<vmem>>, vector<16x288xf32>
    %cst_20 = arith.constant 0.000000e+00 : f32
    %47 = vector.broadcast %cst_20 : f32 to vector<32x9xf32>
    %48 = tpu.concatenate %47, %45, %47 in 1 : vector<32x9xf32>, vector<32x64xf32>, vector<32x9xf32> -> vector<32x82xf32>
    %49 = tpu.iota {dimensions = array<i32: 1>} : vector<32x64xi32>
    %c7_i32_21 = arith.constant 7 : i32
    %50 = vector.broadcast %c7_i32_21 : i32 to vector<32x64xi32>
    %51 = arith.andi %49, %50 : vector<32x64xi32>
    %52 = vector.extract_strided_slice %48 {offsets = [0, 0], sizes = [32, 64], strides = [1, 1]} : vector<32x82xf32> to vector<32x64xf32>
    %c0_i32_22 = arith.constant 0 : i32
    %53 = vector.broadcast %c0_i32_22 : i32 to vector<32x64xi32>
    %54 = arith.cmpi sgt, %51, %53 : vector<32x64xi32>
    %cst_23 = arith.constant 0.000000e+00 : f32
    %55 = vector.broadcast %cst_23 : f32 to vector<32x64xf32>
    %56 = arith.select %54, %52, %55 : vector<32x64xi1>, vector<32x64xf32>
    %57 = vector.extract_strided_slice %48 {offsets = [0, 1], sizes = [32, 64], strides = [1, 1]} : vector<32x82xf32> to vector<32x64xf32>
    %58 = vector.extract_strided_slice %48 {offsets = [0, 2], sizes = [32, 64], strides = [1, 1]} : vector<32x82xf32> to vector<32x64xf32>
    %c7_i32_24 = arith.constant 7 : i32
    %59 = vector.broadcast %c7_i32_24 : i32 to vector<32x64xi32>
    %60 = arith.cmpi slt, %51, %59 : vector<32x64xi32>
    %cst_25 = arith.constant 0.000000e+00 : f32
    %61 = vector.broadcast %cst_25 : f32 to vector<32x64xf32>
    %62 = arith.select %60, %58, %61 : vector<32x64xi1>, vector<32x64xf32>
    %63 = vector.extract_strided_slice %48 {offsets = [0, 8], sizes = [32, 64], strides = [1, 1]} : vector<32x82xf32> to vector<32x64xf32>
    %c0_i32_26 = arith.constant 0 : i32
    %64 = vector.broadcast %c0_i32_26 : i32 to vector<32x64xi32>
    %65 = arith.cmpi sgt, %51, %64 : vector<32x64xi32>
    %cst_27 = arith.constant 0.000000e+00 : f32
    %66 = vector.broadcast %cst_27 : f32 to vector<32x64xf32>
    %67 = arith.select %65, %63, %66 : vector<32x64xi1>, vector<32x64xf32>
    %68 = vector.extract_strided_slice %48 {offsets = [0, 9], sizes = [32, 64], strides = [1, 1]} : vector<32x82xf32> to vector<32x64xf32>
    %69 = vector.extract_strided_slice %48 {offsets = [0, 10], sizes = [32, 64], strides = [1, 1]} : vector<32x82xf32> to vector<32x64xf32>
    %c7_i32_28 = arith.constant 7 : i32
    %70 = vector.broadcast %c7_i32_28 : i32 to vector<32x64xi32>
    %71 = arith.cmpi slt, %51, %70 : vector<32x64xi32>
    %cst_29 = arith.constant 0.000000e+00 : f32
    %72 = vector.broadcast %cst_29 : f32 to vector<32x64xf32>
    %73 = arith.select %71, %69, %72 : vector<32x64xi1>, vector<32x64xf32>
    %74 = vector.extract_strided_slice %48 {offsets = [0, 16], sizes = [32, 64], strides = [1, 1]} : vector<32x82xf32> to vector<32x64xf32>
    %c0_i32_30 = arith.constant 0 : i32
    %75 = vector.broadcast %c0_i32_30 : i32 to vector<32x64xi32>
    %76 = arith.cmpi sgt, %51, %75 : vector<32x64xi32>
    %cst_31 = arith.constant 0.000000e+00 : f32
    %77 = vector.broadcast %cst_31 : f32 to vector<32x64xf32>
    %78 = arith.select %76, %74, %77 : vector<32x64xi1>, vector<32x64xf32>
    %79 = vector.extract_strided_slice %48 {offsets = [0, 17], sizes = [32, 64], strides = [1, 1]} : vector<32x82xf32> to vector<32x64xf32>
    %80 = vector.extract_strided_slice %48 {offsets = [0, 18], sizes = [32, 64], strides = [1, 1]} : vector<32x82xf32> to vector<32x64xf32>
    %c7_i32_32 = arith.constant 7 : i32
    %81 = vector.broadcast %c7_i32_32 : i32 to vector<32x64xi32>
    %82 = arith.cmpi slt, %51, %81 : vector<32x64xi32>
    %cst_33 = arith.constant 0.000000e+00 : f32
    %83 = vector.broadcast %cst_33 : f32 to vector<32x64xf32>
    %84 = arith.select %82, %80, %83 : vector<32x64xi1>, vector<32x64xf32>
    %85 = tpu.concatenate %56, %57, %62, %67, %68, %73, %78, %79, %84 in 0 : vector<32x64xf32>, vector<32x64xf32>, vector<32x64xf32>, vector<32x64xf32>, vector<32x64xf32>, vector<32x64xf32>, vector<32x64xf32>, vector<32x64xf32>, vector<32x64xf32> -> vector<288x64xf32>
    %cst_34 = arith.constant dense<0.000000e+00> : vector<16x64xf32>
    %86 = tpu.matmul %46, %85, %cst_34 {dimension_numbers = #tpu.dot_dimension_numbers<[1], [0], [0], [1], [0, 0, 1, 1], [], []>} : vector<16x288xf32>, vector<288x64xf32>, vector<16x64xf32> -> vector<16x64xf32>
    %cst_35 = arith.constant dense<0.000000e+00> : vector<16xf32>
    %87 = vector.multi_reduction <add>, %86, %cst_35 [1] : vector<16x64xf32> to vector<16xf32>
    %88 = vector.shape_cast %87 : vector<16xf32> to vector<16x1xf32>
    %cst_36 = arith.constant 6.400000e+01 : f32
    %89 = vector.broadcast %cst_36 : f32 to vector<16x1xf32>
    %90 = arith.divf %88, %89 : vector<16x1xf32>
    %91 = vector.broadcast %90 : vector<16x1xf32> to vector<16x64xf32>
    %92 = arith.subf %86, %91 : vector<16x64xf32>
    %93 = arith.mulf %92, %92 : vector<16x64xf32>
    %cst_37 = arith.constant dense<0.000000e+00> : vector<16xf32>
    %94 = vector.multi_reduction <add>, %93, %cst_37 [1] : vector<16x64xf32> to vector<16xf32>
    %95 = vector.shape_cast %94 : vector<16xf32> to vector<16x1xf32>
    %cst_38 = arith.constant 6.400000e+01 : f32
    %96 = vector.broadcast %cst_38 : f32 to vector<16x1xf32>
    %97 = arith.divf %95, %96 : vector<16x1xf32>
    %98 = vector.broadcast %90 : vector<16x1xf32> to vector<16x64xf32>
    %99 = arith.subf %86, %98 : vector<16x64xf32>
    %cst_39 = arith.constant 9.99999974E-6 : f32
    %100 = vector.broadcast %cst_39 : f32 to vector<16x1xf32>
    %101 = arith.addf %97, %100 : vector<16x1xf32>
    %102 = math.rsqrt %101 : vector<16x1xf32>
    %103 = vector.broadcast %102 : vector<16x1xf32> to vector<16x64xf32>
    %104 = arith.mulf %99, %103 : vector<16x64xf32>
    %105 = arith.negf %104 : vector<16x64xf32>
    %106 = math.exp %105 : vector<16x64xf32>
    %cst_40 = arith.constant 1.000000e+00 : f32
    %107 = vector.broadcast %cst_40 : f32 to vector<16x64xf32>
    %108 = arith.addf %107, %106 : vector<16x64xf32>
    %109 = arith.divf %107, %108 : vector<16x64xf32>
    %110 = arith.mulf %104, %109 : vector<16x64xf32>
    %c0_41 = arith.constant 0 : index
    %c0_42 = arith.constant 0 : index
    %111 = vector.load %arg5[%c0_41, %c0_42] : memref<16x144xf32, #tpu.memory_space<vmem>>, vector<16x144xf32>
    %cst_43 = arith.constant 0.000000e+00 : f32
    %112 = vector.broadcast %cst_43 : f32 to vector<16x9xf32>
    %113 = tpu.concatenate %112, %110, %112 in 1 : vector<16x9xf32>, vector<16x64xf32>, vector<16x9xf32> -> vector<16x82xf32>
    %114 = tpu.iota {dimensions = array<i32: 1>} : vector<16x64xi32>
    %c7_i32_44 = arith.constant 7 : i32
    %115 = vector.broadcast %c7_i32_44 : i32 to vector<16x64xi32>
    %116 = arith.andi %114, %115 : vector<16x64xi32>
    %117 = vector.extract_strided_slice %113 {offsets = [0, 0], sizes = [16, 64], strides = [1, 1]} : vector<16x82xf32> to vector<16x64xf32>
    %c0_i32_45 = arith.constant 0 : i32
    %118 = vector.broadcast %c0_i32_45 : i32 to vector<16x64xi32>
    %119 = arith.cmpi sgt, %116, %118 : vector<16x64xi32>
    %cst_46 = arith.constant 0.000000e+00 : f32
    %120 = vector.broadcast %cst_46 : f32 to vector<16x64xf32>
    %121 = arith.select %119, %117, %120 : vector<16x64xi1>, vector<16x64xf32>
    %122 = vector.extract_strided_slice %113 {offsets = [0, 1], sizes = [16, 64], strides = [1, 1]} : vector<16x82xf32> to vector<16x64xf32>
    %123 = vector.extract_strided_slice %113 {offsets = [0, 2], sizes = [16, 64], strides = [1, 1]} : vector<16x82xf32> to vector<16x64xf32>
    %c7_i32_47 = arith.constant 7 : i32
    %124 = vector.broadcast %c7_i32_47 : i32 to vector<16x64xi32>
    %125 = arith.cmpi slt, %116, %124 : vector<16x64xi32>
    %cst_48 = arith.constant 0.000000e+00 : f32
    %126 = vector.broadcast %cst_48 : f32 to vector<16x64xf32>
    %127 = arith.select %125, %123, %126 : vector<16x64xi1>, vector<16x64xf32>
    %128 = vector.extract_strided_slice %113 {offsets = [0, 8], sizes = [16, 64], strides = [1, 1]} : vector<16x82xf32> to vector<16x64xf32>
    %c0_i32_49 = arith.constant 0 : i32
    %129 = vector.broadcast %c0_i32_49 : i32 to vector<16x64xi32>
    %130 = arith.cmpi sgt, %116, %129 : vector<16x64xi32>
    %cst_50 = arith.constant 0.000000e+00 : f32
    %131 = vector.broadcast %cst_50 : f32 to vector<16x64xf32>
    %132 = arith.select %130, %128, %131 : vector<16x64xi1>, vector<16x64xf32>
    %133 = vector.extract_strided_slice %113 {offsets = [0, 9], sizes = [16, 64], strides = [1, 1]} : vector<16x82xf32> to vector<16x64xf32>
    %134 = vector.extract_strided_slice %113 {offsets = [0, 10], sizes = [16, 64], strides = [1, 1]} : vector<16x82xf32> to vector<16x64xf32>
    %c7_i32_51 = arith.constant 7 : i32
    %135 = vector.broadcast %c7_i32_51 : i32 to vector<16x64xi32>
    %136 = arith.cmpi slt, %116, %135 : vector<16x64xi32>
    %cst_52 = arith.constant 0.000000e+00 : f32
    %137 = vector.broadcast %cst_52 : f32 to vector<16x64xf32>
    %138 = arith.select %136, %134, %137 : vector<16x64xi1>, vector<16x64xf32>
    %139 = vector.extract_strided_slice %113 {offsets = [0, 16], sizes = [16, 64], strides = [1, 1]} : vector<16x82xf32> to vector<16x64xf32>
    %c0_i32_53 = arith.constant 0 : i32
    %140 = vector.broadcast %c0_i32_53 : i32 to vector<16x64xi32>
    %141 = arith.cmpi sgt, %116, %140 : vector<16x64xi32>
    %cst_54 = arith.constant 0.000000e+00 : f32
    %142 = vector.broadcast %cst_54 : f32 to vector<16x64xf32>
    %143 = arith.select %141, %139, %142 : vector<16x64xi1>, vector<16x64xf32>
    %144 = vector.extract_strided_slice %113 {offsets = [0, 17], sizes = [16, 64], strides = [1, 1]} : vector<16x82xf32> to vector<16x64xf32>
    %145 = vector.extract_strided_slice %113 {offsets = [0, 18], sizes = [16, 64], strides = [1, 1]} : vector<16x82xf32> to vector<16x64xf32>
    %c7_i32_55 = arith.constant 7 : i32
    %146 = vector.broadcast %c7_i32_55 : i32 to vector<16x64xi32>
    %147 = arith.cmpi slt, %116, %146 : vector<16x64xi32>
    %cst_56 = arith.constant 0.000000e+00 : f32
    %148 = vector.broadcast %cst_56 : f32 to vector<16x64xf32>
    %149 = arith.select %147, %145, %148 : vector<16x64xi1>, vector<16x64xf32>
    %150 = tpu.concatenate %121, %122, %127, %132, %133, %138, %143, %144, %149 in 0 : vector<16x64xf32>, vector<16x64xf32>, vector<16x64xf32>, vector<16x64xf32>, vector<16x64xf32>, vector<16x64xf32>, vector<16x64xf32>, vector<16x64xf32>, vector<16x64xf32> -> vector<144x64xf32>
    %cst_57 = arith.constant dense<0.000000e+00> : vector<16x64xf32>
    %151 = tpu.matmul %111, %150, %cst_57 {dimension_numbers = #tpu.dot_dimension_numbers<[1], [0], [0], [1], [0, 0, 1, 1], [], []>} : vector<16x144xf32>, vector<144x64xf32>, vector<16x64xf32> -> vector<16x64xf32>
    %cst_58 = arith.constant dense<0.000000e+00> : vector<16xf32>
    %152 = vector.multi_reduction <add>, %151, %cst_58 [1] : vector<16x64xf32> to vector<16xf32>
    %153 = vector.shape_cast %152 : vector<16xf32> to vector<16x1xf32>
    %cst_59 = arith.constant 6.400000e+01 : f32
    %154 = vector.broadcast %cst_59 : f32 to vector<16x1xf32>
    %155 = arith.divf %153, %154 : vector<16x1xf32>
    %156 = vector.broadcast %155 : vector<16x1xf32> to vector<16x64xf32>
    %157 = arith.subf %151, %156 : vector<16x64xf32>
    %158 = arith.mulf %157, %157 : vector<16x64xf32>
    %cst_60 = arith.constant dense<0.000000e+00> : vector<16xf32>
    %159 = vector.multi_reduction <add>, %158, %cst_60 [1] : vector<16x64xf32> to vector<16xf32>
    %160 = vector.shape_cast %159 : vector<16xf32> to vector<16x1xf32>
    %cst_61 = arith.constant 6.400000e+01 : f32
    %161 = vector.broadcast %cst_61 : f32 to vector<16x1xf32>
    %162 = arith.divf %160, %161 : vector<16x1xf32>
    %163 = vector.broadcast %155 : vector<16x1xf32> to vector<16x64xf32>
    %164 = arith.subf %151, %163 : vector<16x64xf32>
    %cst_62 = arith.constant 9.99999974E-6 : f32
    %165 = vector.broadcast %cst_62 : f32 to vector<16x1xf32>
    %166 = arith.addf %162, %165 : vector<16x1xf32>
    %167 = math.rsqrt %166 : vector<16x1xf32>
    %168 = vector.broadcast %167 : vector<16x1xf32> to vector<16x64xf32>
    %169 = arith.mulf %164, %168 : vector<16x64xf32>
    %170 = arith.negf %169 : vector<16x64xf32>
    %171 = math.exp %170 : vector<16x64xf32>
    %cst_63 = arith.constant 1.000000e+00 : f32
    %172 = vector.broadcast %cst_63 : f32 to vector<16x64xf32>
    %173 = arith.addf %172, %171 : vector<16x64xf32>
    %174 = arith.divf %172, %173 : vector<16x64xf32>
    %175 = arith.mulf %169, %174 : vector<16x64xf32>
    %c0_64 = arith.constant 0 : index
    %c0_65 = arith.constant 0 : index
    %176 = vector.load %arg6[%c0_64, %c0_65] : memref<16x32xf32, #tpu.memory_space<vmem>>, vector<16x32xf32>
    %cst_66 = arith.constant dense<0.000000e+00> : vector<16x64xf32>
    %177 = tpu.matmul %176, %45, %cst_66 {dimension_numbers = #tpu.dot_dimension_numbers<[1], [0], [0], [1], [0, 0, 1, 1], [], []>} : vector<16x32xf32>, vector<32x64xf32>, vector<16x64xf32> -> vector<16x64xf32>
    %c0_67 = arith.constant 0 : index
    %c0_68 = arith.constant 0 : index
    %178 = vector.load %arg7[%c0_67, %c0_68] : memref<16x1xf32, #tpu.memory_space<vmem>>, vector<16x1xf32>
    %179 = vector.broadcast %178 : vector<16x1xf32> to vector<16x64xf32>
    %180 = arith.addf %177, %179 : vector<16x64xf32>
    %181 = arith.addf %175, %180 : vector<16x64xf32>
    %c0_69 = arith.constant 0 : index
    %c0_70 = arith.constant 0 : index
    %c0_71 = arith.constant 0 : index
    %182 = vector.load %arg8[%c0_69, %c0_70, %c0_71] : memref<1x16x64xf32, #tpu.memory_space<vmem>>, vector<1x16x64xf32>
    %183 = vector.shape_cast %182 : vector<1x16x64xf32> to vector<16x64xf32>
    %184 = vector.shape_cast %181 : vector<16x64xf32> to vector<1x16x64xf32>
    tpu.vector_store %arg8[%c0_69, %c0_70, %c0_71], %184 {strides = array<i32>} : memref<1x16x64xf32, #tpu.memory_space<vmem>>, vector<1x16x64xf32>,
    return
  }
  func.func @transform_0(%arg0: i32) -> (i32, i32, i32) {
    %c0_i32 = arith.constant 0 : i32
    %c0_i32_0 = arith.constant 0 : i32
    %c0_i32_1 = arith.constant 0 : i32
    return %arg0, %c0_i32, %c0_i32_0 : i32, i32, i32
  }
  func.func @transform_1(%arg0: i32) -> (i32, i32) {
    %c0_i32 = arith.constant 0 : i32
    %c0_i32_0 = arith.constant 0 : i32
    %c0_i32_1 = arith.constant 0 : i32
    return %c0_i32, %c0_i32_0 : i32, i32
  }
  func.func @transform_2(%arg0: i32) -> (i32, i32) {
    %c0_i32 = arith.constant 0 : i32
    %c0_i32_0 = arith.constant 0 : i32
    %c0_i32_1 = arith.constant 0 : i32
    return %c0_i32, %c0_i32_0 : i32, i32
  }
  func.func @transform_3(%arg0: i32) -> (i32, i32) {
    %c0_i32 = arith.constant 0 : i32
    %c0_i32_0 = arith.constant 0 : i32
    %c0_i32_1 = arith.constant 0 : i32
    return %c0_i32, %c0_i32_0 : i32, i32
  }
  func.func @transform_4(%arg0: i32) -> (i32, i32) {
    %c0_i32 = arith.constant 0 : i32
    %c0_i32_0 = arith.constant 0 : i32
    %c0_i32_1 = arith.constant 0 : i32
    return %c0_i32, %c0_i32_0 : i32, i32
  }
  func.func @transform_5(%arg0: i32) -> (i32, i32) {
    %c0_i32 = arith.constant 0 : i32
    %c0_i32_0 = arith.constant 0 : i32
    %c0_i32_1 = arith.constant 0 : i32
    return %c0_i32, %c0_i32_0 : i32, i32
  }
  func.func @transform_6(%arg0: i32) -> (i32, i32) {
    %c0_i32 = arith.constant 0 : i32
    %c0_i32_0 = arith.constant 0 : i32
    %c0_i32_1 = arith.constant 0 : i32
    return %c0_i32, %c0_i32_0 : i32, i32
  }
  func.func @transform_7(%arg0: i32) -> (i32, i32, i32) {
    %c0_i32 = arith.constant 0 : i32
    %c0_i32_0 = arith.constant 0 : i32
    %c0_i32_1 = arith.constant 0 : i32
    return %arg0, %c0_i32, %c0_i32_0 : i32, i32, i32
  }
}

module attributes {stable_mosaic.version = 11 : i64} {
  func.func @_stage_kernel(%arg0: i32, %arg1: memref<1x16x256xf32, #tpu.memory_space<vmem>>, %arg2: memref<16x144xf32, #tpu.memory_space<vmem>>, %arg3: memref<16x1xf32, #tpu.memory_space<vmem>>, %arg4: memref<8x144xf32, #tpu.memory_space<vmem>>, %arg5: memref<8x72xf32, #tpu.memory_space<vmem>>, %arg6: memref<8x16xf32, #tpu.memory_space<vmem>>, %arg7: memref<8x1xf32, #tpu.memory_space<vmem>>, %arg8: memref<1x8x256xf32, #tpu.memory_space<vmem>>) attributes {dimension_semantics = [#tpu.dimension_semantics<parallel>], iteration_bounds = array<i64: 2>, scalar_prefetch = 0 : i64, scratch_operands = 0 : i64, tpu.core_type = #tpu.core_type<tc>, window_params = [{transform_indices = @transform_0, window_bounds = array<i64: 1, 16, 256>}, {pipeline_mode = #tpu.pipeline_mode<synchronous>, transform_indices = @transform_1, window_bounds = array<i64: 16, 144>}, {pipeline_mode = #tpu.pipeline_mode<synchronous>, transform_indices = @transform_2, window_bounds = array<i64: 16, 1>}, {pipeline_mode = #tpu.pipeline_mode<synchronous>, transform_indices = @transform_3, window_bounds = array<i64: 8, 144>}, {pipeline_mode = #tpu.pipeline_mode<synchronous>, transform_indices = @transform_4, window_bounds = array<i64: 8, 72>}, {pipeline_mode = #tpu.pipeline_mode<synchronous>, transform_indices = @transform_5, window_bounds = array<i64: 8, 16>}, {pipeline_mode = #tpu.pipeline_mode<synchronous>, transform_indices = @transform_6, window_bounds = array<i64: 8, 1>}, {transform_indices = @transform_7, window_bounds = array<i64: 1, 8, 256>}]} {
    %c0 = arith.constant 0 : index
    %c0_0 = arith.constant 0 : index
    %c0_1 = arith.constant 0 : index
    %0 = vector.load %arg1[%c0, %c0_0, %c0_1] : memref<1x16x256xf32, #tpu.memory_space<vmem>>, vector<1x16x256xf32>
    %1 = vector.shape_cast %0 : vector<1x16x256xf32> to vector<16x256xf32>
    %c0_2 = arith.constant 0 : index
    %c0_3 = arith.constant 0 : index
    %2 = vector.load %arg2[%c0_2, %c0_3] : memref<16x144xf32, #tpu.memory_space<vmem>>, vector<16x144xf32>
    %c0_4 = arith.constant 0 : index
    %c0_5 = arith.constant 0 : index
    %3 = vector.load %arg3[%c0_4, %c0_5] : memref<16x1xf32, #tpu.memory_space<vmem>>, vector<16x1xf32>
    %cst = arith.constant 0.000000e+00 : f32
    %4 = vector.broadcast %cst : f32 to vector<16x17xf32>
    %5 = tpu.concatenate %4, %1, %4 in 1 : vector<16x17xf32>, vector<16x256xf32>, vector<16x17xf32> -> vector<16x290xf32>
    %6 = tpu.iota {dimensions = array<i32: 1>} : vector<16x256xi32>
    %c15_i32 = arith.constant 15 : i32
    %7 = vector.broadcast %c15_i32 : i32 to vector<16x256xi32>
    %8 = arith.andi %6, %7 : vector<16x256xi32>
    %9 = vector.extract_strided_slice %5 {offsets = [0, 0], sizes = [16, 256], strides = [1, 1]} : vector<16x290xf32> to vector<16x256xf32>
    %c0_i32 = arith.constant 0 : i32
    %10 = vector.broadcast %c0_i32 : i32 to vector<16x256xi32>
    %11 = arith.cmpi sgt, %8, %10 : vector<16x256xi32>
    %cst_6 = arith.constant 0.000000e+00 : f32
    %12 = vector.broadcast %cst_6 : f32 to vector<16x256xf32>
    %13 = arith.select %11, %9, %12 : vector<16x256xi1>, vector<16x256xf32>
    %14 = vector.extract_strided_slice %5 {offsets = [0, 1], sizes = [16, 256], strides = [1, 1]} : vector<16x290xf32> to vector<16x256xf32>
    %15 = vector.extract_strided_slice %5 {offsets = [0, 2], sizes = [16, 256], strides = [1, 1]} : vector<16x290xf32> to vector<16x256xf32>
    %c15_i32_7 = arith.constant 15 : i32
    %16 = vector.broadcast %c15_i32_7 : i32 to vector<16x256xi32>
    %17 = arith.cmpi slt, %8, %16 : vector<16x256xi32>
    %cst_8 = arith.constant 0.000000e+00 : f32
    %18 = vector.broadcast %cst_8 : f32 to vector<16x256xf32>
    %19 = arith.select %17, %15, %18 : vector<16x256xi1>, vector<16x256xf32>
    %20 = vector.extract_strided_slice %5 {offsets = [0, 16], sizes = [16, 256], strides = [1, 1]} : vector<16x290xf32> to vector<16x256xf32>
    %c0_i32_9 = arith.constant 0 : i32
    %21 = vector.broadcast %c0_i32_9 : i32 to vector<16x256xi32>
    %22 = arith.cmpi sgt, %8, %21 : vector<16x256xi32>
    %cst_10 = arith.constant 0.000000e+00 : f32
    %23 = vector.broadcast %cst_10 : f32 to vector<16x256xf32>
    %24 = arith.select %22, %20, %23 : vector<16x256xi1>, vector<16x256xf32>
    %25 = vector.extract_strided_slice %5 {offsets = [0, 17], sizes = [16, 256], strides = [1, 1]} : vector<16x290xf32> to vector<16x256xf32>
    %26 = vector.extract_strided_slice %5 {offsets = [0, 18], sizes = [16, 256], strides = [1, 1]} : vector<16x290xf32> to vector<16x256xf32>
    %c15_i32_11 = arith.constant 15 : i32
    %27 = vector.broadcast %c15_i32_11 : i32 to vector<16x256xi32>
    %28 = arith.cmpi slt, %8, %27 : vector<16x256xi32>
    %cst_12 = arith.constant 0.000000e+00 : f32
    %29 = vector.broadcast %cst_12 : f32 to vector<16x256xf32>
    %30 = arith.select %28, %26, %29 : vector<16x256xi1>, vector<16x256xf32>
    %31 = vector.extract_strided_slice %5 {offsets = [0, 32], sizes = [16, 256], strides = [1, 1]} : vector<16x290xf32> to vector<16x256xf32>
    %c0_i32_13 = arith.constant 0 : i32
    %32 = vector.broadcast %c0_i32_13 : i32 to vector<16x256xi32>
    %33 = arith.cmpi sgt, %8, %32 : vector<16x256xi32>
    %cst_14 = arith.constant 0.000000e+00 : f32
    %34 = vector.broadcast %cst_14 : f32 to vector<16x256xf32>
    %35 = arith.select %33, %31, %34 : vector<16x256xi1>, vector<16x256xf32>
    %36 = vector.extract_strided_slice %5 {offsets = [0, 33], sizes = [16, 256], strides = [1, 1]} : vector<16x290xf32> to vector<16x256xf32>
    %37 = vector.extract_strided_slice %5 {offsets = [0, 34], sizes = [16, 256], strides = [1, 1]} : vector<16x290xf32> to vector<16x256xf32>
    %c15_i32_15 = arith.constant 15 : i32
    %38 = vector.broadcast %c15_i32_15 : i32 to vector<16x256xi32>
    %39 = arith.cmpi slt, %8, %38 : vector<16x256xi32>
    %cst_16 = arith.constant 0.000000e+00 : f32
    %40 = vector.broadcast %cst_16 : f32 to vector<16x256xf32>
    %41 = arith.select %39, %37, %40 : vector<16x256xi1>, vector<16x256xf32>
    %42 = tpu.concatenate %13, %14, %19, %24, %25, %30, %35, %36, %41 in 0 : vector<16x256xf32>, vector<16x256xf32>, vector<16x256xf32>, vector<16x256xf32>, vector<16x256xf32>, vector<16x256xf32>, vector<16x256xf32>, vector<16x256xf32>, vector<16x256xf32> -> vector<144x256xf32>
    %cst_17 = arith.constant dense<0.000000e+00> : vector<16x256xf32>
    %43 = tpu.matmul %2, %42, %cst_17 {dimension_numbers = #tpu.dot_dimension_numbers<[1], [0], [0], [1], [0, 0, 1, 1], [], []>} : vector<16x144xf32>, vector<144x256xf32>, vector<16x256xf32> -> vector<16x256xf32>
    %44 = vector.broadcast %3 : vector<16x1xf32> to vector<16x256xf32>
    %45 = arith.addf %43, %44 : vector<16x256xf32>
    %c0_18 = arith.constant 0 : index
    %c0_19 = arith.constant 0 : index
    %46 = vector.load %arg4[%c0_18, %c0_19] : memref<8x144xf32, #tpu.memory_space<vmem>>, vector<8x144xf32>
    %cst_20 = arith.constant 0.000000e+00 : f32
    %47 = vector.broadcast %cst_20 : f32 to vector<16x17xf32>
    %48 = tpu.concatenate %47, %45, %47 in 1 : vector<16x17xf32>, vector<16x256xf32>, vector<16x17xf32> -> vector<16x290xf32>
    %49 = tpu.iota {dimensions = array<i32: 1>} : vector<16x256xi32>
    %c15_i32_21 = arith.constant 15 : i32
    %50 = vector.broadcast %c15_i32_21 : i32 to vector<16x256xi32>
    %51 = arith.andi %49, %50 : vector<16x256xi32>
    %52 = vector.extract_strided_slice %48 {offsets = [0, 0], sizes = [16, 256], strides = [1, 1]} : vector<16x290xf32> to vector<16x256xf32>
    %c0_i32_22 = arith.constant 0 : i32
    %53 = vector.broadcast %c0_i32_22 : i32 to vector<16x256xi32>
    %54 = arith.cmpi sgt, %51, %53 : vector<16x256xi32>
    %cst_23 = arith.constant 0.000000e+00 : f32
    %55 = vector.broadcast %cst_23 : f32 to vector<16x256xf32>
    %56 = arith.select %54, %52, %55 : vector<16x256xi1>, vector<16x256xf32>
    %57 = vector.extract_strided_slice %48 {offsets = [0, 1], sizes = [16, 256], strides = [1, 1]} : vector<16x290xf32> to vector<16x256xf32>
    %58 = vector.extract_strided_slice %48 {offsets = [0, 2], sizes = [16, 256], strides = [1, 1]} : vector<16x290xf32> to vector<16x256xf32>
    %c15_i32_24 = arith.constant 15 : i32
    %59 = vector.broadcast %c15_i32_24 : i32 to vector<16x256xi32>
    %60 = arith.cmpi slt, %51, %59 : vector<16x256xi32>
    %cst_25 = arith.constant 0.000000e+00 : f32
    %61 = vector.broadcast %cst_25 : f32 to vector<16x256xf32>
    %62 = arith.select %60, %58, %61 : vector<16x256xi1>, vector<16x256xf32>
    %63 = vector.extract_strided_slice %48 {offsets = [0, 16], sizes = [16, 256], strides = [1, 1]} : vector<16x290xf32> to vector<16x256xf32>
    %c0_i32_26 = arith.constant 0 : i32
    %64 = vector.broadcast %c0_i32_26 : i32 to vector<16x256xi32>
    %65 = arith.cmpi sgt, %51, %64 : vector<16x256xi32>
    %cst_27 = arith.constant 0.000000e+00 : f32
    %66 = vector.broadcast %cst_27 : f32 to vector<16x256xf32>
    %67 = arith.select %65, %63, %66 : vector<16x256xi1>, vector<16x256xf32>
    %68 = vector.extract_strided_slice %48 {offsets = [0, 17], sizes = [16, 256], strides = [1, 1]} : vector<16x290xf32> to vector<16x256xf32>
    %69 = vector.extract_strided_slice %48 {offsets = [0, 18], sizes = [16, 256], strides = [1, 1]} : vector<16x290xf32> to vector<16x256xf32>
    %c15_i32_28 = arith.constant 15 : i32
    %70 = vector.broadcast %c15_i32_28 : i32 to vector<16x256xi32>
    %71 = arith.cmpi slt, %51, %70 : vector<16x256xi32>
    %cst_29 = arith.constant 0.000000e+00 : f32
    %72 = vector.broadcast %cst_29 : f32 to vector<16x256xf32>
    %73 = arith.select %71, %69, %72 : vector<16x256xi1>, vector<16x256xf32>
    %74 = vector.extract_strided_slice %48 {offsets = [0, 32], sizes = [16, 256], strides = [1, 1]} : vector<16x290xf32> to vector<16x256xf32>
    %c0_i32_30 = arith.constant 0 : i32
    %75 = vector.broadcast %c0_i32_30 : i32 to vector<16x256xi32>
    %76 = arith.cmpi sgt, %51, %75 : vector<16x256xi32>
    %cst_31 = arith.constant 0.000000e+00 : f32
    %77 = vector.broadcast %cst_31 : f32 to vector<16x256xf32>
    %78 = arith.select %76, %74, %77 : vector<16x256xi1>, vector<16x256xf32>
    %79 = vector.extract_strided_slice %48 {offsets = [0, 33], sizes = [16, 256], strides = [1, 1]} : vector<16x290xf32> to vector<16x256xf32>
    %80 = vector.extract_strided_slice %48 {offsets = [0, 34], sizes = [16, 256], strides = [1, 1]} : vector<16x290xf32> to vector<16x256xf32>
    %c15_i32_32 = arith.constant 15 : i32
    %81 = vector.broadcast %c15_i32_32 : i32 to vector<16x256xi32>
    %82 = arith.cmpi slt, %51, %81 : vector<16x256xi32>
    %cst_33 = arith.constant 0.000000e+00 : f32
    %83 = vector.broadcast %cst_33 : f32 to vector<16x256xf32>
    %84 = arith.select %82, %80, %83 : vector<16x256xi1>, vector<16x256xf32>
    %85 = tpu.concatenate %56, %57, %62, %67, %68, %73, %78, %79, %84 in 0 : vector<16x256xf32>, vector<16x256xf32>, vector<16x256xf32>, vector<16x256xf32>, vector<16x256xf32>, vector<16x256xf32>, vector<16x256xf32>, vector<16x256xf32>, vector<16x256xf32> -> vector<144x256xf32>
    %cst_34 = arith.constant dense<0.000000e+00> : vector<8x256xf32>
    %86 = tpu.matmul %46, %85, %cst_34 {dimension_numbers = #tpu.dot_dimension_numbers<[1], [0], [0], [1], [0, 0, 1, 1], [], []>} : vector<8x144xf32>, vector<144x256xf32>, vector<8x256xf32> -> vector<8x256xf32>
    %cst_35 = arith.constant dense<0.000000e+00> : vector<8xf32>
    %87 = vector.multi_reduction <add>, %86, %cst_35 [1] : vector<8x256xf32> to vector<8xf32>
    %88 = vector.shape_cast %87 : vector<8xf32> to vector<8x1xf32>
    %cst_36 = arith.constant 2.560000e+02 : f32
    %89 = vector.broadcast %cst_36 : f32 to vector<8x1xf32>
    %90 = arith.divf %88, %89 : vector<8x1xf32>
    %91 = vector.broadcast %90 : vector<8x1xf32> to vector<8x256xf32>
    %92 = arith.subf %86, %91 : vector<8x256xf32>
    %93 = arith.mulf %92, %92 : vector<8x256xf32>
    %cst_37 = arith.constant dense<0.000000e+00> : vector<8xf32>
    %94 = vector.multi_reduction <add>, %93, %cst_37 [1] : vector<8x256xf32> to vector<8xf32>
    %95 = vector.shape_cast %94 : vector<8xf32> to vector<8x1xf32>
    %cst_38 = arith.constant 2.560000e+02 : f32
    %96 = vector.broadcast %cst_38 : f32 to vector<8x1xf32>
    %97 = arith.divf %95, %96 : vector<8x1xf32>
    %98 = vector.broadcast %90 : vector<8x1xf32> to vector<8x256xf32>
    %99 = arith.subf %86, %98 : vector<8x256xf32>
    %cst_39 = arith.constant 9.99999974E-6 : f32
    %100 = vector.broadcast %cst_39 : f32 to vector<8x1xf32>
    %101 = arith.addf %97, %100 : vector<8x1xf32>
    %102 = math.rsqrt %101 : vector<8x1xf32>
    %103 = vector.broadcast %102 : vector<8x1xf32> to vector<8x256xf32>
    %104 = arith.mulf %99, %103 : vector<8x256xf32>
    %105 = arith.negf %104 : vector<8x256xf32>
    %106 = math.exp %105 : vector<8x256xf32>
    %cst_40 = arith.constant 1.000000e+00 : f32
    %107 = vector.broadcast %cst_40 : f32 to vector<8x256xf32>
    %108 = arith.addf %107, %106 : vector<8x256xf32>
    %109 = arith.divf %107, %108 : vector<8x256xf32>
    %110 = arith.mulf %104, %109 : vector<8x256xf32>
    %c0_41 = arith.constant 0 : index
    %c0_42 = arith.constant 0 : index
    %111 = vector.load %arg5[%c0_41, %c0_42] : memref<8x72xf32, #tpu.memory_space<vmem>>, vector<8x72xf32>
    %cst_43 = arith.constant 0.000000e+00 : f32
    %112 = vector.broadcast %cst_43 : f32 to vector<8x17xf32>
    %113 = tpu.concatenate %112, %110, %112 in 1 : vector<8x17xf32>, vector<8x256xf32>, vector<8x17xf32> -> vector<8x290xf32>
    %114 = tpu.iota {dimensions = array<i32: 1>} : vector<8x256xi32>
    %c15_i32_44 = arith.constant 15 : i32
    %115 = vector.broadcast %c15_i32_44 : i32 to vector<8x256xi32>
    %116 = arith.andi %114, %115 : vector<8x256xi32>
    %117 = vector.extract_strided_slice %113 {offsets = [0, 0], sizes = [8, 256], strides = [1, 1]} : vector<8x290xf32> to vector<8x256xf32>
    %c0_i32_45 = arith.constant 0 : i32
    %118 = vector.broadcast %c0_i32_45 : i32 to vector<8x256xi32>
    %119 = arith.cmpi sgt, %116, %118 : vector<8x256xi32>
    %cst_46 = arith.constant 0.000000e+00 : f32
    %120 = vector.broadcast %cst_46 : f32 to vector<8x256xf32>
    %121 = arith.select %119, %117, %120 : vector<8x256xi1>, vector<8x256xf32>
    %122 = vector.extract_strided_slice %113 {offsets = [0, 1], sizes = [8, 256], strides = [1, 1]} : vector<8x290xf32> to vector<8x256xf32>
    %123 = vector.extract_strided_slice %113 {offsets = [0, 2], sizes = [8, 256], strides = [1, 1]} : vector<8x290xf32> to vector<8x256xf32>
    %c15_i32_47 = arith.constant 15 : i32
    %124 = vector.broadcast %c15_i32_47 : i32 to vector<8x256xi32>
    %125 = arith.cmpi slt, %116, %124 : vector<8x256xi32>
    %cst_48 = arith.constant 0.000000e+00 : f32
    %126 = vector.broadcast %cst_48 : f32 to vector<8x256xf32>
    %127 = arith.select %125, %123, %126 : vector<8x256xi1>, vector<8x256xf32>
    %128 = vector.extract_strided_slice %113 {offsets = [0, 16], sizes = [8, 256], strides = [1, 1]} : vector<8x290xf32> to vector<8x256xf32>
    %c0_i32_49 = arith.constant 0 : i32
    %129 = vector.broadcast %c0_i32_49 : i32 to vector<8x256xi32>
    %130 = arith.cmpi sgt, %116, %129 : vector<8x256xi32>
    %cst_50 = arith.constant 0.000000e+00 : f32
    %131 = vector.broadcast %cst_50 : f32 to vector<8x256xf32>
    %132 = arith.select %130, %128, %131 : vector<8x256xi1>, vector<8x256xf32>
    %133 = vector.extract_strided_slice %113 {offsets = [0, 17], sizes = [8, 256], strides = [1, 1]} : vector<8x290xf32> to vector<8x256xf32>
    %134 = vector.extract_strided_slice %113 {offsets = [0, 18], sizes = [8, 256], strides = [1, 1]} : vector<8x290xf32> to vector<8x256xf32>
    %c15_i32_51 = arith.constant 15 : i32
    %135 = vector.broadcast %c15_i32_51 : i32 to vector<8x256xi32>
    %136 = arith.cmpi slt, %116, %135 : vector<8x256xi32>
    %cst_52 = arith.constant 0.000000e+00 : f32
    %137 = vector.broadcast %cst_52 : f32 to vector<8x256xf32>
    %138 = arith.select %136, %134, %137 : vector<8x256xi1>, vector<8x256xf32>
    %139 = vector.extract_strided_slice %113 {offsets = [0, 32], sizes = [8, 256], strides = [1, 1]} : vector<8x290xf32> to vector<8x256xf32>
    %c0_i32_53 = arith.constant 0 : i32
    %140 = vector.broadcast %c0_i32_53 : i32 to vector<8x256xi32>
    %141 = arith.cmpi sgt, %116, %140 : vector<8x256xi32>
    %cst_54 = arith.constant 0.000000e+00 : f32
    %142 = vector.broadcast %cst_54 : f32 to vector<8x256xf32>
    %143 = arith.select %141, %139, %142 : vector<8x256xi1>, vector<8x256xf32>
    %144 = vector.extract_strided_slice %113 {offsets = [0, 33], sizes = [8, 256], strides = [1, 1]} : vector<8x290xf32> to vector<8x256xf32>
    %145 = vector.extract_strided_slice %113 {offsets = [0, 34], sizes = [8, 256], strides = [1, 1]} : vector<8x290xf32> to vector<8x256xf32>
    %c15_i32_55 = arith.constant 15 : i32
    %146 = vector.broadcast %c15_i32_55 : i32 to vector<8x256xi32>
    %147 = arith.cmpi slt, %116, %146 : vector<8x256xi32>
    %cst_56 = arith.constant 0.000000e+00 : f32
    %148 = vector.broadcast %cst_56 : f32 to vector<8x256xf32>
    %149 = arith.select %147, %145, %148 : vector<8x256xi1>, vector<8x256xf32>
    %150 = tpu.concatenate %121, %122, %127, %132, %133, %138, %143, %144, %149 in 0 : vector<8x256xf32>, vector<8x256xf32>, vector<8x256xf32>, vector<8x256xf32>, vector<8x256xf32>, vector<8x256xf32>, vector<8x256xf32>, vector<8x256xf32>, vector<8x256xf32> -> vector<72x256xf32>
    %cst_57 = arith.constant dense<0.000000e+00> : vector<8x256xf32>
    %151 = tpu.matmul %111, %150, %cst_57 {dimension_numbers = #tpu.dot_dimension_numbers<[1], [0], [0], [1], [0, 0, 1, 1], [], []>} : vector<8x72xf32>, vector<72x256xf32>, vector<8x256xf32> -> vector<8x256xf32>
    %cst_58 = arith.constant dense<0.000000e+00> : vector<8xf32>
    %152 = vector.multi_reduction <add>, %151, %cst_58 [1] : vector<8x256xf32> to vector<8xf32>
    %153 = vector.shape_cast %152 : vector<8xf32> to vector<8x1xf32>
    %cst_59 = arith.constant 2.560000e+02 : f32
    %154 = vector.broadcast %cst_59 : f32 to vector<8x1xf32>
    %155 = arith.divf %153, %154 : vector<8x1xf32>
    %156 = vector.broadcast %155 : vector<8x1xf32> to vector<8x256xf32>
    %157 = arith.subf %151, %156 : vector<8x256xf32>
    %158 = arith.mulf %157, %157 : vector<8x256xf32>
    %cst_60 = arith.constant dense<0.000000e+00> : vector<8xf32>
    %159 = vector.multi_reduction <add>, %158, %cst_60 [1] : vector<8x256xf32> to vector<8xf32>
    %160 = vector.shape_cast %159 : vector<8xf32> to vector<8x1xf32>
    %cst_61 = arith.constant 2.560000e+02 : f32
    %161 = vector.broadcast %cst_61 : f32 to vector<8x1xf32>
    %162 = arith.divf %160, %161 : vector<8x1xf32>
    %163 = vector.broadcast %155 : vector<8x1xf32> to vector<8x256xf32>
    %164 = arith.subf %151, %163 : vector<8x256xf32>
    %cst_62 = arith.constant 9.99999974E-6 : f32
    %165 = vector.broadcast %cst_62 : f32 to vector<8x1xf32>
    %166 = arith.addf %162, %165 : vector<8x1xf32>
    %167 = math.rsqrt %166 : vector<8x1xf32>
    %168 = vector.broadcast %167 : vector<8x1xf32> to vector<8x256xf32>
    %169 = arith.mulf %164, %168 : vector<8x256xf32>
    %170 = arith.negf %169 : vector<8x256xf32>
    %171 = math.exp %170 : vector<8x256xf32>
    %cst_63 = arith.constant 1.000000e+00 : f32
    %172 = vector.broadcast %cst_63 : f32 to vector<8x256xf32>
    %173 = arith.addf %172, %171 : vector<8x256xf32>
    %174 = arith.divf %172, %173 : vector<8x256xf32>
    %175 = arith.mulf %169, %174 : vector<8x256xf32>
    %c0_64 = arith.constant 0 : index
    %c0_65 = arith.constant 0 : index
    %176 = vector.load %arg6[%c0_64, %c0_65] : memref<8x16xf32, #tpu.memory_space<vmem>>, vector<8x16xf32>
    %cst_66 = arith.constant dense<0.000000e+00> : vector<8x256xf32>
    %177 = tpu.matmul %176, %45, %cst_66 {dimension_numbers = #tpu.dot_dimension_numbers<[1], [0], [0], [1], [0, 0, 1, 1], [], []>} : vector<8x16xf32>, vector<16x256xf32>, vector<8x256xf32> -> vector<8x256xf32>
    %c0_67 = arith.constant 0 : index
    %c0_68 = arith.constant 0 : index
    %178 = vector.load %arg7[%c0_67, %c0_68] : memref<8x1xf32, #tpu.memory_space<vmem>>, vector<8x1xf32>
    %179 = vector.broadcast %178 : vector<8x1xf32> to vector<8x256xf32>
    %180 = arith.addf %177, %179 : vector<8x256xf32>
    %181 = arith.addf %175, %180 : vector<8x256xf32>
    %c0_69 = arith.constant 0 : index
    %c0_70 = arith.constant 0 : index
    %c0_71 = arith.constant 0 : index
    %182 = vector.load %arg8[%c0_69, %c0_70, %c0_71] : memref<1x8x256xf32, #tpu.memory_space<vmem>>, vector<1x8x256xf32>
    %183 = vector.shape_cast %182 : vector<1x8x256xf32> to vector<8x256xf32>
    %184 = vector.shape_cast %181 : vector<8x256xf32> to vector<1x8x256xf32>
    tpu.vector_store %arg8[%c0_69, %c0_70, %c0_71], %184 {strides = array<i32>} : memref<1x8x256xf32, #tpu.memory_space<vmem>>, vector<1x8x256xf32>,
    return
  }
  func.func @transform_0(%arg0: i32) -> (i32, i32, i32) {
    %c0_i32 = arith.constant 0 : i32
    %c0_i32_0 = arith.constant 0 : i32
    %c0_i32_1 = arith.constant 0 : i32
    return %arg0, %c0_i32, %c0_i32_0 : i32, i32, i32
  }
  func.func @transform_1(%arg0: i32) -> (i32, i32) {
    %c0_i32 = arith.constant 0 : i32
    %c0_i32_0 = arith.constant 0 : i32
    %c0_i32_1 = arith.constant 0 : i32
    return %c0_i32, %c0_i32_0 : i32, i32
  }
  func.func @transform_2(%arg0: i32) -> (i32, i32) {
    %c0_i32 = arith.constant 0 : i32
    %c0_i32_0 = arith.constant 0 : i32
    %c0_i32_1 = arith.constant 0 : i32
    return %c0_i32, %c0_i32_0 : i32, i32
  }
  func.func @transform_3(%arg0: i32) -> (i32, i32) {
    %c0_i32 = arith.constant 0 : i32
    %c0_i32_0 = arith.constant 0 : i32
    %c0_i32_1 = arith.constant 0 : i32
    return %c0_i32, %c0_i32_0 : i32, i32
  }
  func.func @transform_4(%arg0: i32) -> (i32, i32) {
    %c0_i32 = arith.constant 0 : i32
    %c0_i32_0 = arith.constant 0 : i32
    %c0_i32_1 = arith.constant 0 : i32
    return %c0_i32, %c0_i32_0 : i32, i32
  }
  func.func @transform_5(%arg0: i32) -> (i32, i32) {
    %c0_i32 = arith.constant 0 : i32
    %c0_i32_0 = arith.constant 0 : i32
    %c0_i32_1 = arith.constant 0 : i32
    return %c0_i32, %c0_i32_0 : i32, i32
  }
  func.func @transform_6(%arg0: i32) -> (i32, i32) {
    %c0_i32 = arith.constant 0 : i32
    %c0_i32_0 = arith.constant 0 : i32
    %c0_i32_1 = arith.constant 0 : i32
    return %c0_i32, %c0_i32_0 : i32, i32
  }
  func.func @transform_7(%arg0: i32) -> (i32, i32, i32) {
    %c0_i32 = arith.constant 0 : i32
    %c0_i32_0 = arith.constant 0 : i32
    %c0_i32_1 = arith.constant 0 : i32
    return %arg0, %c0_i32, %c0_i32_0 : i32, i32, i32
  }
}

module attributes {stable_mosaic.version = 11 : i64} {
  func.func @_stage_kernel(%arg0: i32, %arg1: memref<1x8x1024xf32, #tpu.memory_space<vmem>>, %arg2: memref<8x72xf32, #tpu.memory_space<vmem>>, %arg3: memref<8x1xf32, #tpu.memory_space<vmem>>, %arg4: memref<8x72xf32, #tpu.memory_space<vmem>>, %arg5: memref<8x72xf32, #tpu.memory_space<vmem>>, %arg6: memref<8x8xf32, #tpu.memory_space<vmem>>, %arg7: memref<8x1xf32, #tpu.memory_space<vmem>>, %arg8: memref<1x8x1024xf32, #tpu.memory_space<vmem>>) attributes {dimension_semantics = [#tpu.dimension_semantics<parallel>], iteration_bounds = array<i64: 2>, scalar_prefetch = 0 : i64, scratch_operands = 0 : i64, tpu.core_type = #tpu.core_type<tc>, window_params = [{transform_indices = @transform_0, window_bounds = array<i64: 1, 8, 1024>}, {pipeline_mode = #tpu.pipeline_mode<synchronous>, transform_indices = @transform_1, window_bounds = array<i64: 8, 72>}, {pipeline_mode = #tpu.pipeline_mode<synchronous>, transform_indices = @transform_2, window_bounds = array<i64: 8, 1>}, {pipeline_mode = #tpu.pipeline_mode<synchronous>, transform_indices = @transform_3, window_bounds = array<i64: 8, 72>}, {pipeline_mode = #tpu.pipeline_mode<synchronous>, transform_indices = @transform_4, window_bounds = array<i64: 8, 72>}, {pipeline_mode = #tpu.pipeline_mode<synchronous>, transform_indices = @transform_5, window_bounds = array<i64: 8, 8>}, {pipeline_mode = #tpu.pipeline_mode<synchronous>, transform_indices = @transform_6, window_bounds = array<i64: 8, 1>}, {transform_indices = @transform_7, window_bounds = array<i64: 1, 8, 1024>}]} {
    %c0 = arith.constant 0 : index
    %c0_0 = arith.constant 0 : index
    %c0_1 = arith.constant 0 : index
    %0 = vector.load %arg1[%c0, %c0_0, %c0_1] : memref<1x8x1024xf32, #tpu.memory_space<vmem>>, vector<1x8x1024xf32>
    %1 = vector.shape_cast %0 : vector<1x8x1024xf32> to vector<8x1024xf32>
    %c0_2 = arith.constant 0 : index
    %c0_3 = arith.constant 0 : index
    %2 = vector.load %arg2[%c0_2, %c0_3] : memref<8x72xf32, #tpu.memory_space<vmem>>, vector<8x72xf32>
    %c0_4 = arith.constant 0 : index
    %c0_5 = arith.constant 0 : index
    %3 = vector.load %arg3[%c0_4, %c0_5] : memref<8x1xf32, #tpu.memory_space<vmem>>, vector<8x1xf32>
    %cst = arith.constant 0.000000e+00 : f32
    %4 = vector.broadcast %cst : f32 to vector<8x33xf32>
    %5 = tpu.concatenate %4, %1, %4 in 1 : vector<8x33xf32>, vector<8x1024xf32>, vector<8x33xf32> -> vector<8x1090xf32>
    %6 = tpu.iota {dimensions = array<i32: 1>} : vector<8x1024xi32>
    %c31_i32 = arith.constant 31 : i32
    %7 = vector.broadcast %c31_i32 : i32 to vector<8x1024xi32>
    %8 = arith.andi %6, %7 : vector<8x1024xi32>
    %9 = vector.extract_strided_slice %5 {offsets = [0, 0], sizes = [8, 1024], strides = [1, 1]} : vector<8x1090xf32> to vector<8x1024xf32>
    %c0_i32 = arith.constant 0 : i32
    %10 = vector.broadcast %c0_i32 : i32 to vector<8x1024xi32>
    %11 = arith.cmpi sgt, %8, %10 : vector<8x1024xi32>
    %cst_6 = arith.constant 0.000000e+00 : f32
    %12 = vector.broadcast %cst_6 : f32 to vector<8x1024xf32>
    %13 = arith.select %11, %9, %12 : vector<8x1024xi1>, vector<8x1024xf32>
    %14 = vector.extract_strided_slice %5 {offsets = [0, 1], sizes = [8, 1024], strides = [1, 1]} : vector<8x1090xf32> to vector<8x1024xf32>
    %15 = vector.extract_strided_slice %5 {offsets = [0, 2], sizes = [8, 1024], strides = [1, 1]} : vector<8x1090xf32> to vector<8x1024xf32>
    %c31_i32_7 = arith.constant 31 : i32
    %16 = vector.broadcast %c31_i32_7 : i32 to vector<8x1024xi32>
    %17 = arith.cmpi slt, %8, %16 : vector<8x1024xi32>
    %cst_8 = arith.constant 0.000000e+00 : f32
    %18 = vector.broadcast %cst_8 : f32 to vector<8x1024xf32>
    %19 = arith.select %17, %15, %18 : vector<8x1024xi1>, vector<8x1024xf32>
    %20 = vector.extract_strided_slice %5 {offsets = [0, 32], sizes = [8, 1024], strides = [1, 1]} : vector<8x1090xf32> to vector<8x1024xf32>
    %c0_i32_9 = arith.constant 0 : i32
    %21 = vector.broadcast %c0_i32_9 : i32 to vector<8x1024xi32>
    %22 = arith.cmpi sgt, %8, %21 : vector<8x1024xi32>
    %cst_10 = arith.constant 0.000000e+00 : f32
    %23 = vector.broadcast %cst_10 : f32 to vector<8x1024xf32>
    %24 = arith.select %22, %20, %23 : vector<8x1024xi1>, vector<8x1024xf32>
    %25 = vector.extract_strided_slice %5 {offsets = [0, 33], sizes = [8, 1024], strides = [1, 1]} : vector<8x1090xf32> to vector<8x1024xf32>
    %26 = vector.extract_strided_slice %5 {offsets = [0, 34], sizes = [8, 1024], strides = [1, 1]} : vector<8x1090xf32> to vector<8x1024xf32>
    %c31_i32_11 = arith.constant 31 : i32
    %27 = vector.broadcast %c31_i32_11 : i32 to vector<8x1024xi32>
    %28 = arith.cmpi slt, %8, %27 : vector<8x1024xi32>
    %cst_12 = arith.constant 0.000000e+00 : f32
    %29 = vector.broadcast %cst_12 : f32 to vector<8x1024xf32>
    %30 = arith.select %28, %26, %29 : vector<8x1024xi1>, vector<8x1024xf32>
    %31 = vector.extract_strided_slice %5 {offsets = [0, 64], sizes = [8, 1024], strides = [1, 1]} : vector<8x1090xf32> to vector<8x1024xf32>
    %c0_i32_13 = arith.constant 0 : i32
    %32 = vector.broadcast %c0_i32_13 : i32 to vector<8x1024xi32>
    %33 = arith.cmpi sgt, %8, %32 : vector<8x1024xi32>
    %cst_14 = arith.constant 0.000000e+00 : f32
    %34 = vector.broadcast %cst_14 : f32 to vector<8x1024xf32>
    %35 = arith.select %33, %31, %34 : vector<8x1024xi1>, vector<8x1024xf32>
    %36 = vector.extract_strided_slice %5 {offsets = [0, 65], sizes = [8, 1024], strides = [1, 1]} : vector<8x1090xf32> to vector<8x1024xf32>
    %37 = vector.extract_strided_slice %5 {offsets = [0, 66], sizes = [8, 1024], strides = [1, 1]} : vector<8x1090xf32> to vector<8x1024xf32>
    %c31_i32_15 = arith.constant 31 : i32
    %38 = vector.broadcast %c31_i32_15 : i32 to vector<8x1024xi32>
    %39 = arith.cmpi slt, %8, %38 : vector<8x1024xi32>
    %cst_16 = arith.constant 0.000000e+00 : f32
    %40 = vector.broadcast %cst_16 : f32 to vector<8x1024xf32>
    %41 = arith.select %39, %37, %40 : vector<8x1024xi1>, vector<8x1024xf32>
    %42 = tpu.concatenate %13, %14, %19, %24, %25, %30, %35, %36, %41 in 0 : vector<8x1024xf32>, vector<8x1024xf32>, vector<8x1024xf32>, vector<8x1024xf32>, vector<8x1024xf32>, vector<8x1024xf32>, vector<8x1024xf32>, vector<8x1024xf32>, vector<8x1024xf32> -> vector<72x1024xf32>
    %cst_17 = arith.constant dense<0.000000e+00> : vector<8x1024xf32>
    %43 = tpu.matmul %2, %42, %cst_17 {dimension_numbers = #tpu.dot_dimension_numbers<[1], [0], [0], [1], [0, 0, 1, 1], [], []>} : vector<8x72xf32>, vector<72x1024xf32>, vector<8x1024xf32> -> vector<8x1024xf32>
    %44 = vector.broadcast %3 : vector<8x1xf32> to vector<8x1024xf32>
    %45 = arith.addf %43, %44 : vector<8x1024xf32>
    %c0_18 = arith.constant 0 : index
    %c0_19 = arith.constant 0 : index
    %46 = vector.load %arg4[%c0_18, %c0_19] : memref<8x72xf32, #tpu.memory_space<vmem>>, vector<8x72xf32>
    %cst_20 = arith.constant 0.000000e+00 : f32
    %47 = vector.broadcast %cst_20 : f32 to vector<8x33xf32>
    %48 = tpu.concatenate %47, %45, %47 in 1 : vector<8x33xf32>, vector<8x1024xf32>, vector<8x33xf32> -> vector<8x1090xf32>
    %49 = tpu.iota {dimensions = array<i32: 1>} : vector<8x1024xi32>
    %c31_i32_21 = arith.constant 31 : i32
    %50 = vector.broadcast %c31_i32_21 : i32 to vector<8x1024xi32>
    %51 = arith.andi %49, %50 : vector<8x1024xi32>
    %52 = vector.extract_strided_slice %48 {offsets = [0, 0], sizes = [8, 1024], strides = [1, 1]} : vector<8x1090xf32> to vector<8x1024xf32>
    %c0_i32_22 = arith.constant 0 : i32
    %53 = vector.broadcast %c0_i32_22 : i32 to vector<8x1024xi32>
    %54 = arith.cmpi sgt, %51, %53 : vector<8x1024xi32>
    %cst_23 = arith.constant 0.000000e+00 : f32
    %55 = vector.broadcast %cst_23 : f32 to vector<8x1024xf32>
    %56 = arith.select %54, %52, %55 : vector<8x1024xi1>, vector<8x1024xf32>
    %57 = vector.extract_strided_slice %48 {offsets = [0, 1], sizes = [8, 1024], strides = [1, 1]} : vector<8x1090xf32> to vector<8x1024xf32>
    %58 = vector.extract_strided_slice %48 {offsets = [0, 2], sizes = [8, 1024], strides = [1, 1]} : vector<8x1090xf32> to vector<8x1024xf32>
    %c31_i32_24 = arith.constant 31 : i32
    %59 = vector.broadcast %c31_i32_24 : i32 to vector<8x1024xi32>
    %60 = arith.cmpi slt, %51, %59 : vector<8x1024xi32>
    %cst_25 = arith.constant 0.000000e+00 : f32
    %61 = vector.broadcast %cst_25 : f32 to vector<8x1024xf32>
    %62 = arith.select %60, %58, %61 : vector<8x1024xi1>, vector<8x1024xf32>
    %63 = vector.extract_strided_slice %48 {offsets = [0, 32], sizes = [8, 1024], strides = [1, 1]} : vector<8x1090xf32> to vector<8x1024xf32>
    %c0_i32_26 = arith.constant 0 : i32
    %64 = vector.broadcast %c0_i32_26 : i32 to vector<8x1024xi32>
    %65 = arith.cmpi sgt, %51, %64 : vector<8x1024xi32>
    %cst_27 = arith.constant 0.000000e+00 : f32
    %66 = vector.broadcast %cst_27 : f32 to vector<8x1024xf32>
    %67 = arith.select %65, %63, %66 : vector<8x1024xi1>, vector<8x1024xf32>
    %68 = vector.extract_strided_slice %48 {offsets = [0, 33], sizes = [8, 1024], strides = [1, 1]} : vector<8x1090xf32> to vector<8x1024xf32>
    %69 = vector.extract_strided_slice %48 {offsets = [0, 34], sizes = [8, 1024], strides = [1, 1]} : vector<8x1090xf32> to vector<8x1024xf32>
    %c31_i32_28 = arith.constant 31 : i32
    %70 = vector.broadcast %c31_i32_28 : i32 to vector<8x1024xi32>
    %71 = arith.cmpi slt, %51, %70 : vector<8x1024xi32>
    %cst_29 = arith.constant 0.000000e+00 : f32
    %72 = vector.broadcast %cst_29 : f32 to vector<8x1024xf32>
    %73 = arith.select %71, %69, %72 : vector<8x1024xi1>, vector<8x1024xf32>
    %74 = vector.extract_strided_slice %48 {offsets = [0, 64], sizes = [8, 1024], strides = [1, 1]} : vector<8x1090xf32> to vector<8x1024xf32>
    %c0_i32_30 = arith.constant 0 : i32
    %75 = vector.broadcast %c0_i32_30 : i32 to vector<8x1024xi32>
    %76 = arith.cmpi sgt, %51, %75 : vector<8x1024xi32>
    %cst_31 = arith.constant 0.000000e+00 : f32
    %77 = vector.broadcast %cst_31 : f32 to vector<8x1024xf32>
    %78 = arith.select %76, %74, %77 : vector<8x1024xi1>, vector<8x1024xf32>
    %79 = vector.extract_strided_slice %48 {offsets = [0, 65], sizes = [8, 1024], strides = [1, 1]} : vector<8x1090xf32> to vector<8x1024xf32>
    %80 = vector.extract_strided_slice %48 {offsets = [0, 66], sizes = [8, 1024], strides = [1, 1]} : vector<8x1090xf32> to vector<8x1024xf32>
    %c31_i32_32 = arith.constant 31 : i32
    %81 = vector.broadcast %c31_i32_32 : i32 to vector<8x1024xi32>
    %82 = arith.cmpi slt, %51, %81 : vector<8x1024xi32>
    %cst_33 = arith.constant 0.000000e+00 : f32
    %83 = vector.broadcast %cst_33 : f32 to vector<8x1024xf32>
    %84 = arith.select %82, %80, %83 : vector<8x1024xi1>, vector<8x1024xf32>
    %85 = tpu.concatenate %56, %57, %62, %67, %68, %73, %78, %79, %84 in 0 : vector<8x1024xf32>, vector<8x1024xf32>, vector<8x1024xf32>, vector<8x1024xf32>, vector<8x1024xf32>, vector<8x1024xf32>, vector<8x1024xf32>, vector<8x1024xf32>, vector<8x1024xf32> -> vector<72x1024xf32>
    %cst_34 = arith.constant dense<0.000000e+00> : vector<8x1024xf32>
    %86 = tpu.matmul %46, %85, %cst_34 {dimension_numbers = #tpu.dot_dimension_numbers<[1], [0], [0], [1], [0, 0, 1, 1], [], []>} : vector<8x72xf32>, vector<72x1024xf32>, vector<8x1024xf32> -> vector<8x1024xf32>
    %cst_35 = arith.constant dense<0.000000e+00> : vector<8xf32>
    %87 = vector.multi_reduction <add>, %86, %cst_35 [1] : vector<8x1024xf32> to vector<8xf32>
    %88 = vector.shape_cast %87 : vector<8xf32> to vector<8x1xf32>
    %cst_36 = arith.constant 1.024000e+03 : f32
    %89 = vector.broadcast %cst_36 : f32 to vector<8x1xf32>
    %90 = arith.divf %88, %89 : vector<8x1xf32>
    %91 = vector.broadcast %90 : vector<8x1xf32> to vector<8x1024xf32>
    %92 = arith.subf %86, %91 : vector<8x1024xf32>
    %93 = arith.mulf %92, %92 : vector<8x1024xf32>
    %cst_37 = arith.constant dense<0.000000e+00> : vector<8xf32>
    %94 = vector.multi_reduction <add>, %93, %cst_37 [1] : vector<8x1024xf32> to vector<8xf32>
    %95 = vector.shape_cast %94 : vector<8xf32> to vector<8x1xf32>
    %cst_38 = arith.constant 1.024000e+03 : f32
    %96 = vector.broadcast %cst_38 : f32 to vector<8x1xf32>
    %97 = arith.divf %95, %96 : vector<8x1xf32>
    %98 = vector.broadcast %90 : vector<8x1xf32> to vector<8x1024xf32>
    %99 = arith.subf %86, %98 : vector<8x1024xf32>
    %cst_39 = arith.constant 9.99999974E-6 : f32
    %100 = vector.broadcast %cst_39 : f32 to vector<8x1xf32>
    %101 = arith.addf %97, %100 : vector<8x1xf32>
    %102 = math.rsqrt %101 : vector<8x1xf32>
    %103 = vector.broadcast %102 : vector<8x1xf32> to vector<8x1024xf32>
    %104 = arith.mulf %99, %103 : vector<8x1024xf32>
    %105 = arith.negf %104 : vector<8x1024xf32>
    %106 = math.exp %105 : vector<8x1024xf32>
    %cst_40 = arith.constant 1.000000e+00 : f32
    %107 = vector.broadcast %cst_40 : f32 to vector<8x1024xf32>
    %108 = arith.addf %107, %106 : vector<8x1024xf32>
    %109 = arith.divf %107, %108 : vector<8x1024xf32>
    %110 = arith.mulf %104, %109 : vector<8x1024xf32>
    %c0_41 = arith.constant 0 : index
    %c0_42 = arith.constant 0 : index
    %111 = vector.load %arg5[%c0_41, %c0_42] : memref<8x72xf32, #tpu.memory_space<vmem>>, vector<8x72xf32>
    %cst_43 = arith.constant 0.000000e+00 : f32
    %112 = vector.broadcast %cst_43 : f32 to vector<8x33xf32>
    %113 = tpu.concatenate %112, %110, %112 in 1 : vector<8x33xf32>, vector<8x1024xf32>, vector<8x33xf32> -> vector<8x1090xf32>
    %114 = tpu.iota {dimensions = array<i32: 1>} : vector<8x1024xi32>
    %c31_i32_44 = arith.constant 31 : i32
    %115 = vector.broadcast %c31_i32_44 : i32 to vector<8x1024xi32>
    %116 = arith.andi %114, %115 : vector<8x1024xi32>
    %117 = vector.extract_strided_slice %113 {offsets = [0, 0], sizes = [8, 1024], strides = [1, 1]} : vector<8x1090xf32> to vector<8x1024xf32>
    %c0_i32_45 = arith.constant 0 : i32
    %118 = vector.broadcast %c0_i32_45 : i32 to vector<8x1024xi32>
    %119 = arith.cmpi sgt, %116, %118 : vector<8x1024xi32>
    %cst_46 = arith.constant 0.000000e+00 : f32
    %120 = vector.broadcast %cst_46 : f32 to vector<8x1024xf32>
    %121 = arith.select %119, %117, %120 : vector<8x1024xi1>, vector<8x1024xf32>
    %122 = vector.extract_strided_slice %113 {offsets = [0, 1], sizes = [8, 1024], strides = [1, 1]} : vector<8x1090xf32> to vector<8x1024xf32>
    %123 = vector.extract_strided_slice %113 {offsets = [0, 2], sizes = [8, 1024], strides = [1, 1]} : vector<8x1090xf32> to vector<8x1024xf32>
    %c31_i32_47 = arith.constant 31 : i32
    %124 = vector.broadcast %c31_i32_47 : i32 to vector<8x1024xi32>
    %125 = arith.cmpi slt, %116, %124 : vector<8x1024xi32>
    %cst_48 = arith.constant 0.000000e+00 : f32
    %126 = vector.broadcast %cst_48 : f32 to vector<8x1024xf32>
    %127 = arith.select %125, %123, %126 : vector<8x1024xi1>, vector<8x1024xf32>
    %128 = vector.extract_strided_slice %113 {offsets = [0, 32], sizes = [8, 1024], strides = [1, 1]} : vector<8x1090xf32> to vector<8x1024xf32>
    %c0_i32_49 = arith.constant 0 : i32
    %129 = vector.broadcast %c0_i32_49 : i32 to vector<8x1024xi32>
    %130 = arith.cmpi sgt, %116, %129 : vector<8x1024xi32>
    %cst_50 = arith.constant 0.000000e+00 : f32
    %131 = vector.broadcast %cst_50 : f32 to vector<8x1024xf32>
    %132 = arith.select %130, %128, %131 : vector<8x1024xi1>, vector<8x1024xf32>
    %133 = vector.extract_strided_slice %113 {offsets = [0, 33], sizes = [8, 1024], strides = [1, 1]} : vector<8x1090xf32> to vector<8x1024xf32>
    %134 = vector.extract_strided_slice %113 {offsets = [0, 34], sizes = [8, 1024], strides = [1, 1]} : vector<8x1090xf32> to vector<8x1024xf32>
    %c31_i32_51 = arith.constant 31 : i32
    %135 = vector.broadcast %c31_i32_51 : i32 to vector<8x1024xi32>
    %136 = arith.cmpi slt, %116, %135 : vector<8x1024xi32>
    %cst_52 = arith.constant 0.000000e+00 : f32
    %137 = vector.broadcast %cst_52 : f32 to vector<8x1024xf32>
    %138 = arith.select %136, %134, %137 : vector<8x1024xi1>, vector<8x1024xf32>
    %139 = vector.extract_strided_slice %113 {offsets = [0, 64], sizes = [8, 1024], strides = [1, 1]} : vector<8x1090xf32> to vector<8x1024xf32>
    %c0_i32_53 = arith.constant 0 : i32
    %140 = vector.broadcast %c0_i32_53 : i32 to vector<8x1024xi32>
    %141 = arith.cmpi sgt, %116, %140 : vector<8x1024xi32>
    %cst_54 = arith.constant 0.000000e+00 : f32
    %142 = vector.broadcast %cst_54 : f32 to vector<8x1024xf32>
    %143 = arith.select %141, %139, %142 : vector<8x1024xi1>, vector<8x1024xf32>
    %144 = vector.extract_strided_slice %113 {offsets = [0, 65], sizes = [8, 1024], strides = [1, 1]} : vector<8x1090xf32> to vector<8x1024xf32>
    %145 = vector.extract_strided_slice %113 {offsets = [0, 66], sizes = [8, 1024], strides = [1, 1]} : vector<8x1090xf32> to vector<8x1024xf32>
    %c31_i32_55 = arith.constant 31 : i32
    %146 = vector.broadcast %c31_i32_55 : i32 to vector<8x1024xi32>
    %147 = arith.cmpi slt, %116, %146 : vector<8x1024xi32>
    %cst_56 = arith.constant 0.000000e+00 : f32
    %148 = vector.broadcast %cst_56 : f32 to vector<8x1024xf32>
    %149 = arith.select %147, %145, %148 : vector<8x1024xi1>, vector<8x1024xf32>
    %150 = tpu.concatenate %121, %122, %127, %132, %133, %138, %143, %144, %149 in 0 : vector<8x1024xf32>, vector<8x1024xf32>, vector<8x1024xf32>, vector<8x1024xf32>, vector<8x1024xf32>, vector<8x1024xf32>, vector<8x1024xf32>, vector<8x1024xf32>, vector<8x1024xf32> -> vector<72x1024xf32>
    %cst_57 = arith.constant dense<0.000000e+00> : vector<8x1024xf32>
    %151 = tpu.matmul %111, %150, %cst_57 {dimension_numbers = #tpu.dot_dimension_numbers<[1], [0], [0], [1], [0, 0, 1, 1], [], []>} : vector<8x72xf32>, vector<72x1024xf32>, vector<8x1024xf32> -> vector<8x1024xf32>
    %cst_58 = arith.constant dense<0.000000e+00> : vector<8xf32>
    %152 = vector.multi_reduction <add>, %151, %cst_58 [1] : vector<8x1024xf32> to vector<8xf32>
    %153 = vector.shape_cast %152 : vector<8xf32> to vector<8x1xf32>
    %cst_59 = arith.constant 1.024000e+03 : f32
    %154 = vector.broadcast %cst_59 : f32 to vector<8x1xf32>
    %155 = arith.divf %153, %154 : vector<8x1xf32>
    %156 = vector.broadcast %155 : vector<8x1xf32> to vector<8x1024xf32>
    %157 = arith.subf %151, %156 : vector<8x1024xf32>
    %158 = arith.mulf %157, %157 : vector<8x1024xf32>
    %cst_60 = arith.constant dense<0.000000e+00> : vector<8xf32>
    %159 = vector.multi_reduction <add>, %158, %cst_60 [1] : vector<8x1024xf32> to vector<8xf32>
    %160 = vector.shape_cast %159 : vector<8xf32> to vector<8x1xf32>
    %cst_61 = arith.constant 1.024000e+03 : f32
    %161 = vector.broadcast %cst_61 : f32 to vector<8x1xf32>
    %162 = arith.divf %160, %161 : vector<8x1xf32>
    %163 = vector.broadcast %155 : vector<8x1xf32> to vector<8x1024xf32>
    %164 = arith.subf %151, %163 : vector<8x1024xf32>
    %cst_62 = arith.constant 9.99999974E-6 : f32
    %165 = vector.broadcast %cst_62 : f32 to vector<8x1xf32>
    %166 = arith.addf %162, %165 : vector<8x1xf32>
    %167 = math.rsqrt %166 : vector<8x1xf32>
    %168 = vector.broadcast %167 : vector<8x1xf32> to vector<8x1024xf32>
    %169 = arith.mulf %164, %168 : vector<8x1024xf32>
    %170 = arith.negf %169 : vector<8x1024xf32>
    %171 = math.exp %170 : vector<8x1024xf32>
    %cst_63 = arith.constant 1.000000e+00 : f32
    %172 = vector.broadcast %cst_63 : f32 to vector<8x1024xf32>
    %173 = arith.addf %172, %171 : vector<8x1024xf32>
    %174 = arith.divf %172, %173 : vector<8x1024xf32>
    %175 = arith.mulf %169, %174 : vector<8x1024xf32>
    %c0_64 = arith.constant 0 : index
    %c0_65 = arith.constant 0 : index
    %176 = vector.load %arg6[%c0_64, %c0_65] : memref<8x8xf32, #tpu.memory_space<vmem>>, vector<8x8xf32>
    %cst_66 = arith.constant dense<0.000000e+00> : vector<8x1024xf32>
    %177 = tpu.matmul %176, %45, %cst_66 {dimension_numbers = #tpu.dot_dimension_numbers<[1], [0], [0], [1], [0, 0, 1, 1], [], []>} : vector<8x8xf32>, vector<8x1024xf32>, vector<8x1024xf32> -> vector<8x1024xf32>
    %c0_67 = arith.constant 0 : index
    %c0_68 = arith.constant 0 : index
    %178 = vector.load %arg7[%c0_67, %c0_68] : memref<8x1xf32, #tpu.memory_space<vmem>>, vector<8x1xf32>
    %179 = vector.broadcast %178 : vector<8x1xf32> to vector<8x1024xf32>
    %180 = arith.addf %177, %179 : vector<8x1024xf32>
    %181 = arith.addf %175, %180 : vector<8x1024xf32>
    %c0_69 = arith.constant 0 : index
    %c0_70 = arith.constant 0 : index
    %c0_71 = arith.constant 0 : index
    %182 = vector.load %arg8[%c0_69, %c0_70, %c0_71] : memref<1x8x1024xf32, #tpu.memory_space<vmem>>, vector<1x8x1024xf32>
    %183 = vector.shape_cast %182 : vector<1x8x1024xf32> to vector<8x1024xf32>
    %184 = vector.shape_cast %181 : vector<8x1024xf32> to vector<1x8x1024xf32>
    tpu.vector_store %arg8[%c0_69, %c0_70, %c0_71], %184 {strides = array<i32>} : memref<1x8x1024xf32, #tpu.memory_space<vmem>>, vector<1x8x1024xf32>,
    return
  }
  func.func @transform_0(%arg0: i32) -> (i32, i32, i32) {
    %c0_i32 = arith.constant 0 : i32
    %c0_i32_0 = arith.constant 0 : i32
    %c0_i32_1 = arith.constant 0 : i32
    return %arg0, %c0_i32, %c0_i32_0 : i32, i32, i32
  }
  func.func @transform_1(%arg0: i32) -> (i32, i32) {
    %c0_i32 = arith.constant 0 : i32
    %c0_i32_0 = arith.constant 0 : i32
    %c0_i32_1 = arith.constant 0 : i32
    return %c0_i32, %c0_i32_0 : i32, i32
  }
  func.func @transform_2(%arg0: i32) -> (i32, i32) {
    %c0_i32 = arith.constant 0 : i32
    %c0_i32_0 = arith.constant 0 : i32
    %c0_i32_1 = arith.constant 0 : i32
    return %c0_i32, %c0_i32_0 : i32, i32
  }
  func.func @transform_3(%arg0: i32) -> (i32, i32) {
    %c0_i32 = arith.constant 0 : i32
    %c0_i32_0 = arith.constant 0 : i32
    %c0_i32_1 = arith.constant 0 : i32
    return %c0_i32, %c0_i32_0 : i32, i32
  }
  func.func @transform_4(%arg0: i32) -> (i32, i32) {
    %c0_i32 = arith.constant 0 : i32
    %c0_i32_0 = arith.constant 0 : i32
    %c0_i32_1 = arith.constant 0 : i32
    return %c0_i32, %c0_i32_0 : i32, i32
  }
  func.func @transform_5(%arg0: i32) -> (i32, i32) {
    %c0_i32 = arith.constant 0 : i32
    %c0_i32_0 = arith.constant 0 : i32
    %c0_i32_1 = arith.constant 0 : i32
    return %c0_i32, %c0_i32_0 : i32, i32
  }
  func.func @transform_6(%arg0: i32) -> (i32, i32) {
    %c0_i32 = arith.constant 0 : i32
    %c0_i32_0 = arith.constant 0 : i32
    %c0_i32_1 = arith.constant 0 : i32
    return %c0_i32, %c0_i32_0 : i32, i32
  }
  func.func @transform_7(%arg0: i32) -> (i32, i32, i32) {
    %c0_i32 = arith.constant 0 : i32
    %c0_i32_0 = arith.constant 0 : i32
    %c0_i32_1 = arith.constant 0 : i32
    return %arg0, %c0_i32, %c0_i32_0 : i32, i32, i32
  }
}

module attributes {stable_mosaic.version = 11 : i64} {
  func.func @_final_kernel(%arg0: i32, %arg1: memref<1x8x4096xf32, #tpu.memory_space<vmem>>, %arg2: memref<8x72xf32, #tpu.memory_space<vmem>>, %arg3: memref<8x1xf32, #tpu.memory_space<vmem>>, %arg4: memref<8x8xf32, #tpu.memory_space<vmem>>, %arg5: memref<8x1xf32, #tpu.memory_space<vmem>>, %arg6: memref<1x8x4096xf32, #tpu.memory_space<vmem>>) attributes {dimension_semantics = [#tpu.dimension_semantics<parallel>], iteration_bounds = array<i64: 2>, scalar_prefetch = 0 : i64, scratch_operands = 0 : i64, tpu.core_type = #tpu.core_type<tc>, window_params = [{transform_indices = @transform_0, window_bounds = array<i64: 1, 8, 4096>}, {pipeline_mode = #tpu.pipeline_mode<synchronous>, transform_indices = @transform_1, window_bounds = array<i64: 8, 72>}, {pipeline_mode = #tpu.pipeline_mode<synchronous>, transform_indices = @transform_2, window_bounds = array<i64: 8, 1>}, {pipeline_mode = #tpu.pipeline_mode<synchronous>, transform_indices = @transform_3, window_bounds = array<i64: 8, 8>}, {pipeline_mode = #tpu.pipeline_mode<synchronous>, transform_indices = @transform_4, window_bounds = array<i64: 8, 1>}, {transform_indices = @transform_5, window_bounds = array<i64: 1, 8, 4096>}]} {
    %c0 = arith.constant 0 : index
    %c0_0 = arith.constant 0 : index
    %c0_1 = arith.constant 0 : index
    %0 = vector.load %arg1[%c0, %c0_0, %c0_1] : memref<1x8x4096xf32, #tpu.memory_space<vmem>>, vector<1x8x4096xf32>
    %1 = vector.shape_cast %0 : vector<1x8x4096xf32> to vector<8x4096xf32>
    %c0_2 = arith.constant 0 : index
    %c0_3 = arith.constant 0 : index
    %2 = vector.load %arg2[%c0_2, %c0_3] : memref<8x72xf32, #tpu.memory_space<vmem>>, vector<8x72xf32>
    %c0_4 = arith.constant 0 : index
    %c0_5 = arith.constant 0 : index
    %3 = vector.load %arg3[%c0_4, %c0_5] : memref<8x1xf32, #tpu.memory_space<vmem>>, vector<8x1xf32>
    %cst = arith.constant 0.000000e+00 : f32
    %4 = vector.broadcast %cst : f32 to vector<8x65xf32>
    %5 = tpu.concatenate %4, %1, %4 in 1 : vector<8x65xf32>, vector<8x4096xf32>, vector<8x65xf32> -> vector<8x4226xf32>
    %6 = tpu.iota {dimensions = array<i32: 1>} : vector<8x4096xi32>
    %c63_i32 = arith.constant 63 : i32
    %7 = vector.broadcast %c63_i32 : i32 to vector<8x4096xi32>
    %8 = arith.andi %6, %7 : vector<8x4096xi32>
    %9 = vector.extract_strided_slice %5 {offsets = [0, 0], sizes = [8, 4096], strides = [1, 1]} : vector<8x4226xf32> to vector<8x4096xf32>
    %c0_i32 = arith.constant 0 : i32
    %10 = vector.broadcast %c0_i32 : i32 to vector<8x4096xi32>
    %11 = arith.cmpi sgt, %8, %10 : vector<8x4096xi32>
    %cst_6 = arith.constant 0.000000e+00 : f32
    %12 = vector.broadcast %cst_6 : f32 to vector<8x4096xf32>
    %13 = arith.select %11, %9, %12 : vector<8x4096xi1>, vector<8x4096xf32>
    %14 = vector.extract_strided_slice %5 {offsets = [0, 1], sizes = [8, 4096], strides = [1, 1]} : vector<8x4226xf32> to vector<8x4096xf32>
    %15 = vector.extract_strided_slice %5 {offsets = [0, 2], sizes = [8, 4096], strides = [1, 1]} : vector<8x4226xf32> to vector<8x4096xf32>
    %c63_i32_7 = arith.constant 63 : i32
    %16 = vector.broadcast %c63_i32_7 : i32 to vector<8x4096xi32>
    %17 = arith.cmpi slt, %8, %16 : vector<8x4096xi32>
    %cst_8 = arith.constant 0.000000e+00 : f32
    %18 = vector.broadcast %cst_8 : f32 to vector<8x4096xf32>
    %19 = arith.select %17, %15, %18 : vector<8x4096xi1>, vector<8x4096xf32>
    %20 = vector.extract_strided_slice %5 {offsets = [0, 64], sizes = [8, 4096], strides = [1, 1]} : vector<8x4226xf32> to vector<8x4096xf32>
    %c0_i32_9 = arith.constant 0 : i32
    %21 = vector.broadcast %c0_i32_9 : i32 to vector<8x4096xi32>
    %22 = arith.cmpi sgt, %8, %21 : vector<8x4096xi32>
    %cst_10 = arith.constant 0.000000e+00 : f32
    %23 = vector.broadcast %cst_10 : f32 to vector<8x4096xf32>
    %24 = arith.select %22, %20, %23 : vector<8x4096xi1>, vector<8x4096xf32>
    %25 = vector.extract_strided_slice %5 {offsets = [0, 65], sizes = [8, 4096], strides = [1, 1]} : vector<8x4226xf32> to vector<8x4096xf32>
    %26 = vector.extract_strided_slice %5 {offsets = [0, 66], sizes = [8, 4096], strides = [1, 1]} : vector<8x4226xf32> to vector<8x4096xf32>
    %c63_i32_11 = arith.constant 63 : i32
    %27 = vector.broadcast %c63_i32_11 : i32 to vector<8x4096xi32>
    %28 = arith.cmpi slt, %8, %27 : vector<8x4096xi32>
    %cst_12 = arith.constant 0.000000e+00 : f32
    %29 = vector.broadcast %cst_12 : f32 to vector<8x4096xf32>
    %30 = arith.select %28, %26, %29 : vector<8x4096xi1>, vector<8x4096xf32>
    %31 = vector.extract_strided_slice %5 {offsets = [0, 128], sizes = [8, 4096], strides = [1, 1]} : vector<8x4226xf32> to vector<8x4096xf32>
    %c0_i32_13 = arith.constant 0 : i32
    %32 = vector.broadcast %c0_i32_13 : i32 to vector<8x4096xi32>
    %33 = arith.cmpi sgt, %8, %32 : vector<8x4096xi32>
    %cst_14 = arith.constant 0.000000e+00 : f32
    %34 = vector.broadcast %cst_14 : f32 to vector<8x4096xf32>
    %35 = arith.select %33, %31, %34 : vector<8x4096xi1>, vector<8x4096xf32>
    %36 = vector.extract_strided_slice %5 {offsets = [0, 129], sizes = [8, 4096], strides = [1, 1]} : vector<8x4226xf32> to vector<8x4096xf32>
    %37 = vector.extract_strided_slice %5 {offsets = [0, 130], sizes = [8, 4096], strides = [1, 1]} : vector<8x4226xf32> to vector<8x4096xf32>
    %c63_i32_15 = arith.constant 63 : i32
    %38 = vector.broadcast %c63_i32_15 : i32 to vector<8x4096xi32>
    %39 = arith.cmpi slt, %8, %38 : vector<8x4096xi32>
    %cst_16 = arith.constant 0.000000e+00 : f32
    %40 = vector.broadcast %cst_16 : f32 to vector<8x4096xf32>
    %41 = arith.select %39, %37, %40 : vector<8x4096xi1>, vector<8x4096xf32>
    %42 = tpu.concatenate %13, %14, %19, %24, %25, %30, %35, %36, %41 in 0 : vector<8x4096xf32>, vector<8x4096xf32>, vector<8x4096xf32>, vector<8x4096xf32>, vector<8x4096xf32>, vector<8x4096xf32>, vector<8x4096xf32>, vector<8x4096xf32>, vector<8x4096xf32> -> vector<72x4096xf32>
    %cst_17 = arith.constant dense<0.000000e+00> : vector<8x4096xf32>
    %43 = tpu.matmul %2, %42, %cst_17 {dimension_numbers = #tpu.dot_dimension_numbers<[1], [0], [0], [1], [0, 0, 1, 1], [], []>} : vector<8x72xf32>, vector<72x4096xf32>, vector<8x4096xf32> -> vector<8x4096xf32>
    %44 = vector.broadcast %3 : vector<8x1xf32> to vector<8x4096xf32>
    %45 = arith.addf %43, %44 : vector<8x4096xf32>
    %c0_18 = arith.constant 0 : index
    %c0_19 = arith.constant 0 : index
    %46 = vector.load %arg4[%c0_18, %c0_19] : memref<8x8xf32, #tpu.memory_space<vmem>>, vector<8x8xf32>
    %cst_20 = arith.constant dense<0.000000e+00> : vector<8x4096xf32>
    %47 = tpu.matmul %46, %45, %cst_20 {dimension_numbers = #tpu.dot_dimension_numbers<[1], [0], [0], [1], [0, 0, 1, 1], [], []>} : vector<8x8xf32>, vector<8x4096xf32>, vector<8x4096xf32> -> vector<8x4096xf32>
    %c0_21 = arith.constant 0 : index
    %c0_22 = arith.constant 0 : index
    %48 = vector.load %arg5[%c0_21, %c0_22] : memref<8x1xf32, #tpu.memory_space<vmem>>, vector<8x1xf32>
    %49 = vector.broadcast %48 : vector<8x1xf32> to vector<8x4096xf32>
    %50 = arith.addf %47, %49 : vector<8x4096xf32>
    %c0_23 = arith.constant 0 : index
    %c0_24 = arith.constant 0 : index
    %c0_25 = arith.constant 0 : index
    %51 = vector.load %arg6[%c0_23, %c0_24, %c0_25] : memref<1x8x4096xf32, #tpu.memory_space<vmem>>, vector<1x8x4096xf32>
    %52 = vector.shape_cast %51 : vector<1x8x4096xf32> to vector<8x4096xf32>
    %53 = vector.shape_cast %50 : vector<8x4096xf32> to vector<1x8x4096xf32>
    tpu.vector_store %arg6[%c0_23, %c0_24, %c0_25], %53 {strides = array<i32>} : memref<1x8x4096xf32, #tpu.memory_space<vmem>>, vector<1x8x4096xf32>,
    return
  }
  func.func @transform_0(%arg0: i32) -> (i32, i32, i32) {
    %c0_i32 = arith.constant 0 : i32
    %c0_i32_0 = arith.constant 0 : i32
    %c0_i32_1 = arith.constant 0 : i32
    return %arg0, %c0_i32, %c0_i32_0 : i32, i32, i32
  }
  func.func @transform_1(%arg0: i32) -> (i32, i32) {
    %c0_i32 = arith.constant 0 : i32
    %c0_i32_0 = arith.constant 0 : i32
    %c0_i32_1 = arith.constant 0 : i32
    return %c0_i32, %c0_i32_0 : i32, i32
  }
  func.func @transform_2(%arg0: i32) -> (i32, i32) {
    %c0_i32 = arith.constant 0 : i32
    %c0_i32_0 = arith.constant 0 : i32
    %c0_i32_1 = arith.constant 0 : i32
    return %c0_i32, %c0_i32_0 : i32, i32
  }
  func.func @transform_3(%arg0: i32) -> (i32, i32) {
    %c0_i32 = arith.constant 0 : i32
    %c0_i32_0 = arith.constant 0 : i32
    %c0_i32_1 = arith.constant 0 : i32
    return %c0_i32, %c0_i32_0 : i32, i32
  }
  func.func @transform_4(%arg0: i32) -> (i32, i32) {
    %c0_i32 = arith.constant 0 : i32
    %c0_i32_0 = arith.constant 0 : i32
    %c0_i32_1 = arith.constant 0 : i32
    return %c0_i32, %c0_i32_0 : i32, i32
  }
  func.func @transform_5(%arg0: i32) -> (i32, i32, i32) {
    %c0_i32 = arith.constant 0 : i32
    %c0_i32_0 = arith.constant 0 : i32
    %c0_i32_1 = arith.constant 0 : i32
    return %arg0, %c0_i32, %c0_i32_0 : i32, i32, i32
  }
}

</mosaic_0001>

<bundles_post_ra>
// kernel: generator_forward.5
= control target key start
LH: loop header
LB: loop body
LE: loop exit
PB: predicated region body
PF: predicated region fallthrough
CT: control target
= control target key end

     0   :  { %20 = vsyncpa [#allocation3], 0  ;;  %s1466_s0 = inlined_call_operand.vmem [shape: f32[2,16], index: 0, kind: input, shape index: {}]   ;;  %s1467_s1 = inlined_call_operand.vmem [shape: f32[16,4], index: 1, kind: input, shape index: {}]   ;;  %s1468_s2 = inlined_call_operand.hbm [shape: f32[1,4], index: 2, kind: input, shape index: {}]   ;;  %s1469_s3 = inlined_call_operand.hbm [shape: f32[1,4], index: 3, kind: input, shape index: {}]   ;;  %s1470_s4 = inlined_call_operand.hbm [shape: f32[1,4], index: 4, kind: input, shape index: {}]   ;;  %s1471_s5 = inlined_call_operand.hbm [shape: f32[4,16], index: 5, kind: input, shape index: {}]   ;;  %s1472_s6 = inlined_call_operand.hbm [shape: f32[1,16], index: 6, kind: input, shape index: {}]   ;;  %s1473_s7 = inlined_call_operand.hbm [shape: f32[1,16], index: 7, kind: input, shape index: {}]   ;;  %s1474_s8 = inlined_call_operand.hbm [shape: f32[1,16], index: 8, kind: input, shape index: {}]   ;;  %s1475_s9 = inlined_call_operand.hbm [shape: f32[16,32], index: 9, kind: input, shape index: {}]   ;;  %s1476_s10 = inlined_call_operand.hbm [shape: f32[1,32], index: 10, kind: input, shape index: {}]   ;;  %s1477_s11 = inlined_call_operand.hbm [shape: f32[32,64], index: 11, kind: input, shape index: {}]   ;;  %s1478_s12 = inlined_call_operand.hbm [shape: f32[1,64], index: 12, kind: input, shape index: {}]   ;;  %s1479_s13 = inlined_call_operand.hbm [shape: f32[64,512], index: 13, kind: input, shape index: {}]   ;;  %s1480_s14 = inlined_call_operand.hbm [shape: f32[1,512], index: 14, kind: input, shape index: {}]   ;;  %s1481_s15 = inlined_call_operand.vmem [shape: f32[2,512], index: 15, kind: output, shape index: {}]  }
   0x1   :  { %21 = vsyncpa [#allocation5], 0 }
   0x2   :  { %22 = vsyncpa [#allocation8], 0 }
   0x3   :  { %23 = vsyncpa [#allocation11], 0 }
   0x4   :  { %24 = vsyncpa [#allocation14], 0 }
   0x5   :  { %25 = vsyncpa [#allocation17], 0 }
   0x6   :  { %26 = vsyncpa [#allocation20], 0  ;;  %s1294_s18 = smov [#allocation4]   ;;  %s1295_s20 = smov [#allocation7]  }
   0x7   :  { %s47_s19 = sshll.u32 %s1294_s18, 4  ;;  %s67_s21 = sshll.u32 %s1295_s20, 4  ;;  %s48_s19 = int_to_ptr.vmem [resolvable:$true] %s47_s19  ;;  %s68_s21 = int_to_ptr.vmem [resolvable:$true] %s67_s21 }
   0x8   :  { %s1028_s22 = scalar_lea.vmem %s48_s19, 16  ;;  %s1032_s23 = scalar_lea.vmem %s48_s19, 32 }
   0x9   :  { %p1029_p0 = scmp.ne.s32.totalorder %s48_s19, %s1028_s22  ;;  %p1033_p1 = scmp.lt.s32.totalorder %s48_s19, %s48_s19 }
   0xa   :  { %p1034_p2 = scmp.lt.s32.totalorder %s1032_s23, %s1028_s22 }
   0xc   :  { %p1035_p3 = por %p1034_p2, %p1033_p1 }
   0xe   :  { %p1036_p4 = pnand %p1035_p3, %p1029_p0 }
  0x10   :  { %1039 = shalt.err (!%p1036_p4)
}
  0x11   :  { %50 = dma.hbm_to_vmem [thread:$0]  %s1469_s3, 16, %s48_s19, [#allocation5]  }
  0x12   :  { %s1048_s26 = scalar_lea.vmem %s68_s21, 64  ;;  %p1053_p6 = scmp.lt.s32.totalorder %s68_s21, %s68_s21 }
  0x13   :  { %p1049_p5 = scmp.ne.s32.totalorder %s68_s21, %s1048_s26  ;;  %p1054_p7 = scmp.lt.s32.totalorder %s1048_s26, %s1048_s26 }
  0x15   :  { %p1055_p8 = por %p1054_p7, %p1053_p6 }
  0x17   :  { %p1056_p9 = pnand %p1055_p8, %p1049_p5 }
  0x19   :  { %1059 = shalt.err (!%p1056_p9)
}
  0x1a   :  { %70 = dma.hbm_to_vmem [thread:$0]  %s1471_s5, 64, %s68_s21, [#allocation8]  }
  0x1b   :  { %s1296_s29 = smov [#allocation10]   ;;  %s1297_s16 = smov [#allocation13]  }
  0x1c   :  { %s87_s30 = sshll.u32 %s1296_s29, 4  ;;  %s106_s17 = sshll.u32 %s1297_s16, 4  ;;  %s88_s30 = int_to_ptr.vmem [resolvable:$true] %s87_s30  ;;  %s107_s17 = int_to_ptr.vmem [resolvable:$true] %s106_s17 }
  0x1d   :  { %s1068_s18 = scalar_lea.vmem %s88_s30, 16  ;;  %s1072_s3 = scalar_lea.vmem %s88_s30, 32 }
  0x1e   :  { %p1069_p10 = scmp.ne.s32.totalorder %s88_s30, %s1068_s18  ;;  %p1073_p11 = scmp.lt.s32.totalorder %s88_s30, %s88_s30 }
  0x1f   :  { %p1074_p12 = scmp.lt.s32.totalorder %s1072_s3, %s1068_s18 }
  0x21   :  { %p1075_p13 = por %p1074_p12, %p1073_p11 }
  0x23   :  { %p1076_p0 = pnand %p1075_p13, %p1069_p10 }
  0x25   :  { %1079 = shalt.err (!%p1076_p0)
}
  0x26   :  { %90 = dma.hbm_to_vmem [thread:$0]  %s1473_s7, 16, %s88_s30, [#allocation11]  }
  0x27   :  { %s1088_s22 = scalar_lea.vmem %s107_s17, 256  ;;  %p1093_p2 = scmp.lt.s32.totalorder %s107_s17, %s107_s17 }
  0x28   :  { %p1089_p1 = scmp.ne.s32.totalorder %s107_s17, %s1088_s22  ;;  %p1094_p3 = scmp.lt.s32.totalorder %s1088_s22, %s1088_s22 }
  0x2a   :  { %p1095_p4 = por %p1094_p3, %p1093_p2 }
  0x2c   :  { %p1096_p5 = pnand %p1095_p4, %p1089_p1 }
  0x2e   :  { %1099 = shalt.err (!%p1096_p5)
}
  0x2f   :  { %s1298_s5 = smov 128   ;;  %s1299_s21 = smov 8  }
  0x30   :  { %112 = dma.hbm_to_vmem [thread:$0]  %s1475_s9, 256, %s107_s17, [#allocation14], %s1298_s5, %s1298_s5, %s1299_s21  }
  0x31   :  { %s1300_s25 = smov [#allocation16]   ;;  %s1301_s27 = smov [#allocation19]  }
  0x32   :  { %s128_s26 = sshll.u32 %s1300_s25, 4  ;;  %s150_s28 = sshll.u32 %s1301_s27, 4  ;;  %s129_s26 = int_to_ptr.vmem [resolvable:$true] %s128_s26  ;;  %s151_s28 = int_to_ptr.vmem [resolvable:$true] %s150_s28 }
  0x33   :  { %s1108_s7 = scalar_lea.vmem %s129_s26, 512  ;;  %p1113_p7 = scmp.lt.s32.totalorder %s129_s26, %s129_s26 }
  0x34   :  { %p1109_p6 = scmp.ne.s32.totalorder %s129_s26, %s1108_s7  ;;  %p1114_p8 = scmp.lt.s32.totalorder %s1108_s7, %s1108_s7 }
  0x36   :  { %p1115_p9 = por %p1114_p8, %p1113_p7 }
  0x38   :  { %p1116_p10 = pnand %p1115_p9, %p1109_p6 }
  0x3a   :  { %1119 = shalt.err (!%p1116_p10)
}
  0x3b   :  { %134 = dma.hbm_to_vmem [thread:$0]  %s1477_s11, 512, %s129_s26, [#allocation17], %s1298_s5, %s1298_s5, %s1299_s21  }
  0x3c   :  { %s1128_s16 = scalar_lea.vmem %s151_s28, 4096  ;;  %p1133_p12 = scmp.lt.s32.totalorder %s151_s28, %s151_s28 }
  0x3d   :  { %p1129_p11 = scmp.ne.s32.totalorder %s151_s28, %s1128_s16  ;;  %p1134_p13 = scmp.lt.s32.totalorder %s1128_s16, %s1128_s16 }
  0x3f   :  { %p1135_p0 = por %p1134_p13, %p1133_p12 }
  0x41   :  { %p1136_p1 = pnand %p1135_p0, %p1129_p11 }
  0x43   :  { %1139 = shalt.err (!%p1136_p1)
}
  0x44   :  { %s1302_s9 = smov 512   ;;  %s1303_s17 = smov 32  }
  0x45   :  { %156 = dma.hbm_to_vmem [thread:$0]  %s1479_s13, 4096, %s151_s28, [#allocation20], %s1302_s9, %s1302_s9, %s1303_s17  }
  0x46   :  { %s1304_s19 = smov [#allocation2]   ;;  %s1305_s22 = smov [#allocation6]  }
  0x47   :  { %s37_s20 = sshll.u32 %s1304_s19, 4  ;;  %s57_s23 = sshll.u32 %s1305_s22, 4  ;;  %s38_s20 = int_to_ptr.vmem [resolvable:$true] %s37_s20  ;;  %s58_s23 = int_to_ptr.vmem [resolvable:$true] %s57_s23 }
  0x48   :  { %s1148_s11 = scalar_lea.vmem %s38_s20, 16  ;;  %s1152_s5 = scalar_lea.vmem %s38_s20, 32 }
  0x49   :  { %p1149_p2 = scmp.ne.s32.totalorder %s38_s20, %s1148_s11  ;;  %p1153_p3 = scmp.lt.s32.totalorder %s38_s20, %s38_s20 }
  0x4a   :  { %p1154_p4 = scmp.lt.s32.totalorder %s1152_s5, %s1148_s11 }
  0x4c   :  { %p1155_p5 = por %p1154_p4, %p1153_p3 }
  0x4e   :  { %p1156_p6 = pnand %p1155_p5, %p1149_p2 }
  0x50   :  { %1159 = shalt.err (!%p1156_p6)
}
  0x51   :  { %40 = dma.hbm_to_vmem [thread:$0]  %s1468_s2, 16, %s38_s20, [#allocation3]  }
  0x52   :  { %s1168_s25 = scalar_lea.vmem %s58_s23, 16  ;;  %s1172_s13 = scalar_lea.vmem %s58_s23, 32 }
  0x53   :  { %p1169_p7 = scmp.ne.s32.totalorder %s58_s23, %s1168_s25  ;;  %p1173_p8 = scmp.lt.s32.totalorder %s58_s23, %s58_s23 }
  0x54   :  { %p1174_p9 = scmp.lt.s32.totalorder %s1172_s13, %s1168_s25 }
  0x56   :  { %p1175_p10 = por %p1174_p9, %p1173_p8 }
  0x58   :  { %p1176_p11 = pnand %p1175_p10, %p1169_p7 }
  0x5a   :  { %1179 = shalt.err (!%p1176_p11)
}
  0x5b   :  { %60 = dma.hbm_to_vmem [thread:$0]  %s1470_s4, 16, %s58_s23, [#allocation5]  }
  0x5c   :  { %s1306_s28 = smov [#allocation9]   ;;  %s1307_s29 = smov [#allocation12]  }
  0x5d   :  { %s77_s7 = sshll.u32 %s1306_s28, 4  ;;  %s97_s30 = sshll.u32 %s1307_s29, 4  ;;  %s78_s7 = int_to_ptr.vmem [resolvable:$true] %s77_s7  ;;  %s98_s30 = int_to_ptr.vmem [resolvable:$true] %s97_s30 }
  0x5e   :  { %s1188_s16 = scalar_lea.vmem %s78_s7, 16  ;;  %s1192_s2 = scalar_lea.vmem %s78_s7, 32 }
  0x5f   :  { %p1189_p12 = scmp.ne.s32.totalorder %s78_s7, %s1188_s16  ;;  %p1193_p13 = scmp.lt.s32.totalorder %s78_s7, %s78_s7 }
  0x60   :  { %p1194_p0 = scmp.lt.s32.totalorder %s1192_s2, %s1188_s16 }
  0x62   :  { %p1195_p1 = por %p1194_p0, %p1193_p13 }
  0x64   :  { %p1196_p2 = pnand %p1195_p1, %p1189_p12 }
  0x66   :  { %1199 = shalt.err (!%p1196_p2)
}
  0x67   :  { %80 = dma.hbm_to_vmem [thread:$0]  %s1472_s6, 16, %s78_s7, [#allocation8]  }
  0x68   :  { %s1208_s18 = scalar_lea.vmem %s98_s30, 16  ;;  %s1212_s4 = scalar_lea.vmem %s98_s30, 32 }
  0x69   :  { %p1209_p3 = scmp.ne.s32.totalorder %s98_s30, %s1208_s18  ;;  %p1213_p4 = scmp.lt.s32.totalorder %s98_s30, %s98_s30 }
  0x6a   :  { %p1214_p5 = scmp.lt.s32.totalorder %s1212_s4, %s1208_s18 }
  0x6c   :  { %p1215_p6 = por %p1214_p5, %p1213_p4 }
  0x6e   :  { %p1216_p7 = pnand %p1215_p6, %p1209_p3 }
  0x70   :  { %1219 = shalt.err (!%p1216_p7)
}
  0x71   :  { %100 = dma.hbm_to_vmem [thread:$0]  %s1474_s8, 16, %s98_s30, [#allocation11]  }
  0x72   :  { %s1308_s20 = smov [#allocation15]   ;;  %s1309_s23 = smov [#allocation18]  }
  0x73   :  { %s119_s22 = sshll.u32 %s1308_s20, 4  ;;  %s141_s11 = sshll.u32 %s1309_s23, 4  ;;  %s120_s22 = int_to_ptr.vmem [resolvable:$true] %s119_s22  ;;  %s142_s11 = int_to_ptr.vmem [resolvable:$true] %s141_s11 }
  0x74   :  { %s1228_s5 = scalar_lea.vmem %s120_s22, 16  ;;  %s1232_s6 = scalar_lea.vmem %s120_s22, 32 }
  0x75   :  { %p1229_p8 = scmp.ne.s32.totalorder %s120_s22, %s1228_s5  ;;  %p1233_p9 = scmp.lt.s32.totalorder %s120_s22, %s120_s22 }
  0x76   :  { %p1234_p10 = scmp.lt.s32.totalorder %s1232_s6, %s1228_s5 }
  0x78   :  { %p1235_p11 = por %p1234_p10, %p1233_p9 }
  0x7a   :  { %p1236_p12 = pnand %p1235_p11, %p1229_p8 }
  0x7c   :  { %1239 = shalt.err (!%p1236_p12)
}
  0x7d   :  { %122 = dma.hbm_to_vmem [thread:$0]  %s1476_s10, 16, %s120_s22, [#allocation14]  }
  0x7e   :  { %s1248_s25 = scalar_lea.vmem %s142_s11, 16  ;;  %s1252_s8 = scalar_lea.vmem %s142_s11, 32 }
  0x7f   :  { %p1249_p13 = scmp.ne.s32.totalorder %s142_s11, %s1248_s25  ;;  %p1253_p0 = scmp.lt.s32.totalorder %s142_s11, %s142_s11 }
  0x80   :  { %p1254_p1 = scmp.lt.s32.totalorder %s1252_s8, %s1248_s25 }
  0x82   :  { %p1255_p2 = por %p1254_p1, %p1253_p0 }
  0x84   :  { %p1256_p3 = pnand %p1255_p2, %p1249_p13 }
  0x86   :  { %1259 = shalt.err (!%p1256_p3)
}
  0x87   :  { %144 = dma.hbm_to_vmem [thread:$0]  %s1478_s12, 16, %s142_s11, [#allocation17]  }
  0x88   :  { %s1310_s27 = smov [#allocation21]  }
  0x89   :  { %s163_s28 = sshll.u32 %s1310_s27, 4  ;;  %s164_s28 = int_to_ptr.vmem [resolvable:$true] %s163_s28 }
  0x8a   :  { %s1268_s7 = scalar_lea.vmem %s164_s28, 64  ;;  %p1273_p5 = scmp.lt.s32.totalorder %s164_s28, %s164_s28 }
  0x8b   :  { %p1269_p4 = scmp.ne.s32.totalorder %s164_s28, %s1268_s7  ;;  %p1274_p6 = scmp.lt.s32.totalorder %s1268_s7, %s1268_s7 }
  0x8d   :  { %p1275_p7 = por %p1274_p6, %p1273_p5 }
  0x8f   :  { %p1276_p8 = pnand %p1275_p7, %p1269_p4 }
  0x91   :  { %1279 = shalt.err (!%p1276_p8)
}
  0x92   :  { %166 = dma.hbm_to_vmem [thread:$0]  %s1480_s14, 64, %s164_s28, [#allocation20]  }
  0x93   :  { %1280 = dma.done.wait [#allocation3], 16  }
  0x94   :  { %1281 = vsyncadd [#allocation3], 4294967280 }
  0x95   :  { %1282 = dma.done.wait [#allocation5], 32  }
  0x96   :  { %1283 = vsyncadd [#allocation5], 4294967264 }
  0x97   :  { %1284 = dma.done.wait [#allocation8], 80  }
  0x98   :  { %1285 = vsyncadd [#allocation8], 4294967216 }
  0x99   :  { %1286 = dma.done.wait [#allocation11], 32  }
  0x9a   :  { %1287 = vsyncadd [#allocation11], 4294967264 }
  0x9b   :  { %1288 = dma.done.wait [#allocation14], 272  }
  0x9c   :  { %1289 = vsyncadd [#allocation14], 4294967024 }
  0x9d   :  { %1290 = dma.done.wait [#allocation17], 528  }
  0x9e   :  { %1291 = vsyncadd [#allocation17], 4294966768 }
  0x9f   :  { %1292 = dma.done.wait [#allocation20], 4160  }
  0xa0   :  { %1293 = vsyncadd [#allocation20], 4294963136  ;;  %v1311_v0 = vmov 0.0   ;;  %vm1312_vm0 = vmmov 0   ;;  %v208_v1 = vld [vmem:[%s1467_s1 + $0x8] sm:$0xff]  ;;  %v207_v2 = vld [vmem:[%s1467_s1] sm:$0xff] }
  0xa1   :  { %938 = vmatprep.subr.mxu0 %v1311_v0  ;;  %942 = vmatprep.mubr.msk.f32.mxu0 %vm1312_vm0, %v1311_v0  ;;  %v206_v3 = vld [vmem:[%s1466_s0] sm:$0x3]  ;;  %vm216_vm1 = vcmask 130048   ;;  %v336_v4 = vld [vmem:[#allocation7] sm:$0xf]  ;;  %vm348_vm2 = vcmask 1043456  }
  0xa2   :  { %945 = vmatprep.subr.mxu1 %v1311_v0  ;;  %947 = vmatprep.mubr.msk.f32.mxu1 %vm1312_vm0, %v1311_v0  ;;  %v903_v5 = vld [vmem:[#allocation2] ss:$0 sm:$0xff]  ;;  %vm297_vm3 = vcmask 25600   ;;  %v906_v34 = vld [vmem:[#allocation4] ss:$0 sm:$0xff]  ;;  %vm344_vm4 = vcmask 31744  }
  0xa3   :  { %939 = vmatpush3.msra.mxu0 %v208_v1  ;;  %946 = vmatpush3.msk.msra.mxu1 %vm348_vm2, %v336_v4  ;;  %v907_v36 = vld [vmem:[#allocation6] ss:$0 sm:$0xff]  ;;  %v468_v39 = vld [vmem:[#allocation13 + $0x8] sm:$0xff]  ;;  %v467_v40 = vld [vmem:[#allocation13] sm:$0xff]  ;;  %vm429_vm5 = vcmask 123904   ;;  %vm560_vm6 = vcmask 261120  }
  0xa4   :  { %940 = vmatprep.subr.mxu0 %v1311_v0  ;;  %950 = vmatprep.subr.mxu1 %v1311_v0  ;;  %v552_v41 = vld [vmem:[#allocation16 + $0x18] sm:$0xff]  ;;  %v551_v42 = vld [vmem:[#allocation16 + $0x10] sm:$0xff]  ;;  %v908_v43 = vld [vmem:[#allocation9] ss:$0 sm:$0xff]  ;;  %vm695_vm7 = vcmask 523264  }
  0xa5   :  { %941 = vmatpush3.msra.mxu0 %v207_v2 }
  0xa6   :  { %943 = vmatmul.mubr.msk.f32.vlgmr.msra.gmra.mxu0 %vm216_vm1, %v206_v3  ;;  %957 = vmatprep.subr.mxu0 %v1311_v0 }
  0xa7   :  { %965 = vmatprep.mubr.msk.f32.mxu0 %vm1312_vm0, %v1311_v0  ;;  %958 = vmatpush3.msra.mxu0 %v552_v41  ;;  %v649_v41 = vld [vmem:[#allocation19 + $0x40] sm:$0xff] }
  0xa8   :  { %959 = vmatprep.subr.mxu0 %v1311_v0 }
  0xa9   :  { %960 = vmatpush3.msra.mxu0 %v551_v42  ;;  %v651_v42 = vld [vmem:[#allocation19 + $0x50] sm:$0xff] }
  0xaa   :  { %961 = vmatprep.subr.mxu0 %v1311_v0 }
 0x166   :  { %v286_v6 = vpop.f32.mrf.mxu0 }
 0x167   :  { %v287_v7 = vadd.f32 %v903_v5, %v286_v6 }
 0x168   :  { %v944_v8 = vpop.f32.mrf.mxu0 }
 0x169   :  { %v905_v9 = vmul.f32 -1.442695, %v287_v7 }
 0x16b   :  { %988 = vpow2.f32 %v905_v9  ;;  %v912_v9 = vld [vmem:[#allocation10] ss:$0 sm:$0xff] }
 0x178   :  { %v989_v10 = vpop.eup %988 }
 0x179   :  { %v293_v11 = vadd.f32 1.0, %v989_v10 }
 0x17b   :  { %990 = vrcp.f32 %v293_v11  ;;  %v913_v11 = vld [vmem:[#allocation12] ss:$0 sm:$0xff] }
 0x188   :  { %v991_v12 = vpop.eup %990 }
 0x189   :  { %v296_v13 = vmul.f32 %v991_v12, %v287_v7 }
 0x18b   :  { %v298_v14 = vsel %vm297_vm3, %v296_v13, 0.0 }
 0x18c   :  { %v299_v15 = vrot.slane %v298_v14, 4 }
 0x18e   :  { %v300_v16 = vadd.f32 %v299_v15, %v298_v14  ;;  %v550_v14 = vld [vmem:[#allocation16 + $0x8] sm:$0xff]  ;;  %v549_v15 = vld [vmem:[#allocation16] sm:$0xff] }
 0x18f   :  { %962 = vmatpush3.msra.mxu0 %v550_v14 }
 0x190   :  { %v301_v17 = vrot.slane %v300_v16, 2  ;;  %963 = vmatprep.subr.mxu0 %v1311_v0 }
 0x191   :  { %964 = vmatpush3.msra.mxu0 %v549_v15 }
 0x192   :  { %v302_v18 = vadd.f32 %v301_v17, %v300_v16  ;;  %v914_v16 = vld [vmem:[#allocation15] ss:$0 sm:$0xff] }
 0x194   :  { %v303_v19 = vrot.slane %v302_v18, 1 }
 0x196   :  { %v304_v20 = vadd.f32 %v303_v19, %v302_v18 }
 0x198   :  { %v306_v21 = vmul.f32 0.5, %v304_v20  ;;  %v670_v20 = vld [vmem:[#allocation19 + $0xe8] sm:$0xff] }
 0x19a   :  { %v307_v22 = vsub.f32 %v296_v13, %v306_v21  ;;  %v672_v21 = vld [vmem:[#allocation19 + $0xf8] sm:$0xff] }
 0x19b   :  { %786 = vmatprep.subr.mxu0 %v672_v21 }
 0x19c   :  { %v308_v23 = vmul.f32 %v307_v22, %v307_v22 }
 0x19e   :  { %v309_v24 = vsel %vm297_vm3, %v308_v23, 0.0  ;;  %v671_v23 = vld [vmem:[#allocation19 + $0xf0] sm:$0xff] }
 0x19f   :  { %v310_v25 = vrot.slane %v309_v24, 4 }
 0x1a1   :  { %v311_v26 = vadd.f32 %v310_v25, %v309_v24  ;;  %v666_v24 = vld [vmem:[#allocation19 + $0xc8] sm:$0xff]  ;;  %v668_v25 = vld [vmem:[#allocation19 + $0xd8] sm:$0xff] }
 0x1a3   :  { %v312_v27 = vrot.slane %v311_v26, 2 }
 0x1a5   :  { %v313_v28 = vadd.f32 %v312_v27, %v311_v26  ;;  %v665_v26 = vld [vmem:[#allocation19 + $0xc0] sm:$0xff]  ;;  %v667_v27 = vld [vmem:[#allocation19 + $0xd0] sm:$0xff] }
 0x1a7   :  { %v314_v29 = vrot.slane %v313_v28, 1 }
 0x1a9   :  { %v315_v30 = vadd.f32 %v314_v29, %v313_v28  ;;  %v662_v28 = vld [vmem:[#allocation19 + $0xa8] sm:$0xff]  ;;  %v664_v29 = vld [vmem:[#allocation19 + $0xb8] sm:$0xff] }
 0x1ab   :  { %v316_v31 = vmul.f32 0.5, %v315_v30  ;;  %v663_v30 = vld [vmem:[#allocation19 + $0xb0] sm:$0xff] }
 0x1ad   :  { %v317_v32 = vadd.f32 1e-05, %v316_v31  ;;  %v658_v31 = vld [vmem:[#allocation19 + $0x88] sm:$0xff] }
 0x1af   :  { %992 = vrsqrt.f32 %v317_v32  ;;  %v660_v32 = vld [vmem:[#allocation19 + $0x98] sm:$0xff] }
 0x1bc   :  { %v993_v33 = vpop.eup %992 }
 0x1bd   :  { %v319_v35 = vmul.f32 %v993_v33, %v307_v22  ;;  %v669_v22 = vld [vmem:[#allocation19 + $0xe0] sm:$0xff] }
 0x1be   :  { %v657_v33 = vld [vmem:[#allocation19 + $0x80] sm:$0xff] }
 0x1bf   :  { %v327_v37 = vmul.f32 %v906_v34, %v319_v35  ;;  %v659_v34 = vld [vmem:[#allocation19 + $0x90] sm:$0xff]  ;;  %v654_v35 = vld [vmem:[#allocation19 + $0x68] sm:$0xff] }
 0x1c1   :  { %v335_v38 = vadd.f32 %v907_v36, %v327_v37  ;;  %v656_v36 = vld [vmem:[#allocation19 + $0x78] sm:$0xff]  ;;  %v653_v37 = vld [vmem:[#allocation19 + $0x60] sm:$0xff] }
 0x1c3   :  { %948 = vmatmul.mubr.msk.f32.vlgmr.msra.gmra.mxu1 %vm344_vm4, %v335_v38  ;;  %v655_v38 = vld [vmem:[#allocation19 + $0x70] sm:$0xff] }
 0x1c4   :  { %954 = vmatprep.mubr.msk.f32.mxu1 %vm1312_vm0, %v1311_v0  ;;  %951 = vmatpush3.msra.mxu1 %v468_v39  ;;  %v650_v39 = vld [vmem:[#allocation19 + $0x48] sm:$0xff] }
 0x1c5   :  { %952 = vmatprep.subr.mxu1 %v1311_v0 }
 0x1c6   :  { %953 = vmatpush3.msra.mxu1 %v467_v40  ;;  %v652_v40 = vld [vmem:[#allocation19 + $0x58] sm:$0xff] }
 0x1c7   :  { %715 = vmatprep.subr.mxu1 %v670_v20 }
 0x283   :  { %v418_v44 = vpop.f32.mrf.mxu1 }
 0x284   :  { %v419_v45 = vadd.f32 %v908_v43, %v418_v44  ;;  %v646_v43 = vld [vmem:[#allocation19 + $0x28] sm:$0xff]  ;;  %v648_v44 = vld [vmem:[#allocation19 + $0x38] sm:$0xff] }
 0x285   :  { %v949_v46 = vpop.f32.mrf.mxu1 }
 0x286   :  { %v911_v47 = vmul.f32 -1.442695, %v419_v45  ;;  %v647_v46 = vld [vmem:[#allocation19 + $0x30] sm:$0xff] }
 0x288   :  { %994 = vpow2.f32 %v911_v47  ;;  %v642_v47 = vld [vmem:[#allocation19 + $0x8] sm:$0xff] }
 0x295   :  { %v995_v48 = vpop.eup %994 }
 0x296   :  { %v425_v49 = vadd.f32 1.0, %v995_v48  ;;  %v644_v48 = vld [vmem:[#allocation19 + $0x18] sm:$0xff] }
 0x298   :  { %996 = vrcp.f32 %v425_v49  ;;  %v641_v49 = vld [vmem:[#allocation19] sm:$0xff] }
 0x2a5   :  { %v997_v50 = vpop.eup %996 }
 0x2a6   :  { %v428_v51 = vmul.f32 %v997_v50, %v419_v45  ;;  %v645_v45 = vld [vmem:[#allocation19 + $0x20] sm:$0xff]  ;;  %v643_v50 = vld [vmem:[#allocation19 + $0x10] sm:$0xff] }
 0x2a8   :  { %v430_v52 = vsel %vm429_vm5, %v428_v51, 0.0 }
 0x2a9   :  { %v431_v53 = vrot.slane %v430_v52, 4 }
 0x2ab   :  { %v432_v54 = vadd.f32 %v431_v53, %v430_v52 }
 0x2ad   :  { %v433_v55 = vrot.slane %v432_v54, 2 }
 0x2af   :  { %v434_v56 = vadd.f32 %v433_v55, %v432_v54 }
 0x2b1   :  { %v435_v57 = vrot.slane %v434_v56, 1 }
 0x2b3   :  { %v436_v58 = vadd.f32 %v435_v57, %v434_v56 }
 0x2b5   :  { %v437_v59 = vmul.f32 0.5, %v436_v58 }
 0x2b7   :  { %v438_v60 = vsub.f32 %v428_v51, %v437_v59  ;;  %v916_v51 = vld [vmem:[#allocation18] ss:$0 sm:$0xff] }
 0x2b9   :  { %v439_v61 = vmul.f32 %v438_v60, %v438_v60 }
 0x2bb   :  { %v440_v62 = vsel %vm429_vm5, %v439_v61, 0.0 }
 0x2bc   :  { %v441_v63 = vrot.slane %v440_v62, 4 }
 0x2be   :  { %v442_v1 = vadd.f32 %v441_v63, %v440_v62 }
 0x2c0   :  { %v443_v2 = vrot.slane %v442_v1, 2 }
 0x2c2   :  { %v444_v3 = vadd.f32 %v443_v2, %v442_v1  ;;  %v673_v1 = vld [vmem:[#allocation21] sm:$0xf] }
 0x2c4   :  { %v445_v4 = vrot.slane %v444_v3, 1 }
 0x2c6   :  { %v446_v5 = vadd.f32 %v445_v4, %v444_v3 }
 0x2c8   :  { %v447_v6 = vmul.f32 0.5, %v446_v5 }
 0x2ca   :  { %v448_v7 = vadd.f32 1e-05, %v447_v6 }
 0x2cc   :  { %998 = vrsqrt.f32 %v448_v7 }
 0x2d9   :  { %v999_v8 = vpop.eup %998 }
 0x2da   :  { %v450_v10 = vmul.f32 %v999_v8, %v438_v60  ;;  %v675_v60 = vlaneseq }
 0x2dc   :  { %v458_v12 = vmul.f32 %v912_v9, %v450_v10  ;;  %v676_v61 = vshrl.u32 %v675_v60, 7 }
 0x2de   :  { %v466_v13 = vadd.f32 %v913_v11, %v458_v12  ;;  %v677_v62 = vsub.s32 0, %v676_v61  ;;  %v685_v63 = vsub.s32 2, %v676_v61  ;;  %v681_v2 = vsub.s32 1, %v676_v61 }
 0x2df   :  { %v689_v3 = vsub.s32 3, %v676_v61 }
 0x2e0   :  { %955 = vmatmul.mubr.msk.f32.vlgmr.msra.gmra.mxu1 %vm216_vm1, %v466_v13  ;;  %v678_v4 = vrot.slane %v673_v1, %v677_v62  ;;  %v686_v5 = vrot.slane %v673_v1, %v685_v63  ;;  %v682_v6 = vrot.slane %v673_v1, %v681_v2 }
 0x2e1   :  { %763 = vmatprep.mubr.f32.mxu1 %v1311_v0  ;;  %716 = vmatpush1.msra.mxu1 %v669_v22  ;;  %v690_v7 = vrot.slane %v673_v1, %v689_v3 }
 0x2e2   :  { %717 = vmatprep.subr.mxu1 %v666_v24 }
 0x2e3   :  { %718 = vmatpush1.msra.mxu1 %v665_v26 }
 0x2e4   :  { %719 = vmatprep.subr.mxu1 %v662_v28  ;;  %v1313_v28 = vmov 1983009808  }
 0x3a0   :  { %v545_v17 = vpop.f32.mrf.mxu1 }
 0x3a1   :  { %v546_v18 = vadd.f32 %v914_v16, %v545_v17 }
 0x3a2   :  { %v956_v19 = vpop.f32.mrf.mxu1 }
 0x3a3   :  { %966 = vmatmul.mubr.msk.f32.vlgmr.msra.gmra.mxu0 %vm560_vm6, %v546_v18 }
 0x3a4   :  { %834 = vmatprep.mubr.f32.mxu0 %v1311_v0  ;;  %787 = vmatpush1.msra.mxu0 %v671_v23  ;;  %v661_v0 = vld [vmem:[#allocation19 + $0xa0] sm:$0xff] }
 0x3a5   :  { %788 = vmatprep.subr.mxu0 %v668_v25  ;;  %720 = vmatpush1.msra.mxu1 %v661_v0 }
 0x3a6   :  { %789 = vmatpush1.msra.mxu0 %v667_v27  ;;  %721 = vmatprep.subr.mxu1 %v658_v31 }
 0x3a7   :  { %790 = vmatprep.subr.mxu0 %v664_v29  ;;  %722 = vmatpush1.msra.mxu1 %v657_v33  ;;  %v876_v29 = vunpack.c.l.s4 %v1313_v28 }
 0x3a8   :  { %791 = vmatpush1.msra.mxu0 %v663_v30  ;;  %723 = vmatprep.subr.mxu1 %v654_v35 }
 0x3a9   :  { %792 = vmatprep.subr.mxu0 %v660_v32  ;;  %724 = vmatpush1.msra.mxu1 %v653_v37  ;;  %v877_v0 = vunpack.c.0.s8 %v876_v29 }
 0x3aa   :  { %793 = vmatpush1.msra.mxu0 %v659_v34  ;;  %725 = vmatprep.subr.mxu1 %v650_v39 }
 0x3ab   :  { %794 = vmatprep.subr.mxu0 %v656_v36  ;;  %726 = vmatpush1.msra.mxu1 %v649_v41  ;;  %v880_v36 = vsub.s32 %v877_v0, %v676_v61 }
 0x3ac   :  { %795 = vmatpush1.msra.mxu0 %v655_v38  ;;  %727 = vmatprep.subr.mxu1 %v646_v43 }
 0x3ad   :  { %796 = vmatprep.subr.mxu0 %v652_v40  ;;  %728 = vmatpush1.msra.mxu1 %v645_v45 }
 0x3ae   :  { %797 = vmatpush1.msra.mxu0 %v651_v42  ;;  %729 = vmatprep.subr.mxu1 %v642_v47 }
 0x3af   :  { %798 = vmatprep.subr.mxu0 %v648_v44  ;;  %730 = vmatpush1.msra.mxu1 %v641_v49 }
 0x3b0   :  { %799 = vmatpush1.msra.mxu0 %v647_v46 }
 0x3b1   :  { %800 = vmatprep.subr.mxu0 %v644_v48 }
 0x3b2   :  { %801 = vmatpush1.msra.mxu0 %v643_v50 }
 0x463   :  { %v630_v52 = vpop.f32.mrf.mxu0 }
 0x464   :  { %v631_v53 = vadd.f32 %v916_v51, %v630_v52 }
 0x465   :  { %v967_v54 = vpop.f32.mrf.mxu0 }
 0x466   :  { %v918_v55 = vmul.f32 -1.442695, %v631_v53 }
 0x468   :  { %1000 = vpow2.f32 %v918_v55 }
 0x475   :  { %v1001_v56 = vpop.eup %1000 }
 0x476   :  { %v637_v57 = vadd.f32 1.0, %v1001_v56 }
 0x478   :  { %1002 = vrcp.f32 %v637_v57 }
 0x485   :  { %v1003_v58 = vpop.eup %1002 }
 0x486   :  { %v640_v59 = vmul.f32 %v1003_v58, %v631_v53 }
 0x488   :  { %919 = vmatmul.mubr.msk.f32.vlgmr.msra.gmra.mxu1 %vm695_vm7, %v640_v59  ;;  %920 = vmatmul.mubr.msk.f32.vlgmr.msra.gmra.mxu0 %vm695_vm7, %v640_v59 }
 0x548   :  { %v765_v8 = vpop.f32.mrf.mxu1  ;;  %v836_v9 = vpop.f32.mrf.mxu0 }
 0x549   :  { %v766_v10 = vadd.f32 %v765_v8, %v678_v4  ;;  %v837_v11 = vadd.f32 %v836_v9, %v686_v5 }
 0x54a   :  { %v767_v12 = vpop.f32.mrf.mxu1  ;;  %v838_v13 = vpop.f32.mrf.mxu0 }
 0x54b   :  { %v921_v14 = vmul.f32 -1.442695, %v766_v10  ;;  %v923_v15 = vmul.f32 -1.442695, %v837_v11  ;;  %v768_v16 = vadd.f32 %v767_v12, %v682_v6  ;;  %v839_v17 = vadd.f32 %v838_v13, %v690_v7 }
 0x54d   :  { %1004 = vpow2.f32 %v921_v14  ;;  %v922_v18 = vmul.f32 -1.442695, %v768_v16  ;;  %v924_v19 = vmul.f32 -1.442695, %v839_v17 }
 0x54e   :  { %1006 = vpow2.f32 %v923_v15 }
 0x54f   :  { %1008 = vpow2.f32 %v922_v18 }
 0x550   :  { %1010 = vpow2.f32 %v924_v19 }
 0x55a   :  { %v1005_v20 = vpop.eup %1004 }
 0x55b   :  { %v1007_v21 = vpop.eup %1006  ;;  %v853_v22 = vadd.f32 1.0, %v1005_v20 }
 0x55c   :  { %v1009_v23 = vpop.eup %1008  ;;  %v855_v24 = vadd.f32 1.0, %v1007_v21 }
 0x55d   :  { %v1011_v25 = vpop.eup %1010  ;;  %1012 = vrcp.f32 %v853_v22  ;;  %v854_v26 = vadd.f32 1.0, %v1009_v23 }
 0x55e   :  { %1014 = vrcp.f32 %v855_v24  ;;  %v856_v27 = vadd.f32 1.0, %v1011_v25 }
 0x55f   :  { %1016 = vrcp.f32 %v854_v26 }
 0x560   :  { %1018 = vrcp.f32 %v856_v27 }
 0x56a   :  { %v1013_v30 = vpop.eup %1012 }
 0x56b   :  { %v1015_v31 = vpop.eup %1014  ;;  %v865_v34 = vmul.f32 %v1013_v30, %v766_v10 }
 0x56c   :  { %v1017_v32 = vpop.eup %1016  ;;  %v867_v37 = vmul.f32 %v1015_v31, %v837_v11 }
 0x56d   :  { %v1019_v33 = vpop.eup %1018  ;;  %v866_v35 = vmul.f32 %v1017_v32, %v768_v16 }
 0x56e   :  { %v868_v38 = vmul.f32 %v1019_v33, %v839_v17 }
 0x56f   :  { %v873_v39 = vcombine.low %v865_v34, %v866_v35 }
 0x570   :  { %v874_v40 = vcombine.low %v867_v37, %v868_v38 }
 0x571   :  { %v881_v41 = vrot.slane %v873_v39, %v880_v36 }
 0x572   :  { %v888_v42 = vrot.slane %v874_v40, %v880_v36 }
 0x574   :  { %v889_v43 = vcombine.low %v881_v41, %v888_v42 }
 0x576   :  { %891 = vst [vmem:[%s1481_s15] sm:$0xff] %v889_v43 }
 0x577   :  { %896 = vsyncpa [#allocation3], 1 }
 0x578   :  { %897 = vsyncpa [#allocation5], 1 }
 0x579   :  { %898 = vsyncpa [#allocation8], 1 }
 0x57a   :  { %899 = vsyncpa [#allocation11], 1 }
 0x57b   :  { %900 = vsyncpa [#allocation14], 1 }
 0x57c   :  { %901 = vsyncpa [#allocation17], 1 }
 0x57d   :  { %902 = vsyncpa [#allocation20], 1 }

// kernel: generator_forward.6
= control target key start
LH: loop header
LB: loop body
LE: loop exit
PB: predicated region body
PF: predicated region fallthrough
CT: control target
= control target key end

     0   :  { %12 = vsyncpa [#allocation3], 0  ;;  %s2513_s0 = inlined_call_operand.vmem [shape: f32[2,32,64], index: 0, kind: input, shape index: {}]   ;;  %s2514_s1 = inlined_call_operand.hbm [shape: f32[32,288], index: 1, kind: input, shape index: {}]   ;;  %s2515_s2 = inlined_call_operand.vmem [shape: f32[32,1], index: 2, kind: input, shape index: {}]   ;;  %s2516_s3 = inlined_call_operand.hbm [shape: f32[16,288], index: 3, kind: input, shape index: {}]   ;;  %s2517_s4 = inlined_call_operand.hbm [shape: f32[16,144], index: 4, kind: input, shape index: {}]   ;;  %s2518_s5 = inlined_call_operand.hbm [shape: f32[16,32], index: 5, kind: input, shape index: {}]   ;;  %s2519_s6 = inlined_call_operand.vmem [shape: f32[16,1], index: 6, kind: input, shape index: {}]   ;;  %s2520_s7 = inlined_call_operand.vmem [shape: f32[2,16,64], index: 7, kind: output, shape index: {}]  }
   0x1   :  { %13 = vsyncpa [#allocation5], 0 }
   0x2   :  { %14 = vsyncpa [#allocation8], 0  ;;  %s1973_s24 = smov 0  }
   0x3 LB: > { %s1979_s25 = sadd.s32 4294967295, %s1910_s24   ;;  %p1465_p0 = scmp.ge.s32.totalorder %s1910_s24, 1  ;;  %s1910_s24 = sphi %s1973_s24, %s20_s24  }
   0x4   : > { %p203_p1 = scmp.lt.s32.totalorder %s1910_s24, 3  ;;  %p1725_p2 = scmp.eq.s32.totalorder %s1979_s25, 0 }
   0x5   : > { %s1912_s27 = smov [#allocation4]   ;;  %s1913_s29 = smov [#allocation2]  }
   0x6   : > { %p1984_p3 = pnand %p1465_p0, %p203_p1  ;;  %s231_s28 = sshll.u32 %s1912_s27, 4  ;;  %s232_s28 = int_to_ptr.vmem [resolvable:$true] %s231_s28 }
   0x7   : > { %s215_s30 = sshll.u32 %s1913_s29, 4  ;;  %s1914_s9 = smov [#allocation6]   ;;  %s1990_s30 = int_to_ptr.vmem [resolvable:$true] %s215_s30 }
   0x8   : > { %p1712_p4 = pneg %p1984_p3  ;;  %s244_s10 = sshll.u32 %s1914_s9, 4  ;;  %s1998_s10 = int_to_ptr.vmem [resolvable:$true] %s244_s10 }
   0x9   : > { %s1799_s11 = scalar_lea.vmem %s232_s28, 768  ;;  %p1807_p10 = scmp.lt.s32.totalorder %s232_s28, %s232_s28 }
   0xa   : > { %p1994_p5 = pnand %p1725_p2, %p1712_p4  ;;  %p1800_p7 = scmp.ne.s32.totalorder %s232_s28, %s1799_s11 }
   0xb   : > { %p1808_p11 = scmp.lt.s32.totalorder %s1799_s11, %s1799_s11 }
   0xc   : > { %p1790_p6 = pneg %p1994_p5 }
   0xd   : > { %p1809_p12 = por %p1808_p11, %p1807_p10 }
   0xe   : > { %p1802_p8 = pnand %p1800_p7, %p1790_p6 }
  0x10   : > { %p1803_p9 = pneg %p1802_p8 }
  0x12   : > { %p1810_p13 = pnand %p1809_p12, %p1803_p9 }
  0x14   : > { %1813 = shalt.err (!%p1810_p13)
}
  0x15   : > { %s1915_s12 = smov 384   ;;  %s1916_s13 = smov 24  }
  0x16   : > { %1718 = dma.hbm_to_vmem [thread:$0]  (!%p1994_p5), %s2516_s3, 768, %s232_s28, [#allocation5], %s1915_s12, %s1915_s12, %s1916_s13  }
  0x17   : > { %s1825_s16 = scalar_lea.vmem %s1990_s30, 1536  ;;  %p1833_p7 = scmp.lt.s32.totalorder %s1990_s30, %s1990_s30 }
  0x18   : > { %p1826_p0 = scmp.ne.s32.totalorder %s1990_s30, %s1825_s16  ;;  %p1834_p8 = scmp.lt.s32.totalorder %s1825_s16, %s1825_s16 }
  0x1a   : > { %p1828_p1 = pnand %p1826_p0, %p1790_p6  ;;  %p1835_p9 = por %p1834_p8, %p1833_p7 }
  0x1c   : > { %p1829_p4 = pneg %p1828_p1 }
  0x1e   : > { %p1836_p10 = pnand %p1835_p9, %p1829_p4 }
  0x20   : > { %1839 = shalt.err (!%p1836_p10)
}
  0x21   : > { %1715 = dma.hbm_to_vmem [thread:$0]  (!%p1994_p5), %s2514_s1, 1536, %s1990_s30, [#allocation3], %s1915_s12, %s1915_s12, %s1916_s13  }
  0x22   : > { %s1851_s19 = scalar_lea.vmem %s1998_s10, 512  ;;  %p1859_p0 = scmp.lt.s32.totalorder %s1998_s10, %s1998_s10 }
  0x23   : > { %p1852_p11 = scmp.ne.s32.totalorder %s1998_s10, %s1851_s19  ;;  %p1860_p1 = scmp.lt.s32.totalorder %s1851_s19, %s1851_s19 }
  0x25   : > { %p1854_p12 = pnand %p1852_p11, %p1790_p6  ;;  %p1861_p4 = por %p1860_p1, %p1859_p0 }
  0x27   : > { %p1855_p13 = pneg %p1854_p12 }
  0x29   : > { %p1862_p7 = pnand %p1861_p4, %p1855_p13 }
  0x2b   : > { %1865 = shalt.err (!%p1862_p7)
}
  0x2c   : > { %s1917_s20 = smov 256   ;;  %s1918_s21 = smov 16  }
  0x2d   : > { %1721 = dma.hbm_to_vmem [thread:$0]  (!%p1994_p5), %s2517_s4, 512, %s1998_s10, [#allocation5], %s1917_s20, %s1917_s20, %s1918_s21  }
  0x2e   : > { %s1919_s27 = smov [#allocation7]  }
  0x2f   : > { %s257_s28 = sshll.u32 %s1919_s27, 4  ;;  %s258_s28 = int_to_ptr.vmem [resolvable:$true] %s257_s28 }
  0x30   : > { %s1877_s29 = scalar_lea.vmem %s258_s28, 256  ;;  %p1885_p11 = scmp.lt.s32.totalorder %s258_s28, %s258_s28 }
  0x31   : > { %p1878_p8 = scmp.ne.s32.totalorder %s258_s28, %s1877_s29  ;;  %p1886_p12 = scmp.lt.s32.totalorder %s1877_s29, %s1877_s29 }
  0x33   : > { %p1880_p9 = pnand %p1878_p8, %p1790_p6  ;;  %p1887_p13 = por %p1886_p12, %p1885_p11 }
  0x35   : > { %p1881_p10 = pneg %p1880_p9 }
  0x37   : > { %p1888_p0 = pnand %p1887_p13, %p1881_p10 }
  0x39   : > { %1891 = shalt.err (!%p1888_p0)
}
  0x3a   : > { %s1920_s30 = smov 128   ;;  %s1921_s9 = smov 8  }
  0x3b   : > { %1724 = dma.hbm_to_vmem [thread:$0]  (!%p1994_p5), %s2518_s5, 256, %s258_s28, [#allocation8], %s1920_s30, %s1920_s30, %s1921_s9  }
  0x3c   : > { %284 = sbr.rel (%p1984_p3) target bundleno = 2217 (0x8a9), region = 48 }
  0x41   : > { %1897 = dma.done.wait (%p1725_p2), [#allocation3], 1536  }
  0x42   : > { %1899 = vsyncadd (%p1725_p2), [#allocation3], 4294965760 }
  0x43   : > { %1901 = dma.done.wait (%p1725_p2), [#allocation5], 1280  }
  0x44   : > { %1903 = vsyncadd (%p1725_p2), [#allocation5], 4294966016 }
  0x45   : > { %1905 = dma.done.wait (%p1725_p2), [#allocation8], 256  }
  0x46   : > { %1907 = vsyncadd (%p1725_p2), [#allocation8], 4294967040  ;;  %p328_p3 = scmp.lt.s32.totalorder %s1979_s25, 1  ;;  %s1922_s14 = smov 9   ;;  %vm374_vm0 = vcmask 72704   ;;  %vm379_vm1 = vcmask 596992   ;;  %v384_v22 = vlaneseq }
  0x47   : > { %s1923_s15 = smov 111   ;;  %s1924_s16 = smov 120   ;;  %v343_v16 = vld [vmem:[#allocation2 + $0x8] sm:$0xff]  ;;  %v357_v17 = vld [vmem:[%s2515_s2 + $0x18] sm:$0xff]  ;;  %v356_v18 = vld [vmem:[%s2515_s2 + $0x10] sm:$0xff]  ;;  %v1931_v19 = vmov 0  }
  0x48   : > { %s2528_s25 = smov (!%p328_p3, %s1979_s25), 1  ;;  %s1925_s17 = smov 126   ;;  %610 = vmatprep.mubr.f32.mxu0 %v343_v16  ;;  %1762 = vset.pattern.permute.xlu0 %v1931_v19  ;;  %v354_v20 = vld [vmem:[%s2515_s2] sm:$0xff]  ;;  %v355_v21 = vld [vmem:[%s2515_s2 + $0x8] sm:$0xff]  ;;  %v385_v23 = vand.u32 127, %v384_v22  ;;  %v345_v59 = vld [vmem:[#allocation2 + $0x18] sm:$0xff] }
  0x49   : > { %s1556_s26 = sshll.u32 %s2528_s25, 5  ;;  %s1926_s18 = smov 112   ;;  %1763 = vset.pattern.permute.xlu1 %v1931_v19  ;;  %v342_v55 = vld [vmem:[#allocation2] sm:$0xff]  ;;  %v349_v60 = vld [vmem:[#allocation2 + $0x38] sm:$0xff]  ;;  %v348_v63 = vld [vmem:[#allocation2 + $0x30] sm:$0xff]  ;;  %vm533_vm4 = vcmask 261120  }
  0x4a   : > { %s332_s13 = scalar_lea.vmem %s2513_s0, %s1556_s26  ;;  %s1927_s19 = smov 127   ;;  %v386_v24 = vand.u32 7, %v385_v23  ;;  %v346_v56 = vld [vmem:[#allocation2 + $0x20] sm:$0xff]  ;;  %vm1026_vm5 = vcmask 523264   ;;  %vm1146_vm6 = vcmask 130048   ;;  %v1268_v25 = vld [vmem:[#allocation7] sm:$0xff] }
  0x4b   : > { %v341_v0 = vld [vmem:[%s332_s13 + $0x18] sm:$0xff]  ;;  %v339_v1 = vld [vmem:[%s332_s13 + $0x8] sm:$0xff]  ;;  %v340_v2 = vld [vmem:[%s332_s13 + $0x10] sm:$0xff]  ;;  %s1928_s20 = smov 118   ;;  %s1929_s21 = smov 119  }
  0x4c   : > { %368 = vrot.lane.b32.xlu0 %v341_v0, %s1922_s14  ;;  %364 = vrot.lane.b32.xlu1 %v339_v1, %s1922_s14  ;;  %v338_v3 = vld [vmem:[%s332_s13] sm:$0xff]  ;;  %s1930_s22 = smov 110   ;;  %vm2162_vm2 = vcmp.gt.s32.totalorder %v386_v24, 0  ;;  %vm2174_vm3 = vcmp.lt.s32.totalorder %v386_v24, 7  ;;  %v352_v0 = vld [vmem:[#allocation2 + $0x50] sm:$0xff]  ;;  %v351_v1 = vld [vmem:[#allocation2 + $0x48] sm:$0xff] }
  0x50   : > { %366 = vrot.lane.b32.xlu0 %v340_v2, %s1922_s14  ;;  %362 = vrot.lane.b32.xlu1 %v338_v3, %s1922_s14  ;;  %v344_v2 = vld [vmem:[#allocation2 + $0x10] sm:$0xff]  ;;  %v347_v3 = vld [vmem:[#allocation2 + $0x28] sm:$0xff] }
  0xbe   : > { %v369_v4 = vpop.permute.xlu0 %368  ;;  %v365_v5 = vpop.permute.xlu1 %364 }
  0xbf   : > { %v378_v6 = vsel %vm374_vm0, 0.0, %v369_v4  ;;  %v376_v10 = vsel %vm374_vm0, 0.0, %v365_v5  ;;  %v350_v4 = vld [vmem:[#allocation2 + $0x40] sm:$0xff]  ;;  %v353_v5 = vld [vmem:[#allocation2 + $0x58] sm:$0xff] }
  0xc0   : > { %v2072_v7 = vsel %vm379_vm1, %v378_v6, 0.0  ;;  %v2088_v13 = vsel %vm379_vm1, %v376_v10, 0.0 }
  0xc1   : > { %507 = vrot.lane.b32.xlu0 %v2072_v7, %s1923_s15  ;;  %419 = vrot.lane.b32.xlu1 %v2072_v7, %s1924_s16 }
  0xc2   : > { %v367_v8 = vpop.permute.xlu0 %366  ;;  %v363_v12 = vpop.permute.xlu1 %362 }
  0xc3   : > { %v377_v9 = vsel %vm374_vm0, 0.0, %v367_v8  ;;  %v375_v14 = vsel %vm374_vm0, 0.0, %v363_v12 }
  0xc4   : > { %v2081_v11 = vsel %vm379_vm1, %v377_v9, 0.0  ;;  %v2096_v15 = vsel %vm379_vm1, %v375_v14, 0.0 }
  0xc5   : > { %505 = vrot.lane.b32.xlu0 %v2081_v11, %s1923_s15  ;;  %417 = vrot.lane.b32.xlu1 %v2081_v11, %s1924_s16 }
  0xc9   : > { %503 = vrot.lane.b32.xlu0 %v2088_v13, %s1923_s15  ;;  %415 = vrot.lane.b32.xlu1 %v2088_v13, %s1924_s16 }
  0xcd   : > { %413 = vrot.lane.b32.xlu1 %v2096_v15, %s1924_s16  ;;  %501 = vrot.lane.b32.xlu0 %v2096_v15, %s1923_s15 }
  0xd1   : > { %403 = vrot.lane.b32.xlu1 %v2072_v7, %s1925_s17  ;;  %451 = vrot.lane.b32.xlu0 %v2072_v7, %s1926_s18 }
  0xd5   : > { %401 = vrot.lane.b32.xlu1 %v2081_v11, %s1925_s17  ;;  %449 = vrot.lane.b32.xlu0 %v2081_v11, %s1926_s18 }
  0xd9   : > { %399 = vrot.lane.b32.xlu1 %v2088_v13, %s1925_s17  ;;  %447 = vrot.lane.b32.xlu0 %v2088_v13, %s1926_s18 }
  0xdd   : > { %397 = vrot.lane.b32.xlu1 %v2096_v15, %s1925_s17  ;;  %445 = vrot.lane.b32.xlu0 %v2096_v15, %s1926_s18 }
  0xe1   : > { %483 = vrot.lane.b32.xlu1 %v2072_v7, %s1927_s19  ;;  %435 = vrot.lane.b32.xlu0 %v2072_v7, %s1928_s20 }
  0xe5   : > { %481 = vrot.lane.b32.xlu1 %v2081_v11, %s1927_s19  ;;  %433 = vrot.lane.b32.xlu0 %v2081_v11, %s1928_s20 }
  0xe9   : > { %479 = vrot.lane.b32.xlu1 %v2088_v13, %s1927_s19  ;;  %431 = vrot.lane.b32.xlu0 %v2088_v13, %s1928_s20 }
  0xed   : > { %477 = vrot.lane.b32.xlu1 %v2096_v15, %s1927_s19  ;;  %429 = vrot.lane.b32.xlu0 %v2096_v15, %s1928_s20 }
  0xf1   : > { %493 = vrot.lane.b32.xlu1 %v2081_v11, %s1929_s21  ;;  %495 = vrot.lane.b32.xlu0 %v2072_v7, %s1929_s21 }
  0xf5   : > { %489 = vrot.lane.b32.xlu1 %v2096_v15, %s1929_s21  ;;  %491 = vrot.lane.b32.xlu0 %v2088_v13, %s1929_s21 }
  0xf9   : > { %465 = vrot.lane.b32.xlu1 %v2081_v11, %s1930_s22  ;;  %467 = vrot.lane.b32.xlu0 %v2072_v7, %s1930_s22 }
  0xfd   : > { %461 = vrot.lane.b32.xlu1 %v2096_v15, %s1930_s22  ;;  %463 = vrot.lane.b32.xlu0 %v2088_v13, %s1930_s22 }
 0x101   : > { %530 = vperm.xlu0 %1762, %v357_v17   ;;  %525 = vperm.xlu1 %1763, %v356_v18  }
 0x105   : > { %515 = vperm.xlu0 %1762, %v354_v20   ;;  %520 = vperm.xlu1 %1763, %v355_v21  }
 0x133   : > { %v508_v26 = vpop.permute.xlu0 %507  ;;  %v420_v27 = vpop.permute.xlu1 %419 }
 0x134   : > { %1558 = vmatprep.subr.mxu0 %v508_v26 }
 0x135   : > { %1559 = vmatpush3.msk.msra.mxu0 %vm2162_vm2, %v420_v27 }
 0x137   : > { %v506_v28 = vpop.permute.xlu0 %505  ;;  %v418_v29 = vpop.permute.xlu1 %417 }
 0x138   : > { %1560 = vmatprep.subr.mxu0 %v506_v28 }
 0x139   : > { %1561 = vmatpush3.msk.msra.mxu0 %vm2162_vm2, %v418_v29 }
 0x13b   : > { %v504_v30 = vpop.permute.xlu0 %503  ;;  %v416_v31 = vpop.permute.xlu1 %415 }
 0x13c   : > { %1562 = vmatprep.subr.mxu0 %v504_v30 }
 0x13d   : > { %1563 = vmatpush3.msk.msra.mxu0 %vm2162_vm2, %v416_v31 }
 0x13f   : > { %v502_v32 = vpop.permute.xlu0 %501  ;;  %v414_v33 = vpop.permute.xlu1 %413 }
 0x140   : > { %1564 = vmatprep.subr.mxu0 %v502_v32 }
 0x141   : > { %1565 = vmatpush3.msk.msra.mxu0 %vm2162_vm2, %v414_v33 }
 0x143   : > { %v452_v35 = vpop.permute.xlu0 %451  ;;  %v404_v36 = vpop.permute.xlu1 %403 }
 0x144   : > { %1566 = vmatprep.subr.msk.mxu0 %vm2162_vm2, %v452_v35 }
 0x145   : > { %1567 = vmatpush3.msk.msra.mxu0 %vm2174_vm3, %v404_v36 }
 0x147   : > { %v450_v37 = vpop.permute.xlu0 %449  ;;  %v402_v38 = vpop.permute.xlu1 %401 }
 0x148   : > { %1568 = vmatprep.subr.msk.mxu0 %vm2162_vm2, %v450_v37 }
 0x149   : > { %1569 = vmatpush3.msk.msra.mxu0 %vm2174_vm3, %v402_v38 }
 0x14b   : > { %v448_v39 = vpop.permute.xlu0 %447  ;;  %v400_v40 = vpop.permute.xlu1 %399 }
 0x14c   : > { %1570 = vmatprep.subr.msk.mxu0 %vm2162_vm2, %v448_v39 }
 0x14d   : > { %1571 = vmatpush3.msk.msra.mxu0 %vm2174_vm3, %v400_v40 }
 0x14f   : > { %v446_v41 = vpop.permute.xlu0 %445  ;;  %v398_v42 = vpop.permute.xlu1 %397 }
 0x150   : > { %1572 = vmatprep.subr.msk.mxu0 %vm2162_vm2, %v446_v41 }
 0x151   : > { %1573 = vmatpush3.msk.msra.mxu0 %vm2174_vm3, %v398_v42 }
 0x153   : > { %v436_v43 = vpop.permute.xlu0 %435  ;;  %v484_v44 = vpop.permute.xlu1 %483 }
 0x154   : > { %1574 = vmatprep.subr.msk.mxu0 %vm2174_vm3, %v436_v43 }
 0x155   : > { %1575 = vmatpush3.msra.mxu0 %v484_v44 }
 0x157   : > { %v434_v45 = vpop.permute.xlu0 %433  ;;  %v482_v46 = vpop.permute.xlu1 %481 }
 0x158   : > { %1576 = vmatprep.subr.msk.mxu0 %vm2174_vm3, %v434_v45 }
 0x159   : > { %1577 = vmatpush3.msra.mxu0 %v482_v46 }
 0x15b   : > { %v432_v47 = vpop.permute.xlu0 %431  ;;  %v480_v48 = vpop.permute.xlu1 %479 }
 0x15c   : > { %1578 = vmatprep.subr.msk.mxu0 %vm2174_vm3, %v432_v47 }
 0x15d   : > { %1579 = vmatpush3.msra.mxu0 %v480_v48  ;;  %v717_v48 = vld [vmem:[#allocation4 + $0x8] sm:$0xff] }
 0x15e   : > { %940 = vmatprep.mubr.f32.mxu1 %v717_v48 }
 0x15f   : > { %v430_v49 = vpop.permute.xlu0 %429  ;;  %v478_v50 = vpop.permute.xlu1 %477 }
 0x160   : > { %1580 = vmatprep.subr.msk.mxu0 %vm2174_vm3, %v430_v49  ;;  %v718_v49 = vld [vmem:[#allocation4 + $0x10] sm:$0xff] }
 0x161   : > { %1581 = vmatpush3.msra.mxu0 %v478_v50 }
 0x163   : > { %v496_v51 = vpop.permute.xlu0 %495  ;;  %v494_v52 = vpop.permute.xlu1 %493 }
 0x164   : > { %1582 = vmatprep.subr.mxu0 %v496_v51 }
 0x165   : > { %1583 = vmatpush3.msk.msra.mxu0 %vm2162_vm2, %v2072_v7 }
 0x166   : > { %1584 = vmatprep.subr.mxu0 %v494_v52 }
 0x167   : > { %v492_v53 = vpop.permute.xlu0 %491  ;;  %1585 = vmatpush3.msk.msra.mxu0 %vm2162_vm2, %v2081_v11  ;;  %v490_v54 = vpop.permute.xlu1 %489 }
 0x168   : > { %1586 = vmatprep.subr.mxu0 %v492_v53 }
 0x169   : > { %1587 = vmatpush3.msk.msra.mxu0 %vm2162_vm2, %v2088_v13 }
 0x16a   : > { %1588 = vmatprep.subr.mxu0 %v490_v54 }
 0x16b   : > { %v468_v57 = vpop.permute.xlu0 %467  ;;  %1589 = vmatpush3.msk.msra.mxu0 %vm2162_vm2, %v2096_v15  ;;  %v466_v58 = vpop.permute.xlu1 %465 }
 0x16c   : > { %611 = vmatmul.mubr.f32.vlgmr.msra.gmra.mxu0 %v342_v55  ;;  %1660 = vmatprep.subr.msk.mxu0 %vm2174_vm3, %v468_v57 }
 0x16d   : > { %1661 = vmatpush3.msk.msra.mxu0 %vm2174_vm3, %v468_v57  ;;  %615 = vmatprep.mubr.f32.mxu0 %v346_v56 }
 0x16e   : > { %1662 = vmatprep.subr.msk.mxu0 %vm2174_vm3, %v466_v58 }
 0x16f   : > { %v464_v61 = vpop.permute.xlu0 %463  ;;  %1663 = vmatpush3.msk.msra.mxu0 %vm2174_vm3, %v466_v58  ;;  %v462_v62 = vpop.permute.xlu1 %461 }
 0x170   : > { %616 = vmatmul.mubr.f32.gmra.mxu0 %v345_v59  ;;  %1664 = vmatprep.subr.msk.mxu0 %vm2174_vm3, %v464_v61 }
 0x171   : > { %1665 = vmatpush3.msk.msra.mxu0 %vm2174_vm3, %v464_v61  ;;  %620 = vmatprep.mubr.f32.mxu0 %v349_v60 }
 0x172   : > { %1666 = vmatprep.subr.msk.mxu0 %vm2174_vm3, %v462_v62 }
 0x173   : > { %1667 = vmatpush3.msk.msra.mxu0 %vm2174_vm3, %v462_v62 }
 0x174   : > { %621 = vmatmul.mubr.f32.gmra.mxu0 %v348_v63 }
 0x175   : > { %625 = vmatprep.mubr.f32.mxu0 %v352_v0 }
 0x178   : > { %626 = vmatmul.mubr.f32.gmra.mxu0 %v351_v1 }
 0x179   : > { %1668 = vmatprep.mubr.msk.f32.mxu0 %vm533_vm4, %v344_v2 }
 0x17c   : > { %1669 = vmatmul.mubr.msk.f32.vlgmr.msra.gmra.mxu0 %vm533_vm4, %v347_v3  ;;  %v526_v13 = vpop.permute.xlu1 %525  ;;  %v531_v16 = vpop.permute.xlu0 %530 }
 0x17d   : > { %1671 = vmatprep.mubr.msk.f32.mxu0 %vm533_vm4, %v350_v4 }
 0x180   : > { %1672 = vmatmul.mubr.msk.f32.gmra.mxu0 %vm533_vm4, %v353_v5  ;;  %v521_v22 = vpop.permute.xlu1 %520  ;;  %v516_v28 = vpop.permute.xlu0 %515 }
 0x181   : > { %1682 = vmatprep.mubr.msk.f32.mxu0 %vm533_vm4, %v718_v49 }
 0x22c   : > { %v1590_v6 = vpop.f32.mrf.mxu0 }
 0x22e   : > { %v1591_v7 = vpop.f32.mrf.mxu0 }
 0x22f   : > { %v1592_v24 = vadd.f32 %v1591_v7, %v1590_v6 }
 0x230   : > { %v1593_v8 = vpop.f32.mrf.mxu0 }
 0x231   : > { %v613_v32 = vadd.f32 %v1592_v24, %v516_v28 }
 0x232   : > { %v1594_v9 = vpop.f32.mrf.mxu0 }
 0x233   : > { %v1595_v20 = vadd.f32 %v1594_v9, %v1593_v8 }
 0x234   : > { %v1596_v10 = vpop.f32.mrf.mxu0 }
 0x235   : > { %v618_v30 = vadd.f32 %v1595_v20, %v521_v22 }
 0x236   : > { %v1597_v11 = vpop.f32.mrf.mxu0 }
 0x237   : > { %v1598_v18 = vadd.f32 %v1597_v11, %v1596_v10 }
 0x238   : > { %v1599_v12 = vpop.f32.mrf.mxu0 }
 0x239   : > { %v623_v27 = vadd.f32 %v1598_v18, %v526_v13  ;;  %v719_v18 = vld [vmem:[#allocation4 + $0x18] sm:$0xff] }
 0x23a   : > { %v1600_v14 = vpop.f32.mrf.mxu0 }
 0x23b   : > { %v1601_v15 = vadd.f32 %v1600_v14, %v1599_v12  ;;  %v716_v14 = vld [vmem:[#allocation4] sm:$0xff] }
 0x23c   : > { %v1670_v17 = vpop.f32.mrf.mxu0 }
 0x23d   : > { %v628_v21 = vadd.f32 %v1601_v15, %v531_v16  ;;  %v2240_v33 = vadd.f32 %v1670_v17, %v618_v30  ;;  %v720_v15 = vld [vmem:[#allocation4 + $0x20] sm:$0xff] }
 0x23e   : > { %v697_v19 = vpop.f32.mrf.mxu0 }
 0x23f   : > { %v2244_v35 = vadd.f32 %v697_v19, %v613_v32 }
 0x240   : > { %v1673_v23 = vpop.f32.mrf.mxu0 }
 0x241   : > { %v2234_v26 = vadd.f32 %v1673_v23, %v628_v21  ;;  %v721_v21 = vld [vmem:[#allocation4 + $0x28] sm:$0xff] }
 0x242   : > { %v707_v29 = vpop.f32.mrf.mxu0 }
 0x243   : > { %v2236_v31 = vadd.f32 %v707_v29, %v623_v27  ;;  %732 = vrot.lane.b32.xlu1 %v2234_v26, %s1922_s14 }
 0x245   : > { %730 = vrot.lane.b32.xlu0 %v2236_v31, %s1922_s14 }
 0x247   : > { %728 = vrot.lane.b32.xlu1 %v2240_v33, %s1922_s14 }
 0x249   : > { %726 = vrot.lane.b32.xlu0 %v2244_v35, %s1922_s14 }
 0x2b5   : > { %v733_v36 = vpop.permute.xlu1 %732 }
 0x2b6   : > { %v741_v44 = vsel %vm374_vm0, 0.0, %v733_v36 }
 0x2b7   : > { %v731_v37 = vpop.permute.xlu0 %730  ;;  %v2276_v45 = vsel %vm379_vm1, %v741_v44, 0.0 }
 0x2b8   : > { %v740_v46 = vsel %vm374_vm0, 0.0, %v731_v37 }
 0x2b9   : > { %v729_v38 = vpop.permute.xlu1 %728  ;;  %v2288_v47 = vsel %vm379_vm1, %v740_v46, 0.0 }
 0x2ba   : > { %v739_v39 = vsel %vm374_vm0, 0.0, %v729_v38 }
 0x2bb   : > { %v2252_v40 = vsel %vm379_vm1, %v739_v39, 0.0  ;;  %v727_v41 = vpop.permute.xlu0 %726 }
 0x2bc   : > { %772 = vrot.lane.b32.xlu0 %v2252_v40, %s1924_s16  ;;  %860 = vrot.lane.b32.xlu1 %v2252_v40, %s1923_s15  ;;  %v738_v42 = vsel %vm374_vm0, 0.0, %v727_v41 }
 0x2bd   : > { %v2264_v43 = vsel %vm379_vm1, %v738_v42, 0.0 }
 0x2c0   : > { %756 = vrot.lane.b32.xlu0 %v2252_v40, %s1925_s17  ;;  %804 = vrot.lane.b32.xlu1 %v2252_v40, %s1926_s18 }
 0x2c4   : > { %770 = vrot.lane.b32.xlu0 %v2264_v43, %s1924_s16  ;;  %858 = vrot.lane.b32.xlu1 %v2264_v43, %s1923_s15 }
 0x2c8   : > { %754 = vrot.lane.b32.xlu0 %v2264_v43, %s1925_s17  ;;  %802 = vrot.lane.b32.xlu1 %v2264_v43, %s1926_s18 }
 0x2cc   : > { %776 = vrot.lane.b32.xlu0 %v2276_v45, %s1924_s16  ;;  %864 = vrot.lane.b32.xlu1 %v2276_v45, %s1923_s15 }
 0x2d0   : > { %760 = vrot.lane.b32.xlu0 %v2276_v45, %s1925_s17  ;;  %808 = vrot.lane.b32.xlu1 %v2276_v45, %s1926_s18 }
 0x2d4   : > { %774 = vrot.lane.b32.xlu0 %v2288_v47, %s1924_s16  ;;  %862 = vrot.lane.b32.xlu1 %v2288_v47, %s1923_s15 }
 0x2d8   : > { %840 = vrot.lane.b32.xlu0 %v2276_v45, %s1927_s19  ;;  %792 = vrot.lane.b32.xlu1 %v2276_v45, %s1928_s20 }
 0x2dc   : > { %758 = vrot.lane.b32.xlu0 %v2288_v47, %s1925_s17  ;;  %806 = vrot.lane.b32.xlu1 %v2288_v47, %s1926_s18 }
 0x2e0   : > { %836 = vrot.lane.b32.xlu0 %v2252_v40, %s1927_s19  ;;  %788 = vrot.lane.b32.xlu1 %v2252_v40, %s1928_s20 }
 0x2e4   : > { %838 = vrot.lane.b32.xlu0 %v2288_v47, %s1927_s19  ;;  %790 = vrot.lane.b32.xlu1 %v2288_v47, %s1928_s20 }
 0x2e8   : > { %834 = vrot.lane.b32.xlu0 %v2264_v43, %s1927_s19  ;;  %786 = vrot.lane.b32.xlu1 %v2264_v43, %s1928_s20 }
 0x2ec   : > { %850 = vrot.lane.b32.xlu0 %v2288_v47, %s1929_s21  ;;  %852 = vrot.lane.b32.xlu1 %v2276_v45, %s1929_s21 }
 0x2f0   : > { %846 = vrot.lane.b32.xlu0 %v2264_v43, %s1929_s21  ;;  %848 = vrot.lane.b32.xlu1 %v2252_v40, %s1929_s21 }
 0x2f4   : > { %822 = vrot.lane.b32.xlu0 %v2288_v47, %s1930_s22  ;;  %824 = vrot.lane.b32.xlu1 %v2276_v45, %s1930_s22 }
 0x2f8   : > { %818 = vrot.lane.b32.xlu0 %v2264_v43, %s1930_s22  ;;  %820 = vrot.lane.b32.xlu1 %v2252_v40, %s1930_s22 }
 0x32e   : > { %v773_v50 = vpop.permute.xlu0 %772  ;;  %v861_v51 = vpop.permute.xlu1 %860 }
 0x332   : > { %v757_v52 = vpop.permute.xlu0 %756  ;;  %v805_v53 = vpop.permute.xlu1 %804 }
 0x336   : > { %v771_v54 = vpop.permute.xlu0 %770  ;;  %v859_v55 = vpop.permute.xlu1 %858 }
 0x33a   : > { %v755_v56 = vpop.permute.xlu0 %754  ;;  %v803_v57 = vpop.permute.xlu1 %802 }
 0x33e   : > { %v777_v58 = vpop.permute.xlu0 %776  ;;  %v865_v59 = vpop.permute.xlu1 %864 }
 0x33f   : > { %1610 = vmatprep.subr.mxu1 %v865_v59 }
 0x340   : > { %1611 = vmatpush3.msk.msra.mxu1 %vm2162_vm2, %v777_v58 }
 0x342   : > { %v761_v60 = vpop.permute.xlu0 %760  ;;  %v809_v61 = vpop.permute.xlu1 %808 }
 0x346   : > { %v775_v62 = vpop.permute.xlu0 %774  ;;  %v863_v63 = vpop.permute.xlu1 %862 }
 0x347   : > { %1612 = vmatprep.subr.mxu1 %v863_v63 }
 0x348   : > { %1613 = vmatpush3.msk.msra.mxu1 %vm2162_vm2, %v775_v62 }
 0x349   : > { %1614 = vmatprep.subr.mxu1 %v861_v51 }
 0x34a   : > { %v841_v0 = vpop.permute.xlu0 %840  ;;  %1615 = vmatpush3.msk.msra.mxu1 %vm2162_vm2, %v773_v50  ;;  %v793_v1 = vpop.permute.xlu1 %792 }
 0x34b   : > { %1616 = vmatprep.subr.mxu1 %v859_v55 }
 0x34c   : > { %1617 = vmatpush3.msk.msra.mxu1 %vm2162_vm2, %v771_v54 }
 0x34d   : > { %1618 = vmatprep.subr.msk.mxu1 %vm2162_vm2, %v809_v61 }
 0x34e   : > { %v759_v2 = vpop.permute.xlu0 %758  ;;  %1619 = vmatpush3.msk.msra.mxu1 %vm2174_vm3, %v761_v60  ;;  %v807_v3 = vpop.permute.xlu1 %806 }
 0x34f   : > { %1620 = vmatprep.subr.msk.mxu1 %vm2162_vm2, %v807_v3 }
 0x350   : > { %1621 = vmatpush3.msk.msra.mxu1 %vm2174_vm3, %v759_v2  ;;  %v1932_v2 = vmov 0.0  }
 0x351   : > { %1622 = vmatprep.subr.msk.mxu1 %vm2162_vm2, %v805_v53 }
 0x352   : > { %v837_v4 = vpop.permute.xlu0 %836  ;;  %1623 = vmatpush3.msk.msra.mxu1 %vm2174_vm3, %v757_v52  ;;  %v789_v5 = vpop.permute.xlu1 %788 }
 0x353   : > { %1624 = vmatprep.subr.msk.mxu1 %vm2162_vm2, %v803_v57 }
 0x354   : > { %1625 = vmatpush3.msk.msra.mxu1 %vm2174_vm3, %v755_v56 }
 0x355   : > { %1626 = vmatprep.subr.msk.mxu1 %vm2174_vm3, %v793_v1 }
 0x356   : > { %v839_v6 = vpop.permute.xlu0 %838  ;;  %1627 = vmatpush3.msra.mxu1 %v841_v0  ;;  %v791_v7 = vpop.permute.xlu1 %790 }
 0x357   : > { %1628 = vmatprep.subr.msk.mxu1 %vm2174_vm3, %v791_v7 }
 0x358   : > { %1629 = vmatpush3.msra.mxu1 %v839_v6 }
 0x359   : > { %1630 = vmatprep.subr.msk.mxu1 %vm2174_vm3, %v789_v5 }
 0x35a   : > { %v835_v8 = vpop.permute.xlu0 %834  ;;  %1631 = vmatpush3.msra.mxu1 %v837_v4  ;;  %v787_v9 = vpop.permute.xlu1 %786 }
 0x35b   : > { %1632 = vmatprep.subr.msk.mxu1 %vm2174_vm3, %v787_v9  ;;  %v1069_v9 = vld [vmem:[#allocation6 + $0x8] sm:$0xff] }
 0x35c   : > { %1633 = vmatpush3.msra.mxu1 %v835_v8 }
 0x35e   : > { %v851_v10 = vpop.permute.xlu0 %850  ;;  %v853_v11 = vpop.permute.xlu1 %852 }
 0x35f   : > { %1634 = vmatprep.subr.mxu1 %v853_v11 }
 0x360   : > { %1635 = vmatpush3.msk.msra.mxu1 %vm2162_vm2, %v2276_v45 }
 0x361   : > { %1636 = vmatprep.subr.mxu1 %v851_v10 }
 0x362   : > { %v847_v12 = vpop.permute.xlu0 %846  ;;  %1637 = vmatpush3.msk.msra.mxu1 %vm2162_vm2, %v2288_v47  ;;  %v849_v13 = vpop.permute.xlu1 %848 }
 0x363   : > { %1638 = vmatprep.subr.mxu1 %v849_v13 }
 0x364   : > { %1639 = vmatpush3.msk.msra.mxu1 %vm2162_vm2, %v2252_v40 }
 0x365   : > { %1640 = vmatprep.subr.mxu1 %v847_v12 }
 0x366   : > { %v823_v16 = vpop.permute.xlu0 %822  ;;  %1641 = vmatpush3.msk.msra.mxu1 %vm2162_vm2, %v2264_v43  ;;  %v825_v17 = vpop.permute.xlu1 %824 }
 0x367   : > { %941 = vmatmul.mubr.f32.vlgmr.msra.gmra.mxu1 %v716_v14  ;;  %1674 = vmatprep.subr.msk.mxu0 %vm2174_vm3, %v825_v17 }
 0x368   : > { %1675 = vmatpush3.msk.msra.mxu0 %vm2174_vm3, %v825_v17  ;;  %945 = vmatprep.mubr.f32.mxu1 %v720_v15 }
 0x369   : > { %1676 = vmatprep.subr.msk.mxu0 %vm2174_vm3, %v823_v16  ;;  %1153 = vmatprep.subr.mxu1 %v1932_v2 }
 0x36a   : > { %1677 = vmatpush3.msk.msra.mxu0 %vm2174_vm3, %v823_v16  ;;  %v821_v19 = vpop.permute.xlu1 %820  ;;  %v819_v20 = vpop.permute.xlu0 %818 }
 0x36b   : > { %946 = vmatmul.mubr.f32.gmra.mxu1 %v719_v18  ;;  %1678 = vmatprep.subr.msk.mxu0 %vm2174_vm3, %v821_v19 }
 0x36c   : > { %1679 = vmatpush3.msk.msra.mxu0 %vm2174_vm3, %v821_v19  ;;  %1548 = vmatprep.mubr.msk.f32.mxu1 %vm1146_vm6, %v1069_v9 }
 0x36d   : > { %1680 = vmatprep.subr.msk.mxu0 %vm2174_vm3, %v819_v20 }
 0x36e   : > { %1681 = vmatpush3.msk.msra.mxu0 %vm2174_vm3, %v819_v20 }
 0x36f   : > { %1683 = vmatmul.mubr.msk.f32.vlgmr.msra.gmra.mxu0 %vm533_vm4, %v721_v21  ;;  %1685 = vmatprep.subr.mxu0 %v2234_v26 }
 0x370   : > { %1686 = vmatpush3.msra.mxu0 %v2234_v26  ;;  %1693 = vmatprep.mubr.msk.f32.mxu0 %vm533_vm4, %v1268_v25 }
 0x371   : > { %1687 = vmatprep.subr.mxu0 %v2236_v31 }
 0x372   : > { %1688 = vmatpush3.msra.mxu0 %v2236_v31 }
 0x373   : > { %1689 = vmatprep.subr.mxu0 %v2240_v33 }
 0x374   : > { %1690 = vmatpush3.msra.mxu0 %v2240_v33 }
 0x375   : > { %1691 = vmatprep.subr.mxu0 %v2244_v35 }
 0x376   : > { %1692 = vmatpush3.msra.mxu0 %v2244_v35 }
 0x427   : > { %v1642_v22 = vpop.f32.mrf.mxu1 }
 0x429   : > { %v1643_v23 = vpop.f32.mrf.mxu1 }
 0x42a   : > { %v1644_v26 = vadd.f32 %v1643_v23, %v1642_v22 }
 0x42b   : > { %v1645_v24 = vpop.f32.mrf.mxu1 }
 0x42d   : > { %v1646_v27 = vpop.f32.mrf.mxu1 }
 0x42e   : > { %v1647_v28 = vadd.f32 %v1646_v27, %v1645_v24  ;;  %v1068_v27 = vld [vmem:[#allocation6] sm:$0xff] }
 0x42f   : > { %v1684_v29 = vpop.f32.mrf.mxu0 }
 0x430   : > { %v1023_v30 = vadd.f32 %v1684_v29, %v1647_v28  ;;  %v1071_v29 = vld [vmem:[#allocation6 + $0x18] sm:$0xff] }
 0x431   : > { %v1017_v32 = vpop.f32.mrf.mxu0 }
 0x432   : > { %v1018_v36 = vadd.f32 %v1644_v26, %v1017_v32  ;;  %v1030_v31 = vsel %vm1026_vm5, %v1023_v30, 0.0  ;;  %v1070_v26 = vld [vmem:[#allocation6 + $0x10] sm:$0xff] }
 0x433   : > { %1031 = vadd.xlane.f32.xlu1 %v1030_v31 }
 0x434   : > { %v1027_v33 = vsel %vm1026_vm5, %v1018_v36, 0.0 }
 0x435   : > { %1028 = vadd.xlane.f32.xlu0 %v1027_v33 }
 0x4bc   : > { %v1032_v37 = vpop.xlane.xlu1 %1031 }
 0x4bd   : > { %v1035_v38 = vmul.f32 0.015625, %v1032_v37 }
 0x4be   : > { %v1029_v35 = vpop.xlane.xlu0 %1028 }
 0x4bf   : > { %v1037_v39 = vsub.f32 %v1023_v30, %v1035_v38  ;;  %v1034_v40 = vmul.f32 0.015625, %v1029_v35  ;;  %v1269_v30 = vld [vmem:[#allocation7 + $0x8] sm:$0xff] }
 0x4c0   : > { %1694 = vmatmul.mubr.msk.f32.vlgmr.msra.gmra.mxu0 %vm533_vm4, %v1269_v30 }
 0x4c1   : > { %v1036_v41 = vsub.f32 %v1018_v36, %v1034_v40  ;;  %v1039_v42 = vmul.f32 %v1037_v39, %v1037_v39 }
 0x4c3   : > { %v1043_v43 = vsel %vm1026_vm5, %v1039_v42, 0.0  ;;  %v1038_v44 = vmul.f32 %v1036_v41, %v1036_v41 }
 0x4c4   : > { %1044 = vadd.xlane.f32.xlu0 %v1043_v43 }
 0x4c5   : > { %v1040_v45 = vsel %vm1026_vm5, %v1038_v44, 0.0 }
 0x4c6   : > { %1041 = vadd.xlane.f32.xlu1 %v1040_v45 }
 0x54d   : > { %v1045_v46 = vpop.xlane.xlu0 %1044 }
 0x54e   : > { %v1047_v47 = vmul.f32 0.015625, %v1045_v46 }
 0x54f   : > { %v1042_v48 = vpop.xlane.xlu1 %1041 }
 0x550   : > { %v1049_v49 = vadd.f32 1e-05, %v1047_v47  ;;  %v1046_v50 = vmul.f32 0.015625, %v1042_v48  ;;  %v1271_v47 = vld [vmem:[%s2519_s6 + $0x8] sm:$0xff]  ;;  %v1270_v48 = vld [vmem:[%s2519_s6] sm:$0xff] }
 0x552   : > { %1764 = vrsqrt.f32 %v1049_v49  ;;  %v1048_v51 = vadd.f32 1e-05, %v1046_v50 }
 0x554   : > { %1766 = vrsqrt.f32 %v1048_v51 }
 0x55f   : > { %v1765_v52 = vpop.eup %1764 }
 0x560   : > { %v1053_v53 = vmul.f32 %v1765_v52, %v1037_v39 }
 0x561   : > { %v1767_v54 = vpop.eup %1766 }
 0x562   : > { %v1535_v55 = vmul.f32 -1.442695, %v1053_v53  ;;  %v1052_v56 = vmul.f32 %v1767_v54, %v1036_v41 }
 0x564   : > { %1768 = vpow2.f32 %v1535_v55  ;;  %v1534_v57 = vmul.f32 -1.442695, %v1052_v56 }
 0x566   : > { %1770 = vpow2.f32 %v1534_v57 }
 0x571   : > { %v1769_v58 = vpop.eup %1768 }
 0x572   : > { %v1061_v59 = vadd.f32 1.0, %v1769_v58 }
 0x573   : > { %v1771_v60 = vpop.eup %1770 }
 0x574   : > { %1772 = vrcp.f32 %v1061_v59  ;;  %v1060_v61 = vadd.f32 1.0, %v1771_v60 }
 0x576   : > { %1774 = vrcp.f32 %v1060_v61 }
 0x581   : > { %v1773_v62 = vpop.eup %1772 }
 0x582   : > { %v1067_v63 = vmul.f32 %v1773_v62, %v1053_v53 }
 0x583   : > { %v1775_v0 = vpop.eup %1774 }
 0x584   : > { %1076 = vrot.lane.b32.xlu0 %v1067_v63, %s1922_s14  ;;  %v1066_v1 = vmul.f32 %v1775_v0, %v1052_v56 }
 0x586   : > { %1074 = vrot.lane.b32.xlu1 %v1066_v1, %s1922_s14  ;;  %v1695_v1 = vpop.f32.mrf.mxu0  ;;  %s1557_s14 = sshll.u32 %s2528_s25, 4 }
 0x5f6   : > { %v1077_v3 = vpop.permute.xlu0 %1076 }
 0x5f7   : > { %v1081_v4 = vsel %vm374_vm0, 0.0, %v1077_v3 }
 0x5f8   : > { %v2409_v5 = vsel %vm379_vm1, %v1081_v4, 0.0  ;;  %v1075_v6 = vpop.permute.xlu1 %1074 }
 0x5f9   : > { %v1080_v7 = vsel %vm374_vm0, 0.0, %v1075_v6  ;;  %1142 = vrot.lane.b32.xlu1 %v2409_v5, %s1923_s15 }
 0x5fa   : > { %v2415_v8 = vsel %vm379_vm1, %v1080_v7, 0.0 }
 0x5fb   : > { %1140 = vrot.lane.b32.xlu0 %v2415_v8, %s1923_s15 }
 0x5fd   : > { %1114 = vrot.lane.b32.xlu1 %v2409_v5, %s1926_s18 }
 0x5ff   : > { %1112 = vrot.lane.b32.xlu0 %v2415_v8, %s1926_s18 }
 0x601   : > { %1106 = vrot.lane.b32.xlu1 %v2409_v5, %s1928_s20 }
 0x603   : > { %1104 = vrot.lane.b32.xlu0 %v2415_v8, %s1928_s20 }
 0x605   : > { %1136 = vrot.lane.b32.xlu1 %v2409_v5, %s1929_s21 }
 0x607   : > { %1134 = vrot.lane.b32.xlu0 %v2415_v8, %s1929_s21 }
 0x609   : > { %1098 = vrot.lane.b32.xlu1 %v2409_v5, %s1924_s16 }
 0x60b   : > { %1096 = vrot.lane.b32.xlu0 %v2415_v8, %s1924_s16 }
 0x60d   : > { %1090 = vrot.lane.b32.xlu1 %v2409_v5, %s1925_s17 }
 0x60f   : > { %1088 = vrot.lane.b32.xlu0 %v2415_v8, %s1925_s17  ;;  %s337_s17 = scalar_lea.vmem %s2520_s7, %s1557_s14 }
 0x611   : > { %1130 = vrot.lane.b32.xlu1 %v2409_v5, %s1927_s19 }
 0x613   : > { %1128 = vrot.lane.b32.xlu0 %v2415_v8, %s1927_s19 }
 0x615   : > { %1122 = vrot.lane.b32.xlu1 %v2409_v5, %s1930_s22 }
 0x617   : > { %1120 = vrot.lane.b32.xlu0 %v2415_v8, %s1930_s22 }
 0x66b   : > { %v1143_v10 = vpop.permute.xlu1 %1142 }
 0x66c   : > { %1154 = vmatpush1.msra.mxu1 %v1143_v10 }
 0x66d   : > { %1155 = vmatprep.subr.mxu1 %v1932_v2  ;;  %v1141_v11 = vpop.permute.xlu0 %1140 }
 0x66e   : > { %1156 = vmatpush1.msra.mxu1 %v1141_v11 }
 0x66f   : > { %v1115_v12 = vpop.permute.xlu1 %1114  ;;  %1157 = vmatprep.subr.mxu1 %v1932_v2 }
 0x670   : > { %1536 = vmatpush1.msk.msra.mxu1 %vm2162_vm2, %v1115_v12 }
 0x671   : > { %1159 = vmatprep.subr.mxu1 %v1932_v2  ;;  %v1113_v13 = vpop.permute.xlu0 %1112 }
 0x672   : > { %1537 = vmatpush1.msk.msra.mxu1 %vm2162_vm2, %v1113_v13 }
 0x673   : > { %v1107_v14 = vpop.permute.xlu1 %1106  ;;  %1161 = vmatprep.subr.mxu1 %v1932_v2 }
 0x674   : > { %1538 = vmatpush1.msk.msra.mxu1 %vm2174_vm3, %v1107_v14 }
 0x675   : > { %1163 = vmatprep.subr.mxu1 %v1932_v2  ;;  %v1105_v15 = vpop.permute.xlu0 %1104 }
 0x676   : > { %1539 = vmatpush1.msk.msra.mxu1 %vm2174_vm3, %v1105_v15 }
 0x677   : > { %v1137_v16 = vpop.permute.xlu1 %1136  ;;  %1165 = vmatprep.subr.mxu1 %v1932_v2 }
 0x678   : > { %1166 = vmatpush1.msra.mxu1 %v1137_v16 }
 0x679   : > { %1167 = vmatprep.subr.mxu1 %v1932_v2  ;;  %v1135_v17 = vpop.permute.xlu0 %1134 }
 0x67a   : > { %1168 = vmatpush1.msra.mxu1 %v1135_v17 }
 0x67b   : > { %v1099_v18 = vpop.permute.xlu1 %1098  ;;  %1169 = vmatprep.subr.mxu1 %v1932_v2 }
 0x67c   : > { %1540 = vmatpush1.msk.msra.mxu1 %vm2162_vm2, %v1099_v18 }
 0x67d   : > { %1171 = vmatprep.subr.mxu1 %v1932_v2  ;;  %v1097_v19 = vpop.permute.xlu0 %1096 }
 0x67e   : > { %1541 = vmatpush1.msk.msra.mxu1 %vm2162_vm2, %v1097_v19 }
 0x67f   : > { %v1091_v20 = vpop.permute.xlu1 %1090  ;;  %1173 = vmatprep.subr.mxu1 %v1932_v2 }
 0x680   : > { %1542 = vmatpush1.msk.msra.mxu1 %vm2174_vm3, %v1091_v20 }
 0x681   : > { %1175 = vmatprep.subr.mxu1 %v1932_v2  ;;  %v1089_v21 = vpop.permute.xlu0 %1088 }
 0x682   : > { %1543 = vmatpush1.msk.msra.mxu1 %vm2174_vm3, %v1089_v21 }
 0x683   : > { %v1131_v22 = vpop.permute.xlu1 %1130  ;;  %1177 = vmatprep.subr.mxu1 %v1932_v2 }
 0x684   : > { %1178 = vmatpush1.msra.mxu1 %v1131_v22 }
 0x685   : > { %1179 = vmatprep.subr.mxu1 %v1932_v2  ;;  %v1129_v23 = vpop.permute.xlu0 %1128 }
 0x686   : > { %1180 = vmatpush1.msra.mxu1 %v1129_v23 }
 0x687   : > { %1181 = vmatprep.subr.mxu1 %v1932_v2  ;;  %v1123_v24 = vpop.permute.xlu1 %1122 }
 0x688   : > { %1544 = vmatpush1.msk.msra.mxu1 %vm2162_vm2, %v2409_v5 }
 0x689   : > { %1183 = vmatprep.subr.mxu1 %v1932_v2  ;;  %v1121_v28 = vpop.permute.xlu0 %1120 }
 0x68a   : > { %1545 = vmatpush1.msk.msra.mxu1 %vm2162_vm2, %v2415_v8 }
 0x68b   : > { %1213 = vmatprep.subr.mxu1 %v1932_v2 }
 0x68c   : > { %1546 = vmatpush2.msk.msra.mxu1 %vm2174_vm3, %v1123_v24 }
 0x68d   : > { %1215 = vmatprep.subr.mxu1 %v1932_v2  ;;  %v1354_v2 = vpop.f32.mrf.mxu0 }
 0x68e   : > { %1547 = vmatpush2.msk.msra.mxu1 %vm2174_vm3, %v1121_v28 }
 0x68f   : > { %1218 = vmatmul.mubr.f32.vlgmr.msra.gmra.mxu1 %v1068_v27 }
 0x690   : > { %1549 = vmatprep.mubr.msk.f32.mxu1 %vm1146_vm6, %v1071_v29 }
 0x693   : > { %1223 = vmatmul.mubr.f32.gmra.mxu1 %v1070_v26 }
 0x74f   : > { %v1219_v32 = vpop.f32.mrf.mxu1 }
 0x750   : > { %v1228_v36 = vsel %vm1026_vm5, %v1219_v32, 0.0 }
 0x751   : > { %1229 = vadd.xlane.f32.xlu1 %v1228_v36  ;;  %v1221_v31 = vpop.f32.mrf.mxu1 }
 0x753   : > { %v1224_v33 = vpop.f32.mrf.mxu1 }
 0x754   : > { %v1231_v34 = vsel %vm1026_vm5, %v1224_v33, 0.0 }
 0x755   : > { %1232 = vadd.xlane.f32.xlu0 %v1231_v34  ;;  %v1226_v37 = vpop.f32.mrf.mxu1 }
 0x7da   : > { %v1230_v38 = vpop.xlane.xlu1 %1229 }
 0x7db   : > { %v1234_v35 = vmul.f32 0.015625, %v1230_v38 }
 0x7dd   : > { %v1236_v39 = vsub.f32 %v1219_v32, %v1234_v35 }
 0x7de   : > { %v1233_v40 = vpop.xlane.xlu0 %1232 }
 0x7df   : > { %v1235_v41 = vmul.f32 0.015625, %v1233_v40  ;;  %v1238_v42 = vmul.f32 %v1236_v39, %v1236_v39 }
 0x7e1   : > { %v1237_v43 = vsub.f32 %v1224_v33, %v1235_v41  ;;  %v1240_v44 = vsel %vm1026_vm5, %v1238_v42, 0.0 }
 0x7e2   : > { %1241 = vadd.xlane.f32.xlu0 %v1240_v44 }
 0x7e3   : > { %v1239_v45 = vmul.f32 %v1237_v43, %v1237_v43 }
 0x7e5   : > { %v1243_v46 = vsel %vm1026_vm5, %v1239_v45, 0.0 }
 0x7e6   : > { %1244 = vadd.xlane.f32.xlu1 %v1243_v46 }
 0x7f7   : > { %1279 = vperm.xlu1 %1763, %v1271_v47  }
 0x7f8   : > { %1274 = vperm.xlu0 %1762, %v1270_v48  }
 0x86b   : > { %v1242_v49 = vpop.xlane.xlu0 %1241 }
 0x86c   : > { %v1246_v50 = vmul.f32 0.015625, %v1242_v49 }
 0x86e   : > { %v1248_v51 = vadd.f32 1e-05, %v1246_v50 }
 0x86f   : > { %v1245_v52 = vpop.xlane.xlu1 %1244 }
 0x870   : > { %1776 = vrsqrt.f32 %v1248_v51  ;;  %v1247_v53 = vmul.f32 0.015625, %v1245_v52 }
 0x872   : > { %v1249_v54 = vadd.f32 1e-05, %v1247_v53 }
 0x873   : > { %v1275_v3 = vpop.permute.xlu0 %1274  ;;  %v1280_v7 = vpop.permute.xlu1 %1279 }
 0x874   : > { %1778 = vrsqrt.f32 %v1249_v54  ;;  %v1355_v6 = vadd.f32 %v1354_v2, %v1275_v3  ;;  %v1360_v11 = vadd.f32 %v1695_v1, %v1280_v7 }
 0x87d   : > { %v1777_v55 = vpop.eup %1776 }
 0x87e   : > { %v1252_v56 = vmul.f32 %v1777_v55, %v1236_v39 }
 0x880   : > { %v1550_v57 = vmul.f32 -1.442695, %v1252_v56 }
 0x881   : > { %v1779_v58 = vpop.eup %1778 }
 0x882   : > { %v1253_v59 = vmul.f32 %v1779_v58, %v1237_v43  ;;  %1780 = vpow2.f32 %v1550_v57 }
 0x884   : > { %v1551_v60 = vmul.f32 -1.442695, %v1253_v59 }
 0x886   : > { %1782 = vpow2.f32 %v1551_v60 }
 0x88f   : > { %v1781_v61 = vpop.eup %1780 }
 0x890   : > { %v1260_v62 = vadd.f32 1.0, %v1781_v61 }
 0x892   : > { %1784 = vrcp.f32 %v1260_v62 }
 0x893   : > { %v1783_v63 = vpop.eup %1782 }
 0x894   : > { %v1261_v0 = vadd.f32 1.0, %v1783_v63 }
 0x896   : > { %1786 = vrcp.f32 %v1261_v0 }
 0x89f   : > { %v1785_v4 = vpop.eup %1784 }
 0x8a0   : > { %v1266_v5 = vmul.f32 %v1785_v4, %v1252_v56 }
 0x8a2   : > { %v1363_v8 = vadd.f32 %v1355_v6, %v1266_v5 }
 0x8a3   : > { %v1787_v9 = vpop.eup %1786 }
 0x8a4   : > { %v1267_v10 = vmul.f32 %v1787_v9, %v1253_v59  ;;  %1365 = vst.msk [vmem:[%s337_s17] sm:$0xff] %vm1026_vm5, %v1363_v8 }
 0x8a6   : > { %v1364_v12 = vadd.f32 %v1360_v11, %v1267_v10 }
 0x8a8   : > { %1366 = vst.msk [vmem:[%s337_s17 + $0x8] sm:$0xff] %vm1026_vm5, %v1364_v12 }
 0x8a9 PF: > { %s20_s24 = sadd.s32 1, %s1910_s24  }
 0x8aa   : > { %p17_p2 = scmp.ge.s32.totalorder %s20_s24, 4  }
 0x8ac   :  { %19 = sbr.rel (!%p17_p2) target bundleno = 3 (0x3), region = 95 }
 0x8b1   :  { %1388 = vsyncpa [#allocation3], 1 }
 0x8b2   :  { %1390 = vsyncpa [#allocation3 + $0x1], 1 }
 0x8b3   :  { %1391 = vsyncpa [#allocation5], 1 }
 0x8b4   :  { %1392 = vsyncpa [#allocation8], 1 }

// kernel: generator_forward.7
= control target key start
LH: loop header
LB: loop body
LE: loop exit
PB: predicated region body
PF: predicated region fallthrough
CT: control target
= control target key end

     0   :  { %12 = vsyncpa [#allocation3], 0  ;;  %s2368_s0 = inlined_call_operand.vmem [shape: f32[2,16,256], index: 0, kind: input, shape index: {}]   ;;  %s2369_s1 = inlined_call_operand.hbm [shape: f32[16,144], index: 1, kind: input, shape index: {}]   ;;  %s2370_s2 = inlined_call_operand.vmem [shape: f32[16,1], index: 2, kind: input, shape index: {}]   ;;  %s2371_s3 = inlined_call_operand.hbm [shape: f32[8,144], index: 3, kind: input, shape index: {}]   ;;  %s2372_s4 = inlined_call_operand.hbm [shape: f32[8,72], index: 4, kind: input, shape index: {}]   ;;  %s2373_s5 = inlined_call_operand.hbm [shape: f32[8,16], index: 5, kind: input, shape index: {}]   ;;  %s2374_s6 = inlined_call_operand.vmem [shape: f32[8,1], index: 6, kind: input, shape index: {}]   ;;  %s2375_s7 = inlined_call_operand.vmem [shape: f32[2,8,256], index: 7, kind: output, shape index: {}]  }
   0x1   :  { %13 = vsyncpa [#allocation5], 0 }
   0x2   :  { %14 = vsyncpa [#allocation8], 0  ;;  %s1733_s24 = smov 0  }
   0x3 LB: > { %s1676_s25 = smov [#allocation4]   ;;  %s1739_s27 = sadd.s32 4294967295, %s1674_s24   ;;  %s1674_s24 = sphi %s1733_s24, %s20_s24  }
   0x4   : > { %s232_s26 = sshll.u32 %s1676_s25, 4  ;;  %p1380_p0 = scmp.ge.s32.totalorder %s1674_s24, 1  ;;  %s233_s26 = int_to_ptr.vmem [resolvable:$true] %s232_s26 }
   0x5   : > { %p203_p1 = scmp.lt.s32.totalorder %s1674_s24, 3  ;;  %p1497_p2 = scmp.eq.s32.totalorder %s1739_s27, 0 }
   0x6   : > { %s1677_s29 = smov [#allocation2]   ;;  %s1678_s9 = smov [#allocation6]  }
   0x7   : > { %p1744_p3 = pnand %p1380_p0, %p203_p1  ;;  %s215_s30 = sshll.u32 %s1677_s29, 4  ;;  %s1750_s30 = int_to_ptr.vmem [resolvable:$true] %s215_s30 }
   0x8   : > { %s243_s10 = sshll.u32 %s1678_s9, 4  ;;  %s1679_s11 = smov [#allocation7]   ;;  %s1758_s10 = int_to_ptr.vmem [resolvable:$true] %s243_s10 }
   0x9   : > { %p1484_p4 = pneg %p1744_p3  ;;  %s1760_s12 = sshll.u32 %s1679_s11, 4  ;;  %s255_s12 = int_to_ptr.vmem [resolvable:$true] %s1760_s12 }
   0xa   : > { %s1563_s13 = scalar_lea.vmem %s233_s26, 256  ;;  %p1571_p10 = scmp.lt.s32.totalorder %s233_s26, %s233_s26 }
   0xb   : > { %p1754_p5 = pnand %p1497_p2, %p1484_p4  ;;  %p1564_p7 = scmp.ne.s32.totalorder %s233_s26, %s1563_s13 }
   0xc   : > { %p1572_p11 = scmp.lt.s32.totalorder %s1563_s13, %s1563_s13 }
   0xd   : > { %p1554_p6 = pneg %p1754_p5 }
   0xe   : > { %p1573_p12 = por %p1572_p11, %p1571_p10 }
   0xf   : > { %p1566_p8 = pnand %p1564_p7, %p1554_p6 }
  0x11   : > { %p1567_p9 = pneg %p1566_p8 }
  0x13   : > { %p1574_p13 = pnand %p1573_p12, %p1567_p9 }
  0x15   : > { %1577 = shalt.err (!%p1574_p13)
}
  0x16   : > { %1490 = dma.hbm_to_vmem [thread:$0]  (!%p1754_p5), %s2371_s3, 256, %s233_s26, [#allocation5]  }
  0x17   : > { %s1589_s16 = scalar_lea.vmem %s1750_s30, 512  ;;  %p1597_p7 = scmp.lt.s32.totalorder %s1750_s30, %s1750_s30 }
  0x18   : > { %p1590_p0 = scmp.ne.s32.totalorder %s1750_s30, %s1589_s16  ;;  %p1598_p8 = scmp.lt.s32.totalorder %s1589_s16, %s1589_s16 }
  0x1a   : > { %p1592_p1 = pnand %p1590_p0, %p1554_p6  ;;  %p1599_p9 = por %p1598_p8, %p1597_p7 }
  0x1c   : > { %p1593_p4 = pneg %p1592_p1 }
  0x1e   : > { %p1600_p10 = pnand %p1599_p9, %p1593_p4 }
  0x20   : > { %1603 = shalt.err (!%p1600_p10)
}
  0x21   : > { %s1680_s17 = smov 256   ;;  %s1681_s18 = smov 16  }
  0x22   : > { %1487 = dma.hbm_to_vmem [thread:$0]  (!%p1754_p5), %s2369_s1, 512, %s1750_s30, [#allocation3], %s1680_s17, %s1680_s17, %s1681_s18  }
  0x23   : > { %s1615_s21 = scalar_lea.vmem %s1758_s10, 128  ;;  %p1623_p0 = scmp.lt.s32.totalorder %s1758_s10, %s1758_s10 }
  0x24   : > { %p1616_p11 = scmp.ne.s32.totalorder %s1758_s10, %s1615_s21  ;;  %p1624_p1 = scmp.lt.s32.totalorder %s1615_s21, %s1615_s21 }
  0x26   : > { %p1618_p12 = pnand %p1616_p11, %p1554_p6  ;;  %p1625_p4 = por %p1624_p1, %p1623_p0 }
  0x28   : > { %p1619_p13 = pneg %p1618_p12 }
  0x2a   : > { %p1626_p7 = pnand %p1625_p4, %p1619_p13 }
  0x2c   : > { %1629 = shalt.err (!%p1626_p7)
}
  0x2d   : > { %1493 = dma.hbm_to_vmem [thread:$0]  (!%p1754_p5), %s2372_s4, 128, %s1758_s10, [#allocation5]  }
  0x2e   : > { %s1641_s25 = scalar_lea.vmem %s255_s12, 128  ;;  %p1649_p11 = scmp.lt.s32.totalorder %s255_s12, %s255_s12 }
  0x2f   : > { %p1642_p8 = scmp.ne.s32.totalorder %s255_s12, %s1641_s25  ;;  %p1650_p12 = scmp.lt.s32.totalorder %s1641_s25, %s1641_s25 }
  0x31   : > { %p1644_p9 = pnand %p1642_p8, %p1554_p6  ;;  %p1651_p13 = por %p1650_p12, %p1649_p11 }
  0x33   : > { %p1645_p10 = pneg %p1644_p9 }
  0x35   : > { %p1652_p0 = pnand %p1651_p13, %p1645_p10 }
  0x37   : > { %1655 = shalt.err (!%p1652_p0)
}
  0x38   : > { %1496 = dma.hbm_to_vmem [thread:$0]  (!%p1754_p5), %s2373_s5, 128, %s255_s12, [#allocation8]  }
  0x39   : > { %278 = sbr.rel (%p1744_p3) target bundleno = 2281 (0x8e9), region = 48 }
  0x3e   : > { %1661 = dma.done.wait (%p1497_p2), [#allocation3], 512  }
  0x3f   : > { %1663 = vsyncadd (%p1497_p2), [#allocation3], 4294966784 }
  0x40   : > { %1665 = dma.done.wait (%p1497_p2), [#allocation5], 384  }
  0x41   : > { %1667 = vsyncadd (%p1497_p2), [#allocation5], 4294966912 }
  0x42   : > { %1669 = dma.done.wait (%p1497_p2), [#allocation8], 128  }
  0x43   : > { %1671 = vsyncadd (%p1497_p2), [#allocation8], 4294967168  ;;  %p322_p3 = scmp.lt.s32.totalorder %s1739_s27, 1  ;;  %s1682_s10 = smov 17   ;;  %vm354_vm0 = vcmask 138240   ;;  %v337_v14 = vld [vmem:[#allocation2 + $0x8] sm:$0xff]  ;;  %v367_v18 = vlaneseq }
  0x44   : > { %s1683_s11 = smov 95   ;;  %s1684_s12 = smov 96   ;;  %vm582_vm1 = vcmask 130048   ;;  %v1691_v15 = vmov 0   ;;  %v340_v16 = vld [vmem:[%s2370_s2] sm:$0xff]  ;;  %v341_v17 = vld [vmem:[%s2370_s2 + $0x8] sm:$0xff] }
  0x45   : > { %s2387_s27 = smov (!%p322_p3, %s1739_s27), 1  ;;  %s1685_s13 = smov 110   ;;  %1419 = vmatprep.mubr.msk.f32.mxu0 %vm582_vm1, %v337_v14  ;;  %1531 = vset.pattern.permute.xlu1 %v1691_v15  ;;  %vm563_vm2 = vcmask 777216   ;;  %v368_v19 = vand.u32 127, %v367_v18  ;;  %vm471_vm3 = vcmask 785408   ;;  %vm446_vm6 = vcmask 900096  }
  0x46   : > { %s1466_s28 = sshll.u32 %s2387_s27, 5  ;;  %s1686_s14 = smov 111   ;;  %1530 = vset.pattern.permute.xlu0 %v1691_v15  ;;  %vm542_vm9 = vcmask 908288   ;;  %vm421_vm10 = vcmask 916480   ;;  %vm396_vm11 = vcmask 1031168   ;;  %vm521_vm12 = vcmask 1039360  }
  0x47   : > { %s326_s9 = scalar_lea.vmem %s2368_s0, %s1466_s28  ;;  %s1687_s15 = smov 112   ;;  %v369_v23 = vadd.s32 128, %v368_v19  ;;  %v370_v33 = vand.u32 15, %v368_v19  ;;  %vm496_vm13 = vcmask 769024   ;;  %vm1092_vm14 = vcmask 588800   ;;  %v1197_v45 = vld [vmem:[#allocation7] sm:$0xff] }
  0x48   : > { %v334_v0 = vld [vmem:[%s326_s9 + $0x10] sm:$0xff]  ;;  %v332_v1 = vld [vmem:[%s326_s9] sm:$0xff]  ;;  %v335_v2 = vld [vmem:[%s326_s9 + $0x18] sm:$0xff]  ;;  %s1688_s16 = smov 126   ;;  %s1689_s17 = smov 127  }
  0x49   : > { %350 = vrot.lane.b32.xlu0 %v334_v0, %s1682_s10  ;;  %346 = vrot.lane.b32.xlu1 %v332_v1, %s1682_s10  ;;  %v333_v3 = vld [vmem:[%s326_s9 + $0x8] sm:$0xff]  ;;  %s1690_s18 = smov 94   ;;  %v371_v27 = vand.u32 15, %v369_v23  ;;  %vm1945_vm5 = vcmp.gt.s32.totalorder %v370_v33, 0  ;;  %vm1965_vm8 = vcmp.lt.s32.totalorder %v370_v33, 15  ;;  %v1198_v37 = vld [vmem:[%s2374_s6] sm:$0xff] }
  0x4a   : > { %s1467_s26 = sshll.u32 %s2387_s27, 4 }
  0x4b   : > { %vm1938_vm4 = vcmp.gt.s32.totalorder %v371_v27, 0  ;;  %vm1958_vm7 = vcmp.lt.s32.totalorder %v371_v27, 15  ;;  %s331_s30 = scalar_lea.vmem %s2375_s7, %s1467_s26 }
  0x4d   : > { %352 = vrot.lane.b32.xlu0 %v335_v2, %s1682_s10  ;;  %348 = vrot.lane.b32.xlu1 %v333_v3, %s1682_s10 }
  0xbb   : > { %v351_v4 = vpop.permute.xlu0 %350  ;;  %v347_v5 = vpop.permute.xlu1 %346 }
  0xbc   : > { %v1841_v10 = vsel %vm354_vm0, 0.0, %v351_v4  ;;  %v1851_v12 = vsel %vm354_vm0, 0.0, %v347_v5 }
  0xbf   : > { %v353_v6 = vpop.permute.xlu0 %352  ;;  %v349_v9 = vpop.permute.xlu1 %348 }
  0xc0   : > { %v1834_v7 = vsel %vm354_vm0, %v351_v4, %v353_v6  ;;  %v366_v8 = vsel %vm354_vm0, %v353_v6, 0.0  ;;  %v1844_v11 = vsel %vm354_vm0, %v347_v5, %v349_v9  ;;  %v365_v13 = vsel %vm354_vm0, %v349_v9, 0.0 }
  0xc1   : > { %559 = vrot.lane.b32.xlu0 %v1834_v7, %s1683_s11  ;;  %561 = vrot.lane.b32.xlu1 %v366_v8, %s1683_s11 }
  0xc5   : > { %557 = vrot.lane.b32.xlu0 %v1841_v10, %s1683_s11  ;;  %553 = vrot.lane.b32.xlu1 %v1844_v11, %s1683_s11 }
  0xc9   : > { %555 = vrot.lane.b32.xlu0 %v365_v13, %s1683_s11  ;;  %551 = vrot.lane.b32.xlu1 %v1851_v12, %s1683_s11 }
  0xcd   : > { %467 = vrot.lane.b32.xlu0 %v1834_v7, %s1684_s12  ;;  %469 = vrot.lane.b32.xlu1 %v366_v8, %s1684_s12 }
  0xd1   : > { %465 = vrot.lane.b32.xlu0 %v1841_v10, %s1684_s12  ;;  %461 = vrot.lane.b32.xlu1 %v1844_v11, %s1684_s12 }
  0xd5   : > { %463 = vrot.lane.b32.xlu0 %v365_v13, %s1684_s12  ;;  %459 = vrot.lane.b32.xlu1 %v1851_v12, %s1684_s12 }
  0xd9   : > { %442 = vrot.lane.b32.xlu0 %v1834_v7, %s1685_s13  ;;  %444 = vrot.lane.b32.xlu1 %v366_v8, %s1685_s13 }
  0xdd   : > { %440 = vrot.lane.b32.xlu0 %v1841_v10, %s1685_s13  ;;  %436 = vrot.lane.b32.xlu1 %v1844_v11, %s1685_s13 }
  0xe1   : > { %438 = vrot.lane.b32.xlu0 %v365_v13, %s1685_s13  ;;  %434 = vrot.lane.b32.xlu1 %v1851_v12, %s1685_s13 }
  0xe5   : > { %538 = vrot.lane.b32.xlu0 %v1834_v7, %s1686_s14  ;;  %540 = vrot.lane.b32.xlu1 %v366_v8, %s1686_s14 }
  0xe9   : > { %536 = vrot.lane.b32.xlu0 %v1841_v10, %s1686_s14  ;;  %532 = vrot.lane.b32.xlu1 %v1844_v11, %s1686_s14 }
  0xed   : > { %534 = vrot.lane.b32.xlu0 %v365_v13, %s1686_s14  ;;  %530 = vrot.lane.b32.xlu1 %v1851_v12, %s1686_s14 }
  0xf1   : > { %417 = vrot.lane.b32.xlu0 %v1834_v7, %s1687_s15  ;;  %419 = vrot.lane.b32.xlu1 %v366_v8, %s1687_s15 }
  0xf5   : > { %415 = vrot.lane.b32.xlu0 %v1841_v10, %s1687_s15  ;;  %411 = vrot.lane.b32.xlu1 %v1844_v11, %s1687_s15 }
  0xf9   : > { %413 = vrot.lane.b32.xlu0 %v365_v13, %s1687_s15  ;;  %409 = vrot.lane.b32.xlu1 %v1851_v12, %s1687_s15 }
  0xfd   : > { %392 = vrot.lane.b32.xlu0 %v1834_v7, %s1688_s16  ;;  %394 = vrot.lane.b32.xlu1 %v366_v8, %s1688_s16 }
 0x101   : > { %390 = vrot.lane.b32.xlu0 %v1841_v10, %s1688_s16  ;;  %386 = vrot.lane.b32.xlu1 %v1844_v11, %s1688_s16 }
 0x105   : > { %388 = vrot.lane.b32.xlu0 %v365_v13, %s1688_s16  ;;  %384 = vrot.lane.b32.xlu1 %v1851_v12, %s1688_s16 }
 0x109   : > { %517 = vrot.lane.b32.xlu0 %v1834_v7, %s1689_s17  ;;  %519 = vrot.lane.b32.xlu1 %v366_v8, %s1689_s17 }
 0x10d   : > { %515 = vrot.lane.b32.xlu0 %v1841_v10, %s1689_s17  ;;  %511 = vrot.lane.b32.xlu1 %v1844_v11, %s1689_s17 }
 0x111   : > { %513 = vrot.lane.b32.xlu0 %v365_v13, %s1689_s17  ;;  %509 = vrot.lane.b32.xlu1 %v1851_v12, %s1689_s17 }
 0x115   : > { %492 = vrot.lane.b32.xlu0 %v1834_v7, %s1690_s18  ;;  %494 = vrot.lane.b32.xlu1 %v366_v8, %s1690_s18 }
 0x119   : > { %490 = vrot.lane.b32.xlu0 %v1841_v10, %s1690_s18  ;;  %486 = vrot.lane.b32.xlu1 %v1844_v11, %s1690_s18 }
 0x11d   : > { %488 = vrot.lane.b32.xlu0 %v365_v13, %s1690_s18  ;;  %484 = vrot.lane.b32.xlu1 %v1851_v12, %s1690_s18 }
 0x121   : > { %574 = vperm.xlu1 %1531, %v340_v16   ;;  %579 = vperm.xlu0 %1530, %v341_v17  }
 0x133   : > { %v560_v20 = vpop.permute.xlu0 %559  ;;  %v562_v21 = vpop.permute.xlu1 %561 }
 0x134   : > { %v567_v22 = vsel %vm563_vm2, %v560_v20, %v562_v21 }
 0x135   : > { %589 = vmatprep.subr.mxu0 %v567_v22 }
 0x137   : > { %v558_v24 = vpop.permute.xlu0 %557  ;;  %v554_v25 = vpop.permute.xlu1 %553 }
 0x138   : > { %v566_v26 = vsel %vm563_vm2, %v558_v24, %v560_v20 }
 0x139   : > { %590 = vmatpush1.msra.mxu0 %v566_v26 }
 0x13b   : > { %v556_v28 = vpop.permute.xlu0 %555  ;;  %v552_v29 = vpop.permute.xlu1 %551 }
 0x13c   : > { %v565_v30 = vsel %vm563_vm2, %v554_v25, %v556_v28  ;;  %v564_v31 = vsel %vm563_vm2, %v552_v29, %v554_v25 }
 0x13d   : > { %591 = vmatprep.subr.mxu0 %v565_v30 }
 0x13e   : > { %592 = vmatpush1.msra.mxu0 %v564_v31 }
 0x13f   : > { %v468_v34 = vpop.permute.xlu0 %467  ;;  %v470_v35 = vpop.permute.xlu1 %469 }
 0x140   : > { %v475_v36 = vsel %vm471_vm3, %v468_v34, %v470_v35 }
 0x141   : > { %1395 = vmatprep.subr.msk.mxu0 %vm1938_vm4, %v475_v36 }
 0x143   : > { %v466_v38 = vpop.permute.xlu0 %465  ;;  %v462_v39 = vpop.permute.xlu1 %461 }
 0x144   : > { %v474_v40 = vsel %vm471_vm3, %v466_v38, %v468_v34 }
 0x145   : > { %1396 = vmatpush1.msk.msra.mxu0 %vm1945_vm5, %v474_v40 }
 0x147   : > { %v464_v41 = vpop.permute.xlu0 %463  ;;  %v460_v42 = vpop.permute.xlu1 %459 }
 0x148   : > { %v473_v43 = vsel %vm471_vm3, %v462_v39, %v464_v41  ;;  %v472_v44 = vsel %vm471_vm3, %v460_v42, %v462_v39 }
 0x149   : > { %1397 = vmatprep.subr.msk.mxu0 %vm1938_vm4, %v473_v43 }
 0x14a   : > { %1398 = vmatpush1.msk.msra.mxu0 %vm1945_vm5, %v472_v44 }
 0x14b   : > { %v443_v46 = vpop.permute.xlu0 %442  ;;  %v445_v47 = vpop.permute.xlu1 %444 }
 0x14c   : > { %v450_v48 = vsel %vm446_vm6, %v443_v46, %v445_v47  ;;  %v336_v47 = vld [vmem:[#allocation2] sm:$0xff] }
 0x14d   : > { %1399 = vmatprep.subr.msk.mxu0 %vm1958_vm7, %v450_v48  ;;  %v338_v48 = vld [vmem:[#allocation2 + $0x10] sm:$0xff] }
 0x14f   : > { %v441_v50 = vpop.permute.xlu0 %440  ;;  %v437_v51 = vpop.permute.xlu1 %436 }
 0x150   : > { %v449_v52 = vsel %vm446_vm6, %v441_v50, %v443_v46 }
 0x151   : > { %1400 = vmatpush1.msk.msra.mxu0 %vm1965_vm8, %v449_v52 }
 0x153   : > { %v439_v53 = vpop.permute.xlu0 %438  ;;  %v435_v54 = vpop.permute.xlu1 %434 }
 0x154   : > { %v448_v55 = vsel %vm446_vm6, %v437_v51, %v439_v53  ;;  %v447_v56 = vsel %vm446_vm6, %v435_v54, %v437_v51 }
 0x155   : > { %1401 = vmatprep.subr.msk.mxu0 %vm1958_vm7, %v448_v55 }
 0x156   : > { %1402 = vmatpush1.msk.msra.mxu0 %vm1965_vm8, %v447_v56 }
 0x157   : > { %v539_v57 = vpop.permute.xlu0 %538  ;;  %v541_v58 = vpop.permute.xlu1 %540 }
 0x158   : > { %v546_v59 = vsel %vm542_vm9, %v539_v57, %v541_v58 }
 0x159   : > { %601 = vmatprep.subr.mxu0 %v546_v59 }
 0x15b   : > { %v537_v60 = vpop.permute.xlu0 %536  ;;  %v533_v61 = vpop.permute.xlu1 %532 }
 0x15c   : > { %v545_v62 = vsel %vm542_vm9, %v537_v60, %v539_v57 }
 0x15d   : > { %602 = vmatpush1.msra.mxu0 %v545_v62 }
 0x15f   : > { %v535_v63 = vpop.permute.xlu0 %534  ;;  %v531_v0 = vpop.permute.xlu1 %530 }
 0x160   : > { %v544_v1 = vsel %vm542_vm9, %v533_v61, %v535_v63  ;;  %v543_v2 = vsel %vm542_vm9, %v531_v0, %v533_v61 }
 0x161   : > { %603 = vmatprep.subr.mxu0 %v544_v1 }
 0x162   : > { %604 = vmatpush1.msra.mxu0 %v543_v2 }
 0x163   : > { %v418_v3 = vpop.permute.xlu0 %417  ;;  %v420_v4 = vpop.permute.xlu1 %419 }
 0x164   : > { %v425_v5 = vsel %vm421_vm10, %v418_v3, %v420_v4 }
 0x165   : > { %1403 = vmatprep.subr.msk.mxu0 %vm1938_vm4, %v425_v5 }
 0x167   : > { %v416_v6 = vpop.permute.xlu0 %415  ;;  %v412_v8 = vpop.permute.xlu1 %411 }
 0x168   : > { %v424_v9 = vsel %vm421_vm10, %v416_v6, %v418_v3  ;;  %v667_v6 = vld [vmem:[#allocation4 + $0x8] sm:$0xff] }
 0x169   : > { %1404 = vmatpush1.msk.msra.mxu0 %vm1945_vm5, %v424_v9  ;;  %1445 = vmatprep.mubr.msk.f32.mxu1 %vm582_vm1, %v667_v6 }
 0x16b   : > { %v414_v13 = vpop.permute.xlu0 %413  ;;  %v410_v14 = vpop.permute.xlu1 %409 }
 0x16c   : > { %v423_v15 = vsel %vm421_vm10, %v412_v8, %v414_v13  ;;  %v422_v16 = vsel %vm421_vm10, %v410_v14, %v412_v8 }
 0x16d   : > { %1405 = vmatprep.subr.msk.mxu0 %vm1938_vm4, %v423_v15 }
 0x16e   : > { %1406 = vmatpush1.msk.msra.mxu0 %vm1945_vm5, %v422_v16 }
 0x16f   : > { %v393_v17 = vpop.permute.xlu0 %392  ;;  %v395_v18 = vpop.permute.xlu1 %394 }
 0x170   : > { %v400_v19 = vsel %vm396_vm11, %v393_v17, %v395_v18 }
 0x171   : > { %1407 = vmatprep.subr.msk.mxu0 %vm1958_vm7, %v400_v19 }
 0x173   : > { %v391_v20 = vpop.permute.xlu0 %390  ;;  %v387_v21 = vpop.permute.xlu1 %386 }
 0x174   : > { %v399_v22 = vsel %vm396_vm11, %v391_v20, %v393_v17 }
 0x175   : > { %1408 = vmatpush1.msk.msra.mxu0 %vm1965_vm8, %v399_v22 }
 0x177   : > { %v389_v23 = vpop.permute.xlu0 %388  ;;  %v385_v24 = vpop.permute.xlu1 %384 }
 0x178   : > { %v398_v25 = vsel %vm396_vm11, %v387_v21, %v389_v23  ;;  %v397_v26 = vsel %vm396_vm11, %v385_v24, %v387_v21 }
 0x179   : > { %1409 = vmatprep.subr.msk.mxu0 %vm1958_vm7, %v398_v25 }
 0x17a   : > { %1410 = vmatpush1.msk.msra.mxu0 %vm1965_vm8, %v397_v26 }
 0x17b   : > { %v518_v27 = vpop.permute.xlu0 %517  ;;  %v520_v28 = vpop.permute.xlu1 %519 }
 0x17c   : > { %v525_v29 = vsel %vm521_vm12, %v518_v27, %v520_v28 }
 0x17d   : > { %613 = vmatprep.subr.mxu0 %v525_v29 }
 0x17f   : > { %v516_v30 = vpop.permute.xlu0 %515  ;;  %v512_v31 = vpop.permute.xlu1 %511 }
 0x180   : > { %v524_v33 = vsel %vm521_vm12, %v516_v30, %v518_v27 }
 0x181   : > { %614 = vmatpush1.msra.mxu0 %v524_v33 }
 0x183   : > { %v514_v34 = vpop.permute.xlu0 %513  ;;  %v510_v35 = vpop.permute.xlu1 %509 }
 0x184   : > { %v523_v36 = vsel %vm521_vm12, %v512_v31, %v514_v34  ;;  %v522_v38 = vsel %vm521_vm12, %v510_v35, %v512_v31 }
 0x185   : > { %615 = vmatprep.subr.mxu0 %v523_v36 }
 0x186   : > { %616 = vmatpush1.msra.mxu0 %v522_v38 }
 0x187   : > { %v493_v39 = vpop.permute.xlu0 %492  ;;  %1411 = vmatprep.subr.msk.mxu0 %vm1938_vm4, %v1834_v7  ;;  %v495_v40 = vpop.permute.xlu1 %494 }
 0x188   : > { %1412 = vmatpush1.msk.msra.mxu0 %vm1945_vm5, %v1841_v10  ;;  %v500_v41 = vsel %vm496_vm13, %v493_v39, %v495_v40 }
 0x189   : > { %1413 = vmatprep.subr.msk.mxu0 %vm1938_vm4, %v1844_v11 }
 0x18a   : > { %1414 = vmatpush1.msk.msra.mxu0 %vm1945_vm5, %v1851_v12  ;;  %v339_v12 = vld [vmem:[#allocation2 + $0x18] sm:$0xff] }
 0x18b   : > { %v491_v42 = vpop.permute.xlu0 %490  ;;  %1415 = vmatprep.subr.msk.mxu0 %vm1958_vm7, %v500_v41  ;;  %v487_v7 = vpop.permute.xlu1 %486 }
 0x18c   : > { %v499_v43 = vsel %vm496_vm13, %v491_v42, %v493_v39 }
 0x18d   : > { %1416 = vmatpush2.msk.msra.mxu0 %vm1965_vm8, %v499_v43 }
 0x18f   : > { %v489_v10 = vpop.permute.xlu0 %488  ;;  %v485_v44 = vpop.permute.xlu1 %484 }
 0x190   : > { %v498_v11 = vsel %vm496_vm13, %v487_v7, %v489_v10  ;;  %v497_v46 = vsel %vm496_vm13, %v485_v44, %v487_v7 }
 0x191   : > { %1417 = vmatprep.subr.msk.mxu0 %vm1958_vm7, %v498_v11 }
 0x192   : > { %1418 = vmatpush2.msk.msra.mxu0 %vm1965_vm8, %v497_v46 }
 0x193   : > { %654 = vmatmul.mubr.f32.vlgmr.msra.gmra.mxu0 %v336_v47 }
 0x194   : > { %1420 = vmatprep.mubr.msk.f32.mxu0 %vm582_vm1, %v339_v12 }
 0x197   : > { %660 = vmatmul.mubr.f32.gmra.mxu0 %v338_v48 }
 0x19c   : > { %v575_v50 = vpop.permute.xlu1 %574  ;;  %v580_v54 = vpop.permute.xlu0 %579 }
 0x253   : > { %v655_v51 = vpop.f32.mrf.mxu0 }
 0x254   : > { %v2035_v52 = vadd.f32 %v655_v51, %v575_v50 }
 0x255   : > { %v657_v53 = vpop.f32.mrf.mxu0 }
 0x256   : > { %v2037_v55 = vadd.f32 %v657_v53, %v575_v50  ;;  %672 = vrot.lane.b32.xlu1 %v2035_v52, %s1682_s10 }
 0x257   : > { %v661_v56 = vpop.f32.mrf.mxu0 }
 0x258   : > { %674 = vrot.lane.b32.xlu0 %v2037_v55, %s1682_s10  ;;  %v2043_v57 = vadd.f32 %v661_v56, %v580_v54 }
 0x259   : > { %v663_v58 = vpop.f32.mrf.mxu0 }
 0x25a   : > { %v2045_v59 = vadd.f32 %v663_v58, %v580_v54  ;;  %676 = vrot.lane.b32.xlu1 %v2043_v57, %s1682_s10 }
 0x25c   : > { %678 = vrot.lane.b32.xlu0 %v2045_v59, %s1682_s10 }
 0x2c8   : > { %v673_v60 = vpop.permute.xlu1 %672 }
 0x2c9   : > { %v2052_v61 = vsel %vm354_vm0, 0.0, %v673_v60 }
 0x2ca   : > { %v675_v62 = vpop.permute.xlu0 %674  ;;  %860 = vrot.lane.b32.xlu0 %v2052_v61, %s1683_s11 }
 0x2cb   : > { %v690_v63 = vsel %vm354_vm0, %v675_v62, 0.0  ;;  %v2077_v1 = vsel %vm354_vm0, %v673_v60, %v675_v62 }
 0x2cc   : > { %864 = vrot.lane.b32.xlu1 %v690_v63, %s1683_s11  ;;  %v677_v0 = vpop.permute.xlu1 %676 }
 0x2cd   : > { %v2080_v2 = vsel %vm354_vm0, 0.0, %v677_v0 }
 0x2ce   : > { %772 = vrot.lane.b32.xlu0 %v2052_v61, %s1684_s12  ;;  %v679_v3 = vpop.permute.xlu0 %678 }
 0x2cf   : > { %v691_v4 = vsel %vm354_vm0, %v679_v3, 0.0  ;;  %v2113_v5 = vsel %vm354_vm0, %v677_v0, %v679_v3 }
 0x2d0   : > { %776 = vrot.lane.b32.xlu1 %v690_v63, %s1684_s12 }
 0x2d2   : > { %748 = vrot.lane.b32.xlu0 %v2052_v61, %s1685_s13 }
 0x2d4   : > { %752 = vrot.lane.b32.xlu1 %v690_v63, %s1685_s13 }
 0x2d6   : > { %840 = vrot.lane.b32.xlu0 %v2052_v61, %s1686_s14 }
 0x2d8   : > { %844 = vrot.lane.b32.xlu1 %v690_v63, %s1686_s14 }
 0x2da   : > { %724 = vrot.lane.b32.xlu0 %v2052_v61, %s1687_s15 }
 0x2dc   : > { %728 = vrot.lane.b32.xlu1 %v690_v63, %s1687_s15 }
 0x2de   : > { %700 = vrot.lane.b32.xlu0 %v2052_v61, %s1688_s16 }
 0x2e0   : > { %704 = vrot.lane.b32.xlu1 %v690_v63, %s1688_s16 }
 0x2e2   : > { %820 = vrot.lane.b32.xlu0 %v2052_v61, %s1689_s17 }
 0x2e4   : > { %824 = vrot.lane.b32.xlu1 %v690_v63, %s1689_s17 }
 0x2e6   : > { %862 = vrot.lane.b32.xlu0 %v2077_v1, %s1683_s11 }
 0x2e8   : > { %866 = vrot.lane.b32.xlu1 %v2080_v2, %s1683_s11 }
 0x2ea   : > { %774 = vrot.lane.b32.xlu0 %v2077_v1, %s1684_s12 }
 0x2ec   : > { %778 = vrot.lane.b32.xlu1 %v2080_v2, %s1684_s12 }
 0x2ee   : > { %750 = vrot.lane.b32.xlu0 %v2077_v1, %s1685_s13 }
 0x2f0   : > { %754 = vrot.lane.b32.xlu1 %v2080_v2, %s1685_s13 }
 0x2f2   : > { %842 = vrot.lane.b32.xlu0 %v2077_v1, %s1686_s14 }
 0x2f4   : > { %846 = vrot.lane.b32.xlu1 %v2080_v2, %s1686_s14 }
 0x2f6   : > { %726 = vrot.lane.b32.xlu0 %v2077_v1, %s1687_s15 }
 0x2f8   : > { %730 = vrot.lane.b32.xlu1 %v2080_v2, %s1687_s15 }
 0x2fa   : > { %702 = vrot.lane.b32.xlu0 %v2077_v1, %s1688_s16 }
 0x2fc   : > { %706 = vrot.lane.b32.xlu1 %v2080_v2, %s1688_s16 }
 0x2fe   : > { %822 = vrot.lane.b32.xlu0 %v2077_v1, %s1689_s17 }
 0x300   : > { %826 = vrot.lane.b32.xlu1 %v2080_v2, %s1689_s17 }
 0x302   : > { %870 = vrot.lane.b32.xlu0 %v691_v4, %s1683_s11 }
 0x304   : > { %868 = vrot.lane.b32.xlu1 %v2113_v5, %s1683_s11 }
 0x306   : > { %782 = vrot.lane.b32.xlu0 %v691_v4, %s1684_s12 }
 0x308   : > { %780 = vrot.lane.b32.xlu1 %v2113_v5, %s1684_s12 }
 0x30a   : > { %758 = vrot.lane.b32.xlu0 %v691_v4, %s1685_s13 }
 0x30c   : > { %756 = vrot.lane.b32.xlu1 %v2113_v5, %s1685_s13 }
 0x30e   : > { %850 = vrot.lane.b32.xlu0 %v691_v4, %s1686_s14 }
 0x310   : > { %848 = vrot.lane.b32.xlu1 %v2113_v5, %s1686_s14 }
 0x312   : > { %734 = vrot.lane.b32.xlu0 %v691_v4, %s1687_s15 }
 0x314   : > { %732 = vrot.lane.b32.xlu1 %v2113_v5, %s1687_s15 }
 0x316   : > { %710 = vrot.lane.b32.xlu0 %v691_v4, %s1688_s16 }
 0x318   : > { %708 = vrot.lane.b32.xlu1 %v2113_v5, %s1688_s16 }
 0x31a   : > { %830 = vrot.lane.b32.xlu0 %v691_v4, %s1689_s17 }
 0x31c   : > { %828 = vrot.lane.b32.xlu1 %v2113_v5, %s1689_s17 }
 0x31e   : > { %798 = vrot.lane.b32.xlu0 %v2077_v1, %s1690_s18 }
 0x320   : > { %802 = vrot.lane.b32.xlu1 %v2080_v2, %s1690_s18 }
 0x322   : > { %806 = vrot.lane.b32.xlu0 %v691_v4, %s1690_s18 }
 0x324   : > { %804 = vrot.lane.b32.xlu1 %v2113_v5, %s1690_s18 }
 0x326   : > { %796 = vrot.lane.b32.xlu0 %v2052_v61, %s1690_s18 }
 0x328   : > { %800 = vrot.lane.b32.xlu1 %v690_v63, %s1690_s18 }
 0x33c   : > { %v861_v8 = vpop.permute.xlu0 %860 }
 0x33e   : > { %v865_v9 = vpop.permute.xlu1 %864 }
 0x340   : > { %v773_v13 = vpop.permute.xlu0 %772 }
 0x342   : > { %v777_v14 = vpop.permute.xlu1 %776 }
 0x344   : > { %v749_v15 = vpop.permute.xlu0 %748 }
 0x346   : > { %v753_v16 = vpop.permute.xlu1 %752 }
 0x348   : > { %v2146_v17 = vpop.permute.xlu0 %840 }
 0x34a   : > { %v845_v18 = vpop.permute.xlu1 %844 }
 0x34c   : > { %v2148_v19 = vpop.permute.xlu0 %724 }
 0x34e   : > { %v2150_v20 = vpop.permute.xlu1 %728 }
 0x350   : > { %v2152_v21 = vpop.permute.xlu0 %700 }
 0x352   : > { %v2154_v22 = vpop.permute.xlu1 %704 }
 0x354   : > { %v2156_v23 = vpop.permute.xlu0 %820 }
 0x356   : > { %v2158_v24 = vpop.permute.xlu1 %824 }
 0x358   : > { %v863_v25 = vpop.permute.xlu0 %862 }
 0x359   : > { %v873_v44 = vsel %vm563_vm2, %v863_v25, %v865_v9  ;;  %v872_v46 = vsel %vm563_vm2, %v861_v8, %v863_v25 }
 0x35a   : > { %v867_v26 = vpop.permute.xlu1 %866 }
 0x35c   : > { %v775_v27 = vpop.permute.xlu0 %774 }
 0x35d   : > { %v785_v50 = vsel %vm471_vm3, %v775_v27, %v777_v14  ;;  %v784_v51 = vsel %vm471_vm3, %v773_v13, %v775_v27 }
 0x35e   : > { %v779_v28 = vpop.permute.xlu1 %778 }
 0x360   : > { %v751_v29 = vpop.permute.xlu0 %750 }
 0x361   : > { %v761_v60 = vsel %vm446_vm6, %v751_v29, %v753_v16  ;;  %v760_v62 = vsel %vm446_vm6, %v749_v15, %v751_v29 }
 0x362   : > { %v755_v30 = vpop.permute.xlu1 %754 }
 0x364   : > { %v843_v31 = vpop.permute.xlu0 %842 }
 0x365   : > { %v853_v6 = vsel %vm542_vm9, %v843_v31, %v845_v18  ;;  %v852_v9 = vsel %vm542_vm9, %v2146_v17, %v843_v31 }
 0x366   : > { %v847_v33 = vpop.permute.xlu1 %846 }
 0x368   : > { %v727_v34 = vpop.permute.xlu0 %726 }
 0x369   : > { %v737_v16 = vsel %vm421_vm10, %v727_v34, %v2150_v20  ;;  %v736_v18 = vsel %vm421_vm10, %v2148_v19, %v727_v34 }
 0x36a   : > { %v731_v35 = vpop.permute.xlu1 %730 }
 0x36c   : > { %v2160_v36 = vpop.permute.xlu0 %702 }
 0x36d   : > { %v713_v20 = vsel %vm396_vm11, %v2160_v36, %v2154_v22  ;;  %v712_v19 = vsel %vm396_vm11, %v2152_v21, %v2160_v36 }
 0x36e   : > { %v707_v38 = vpop.permute.xlu1 %706 }
 0x370   : > { %v2162_v39 = vpop.permute.xlu0 %822 }
 0x371   : > { %v833_v31 = vsel %vm521_vm12, %v2162_v39, %v2158_v24 }
 0x372   : > { %v2164_v40 = vpop.permute.xlu1 %826 }
 0x374   : > { %v871_v41 = vpop.permute.xlu0 %870 }
 0x376   : > { %v869_v42 = vpop.permute.xlu1 %868 }
 0x377   : > { %v875_v7 = vsel %vm563_vm2, %v869_v42, %v871_v41  ;;  %v874_v43 = vsel %vm563_vm2, %v867_v26, %v869_v42 }
 0x378   : > { %v783_v10 = vpop.permute.xlu0 %782  ;;  %883 = vmatprep.subr.mxu1 %v875_v7 }
 0x379   : > { %884 = vmatpush1.msra.mxu1 %v874_v43 }
 0x37a   : > { %885 = vmatprep.subr.mxu1 %v873_v44  ;;  %v781_v11 = vpop.permute.xlu1 %780 }
 0x37b   : > { %v786_v47 = vsel %vm471_vm3, %v779_v28, %v781_v11  ;;  %v787_v12 = vsel %vm471_vm3, %v781_v11, %v783_v10  ;;  %886 = vmatpush1.msra.mxu1 %v872_v46 }
 0x37c   : > { %v759_v48 = vpop.permute.xlu0 %758  ;;  %1421 = vmatprep.subr.msk.mxu1 %vm1938_vm4, %v787_v12 }
 0x37d   : > { %1422 = vmatpush1.msk.msra.mxu1 %vm1945_vm5, %v786_v47 }
 0x37e   : > { %1423 = vmatprep.subr.msk.mxu1 %vm1938_vm4, %v785_v50  ;;  %v757_v53 = vpop.permute.xlu1 %756 }
 0x37f   : > { %v762_v54 = vsel %vm446_vm6, %v755_v30, %v757_v53  ;;  %v763_v56 = vsel %vm446_vm6, %v757_v53, %v759_v48  ;;  %1424 = vmatpush1.msk.msra.mxu1 %vm1945_vm5, %v784_v51 }
 0x380   : > { %v851_v58 = vpop.permute.xlu0 %850  ;;  %1425 = vmatprep.subr.msk.mxu1 %vm1958_vm7, %v763_v56 }
 0x381   : > { %1426 = vmatpush1.msk.msra.mxu1 %vm1965_vm8, %v762_v54 }
 0x382   : > { %1427 = vmatprep.subr.msk.mxu1 %vm1958_vm7, %v761_v60  ;;  %v849_v63 = vpop.permute.xlu1 %848 }
 0x383   : > { %1428 = vmatpush1.msk.msra.mxu1 %vm1965_vm8, %v760_v62  ;;  %v855_v0 = vsel %vm542_vm9, %v849_v63, %v851_v58  ;;  %v854_v3 = vsel %vm542_vm9, %v847_v33, %v849_v63  ;;  %v832_v33 = vsel %vm521_vm12, %v2156_v23, %v2162_v39 }
 0x384   : > { %v735_v4 = vpop.permute.xlu0 %734  ;;  %895 = vmatprep.subr.mxu1 %v855_v0 }
 0x385   : > { %896 = vmatpush1.msra.mxu1 %v854_v3 }
 0x386   : > { %897 = vmatprep.subr.mxu1 %v853_v6  ;;  %v733_v8 = vpop.permute.xlu1 %732 }
 0x387   : > { %v738_v13 = vsel %vm421_vm10, %v731_v35, %v733_v8  ;;  %v739_v14 = vsel %vm421_vm10, %v733_v8, %v735_v4  ;;  %898 = vmatpush1.msra.mxu1 %v852_v9  ;;  %v1692_v8 = vmov 0.0  }
 0x388   : > { %v711_v15 = vpop.permute.xlu0 %710  ;;  %1429 = vmatprep.subr.msk.mxu1 %vm1938_vm4, %v739_v14  ;;  %1160 = vmatprep.mubr.f32.mxu0 %v1692_v8 }
 0x389   : > { %1430 = vmatpush1.msk.msra.mxu1 %vm1945_vm5, %v738_v13 }
 0x38a   : > { %1431 = vmatprep.subr.msk.mxu1 %vm1938_vm4, %v737_v16  ;;  %v709_v17 = vpop.permute.xlu1 %708 }
 0x38b   : > { %v714_v25 = vsel %vm396_vm11, %v707_v38, %v709_v17  ;;  %v715_v26 = vsel %vm396_vm11, %v709_v17, %v711_v15  ;;  %1432 = vmatpush1.msk.msra.mxu1 %vm1945_vm5, %v736_v18 }
 0x38c   : > { %v831_v27 = vpop.permute.xlu0 %830  ;;  %1433 = vmatprep.subr.msk.mxu1 %vm1958_vm7, %v715_v26 }
 0x38d   : > { %1434 = vmatpush1.msk.msra.mxu1 %vm1965_vm8, %v714_v25 }
 0x38e   : > { %1435 = vmatprep.subr.msk.mxu1 %vm1958_vm7, %v713_v20  ;;  %v829_v28 = vpop.permute.xlu1 %828 }
 0x38f   : > { %1436 = vmatpush1.msk.msra.mxu1 %vm1965_vm8, %v712_v19  ;;  %v835_v29 = vsel %vm521_vm12, %v829_v28, %v831_v27  ;;  %v834_v30 = vsel %vm521_vm12, %v2164_v40, %v829_v28 }
 0x390   : > { %v799_v22 = vpop.permute.xlu0 %798  ;;  %907 = vmatprep.subr.mxu1 %v835_v29 }
 0x391   : > { %908 = vmatpush1.msra.mxu1 %v834_v30 }
 0x392   : > { %909 = vmatprep.subr.mxu1 %v833_v31  ;;  %v803_v21 = vpop.permute.xlu1 %802 }
 0x393   : > { %910 = vmatpush1.msra.mxu1 %v832_v33 }
 0x394   : > { %v807_v34 = vpop.permute.xlu0 %806  ;;  %1437 = vmatprep.subr.msk.mxu1 %vm1938_vm4, %v2113_v5 }
 0x395   : > { %1438 = vmatpush1.msk.msra.mxu1 %vm1945_vm5, %v2080_v2 }
 0x396   : > { %1439 = vmatprep.subr.msk.mxu1 %vm1938_vm4, %v2077_v1  ;;  %v805_v24 = vpop.permute.xlu1 %804  ;;  %v666_v1 = vld [vmem:[#allocation4] sm:$0xff] }
 0x397   : > { %v810_v35 = vsel %vm496_vm13, %v803_v21, %v805_v24  ;;  %v811_v36 = vsel %vm496_vm13, %v805_v24, %v807_v34  ;;  %1440 = vmatpush1.msk.msra.mxu1 %vm1945_vm5, %v2052_v61 }
 0x398   : > { %1441 = vmatprep.subr.msk.mxu1 %vm1958_vm7, %v811_v36  ;;  %v797_v5 = vpop.permute.xlu0 %796 }
 0x399   : > { %1442 = vmatpush2.msk.msra.mxu1 %vm1965_vm8, %v810_v35  ;;  %v808_v38 = vsel %vm496_vm13, %v797_v5, %v799_v22 }
 0x39a   : > { %v801_v2 = vpop.permute.xlu1 %800 }
 0x39b   : > { %v809_v23 = vsel %vm496_vm13, %v799_v22, %v801_v2 }
 0x39c   : > { %1443 = vmatprep.subr.msk.mxu1 %vm1958_vm7, %v809_v23 }
 0x39d   : > { %1444 = vmatpush2.msk.msra.mxu1 %vm1965_vm8, %v808_v38 }
 0x39e   : > { %948 = vmatmul.mubr.f32.vlgmr.msra.gmra.mxu1 %v666_v1  ;;  %1235 = vmatprep.subr.mxu1 %v2045_v59 }
 0x39f   : > { %1236 = vmatpush1.msra.mxu1 %v2043_v57  ;;  %1271 = vmatprep.mubr.f32.mxu1 %v1692_v8 }
 0x3a0   : > { %1237 = vmatprep.subr.mxu1 %v2037_v55 }
 0x3a1   : > { %1238 = vmatpush1.msra.mxu1 %v2035_v52 }
 0x3a2   : > { %1463 = vmatmul.mubr.msk.f32.vlgmr.msra.gmra.mxu1 %vm582_vm1, %v1197_v45 }
 0x45e   : > { %v949_v61 = vpop.f32.mrf.mxu1 }
 0x460   : > { %v951_v39 = vpop.f32.mrf.mxu1 }
 0x461   : > { %v954_v40 = vadd.f32 %v951_v39, %v949_v61 }
 0x463   : > { %955 = vadd.xlane.f32.xlu1 %v954_v40 }
 0x4ec   : > { %v956_v41 = vpop.xlane.xlu1 %955 }
 0x4ed   : > { %v958_v42 = vmul.f32 0.00390625, %v956_v41 }
 0x4ef   : > { %v959_v7 = vsub.f32 %v949_v61, %v958_v42  ;;  %v960_v43 = vsub.f32 %v951_v39, %v958_v42 }
 0x4f1   : > { %v961_v10 = vmul.f32 %v959_v7, %v959_v7  ;;  %v962_v44 = vmul.f32 %v960_v43, %v960_v43 }
 0x4f3   : > { %v963_v11 = vadd.f32 %v962_v44, %v961_v10 }
 0x4f5   : > { %964 = vadd.xlane.f32.xlu0 %v963_v11 }
 0x57e   : > { %v965_v46 = vpop.xlane.xlu0 %964 }
 0x57f   : > { %v966_v59 = vmul.f32 0.00390625, %v965_v46 }
 0x581   : > { %v967_v47 = vadd.f32 1e-05, %v966_v59 }
 0x583   : > { %1532 = vrsqrt.f32 %v967_v47  ;;  %v985_v47 = vld [vmem:[#allocation6] sm:$0xff] }
 0x590   : > { %v1533_v57 = vpop.eup %1532 }
 0x591   : > { %v970_v55 = vmul.f32 %v1533_v57, %v960_v43  ;;  %v969_v12 = vmul.f32 %v1533_v57, %v959_v7 }
 0x593   : > { %v1447_v52 = vmul.f32 -1.442695, %v970_v55  ;;  %v1446_v48 = vmul.f32 -1.442695, %v969_v12 }
 0x595   : > { %1534 = vpow2.f32 %v1447_v52 }
 0x596   : > { %1536 = vpow2.f32 %v1446_v48 }
 0x5a2   : > { %v1535_v50 = vpop.eup %1534 }
 0x5a3   : > { %v1537_v51 = vpop.eup %1536  ;;  %v978_v53 = vadd.f32 1.0, %v1535_v50 }
 0x5a4   : > { %v977_v54 = vadd.f32 1.0, %v1537_v51 }
 0x5a5   : > { %1538 = vrcp.f32 %v978_v53 }
 0x5a6   : > { %1540 = vrcp.f32 %v977_v54 }
 0x5b2   : > { %v1539_v56 = vpop.eup %1538 }
 0x5b3   : > { %v1541_v58 = vpop.eup %1540  ;;  %v984_v60 = vmul.f32 %v1539_v56, %v970_v55 }
 0x5b4   : > { %v983_v62 = vmul.f32 %v1541_v58, %v969_v12 }
 0x5b5   : > { %990 = vrot.lane.b32.xlu1 %v984_v60, %s1682_s10 }
 0x5b6   : > { %988 = vrot.lane.b32.xlu0 %v983_v62, %s1682_s10 }
 0x627   : > { %v991_v63 = vpop.permute.xlu1 %990 }
 0x628   : > { %v997_v0 = vsel %vm354_vm0, %v991_v63, 0.0  ;;  %v989_v3 = vpop.permute.xlu0 %988 }
 0x629   : > { %v2270_v4 = vsel %vm354_vm0, %v989_v3, %v991_v63  ;;  %1054 = vrot.lane.b32.xlu0 %v997_v0, %s1690_s18  ;;  %v2276_v6 = vsel %vm354_vm0, 0.0, %v989_v3 }
 0x62a   : > { %1052 = vrot.lane.b32.xlu1 %v2270_v4, %s1690_s18 }
 0x62d   : > { %1084 = vrot.lane.b32.xlu0 %v2270_v4, %s1683_s11 }
 0x62e   : > { %1050 = vrot.lane.b32.xlu1 %v2276_v6, %s1690_s18 }
 0x631   : > { %1082 = vrot.lane.b32.xlu0 %v2276_v6, %s1683_s11 }
 0x632   : > { %1086 = vrot.lane.b32.xlu1 %v997_v0, %s1683_s11 }
 0x635   : > { %1042 = vrot.lane.b32.xlu0 %v997_v0, %s1684_s12 }
 0x636   : > { %1040 = vrot.lane.b32.xlu1 %v2270_v4, %s1684_s12 }
 0x639   : > { %1028 = vrot.lane.b32.xlu0 %v2270_v4, %s1685_s13 }
 0x63a   : > { %1038 = vrot.lane.b32.xlu1 %v2276_v6, %s1684_s12 }
 0x63d   : > { %1026 = vrot.lane.b32.xlu0 %v2276_v6, %s1685_s13 }
 0x63e   : > { %1030 = vrot.lane.b32.xlu1 %v997_v0, %s1685_s13 }
 0x641   : > { %1076 = vrot.lane.b32.xlu0 %v997_v0, %s1686_s14 }
 0x642   : > { %1074 = vrot.lane.b32.xlu1 %v2270_v4, %s1686_s14 }
 0x645   : > { %1016 = vrot.lane.b32.xlu0 %v2270_v4, %s1687_s15 }
 0x646   : > { %1072 = vrot.lane.b32.xlu1 %v2276_v6, %s1686_s14 }
 0x649   : > { %1014 = vrot.lane.b32.xlu0 %v2276_v6, %s1687_s15 }
 0x64a   : > { %1018 = vrot.lane.b32.xlu1 %v997_v0, %s1687_s15 }
 0x64d   : > { %1006 = vrot.lane.b32.xlu0 %v997_v0, %s1688_s16 }
 0x64e   : > { %1004 = vrot.lane.b32.xlu1 %v2270_v4, %s1688_s16 }
 0x651   : > { %1064 = vrot.lane.b32.xlu0 %v2270_v4, %s1689_s17 }
 0x652   : > { %1002 = vrot.lane.b32.xlu1 %v2276_v6, %s1688_s16 }
 0x655   : > { %1062 = vrot.lane.b32.xlu0 %v2276_v6, %s1689_s17 }
 0x656   : > { %1066 = vrot.lane.b32.xlu1 %v997_v0, %s1689_s17 }
 0x69b   : > { %v1055_v9 = vpop.permute.xlu0 %1054 }
 0x69c   : > { %v1053_v13 = vpop.permute.xlu1 %1052 }
 0x69d   : > { %v1057_v14 = vsel %vm496_vm13, %v1053_v13, %v1055_v9 }
 0x69e   : > { %1448 = vmatprep.subr.msk.mxu0 %vm1958_vm7, %v1057_v14 }
 0x69f   : > { %v1085_v15 = vpop.permute.xlu0 %1084 }
 0x6a0   : > { %v1051_v16 = vpop.permute.xlu1 %1050 }
 0x6a1   : > { %v1056_v18 = vsel %vm496_vm13, %v1051_v16, %v1053_v13  ;;  %v1273_v13 = vpop.f32.mrf.mxu1 }
 0x6a2   : > { %1449 = vmatpush1.msk.msra.mxu0 %vm1965_vm8, %v1056_v18 }
 0x6a3   : > { %v1083_v17 = vpop.permute.xlu0 %1082 }
 0x6a4   : > { %v1087_v25 = vpop.permute.xlu1 %1086  ;;  %v1088_v26 = vsel %vm563_vm2, %v1083_v17, %v1085_v15 }
 0x6a5   : > { %v1089_v27 = vsel %vm563_vm2, %v1085_v15, %v1087_v25  ;;  %v1275_v15 = vpop.f32.mrf.mxu1 }
 0x6a6   : > { %1112 = vmatprep.subr.mxu0 %v1089_v27 }
 0x6a7   : > { %1113 = vmatpush1.msra.mxu0 %v1088_v26  ;;  %v1043_v20 = vpop.permute.xlu0 %1042 }
 0x6a8   : > { %v1041_v19 = vpop.permute.xlu1 %1040 }
 0x6a9   : > { %v1045_v28 = vsel %vm471_vm3, %v1041_v19, %v1043_v20 }
 0x6aa   : > { %1450 = vmatprep.subr.msk.mxu0 %vm1938_vm4, %v1045_v28 }
 0x6ab   : > { %v1029_v29 = vpop.permute.xlu0 %1028 }
 0x6ac   : > { %v1039_v30 = vpop.permute.xlu1 %1038 }
 0x6ad   : > { %v1044_v22 = vsel %vm471_vm3, %v1039_v30, %v1041_v19 }
 0x6ae   : > { %1451 = vmatpush1.msk.msra.mxu0 %vm1945_vm5, %v1044_v22 }
 0x6af   : > { %v1027_v31 = vpop.permute.xlu0 %1026 }
 0x6b0   : > { %v1031_v21 = vpop.permute.xlu1 %1030  ;;  %v1032_v33 = vsel %vm446_vm6, %v1027_v31, %v1029_v29 }
 0x6b1   : > { %v1033_v34 = vsel %vm446_vm6, %v1029_v29, %v1031_v21 }
 0x6b2   : > { %1452 = vmatprep.subr.msk.mxu0 %vm1958_vm7, %v1033_v34 }
 0x6b3   : > { %1453 = vmatpush1.msk.msra.mxu0 %vm1965_vm8, %v1032_v33  ;;  %v1077_v24 = vpop.permute.xlu0 %1076 }
 0x6b4   : > { %v1075_v35 = vpop.permute.xlu1 %1074 }
 0x6b5   : > { %v1079_v36 = vsel %vm542_vm9, %v1075_v35, %v1077_v24 }
 0x6b6   : > { %1118 = vmatprep.subr.mxu0 %v1079_v36 }
 0x6b7   : > { %v1017_v5 = vpop.permute.xlu0 %1016 }
 0x6b8   : > { %v1073_v2 = vpop.permute.xlu1 %1072 }
 0x6b9   : > { %v1078_v23 = vsel %vm542_vm9, %v1073_v2, %v1075_v35 }
 0x6ba   : > { %1119 = vmatpush1.msra.mxu0 %v1078_v23 }
 0x6bb   : > { %v1015_v1 = vpop.permute.xlu0 %1014 }
 0x6bc   : > { %v1019_v38 = vpop.permute.xlu1 %1018  ;;  %v1020_v61 = vsel %vm421_vm10, %v1015_v1, %v1017_v5 }
 0x6bd   : > { %v1021_v39 = vsel %vm421_vm10, %v1017_v5, %v1019_v38 }
 0x6be   : > { %1454 = vmatprep.subr.msk.mxu0 %vm1938_vm4, %v1021_v39 }
 0x6bf   : > { %1455 = vmatpush1.msk.msra.mxu0 %vm1945_vm5, %v1020_v61  ;;  %v1007_v40 = vpop.permute.xlu0 %1006 }
 0x6c0   : > { %v1005_v41 = vpop.permute.xlu1 %1004 }
 0x6c1   : > { %v1009_v42 = vsel %vm396_vm11, %v1005_v41, %v1007_v40 }
 0x6c2   : > { %1456 = vmatprep.subr.msk.mxu0 %vm1958_vm7, %v1009_v42 }
 0x6c3   : > { %v1065_v7 = vpop.permute.xlu0 %1064 }
 0x6c4   : > { %v1003_v43 = vpop.permute.xlu1 %1002 }
 0x6c5   : > { %v1008_v10 = vsel %vm396_vm11, %v1003_v43, %v1005_v41 }
 0x6c6   : > { %1457 = vmatpush1.msk.msra.mxu0 %vm1965_vm8, %v1008_v10 }
 0x6c7   : > { %v1063_v44 = vpop.permute.xlu0 %1062 }
 0x6c8   : > { %v1067_v11 = vpop.permute.xlu1 %1066  ;;  %v1068_v46 = vsel %vm521_vm12, %v1063_v44, %v1065_v7 }
 0x6c9   : > { %v1069_v59 = vsel %vm521_vm12, %v1065_v7, %v1067_v11 }
 0x6ca   : > { %1124 = vmatprep.subr.mxu0 %v1069_v59 }
 0x6cb   : > { %1125 = vmatpush1.msra.mxu0 %v1068_v46 }
 0x6cc   : > { %1458 = vmatprep.subr.msk.mxu0 %vm1938_vm4, %v2270_v4 }
 0x6cd   : > { %1459 = vmatpush1.msk.msra.mxu0 %vm1945_vm5, %v2276_v6 }
 0x6ce   : > { %1460 = vmatmul.mubr.msk.f32.vlgmr.msra.gmra.mxu0 %vm1092_vm14, %v985_v47 }
 0x78e   : > { %v1162_v49 = vpop.f32.mrf.mxu0 }
 0x790   : > { %v1164_v57 = vpop.f32.mrf.mxu0 }
 0x791   : > { %v1167_v55 = vadd.f32 %v1164_v57, %v1162_v49 }
 0x793   : > { %1168 = vadd.xlane.f32.xlu1 %v1167_v55 }
 0x81c   : > { %v1169_v12 = vpop.xlane.xlu1 %1168 }
 0x81d   : > { %v1170_v52 = vmul.f32 0.00390625, %v1169_v12 }
 0x81f   : > { %v1171_v48 = vsub.f32 %v1162_v49, %v1170_v52  ;;  %v1172_v50 = vsub.f32 %v1164_v57, %v1170_v52 }
 0x821   : > { %v1173_v51 = vmul.f32 %v1171_v48, %v1171_v48  ;;  %v1174_v53 = vmul.f32 %v1172_v50, %v1172_v50 }
 0x823   : > { %v1175_v32 = vadd.f32 %v1174_v53, %v1173_v51 }
 0x825   : > { %1176 = vadd.xlane.f32.xlu0 %v1175_v32 }
 0x83b   : > { %1201 = vperm.xlu0 %1530, %v1198_v37  }
 0x8ae   : > { %v1177_v54 = vpop.xlane.xlu0 %1176 }
 0x8af   : > { %v1178_v56 = vmul.f32 0.00390625, %v1177_v54 }
 0x8b1   : > { %v1179_v58 = vadd.f32 1e-05, %v1178_v56 }
 0x8b3   : > { %1542 = vrsqrt.f32 %v1179_v58 }
 0x8b6   : > { %v1202_v14 = vpop.permute.xlu0 %1201 }
 0x8b7   : > { %v1274_v25 = vadd.f32 %v1273_v13, %v1202_v14  ;;  %v1276_v27 = vadd.f32 %v1275_v15, %v1202_v14 }
 0x8c0   : > { %v1543_v60 = vpop.eup %1542 }
 0x8c1   : > { %v1181_v62 = vmul.f32 %v1543_v60, %v1171_v48  ;;  %v1182_v63 = vmul.f32 %v1543_v60, %v1172_v50 }
 0x8c3   : > { %v1461_v0 = vmul.f32 -1.442695, %v1181_v62  ;;  %v1462_v3 = vmul.f32 -1.442695, %v1182_v63 }
 0x8c5   : > { %1544 = vpow2.f32 %v1461_v0 }
 0x8c6   : > { %1546 = vpow2.f32 %v1462_v3 }
 0x8d2   : > { %v1545_v4 = vpop.eup %1544 }
 0x8d3   : > { %v1547_v6 = vpop.eup %1546  ;;  %v1189_v8 = vadd.f32 1.0, %v1545_v4 }
 0x8d4   : > { %v1190_v9 = vadd.f32 1.0, %v1547_v6 }
 0x8d5   : > { %1548 = vrcp.f32 %v1189_v8 }
 0x8d6   : > { %1550 = vrcp.f32 %v1190_v9 }
 0x8e2   : > { %v1549_v16 = vpop.eup %1548 }
 0x8e3   : > { %v1551_v18 = vpop.eup %1550  ;;  %v1195_v17 = vmul.f32 %v1549_v16, %v1181_v62 }
 0x8e4   : > { %v1196_v26 = vmul.f32 %v1551_v18, %v1182_v63 }
 0x8e5   : > { %v1278_v20 = vadd.f32 %v1274_v25, %v1195_v17 }
 0x8e6   : > { %v1279_v19 = vadd.f32 %v1276_v27, %v1196_v26 }
 0x8e7   : > { %1280 = vst [vmem:[%s331_s30] sm:$0xff] %v1278_v20 }
 0x8e8   : > { %1281 = vst [vmem:[%s331_s30 + $0x8] sm:$0xff] %v1279_v19 }
 0x8e9 PF: > { %s20_s24 = sadd.s32 1, %s1674_s24  }
 0x8ea   : > { %p17_p2 = scmp.ge.s32.totalorder %s20_s24, 4  }
 0x8ec   :  { %19 = sbr.rel (!%p17_p2) target bundleno = 3 (0x3), region = 95 }
 0x8f1   :  { %1303 = vsyncpa [#allocation3], 1 }
 0x8f2   :  { %1305 = vsyncpa [#allocation3 + $0x1], 1 }
 0x8f3   :  { %1306 = vsyncpa [#allocation5], 1 }
 0x8f4   :  { %1307 = vsyncpa [#allocation8], 1 }

// kernel: generator_forward.8
= control target key start
LH: loop header
LB: loop body
LE: loop exit
PB: predicated region body
PF: predicated region fallthrough
CT: control target
= control target key end

     0   :  { %s3199_s24 = smov 0   ;;  %s4568_s0 = inlined_call_operand.vmem [shape: f32[2,8,1024], index: 0, kind: input, shape index: {}]   ;;  %s4569_s1 = inlined_call_operand.vmem [shape: f32[8,72], index: 1, kind: input, shape index: {}]   ;;  %s4570_s2 = inlined_call_operand.vmem [shape: f32[8,1], index: 2, kind: input, shape index: {}]   ;;  %s4571_s3 = inlined_call_operand.vmem [shape: f32[8,72], index: 3, kind: input, shape index: {}]   ;;  %s4572_s4 = inlined_call_operand.vmem [shape: f32[8,72], index: 4, kind: input, shape index: {}]   ;;  %s4573_s5 = inlined_call_operand.vmem [shape: f32[8,8], index: 5, kind: input, shape index: {}]   ;;  %s4574_s6 = inlined_call_operand.vmem [shape: f32[8,1], index: 6, kind: input, shape index: {}]   ;;  %s4575_s7 = inlined_call_operand.vmem [shape: f32[2,8,1024], index: 7, kind: output, shape index: {}]  }
   0x1 LB: > { %s2863_s25 = sadd.s32 4294967295, %s3146_s24   ;;  %p2867_p0 = scmp.ge.s32.totalorder %s3146_s24, 1  ;;  %s3146_s24 = sphi %s3199_s24, %s17_s24  }
   0x2   : > { %p237_p1 = scmp.lt.s32.totalorder %s3146_s24, 3 }
   0x4   : > { %p238_p2 = pnand %p2867_p0, %p237_p1 }
   0x5   : > { %p269_p3 = scmp.lt.s32.totalorder (!%p238_p2), %s2863_s25, 1  ;;  %s3148_s30 = smov (!%p238_p2), 33  }
   0x6   : > { %241 = sbr.rel (%p238_p2) target bundleno = 2395 (0x95b), region = 48  ;;  %s3149_s8 = smov (!%p238_p2), 62  }
   0x7   : > { %s3150_s9 = smov (!%p238_p2), 63   ;;  %s3151_s10 = smov (!%p238_p2), 64  }
   0x8   : > { %s3152_s11 = smov (!%p238_p2), 94   ;;  %s3153_s12 = smov (!%p238_p2), 95  }
   0x9   : > { %s3154_s13 = smov (!%p238_p2), 96   ;;  %s3155_s14 = smov (!%p238_p2), 126  }
   0xa   : > { %s3156_s15 = smov (!%p238_p2), 127  }
   0xb   : > { %s4837_s25 = smov (!%p269_p3, %s2863_s25), 1  ;;  %vm4576_vm0 = vcmask 269312   ;;  %v3157_v18 = vmov 0.0   ;;  %v332_v23 = vlaneseq  ;;  %vm4580_vm1 = vcmask 506880   ;;  %v288_v59 = vld [vmem:[%s4570_s2] sm:$0xff] }
   0xc   : > { %s3050_s26 = sshll.u32 %s4837_s25, 6  ;;  %768 = vmatprep.mubr.f32.mxu0 %v3157_v18  ;;  %839 = vmatprep.mubr.f32.mxu1 %v3157_v18  ;;  %vm4583_vm4 = vcmask 515072   ;;  %vm4582_vm5 = vcmask 523264   ;;  %v3158_v47 = vmov 0   ;;  %v4619_v50 = vmov 0 }
   0xd   : > { %s273_s29 = scalar_lea.vmem %s4568_s0, %s3050_s26  ;;  %v3350_v24 = vand.u32 127, %v332_v23  ;;  %3071 = vset.pattern.permute.xlu0 %v3158_v47  ;;  %vm4581_vm8 = vcmask 769024   ;;  %vm4585_vm9 = vcmask 777216   ;;  %vm4584_vm10 = vcmask 785408  }
   0xe   : > { %v281_v0 = vld [vmem:[%s273_s29 + $0x10] sm:$0xff]  ;;  %v279_v1 = vld [vmem:[%s273_s29] sm:$0xff]  ;;  %v282_v2 = vld [vmem:[%s273_s29 + $0x18] sm:$0xff]  ;;  %vm4579_vm11 = vcmask 1031168   ;;  %vm4577_vm14 = vcmask 1039360   ;;  %vm4578_vm15 = vcmask 588800  }
   0xf   : > { %301 = vrot.lane.b32.xlu1 %v281_v0, %s3148_s30  ;;  %297 = vrot.lane.b32.xlu0 %v279_v1, %s3148_s30  ;;  %v280_v3 = vld [vmem:[%s273_s29 + $0x8] sm:$0xff]  ;;  %v283_v4 = vld [vmem:[%s273_s29 + $0x20] sm:$0xff]  ;;  %v334_v27 = vadd.s32 128, %v3350_v24  ;;  %v341_v33 = vand.u32 31, %v3350_v24 }
  0x10   : > { %v284_v5 = vld [vmem:[%s273_s29 + $0x28] sm:$0xff]  ;;  %v286_v6 = vld [vmem:[%s273_s29 + $0x38] sm:$0xff]  ;;  %v285_v7 = vld [vmem:[%s273_s29 + $0x30] sm:$0xff] }
  0x11   : > { %v342_v29 = vand.u32 31, %v334_v27  ;;  %vm3386_vm3 = vcmp.lt.s32.totalorder %v341_v33, 31  ;;  %vm3420_vm7 = vcmp.gt.s32.totalorder %v341_v33, 0 }
  0x12   : > { %v4620_v50 = vsel %vm3420_vm7, 4294967295, %v4619_v50 }
  0x13   : > { %303 = vrot.lane.b32.xlu1 %v282_v2, %s3148_s30  ;;  %299 = vrot.lane.b32.xlu0 %v280_v3, %s3148_s30  ;;  %vm3373_vm2 = vcmp.lt.s32.totalorder %v342_v29, 31  ;;  %vm3408_vm6 = vcmp.gt.s32.totalorder %v342_v29, 0  ;;  %v336_v3 = vadd.s32 384, %v3350_v24 }
  0x17   : > { %305 = vrot.lane.b32.xlu0 %v283_v4, %s3148_s30  ;;  %307 = vrot.lane.b32.xlu1 %v284_v5, %s3148_s30 }
  0x1b   : > { %311 = vrot.lane.b32.xlu1 %v286_v6, %s3148_s30  ;;  %309 = vrot.lane.b32.xlu0 %v285_v7, %s3148_s30  ;;  %v335_v6 = vadd.s32 256, %v3350_v24 }
  0x81   : > { %v298_v8 = vpop.permute.xlu0 %297  ;;  %v302_v9 = vpop.permute.xlu1 %301 }
  0x82   : > { %v3234_v13 = vsel %vm4576_vm0, 0.0, %v298_v8 }
  0x85   : > { %v300_v10 = vpop.permute.xlu0 %299  ;;  %v304_v14 = vpop.permute.xlu1 %303 }
  0x86   : > { %v3224_v11 = vsel %vm4576_vm0, %v298_v8, %v300_v10  ;;  %v3227_v12 = vsel %vm4576_vm0, %v300_v10, %v302_v9  ;;  %v3273_v15 = vsel %vm4576_vm0, %v302_v9, %v304_v14  ;;  %v344_v8 = vand.u32 31, %v336_v3 }
  0x87   : > { %551 = vrot.lane.b32.xlu1 %v3227_v12, %s3149_s8  ;;  %549 = vrot.lane.b32.xlu0 %v3224_v11, %s3149_s8  ;;  %v4633_v3 = vmov 0 }
  0x88   : > { %vm3476_vm12 = vcmp.lt.s32.totalorder %v344_v8, 31 }
  0x89   : > { %v306_v16 = vpop.permute.xlu0 %305  ;;  %v308_v20 = vpop.permute.xlu1 %307 }
  0x8a   : > { %v3280_v17 = vsel %vm4576_vm0, %v304_v14, %v306_v16  ;;  %v3304_v22 = vsel %vm4576_vm0, %v306_v16, %v308_v20  ;;  %v343_v14 = vand.u32 31, %v335_v6  ;;  %v4635_v6 = vmov 0 }
  0x8b   : > { %662 = vrot.lane.b32.xlu1 %v3224_v11, %s3150_s9  ;;  %547 = vrot.lane.b32.xlu0 %v3234_v13, %s3149_s8 }
  0x8c   : > { %vm3480_vm13 = vcmp.lt.s32.totalorder %v343_v14, 31 }
  0x8d   : > { %v310_v19 = vpop.permute.xlu0 %309  ;;  %v312_v25 = vpop.permute.xlu1 %311 }
  0x8e   : > { %v3301_v21 = vsel %vm4576_vm0, %v308_v20, %v310_v19  ;;  %v3357_v26 = vsel %vm4576_vm0, %v312_v25, 0.0  ;;  %v3361_v28 = vsel %vm4576_vm0, %v310_v19, %v312_v25  ;;  %v4621_v19 = vmov 0 }
  0x8f   : > { %660 = vrot.lane.b32.xlu1 %v3234_v13, %s3150_s9  ;;  %664 = vrot.lane.b32.xlu0 %v3227_v12, %s3150_s9  ;;  %v4622_v19 = vsel %vm3476_vm12, 4294967295, %v4621_v19  ;;  %v4623_v25 = vmov 0  ;;  %vm3514_vm0 = vcmp.gt.s32.totalorder %v344_v8, 0 }
  0x90   : > { %v4624_v25 = vsel %vm3480_vm13, 4294967295, %v4623_v25 }
  0x93   : > { %508 = vrot.lane.b32.xlu1 %v3227_v12, %s3151_s10  ;;  %506 = vrot.lane.b32.xlu0 %v3224_v11, %s3151_s10 }
  0x97   : > { %463 = vrot.lane.b32.xlu1 %v3224_v11, %s3152_s11  ;;  %504 = vrot.lane.b32.xlu0 %v3234_v13, %s3151_s10 }
  0x9b   : > { %461 = vrot.lane.b32.xlu1 %v3234_v13, %s3152_s11  ;;  %465 = vrot.lane.b32.xlu0 %v3227_v12, %s3152_s11 }
  0x9f   : > { %629 = vrot.lane.b32.xlu1 %v3227_v12, %s3153_s12  ;;  %627 = vrot.lane.b32.xlu0 %v3224_v11, %s3153_s12 }
  0xa3   : > { %420 = vrot.lane.b32.xlu1 %v3224_v11, %s3154_s13  ;;  %625 = vrot.lane.b32.xlu0 %v3234_v13, %s3153_s12 }
  0xa7   : > { %418 = vrot.lane.b32.xlu1 %v3234_v13, %s3154_s13  ;;  %422 = vrot.lane.b32.xlu0 %v3227_v12, %s3154_s13 }
  0xab   : > { %379 = vrot.lane.b32.xlu1 %v3227_v12, %s3155_s14  ;;  %377 = vrot.lane.b32.xlu0 %v3224_v11, %s3155_s14 }
  0xaf   : > { %553 = vrot.lane.b32.xlu1 %v3273_v15, %s3149_s8  ;;  %375 = vrot.lane.b32.xlu0 %v3234_v13, %s3155_s14 }
  0xb3   : > { %592 = vrot.lane.b32.xlu1 %v3224_v11, %s3156_s15  ;;  %555 = vrot.lane.b32.xlu0 %v3280_v17, %s3149_s8 }
  0xb7   : > { %590 = vrot.lane.b32.xlu1 %v3234_v13, %s3156_s15  ;;  %594 = vrot.lane.b32.xlu0 %v3227_v12, %s3156_s15 }
  0xbb   : > { %668 = vrot.lane.b32.xlu1 %v3280_v17, %s3150_s9  ;;  %666 = vrot.lane.b32.xlu0 %v3273_v15, %s3150_s9 }
  0xbf   : > { %512 = vrot.lane.b32.xlu1 %v3280_v17, %s3151_s10  ;;  %510 = vrot.lane.b32.xlu0 %v3273_v15, %s3151_s10 }
  0xc3   : > { %557 = vrot.lane.b32.xlu0 %v3304_v22, %s3149_s8  ;;  %559 = vrot.lane.b32.xlu1 %v3301_v21, %s3149_s8 }
  0xc7   : > { %467 = vrot.lane.b32.xlu0 %v3273_v15, %s3152_s11  ;;  %469 = vrot.lane.b32.xlu1 %v3280_v17, %s3152_s11 }
  0xcb   : > { %670 = vrot.lane.b32.xlu0 %v3304_v22, %s3150_s9  ;;  %672 = vrot.lane.b32.xlu1 %v3301_v21, %s3150_s9 }
  0xcf   : > { %514 = vrot.lane.b32.xlu0 %v3304_v22, %s3151_s10  ;;  %516 = vrot.lane.b32.xlu1 %v3301_v21, %s3151_s10 }
  0xd3   : > { %631 = vrot.lane.b32.xlu0 %v3273_v15, %s3153_s12  ;;  %633 = vrot.lane.b32.xlu1 %v3280_v17, %s3153_s12 }
  0xd7   : > { %424 = vrot.lane.b32.xlu0 %v3273_v15, %s3154_s13  ;;  %426 = vrot.lane.b32.xlu1 %v3280_v17, %s3154_s13 }
  0xdb   : > { %471 = vrot.lane.b32.xlu0 %v3304_v22, %s3152_s11  ;;  %473 = vrot.lane.b32.xlu1 %v3301_v21, %s3152_s11 }
  0xdf   : > { %381 = vrot.lane.b32.xlu0 %v3273_v15, %s3155_s14  ;;  %383 = vrot.lane.b32.xlu1 %v3280_v17, %s3155_s14 }
  0xe3   : > { %635 = vrot.lane.b32.xlu0 %v3304_v22, %s3153_s12  ;;  %637 = vrot.lane.b32.xlu1 %v3301_v21, %s3153_s12 }
  0xe7   : > { %428 = vrot.lane.b32.xlu0 %v3304_v22, %s3154_s13  ;;  %430 = vrot.lane.b32.xlu1 %v3301_v21, %s3154_s13 }
  0xeb   : > { %596 = vrot.lane.b32.xlu0 %v3273_v15, %s3156_s15  ;;  %598 = vrot.lane.b32.xlu1 %v3280_v17, %s3156_s15 }
  0xef   : > { %385 = vrot.lane.b32.xlu0 %v3304_v22, %s3155_s14  ;;  %387 = vrot.lane.b32.xlu1 %v3301_v21, %s3155_s14 }
  0xf3   : > { %561 = vrot.lane.b32.xlu0 %v3361_v28, %s3149_s8  ;;  %563 = vrot.lane.b32.xlu1 %v3357_v26, %s3149_s8 }
  0xf7   : > { %600 = vrot.lane.b32.xlu0 %v3304_v22, %s3156_s15  ;;  %602 = vrot.lane.b32.xlu1 %v3301_v21, %s3156_s15 }
  0xf9   : > { %v3371_v30 = vpop.permute.xlu1 %551  ;;  %v550_v31 = vpop.permute.xlu0 %549 }
  0xfa   : > { %v567_v34 = vsel %vm4580_vm1, %v550_v31, %v3371_v30 }
  0xfb   : > { %674 = vrot.lane.b32.xlu0 %v3361_v28, %s3150_s9  ;;  %676 = vrot.lane.b32.xlu1 %v3357_v26, %s3150_s9 }
  0xfc   : > { %2872 = vmatprep.subr.msk.mxu0 %vm3373_vm2, %v567_v34 }
  0xfd   : > { %v663_v35 = vpop.permute.xlu1 %662  ;;  %v548_v36 = vpop.permute.xlu0 %547 }
  0xfe   : > { %v566_v38 = vsel %vm4580_vm1, %v548_v36, %v550_v31 }
  0xff   : > { %518 = vrot.lane.b32.xlu0 %v3361_v28, %s3151_s10  ;;  %520 = vrot.lane.b32.xlu1 %v3357_v26, %s3151_s10 }
 0x100   : > { %2873 = vmatpush1.msk.msra.mxu0 %vm3386_vm3, %v566_v38 }
 0x101   : > { %v661_v39 = vpop.permute.xlu1 %660  ;;  %v3397_v40 = vpop.permute.xlu0 %664 }
 0x102   : > { %v680_v41 = vsel %vm4583_vm4, %v663_v35, %v3397_v40  ;;  %v679_v42 = vsel %vm4583_vm4, %v661_v39, %v663_v35  ;;  %v338_v35 = vadd.s32 640, %v3350_v24  ;;  %v337_v39 = vadd.s32 512, %v3350_v24 }
 0x103   : > { %475 = vrot.lane.b32.xlu0 %v3361_v28, %s3152_s11  ;;  %477 = vrot.lane.b32.xlu1 %v3357_v26, %s3152_s11 }
 0x104   : > { %720 = vmatprep.subr.mxu0 %v680_v41 }
 0x105   : > { %721 = vmatpush1.msra.mxu0 %v679_v42  ;;  %v3406_v43 = vpop.permute.xlu1 %508  ;;  %v507_v44 = vpop.permute.xlu0 %506 }
 0x106   : > { %v524_v46 = vsel %vm4582_vm5, %v507_v44, %v3406_v43 }
 0x107   : > { %639 = vrot.lane.b32.xlu0 %v3361_v28, %s3153_s12  ;;  %641 = vrot.lane.b32.xlu1 %v3357_v26, %s3153_s12 }
 0x108   : > { %2874 = vmatprep.subr.msk.mxu0 %vm3408_vm6, %v524_v46 }
 0x109   : > { %v464_v48 = vpop.permute.xlu1 %463  ;;  %v505_v49 = vpop.permute.xlu0 %504 }
 0x10a   : > { %v523_v51 = vsel %vm4582_vm5, %v505_v49, %v507_v44  ;;  %v4625_v44 = vmov 0 }
 0x10b   : > { %432 = vrot.lane.b32.xlu0 %v3361_v28, %s3154_s13  ;;  %434 = vrot.lane.b32.xlu1 %v3357_v26, %s3154_s13  ;;  %v4626_v44 = vsel %vm3514_vm0, 4294967295, %v4625_v44 }
 0x10c   : > { %2875 = vmatpush1.msk.msra.mxu0 %vm3420_vm7, %v523_v51  ;;  %v4629_v51 = vmov 0 }
 0x10d   : > { %v462_v52 = vpop.permute.xlu1 %461  ;;  %v3431_v53 = vpop.permute.xlu0 %465 }
 0x10e   : > { %v480_v54 = vsel %vm4581_vm8, %v462_v52, %v464_v48  ;;  %v481_v55 = vsel %vm4581_vm8, %v464_v48, %v3431_v53  ;;  %v345_v48 = vand.u32 31, %v337_v39 }
 0x10f   : > { %389 = vrot.lane.b32.xlu0 %v3361_v28, %s3155_s14  ;;  %391 = vrot.lane.b32.xlu1 %v3357_v26, %s3155_s14 }
 0x110   : > { %2876 = vmatprep.subr.msk.mxu0 %vm3373_vm2, %v481_v55  ;;  %v4631_v55 = vmov 0 }
 0x111   : > { %2877 = vmatpush1.msk.msra.mxu0 %vm3386_vm3, %v480_v54  ;;  %v3444_v56 = vpop.permute.xlu1 %629  ;;  %v628_v57 = vpop.permute.xlu0 %627 }
 0x112   : > { %v645_v58 = vsel %vm4585_vm9, %v628_v57, %v3444_v56 }
 0x113   : > { %604 = vrot.lane.b32.xlu0 %v3361_v28, %s3156_s15  ;;  %606 = vrot.lane.b32.xlu1 %v3357_v26, %s3156_s15 }
 0x114   : > { %726 = vmatprep.subr.mxu0 %v645_v58 }
 0x115   : > { %v421_v60 = vpop.permute.xlu1 %420  ;;  %v626_v61 = vpop.permute.xlu0 %625 }
 0x116   : > { %v644_v62 = vsel %vm4585_vm9, %v626_v61, %v628_v57 }
 0x117   : > { %727 = vmatpush1.msra.mxu0 %v644_v62  ;;  %697 = vperm.xlu0 %3071, %v288_v59  }
 0x119   : > { %v419_v63 = vpop.permute.xlu1 %418  ;;  %v3456_v0 = vpop.permute.xlu0 %422 }
 0x11a   : > { %v437_v1 = vsel %vm4584_vm10, %v419_v63, %v421_v60  ;;  %v438_v2 = vsel %vm4584_vm10, %v421_v60, %v3456_v0 }
 0x11b   : > { %2878 = vmatprep.subr.msk.mxu0 %vm3408_vm6, %v438_v2 }
 0x11c   : > { %2879 = vmatpush1.msk.msra.mxu0 %vm3420_vm7, %v437_v1 }
 0x11d   : > { %v3466_v4 = vpop.permute.xlu1 %379  ;;  %v378_v5 = vpop.permute.xlu0 %377 }
 0x11e   : > { %v395_v7 = vsel %vm4579_vm11, %v378_v5, %v3466_v4 }
 0x11f   : > { %2880 = vmatprep.subr.msk.mxu0 %vm3373_vm2, %v395_v7 }
 0x121   : > { %v554_v9 = vpop.permute.xlu1 %553  ;;  %v376_v10 = vpop.permute.xlu0 %375 }
 0x122   : > { %v394_v16 = vsel %vm4579_vm11, %v376_v10, %v378_v5  ;;  %v568_v27 = vsel %vm4580_vm1, %v3371_v30, %v554_v9  ;;  %v3500_v30 = vld [vmem:[%s4569_s1] sm:$0xff]  ;;  %vm3536_vm11 = vcmp.lt.s32.totalorder %v345_v48, 31 }
 0x123   : > { %2881 = vmatpush1.msk.msra.mxu0 %vm3386_vm3, %v394_v16  ;;  %v4632_v55 = vsel %vm3536_vm11, 4294967295, %v4631_v55 }
 0x125   : > { %v593_v20 = vpop.permute.xlu1 %592  ;;  %v556_v23 = vpop.permute.xlu0 %555 }
 0x126   : > { %v569_v26 = vsel %vm4580_vm1, %v554_v9, %v556_v23 }
 0x127   : > { %2885 = vmatprep.subr.msk.mxu1 %vm3476_vm12, %v569_v26 }
 0x128   : > { %2886 = vmatpush1.msk.msra.mxu1 %vm3480_vm13, %v568_v27 }
 0x129   : > { %v591_v29 = vpop.permute.xlu1 %590  ;;  %v3491_v31 = vpop.permute.xlu0 %594 }
 0x12a   : > { %v610_v33 = vsel %vm4577_vm14, %v593_v20, %v3491_v31  ;;  %v609_v34 = vsel %vm4577_vm14, %v591_v29, %v593_v20  ;;  %vm3519_vm14 = vcmp.gt.s32.totalorder %v343_v14, 0 }
 0x12b   : > { %732 = vmatprep.subr.mxu0 %v610_v33 }
 0x12c   : > { %733 = vmatpush1.msra.mxu0 %v609_v34 }
 0x12d   : > { %v669_v36 = vpop.permute.xlu1 %668  ;;  %2882 = vmatprep.subr.msk.mxu0 %vm3408_vm6, %v3224_v11  ;;  %v667_v38 = vpop.permute.xlu0 %666  ;;  %v346_v11 = vand.u32 31, %v338_v35 }
 0x12e   : > { %2883 = vmatpush1.msk.msra.mxu0 %vm3420_vm7, %v3234_v13  ;;  %v682_v41 = vsel %vm4583_vm4, %v667_v38, %v669_v36  ;;  %v681_v42 = vsel %vm4583_vm4, %v3397_v40, %v667_v38  ;;  %v4627_v13 = vmov 0 }
 0x12f   : > { %791 = vmatprep.subr.mxu1 %v682_v41  ;;  %2884 = vmatmul.mubr.msk.f32.vlgmr.msra.gmra.mxu0 %vm4578_vm15, %v3500_v30  ;;  %v4628_v13 = vsel %vm3519_vm14, 4294967295, %v4627_v13  ;;  %vm3530_vm15 = vcmp.lt.s32.totalorder %v346_v11, 31 }
 0x130   : > { %792 = vmatpush1.msra.mxu1 %v681_v42  ;;  %910 = vmatprep.mubr.f32.mxu0 %v3157_v18  ;;  %v4630_v51 = vsel %vm3530_vm15, 4294967295, %v4629_v51 }
 0x131   : > { %v513_v46 = vpop.permute.xlu1 %512  ;;  %v511_v47 = vpop.permute.xlu0 %510 }
 0x132   : > { %v526_v40 = vsel %vm4582_vm5, %v511_v47, %v513_v46  ;;  %v525_v49 = vsel %vm4582_vm5, %v3406_v43, %v511_v47 }
 0x133   : > { %2887 = vmatprep.subr.msk.mxu1 %vm3514_vm0, %v526_v40  ;;  %v340_v40 = vadd.s32 896, %v3350_v24 }
 0x134   : > { %2888 = vmatpush1.msk.msra.mxu1 %vm3519_vm14, %v525_v49 }
 0x135   : > { %v3534_v52 = vpop.permute.xlu1 %559  ;;  %v558_v54 = vpop.permute.xlu0 %557 }
 0x136   : > { %v570_v57 = vsel %vm4580_vm1, %v556_v23, %v558_v54  ;;  %v571_v43 = vsel %vm4580_vm1, %v558_v54, %v3534_v52  ;;  %vm3559_vm1 = vcmp.gt.s32.totalorder %v346_v11, 0 }
 0x137   : > { %2898 = vmatprep.subr.msk.mxu0 %vm3530_vm15, %v571_v43  ;;  %v4634_v3 = vsel %vm3559_vm1, 4294967295, %v4633_v3 }
 0x138   : > { %2899 = vmatpush1.msk.msra.mxu0 %vm3536_vm11, %v570_v57  ;;  %v339_v57 = vadd.s32 768, %v3350_v24 }
 0x139   : > { %v470_v58 = vpop.permute.xlu1 %469  ;;  %v468_v59 = vpop.permute.xlu0 %467 }
 0x13a   : > { %v483_v60 = vsel %vm4581_vm8, %v468_v59, %v470_v58  ;;  %v482_v61 = vsel %vm4581_vm8, %v3431_v53, %v468_v59  ;;  %vm3565_vm8 = vcmp.gt.s32.totalorder %v345_v48, 0  ;;  %v348_v59 = vand.u32 31, %v340_v40 }
 0x13b   : > { %2889 = vmatprep.subr.msk.mxu1 %vm3476_vm12, %v483_v60  ;;  %v4636_v6 = vsel %vm3565_vm8, 4294967295, %v4635_v6 }
 0x13c   : > { %2890 = vmatpush1.msk.msra.mxu1 %vm3480_vm13, %v482_v61 }
 0x13d   : > { %v3554_v62 = vpop.permute.xlu1 %672  ;;  %v671_v63 = vpop.permute.xlu0 %670 }
 0x13e   : > { %v684_v1 = vsel %vm4583_vm4, %v671_v63, %v3554_v62  ;;  %v683_v2 = vsel %vm4583_vm4, %v669_v36, %v671_v63  ;;  %v347_v63 = vand.u32 31, %v339_v57 }
 0x13f   : > { %862 = vmatprep.subr.mxu0 %v684_v1 }
 0x140   : > { %863 = vmatpush1.msra.mxu0 %v683_v2  ;;  %v4652_v2 = vmov 0 }
 0x141   : > { %v3563_v53 = vpop.permute.xlu1 %516  ;;  %v515_v5 = vpop.permute.xlu0 %514 }
 0x142   : > { %v527_v7 = vsel %vm4582_vm5, %v513_v46, %v515_v5  ;;  %v528_v8 = vsel %vm4582_vm5, %v515_v5, %v3563_v53  ;;  %vm4637_vm5 = vcmask 769024  }
 0x143   : > { %2900 = vmatprep.subr.msk.mxu0 %vm3559_vm1, %v528_v8  ;;  %vm4638_vm4 = vmmov %vm4637_vm5 }
 0x144   : > { %2901 = vmatpush1.msk.msra.mxu0 %vm3565_vm8, %v527_v7 }
 0x145   : > { %v634_v9 = vpop.permute.xlu1 %633  ;;  %v632_v10 = vpop.permute.xlu0 %631 }
 0x146   : > { %v647_v14 = vsel %vm4585_vm9, %v632_v10, %v634_v9  ;;  %v646_v16 = vsel %vm4585_vm9, %v3444_v56, %v632_v10 }
 0x147   : > { %797 = vmatprep.subr.mxu1 %v647_v14 }
 0x148   : > { %798 = vmatpush1.msra.mxu1 %v646_v16 }
 0x149   : > { %v427_v20 = vpop.permute.xlu1 %426  ;;  %v425_v23 = vpop.permute.xlu0 %424 }
 0x14a   : > { %v440_v26 = vsel %vm4584_vm10, %v425_v23, %v427_v20  ;;  %v439_v27 = vsel %vm4584_vm10, %v3456_v0, %v425_v23  ;;  %vm4639_vm10 = vcmask 1031168  }
 0x14b   : > { %2891 = vmatprep.subr.msk.mxu1 %vm3514_vm0, %v440_v26  ;;  %vm4640_vm9 = vmmov %vm4639_vm10  ;;  %v4661_v26 = vmov 0 }
 0x14c   : > { %2892 = vmatpush1.msk.msra.mxu1 %vm3519_vm14, %v439_v27 }
 0x14d   : > { %v3586_v29 = vpop.permute.xlu1 %473  ;;  %v472_v33 = vpop.permute.xlu0 %471 }
 0x14e   : > { %v484_v56 = vsel %vm4637_vm5, %v470_v58, %v472_v33  ;;  %v485_v34 = vsel %vm4638_vm4, %v472_v33, %v3586_v29  ;;  %vm4641_vm4 = vcmask 777216  }
 0x14f   : > { %2902 = vmatprep.subr.msk.mxu0 %vm3530_vm15, %v485_v34  ;;  %vm4642_vm5 = vmmov %vm4641_vm4 }
 0x150   : > { %2903 = vmatpush1.msk.msra.mxu0 %vm3536_vm11, %v484_v56 }
 0x151   : > { %v384_v0 = vpop.permute.xlu1 %383  ;;  %v382_v35 = vpop.permute.xlu0 %381 }
 0x152   : > { %v397_v36 = vsel %vm4639_vm10, %v382_v35, %v384_v0  ;;  %v396_v38 = vsel %vm4640_vm9, %v3466_v4, %v382_v35  ;;  %vm4643_vm9 = vcmask 785408  }
 0x153   : > { %2893 = vmatprep.subr.msk.mxu1 %vm3476_vm12, %v397_v36  ;;  %vm4644_vm10 = vmmov %vm4643_vm9 }
 0x154   : > { %2894 = vmatpush1.msk.msra.mxu1 %vm3480_vm13, %v396_v38 }
 0x155   : > { %v3602_v39 = vpop.permute.xlu1 %637  ;;  %v636_v41 = vpop.permute.xlu0 %635 }
 0x156   : > { %v649_v42 = vsel %vm4641_vm4, %v636_v41, %v3602_v39  ;;  %v648_v11 = vsel %vm4642_vm5, %v634_v9, %v636_v41  ;;  %vm4645_vm4 = vcmask 1039360  }
 0x157   : > { %868 = vmatprep.subr.mxu0 %v649_v42  ;;  %vm4646_vm5 = vmmov %vm4645_vm4 }
 0x158   : > { %869 = vmatpush1.msra.mxu0 %v648_v11 }
 0x159   : > { %v3607_v46 = vpop.permute.xlu1 %430  ;;  %v429_v47 = vpop.permute.xlu0 %428 }
 0x15a   : > { %v441_v4 = vsel %vm4643_vm9, %v427_v20, %v429_v47  ;;  %v442_v48 = vsel %vm4644_vm10, %v429_v47, %v3607_v46  ;;  %vm4647_vm9 = vcmask 1031168  }
 0x15b   : > { %2904 = vmatprep.subr.msk.mxu0 %vm3559_vm1, %v442_v48  ;;  %vm4648_vm10 = vmmov %vm4647_vm9 }
 0x15c   : > { %2905 = vmatpush1.msk.msra.mxu0 %vm3565_vm8, %v441_v4 }
 0x15d   : > { %v599_v49 = vpop.permute.xlu1 %598  ;;  %v597_v54 = vpop.permute.xlu0 %596 }
 0x15e   : > { %v612_v43 = vsel %vm4645_vm4, %v597_v54, %v599_v49  ;;  %v611_v58 = vsel %vm4646_vm5, %v3491_v31, %v597_v54  ;;  %vm4649_vm4 = vcmask 588800   ;;  %vm3638_vm5 = vcmp.lt.s32.totalorder %v348_v59, 31 }
 0x15f   : > { %803 = vmatprep.subr.mxu1 %v612_v43 }
 0x160   : > { %804 = vmatpush1.msra.mxu1 %v611_v58 }
 0x161   : > { %v3621_v60 = vpop.permute.xlu1 %387  ;;  %2895 = vmatprep.subr.msk.mxu1 %vm3514_vm0, %v3273_v15  ;;  %v386_v61 = vpop.permute.xlu0 %385  ;;  %v4650_v15 = vmov 0 }
 0x162   : > { %v398_v1 = vsel %vm4647_vm9, %v384_v0, %v386_v61  ;;  %2896 = vmatpush1.msk.msra.mxu1 %vm3519_vm14, %v3227_v12  ;;  %v399_v24 = vsel %vm4648_vm10, %v386_v61, %v3621_v60  ;;  %v4651_v15 = vsel %vm3638_vm5, 4294967295, %v4650_v15  ;;  %vm3643_vm9 = vcmp.lt.s32.totalorder %v347_v63, 31 }
 0x163   : > { %2897 = vmatmul.mubr.msk.f32.vlgmr.msra.gmra.mxu1 %vm4649_vm4, %v3500_v30  ;;  %2906 = vmatprep.subr.msk.mxu0 %vm3530_vm15, %v399_v24  ;;  %v4653_v2 = vsel %vm3643_vm9, 4294967295, %v4652_v2  ;;  %vm4654_vm10 = vcmask 506880  }
 0x164   : > { %2907 = vmatpush1.msk.msra.mxu0 %vm3536_vm11, %v398_v1  ;;  %981 = vmatprep.mubr.f32.mxu1 %v3157_v18  ;;  %vm4655_vm4 = vmmov %vm4654_vm10  ;;  %vm4656_vm11 = vcmask 1039360  }
 0x165   : > { %v564_v31 = vpop.permute.xlu1 %563  ;;  %v562_v12 = vpop.permute.xlu0 %561  ;;  %vm4657_vm15 = vmmov %vm4656_vm11 }
 0x166   : > { %v572_v5 = vsel %vm4654_vm10, %v3534_v52, %v562_v12  ;;  %v573_v7 = vsel %vm4655_vm4, %v562_v12, %v564_v31  ;;  %vm4658_vm10 = vcmask 515072  }
 0x167   : > { %2911 = vmatprep.subr.msk.mxu1 %vm3638_vm5, %v573_v7  ;;  %vm4659_vm4 = vmmov %vm4658_vm10 }
 0x168   : > { %2912 = vmatpush1.msk.msra.mxu1 %vm3643_vm9, %v572_v5 }
 0x169   : > { %v603_v8 = vpop.permute.xlu1 %602  ;;  %v601_v9 = vpop.permute.xlu0 %600 }
 0x16a   : > { %v614_v10 = vsel %vm4656_vm11, %v601_v9, %v603_v8  ;;  %v613_v14 = vsel %vm4657_vm15, %v599_v49, %v601_v9  ;;  %vm4660_vm11 = vcmask 588800   ;;  %vm3667_vm15 = vcmp.gt.s32.totalorder %v348_v59, 0 }
 0x16b   : > { %874 = vmatprep.subr.mxu0 %v614_v10  ;;  %v4662_v26 = vsel %vm3667_vm15, 4294967295, %v4661_v26 }
 0x16c   : > { %875 = vmatpush1.msra.mxu0 %v613_v14 }
 0x16d   : > { %v677_v16 = vpop.permute.xlu1 %676  ;;  %2908 = vmatprep.subr.msk.mxu0 %vm3559_vm1, %v3304_v22  ;;  %v675_v52 = vpop.permute.xlu0 %674  ;;  %vm3672_vm1 = vcmp.gt.s32.totalorder %v347_v63, 0 }
 0x16e   : > { %2909 = vmatpush1.msk.msra.mxu0 %vm3565_vm8, %v3280_v17  ;;  %v686_v20 = vsel %vm4658_vm10, %v675_v52, %v677_v16  ;;  %v685_v23 = vsel %vm4659_vm4, %v3554_v62, %v675_v52  ;;  %v4663_v17 = vmov 0  ;;  %vm4665_vm10 = vcmask 523264  }
 0x16f   : > { %2910 = vmatmul.mubr.msk.f32.vlgmr.msra.gmra.mxu0 %vm4660_vm11, %v3500_v30  ;;  %933 = vmatprep.subr.mxu1 %v686_v20  ;;  %v4664_v17 = vsel %vm3672_vm1, 4294967295, %v4663_v17  ;;  %vm4666_vm4 = vmmov %vm4665_vm10  ;;  %vm4667_vm11 = vcmask 769024  }
 0x170   : > { %934 = vmatpush1.msra.mxu1 %v685_v23  ;;  %1420 = vmatprep.mubr.f32.mxu0 %v3157_v18  ;;  %vm4668_vm8 = vmmov %vm4667_vm11 }
 0x171   : > { %v521_v22 = vpop.permute.xlu1 %520  ;;  %v519_v27 = vpop.permute.xlu0 %518 }
 0x172   : > { %v529_v62 = vsel %vm4665_vm10, %v3563_v53, %v519_v27  ;;  %v530_v33 = vsel %vm4666_vm4, %v519_v27, %v521_v22  ;;  %vm4669_vm10 = vcmask 777216  }
 0x173   : > { %2913 = vmatprep.subr.msk.mxu1 %vm3667_vm15, %v530_v33  ;;  %vm4670_vm4 = vmmov %vm4669_vm10 }
 0x174   : > { %2914 = vmatpush1.msk.msra.mxu1 %vm3672_vm1, %v529_v62 }
 0x175   : > { %v478_v56 = vpop.permute.xlu1 %477  ;;  %v476_v34 = vpop.permute.xlu0 %475 }
 0x176   : > { %v486_v0 = vsel %vm4667_vm11, %v3586_v29, %v476_v34  ;;  %v487_v35 = vsel %vm4668_vm8, %v476_v34, %v478_v56  ;;  %vm4671_vm11 = vcmask 785408  }
 0x177   : > { %2915 = vmatprep.subr.msk.mxu1 %vm3638_vm5, %v487_v35  ;;  %vm4672_vm8 = vmmov %vm4671_vm11 }
 0x178   : > { %2916 = vmatpush1.msk.msra.mxu1 %vm3643_vm9, %v486_v0 }
 0x179   : > { %v642_v53 = vpop.permute.xlu1 %641  ;;  %v640_v36 = vpop.permute.xlu0 %639 }
 0x17a   : > { %v651_v38 = vsel %vm4669_vm10, %v640_v36, %v642_v53  ;;  %v650_v41 = vsel %vm4670_vm4, %v3602_v39, %v640_v36  ;;  %vm4673_vm10 = vcmask 1031168  }
 0x17b   : > { %939 = vmatprep.subr.mxu1 %v651_v38  ;;  %vm4674_vm4 = vmmov %vm4673_vm10 }
 0x17c   : > { %940 = vmatpush1.msra.mxu1 %v650_v41 }
 0x17d   : > { %v435_v42 = vpop.permute.xlu1 %434  ;;  %v433_v11 = vpop.permute.xlu0 %432 }
 0x17e   : > { %v443_v29 = vsel %vm4671_vm11, %v3607_v46, %v433_v11  ;;  %v444_v47 = vsel %vm4672_vm8, %v433_v11, %v435_v42  ;;  %vm4675_vm11 = vcmask 1039360  }
 0x17f   : > { %2917 = vmatprep.subr.msk.mxu1 %vm3667_vm15, %v444_v47  ;;  %vm4676_vm8 = vmmov %vm4675_vm11 }
 0x180   : > { %2918 = vmatpush1.msk.msra.mxu1 %vm3672_vm1, %v443_v29 }
 0x181   : > { %v392_v4 = vpop.permute.xlu1 %391  ;;  %v390_v48 = vpop.permute.xlu0 %389 }
 0x182   : > { %v400_v39 = vsel %vm4673_vm10, %v3621_v60, %v390_v48  ;;  %v401_v40 = vsel %vm4674_vm4, %v390_v48, %v392_v4  ;;  %vm4677_vm10 = vcmask 588800   ;;  %vm4678_vm4 = vcmask 269312  }
 0x183   : > { %2919 = vmatprep.subr.msk.mxu1 %vm3638_vm5, %v401_v40 }
 0x184   : > { %2920 = vmatpush1.msk.msra.mxu1 %vm3643_vm9, %v400_v39 }
 0x185   : > { %v607_v46 = vpop.permute.xlu1 %606  ;;  %v605_v49 = vpop.permute.xlu0 %604 }
 0x186   : > { %v616_v54 = vsel %vm4675_vm11, %v605_v49, %v607_v46  ;;  %v615_v57 = vsel %vm4676_vm8, %v603_v8, %v605_v49  ;;  %vm4679_vm11 = vmmov %vm4678_vm4 }
 0x187   : > { %945 = vmatprep.subr.mxu1 %v616_v54  ;;  %vm4680_vm8 = vmmov %vm4678_vm4 }
 0x188   : > { %946 = vmatpush1.msra.mxu1 %v615_v57 }
 0x189   : > { %2921 = vmatprep.subr.msk.mxu1 %vm3667_vm15, %v3361_v28 }
 0x18a   : > { %2922 = vmatpush1.msk.msra.mxu1 %vm3672_vm1, %v3301_v21 }
 0x18b   : > { %2923 = vmatmul.mubr.msk.f32.vlgmr.msra.gmra.mxu1 %vm4677_vm10, %v3500_v30  ;;  %vm4681_vm10 = vmmov %vm4678_vm4 }
 0x18c   : > { %1491 = vmatprep.mubr.f32.mxu1 %v3157_v18 }
 0x192   : > { %v698_v43 = vpop.permute.xlu0 %697 }
 0x1ef   : > { %v770_v58 = vpop.f32.mrf.mxu0 }
 0x1f0   : > { %v3718_v59 = vadd.f32 %v770_v58, %v698_v43 }
 0x1f1   : > { %v772_v60 = vpop.f32.mrf.mxu0 }
 0x1f2   : > { %997 = vrot.lane.b32.xlu1 %v3718_v59, %s3148_s30  ;;  %v3722_v61 = vadd.f32 %v772_v60, %v698_v43 }
 0x1f6   : > { %999 = vrot.lane.b32.xlu1 %v3722_v61, %s3148_s30 }
 0x223   : > { %v841_v28 = vpop.f32.mrf.mxu1 }
 0x224   : > { %v3726_v21 = vadd.f32 %v841_v28, %v698_v43 }
 0x225   : > { %v843_v63 = vpop.f32.mrf.mxu1 }
 0x226   : > { %v3728_v30 = vadd.f32 %v843_v63, %v698_v43  ;;  %1001 = vrot.lane.b32.xlu0 %v3726_v21, %s3148_s30 }
 0x228   : > { %1003 = vrot.lane.b32.xlu1 %v3728_v30, %s3148_s30 }
 0x22f   : > { %v912_v1 = vpop.f32.mrf.mxu0 }
 0x230   : > { %v3734_v24 = vadd.f32 %v912_v1, %v698_v43 }
 0x231   : > { %v914_v31 = vpop.f32.mrf.mxu0 }
 0x232   : > { %v3736_v12 = vadd.f32 %v914_v31, %v698_v43  ;;  %1005 = vrot.lane.b32.xlu0 %v3734_v24, %s3148_s30 }
 0x234   : > { %1007 = vrot.lane.b32.xlu1 %v3736_v12, %s3148_s30 }
 0x24b   : > { %v983_v5 = vpop.f32.mrf.mxu1 }
 0x24c   : > { %v3742_v7 = vadd.f32 %v983_v5, %v698_v43 }
 0x24d   : > { %v985_v8 = vpop.f32.mrf.mxu1 }
 0x24e   : > { %v3744_v9 = vadd.f32 %v985_v8, %v698_v43  ;;  %1009 = vrot.lane.b32.xlu0 %v3742_v7, %s3148_s30 }
 0x250   : > { %1011 = vrot.lane.b32.xlu1 %v3744_v9, %s3148_s30 }
 0x264   : > { %v998_v10 = vpop.permute.xlu1 %997 }
 0x265   : > { %v3751_v14 = vsel %vm4678_vm4, 0.0, %v998_v10 }
 0x266   : > { %1209 = vrot.lane.b32.xlu0 %v3751_v14, %s3149_s8  ;;  %1319 = vrot.lane.b32.xlu1 %v3751_v14, %s3150_s9 }
 0x268   : > { %v1000_v16 = vpop.permute.xlu1 %999 }
 0x269   : > { %v3770_v52 = vsel %vm4679_vm11, %v998_v10, %v1000_v16  ;;  %vm4682_vm11 = vmmov %vm4678_vm4 }
 0x26a   : > { %1167 = vrot.lane.b32.xlu0 %v3751_v14, %s3151_s10  ;;  %1125 = vrot.lane.b32.xlu1 %v3751_v14, %s3152_s11 }
 0x26e   : > { %1285 = vrot.lane.b32.xlu0 %v3751_v14, %s3153_s12  ;;  %1083 = vrot.lane.b32.xlu1 %v3751_v14, %s3154_s13 }
 0x272   : > { %1041 = vrot.lane.b32.xlu0 %v3751_v14, %s3155_s14  ;;  %1251 = vrot.lane.b32.xlu1 %v3751_v14, %s3156_s15 }
 0x276   : > { %1211 = vrot.lane.b32.xlu0 %v3770_v52, %s3149_s8 }
 0x298   : > { %v1002_v20 = vpop.permute.xlu0 %1001 }
 0x299   : > { %v3775_v23 = vsel %vm4680_vm8, %v1000_v16, %v1002_v20  ;;  %vm4683_vm8 = vmmov %vm4678_vm4 }
 0x29a   : > { %1213 = vrot.lane.b32.xlu1 %v3775_v23, %s3149_s8  ;;  %1323 = vrot.lane.b32.xlu0 %v3775_v23, %s3150_s9  ;;  %v1004_v22 = vpop.permute.xlu1 %1003 }
 0x29b   : > { %v3786_v27 = vsel %vm4681_vm10, %v1002_v20, %v1004_v22  ;;  %vm4684_vm10 = vmmov %vm4678_vm4 }
 0x29e   : > { %1321 = vrot.lane.b32.xlu1 %v3770_v52, %s3150_s9  ;;  %1169 = vrot.lane.b32.xlu0 %v3770_v52, %s3151_s10 }
 0x2a2   : > { %1171 = vrot.lane.b32.xlu1 %v3775_v23, %s3151_s10  ;;  %1215 = vrot.lane.b32.xlu0 %v3786_v27, %s3149_s8 }
 0x2a4   : > { %v1006_v62 = vpop.permute.xlu0 %1005 }
 0x2a5   : > { %v3825_v33 = vsel %vm4678_vm4, %v1004_v22, %v1006_v62 }
 0x2a6   : > { %1127 = vrot.lane.b32.xlu1 %v3770_v52, %s3152_s11  ;;  %1129 = vrot.lane.b32.xlu0 %v3775_v23, %s3152_s11  ;;  %v1008_v56 = vpop.permute.xlu1 %1007 }
 0x2a7   : > { %v3844_v34 = vsel %vm4682_vm11, %v1006_v62, %v1008_v56  ;;  %vm4685_vm11 = vcmask 506880  }
 0x2aa   : > { %1325 = vrot.lane.b32.xlu1 %v3786_v27, %s3150_s9  ;;  %1173 = vrot.lane.b32.xlu0 %v3786_v27, %s3151_s10 }
 0x2ae   : > { %1289 = vrot.lane.b32.xlu1 %v3775_v23, %s3153_s12  ;;  %1287 = vrot.lane.b32.xlu0 %v3770_v52, %s3153_s12 }
 0x2b2   : > { %1085 = vrot.lane.b32.xlu1 %v3770_v52, %s3154_s13  ;;  %1087 = vrot.lane.b32.xlu0 %v3775_v23, %s3154_s13 }
 0x2b6   : > { %1131 = vrot.lane.b32.xlu1 %v3786_v27, %s3152_s11  ;;  %1043 = vrot.lane.b32.xlu0 %v3770_v52, %s3155_s14 }
 0x2ba   : > { %1045 = vrot.lane.b32.xlu1 %v3775_v23, %s3155_s14  ;;  %1291 = vrot.lane.b32.xlu0 %v3786_v27, %s3153_s12 }
 0x2be   : > { %1089 = vrot.lane.b32.xlu1 %v3786_v27, %s3154_s13  ;;  %1255 = vrot.lane.b32.xlu0 %v3775_v23, %s3156_s15 }
 0x2c0   : > { %v1010_v0 = vpop.permute.xlu0 %1009 }
 0x2c1   : > { %v3851_v35 = vsel %vm4683_vm8, %v1008_v56, %v1010_v0  ;;  %vm4686_vm8 = vmmov %vm4685_vm11 }
 0x2c2   : > { %1253 = vrot.lane.b32.xlu1 %v3770_v52, %s3156_s15  ;;  %1047 = vrot.lane.b32.xlu0 %v3786_v27, %s3155_s14  ;;  %v1012_v53 = vpop.permute.xlu1 %1011 }
 0x2c3   : > { %v3862_v36 = vsel %vm4684_vm10, %v1010_v0, %v1012_v53  ;;  %v1030_v38 = vsel %vm4678_vm4, %v1012_v53, 0.0  ;;  %vm4687_vm10 = vcmask 515072  }
 0x2c4   : > { %vm4688_vm4 = vmmov %vm4687_vm10 }
 0x2c6   : > { %1217 = vrot.lane.b32.xlu1 %v3825_v33, %s3149_s8  ;;  %1257 = vrot.lane.b32.xlu0 %v3786_v27, %s3156_s15 }
 0x2ca   : > { %1175 = vrot.lane.b32.xlu1 %v3825_v33, %s3151_s10  ;;  %1327 = vrot.lane.b32.xlu0 %v3825_v33, %s3150_s9 }
 0x2ce   : > { %1293 = vrot.lane.b32.xlu1 %v3825_v33, %s3153_s12  ;;  %1133 = vrot.lane.b32.xlu0 %v3825_v33, %s3152_s11 }
 0x2d2   : > { %1049 = vrot.lane.b32.xlu1 %v3825_v33, %s3155_s14  ;;  %1091 = vrot.lane.b32.xlu0 %v3825_v33, %s3154_s13 }
 0x2d6   : > { %1259 = vrot.lane.b32.xlu1 %v3825_v33, %s3156_s15  ;;  %1219 = vrot.lane.b32.xlu0 %v3844_v34, %s3149_s8 }
 0x2d8   : > { %v1210_v41 = vpop.permute.xlu0 %1209  ;;  %v1320_v11 = vpop.permute.xlu1 %1319 }
 0x2da   : > { %1221 = vrot.lane.b32.xlu1 %v3851_v35, %s3149_s8  ;;  %1329 = vrot.lane.b32.xlu0 %v3844_v34, %s3150_s9 }
 0x2dc   : > { %v1168_v42 = vpop.permute.xlu0 %1167  ;;  %v1126_v47 = vpop.permute.xlu1 %1125 }
 0x2de   : > { %1331 = vrot.lane.b32.xlu1 %v3851_v35, %s3150_s9  ;;  %1177 = vrot.lane.b32.xlu0 %v3844_v34, %s3151_s10 }
 0x2e0   : > { %v1286_v29 = vpop.permute.xlu0 %1285  ;;  %v1084_v48 = vpop.permute.xlu1 %1083 }
 0x2e2   : > { %1179 = vrot.lane.b32.xlu1 %v3851_v35, %s3151_s10  ;;  %1223 = vrot.lane.b32.xlu0 %v3862_v36, %s3149_s8 }
 0x2e4   : > { %v1042_v4 = vpop.permute.xlu0 %1041  ;;  %v1252_v40 = vpop.permute.xlu1 %1251 }
 0x2e6   : > { %1225 = vrot.lane.b32.xlu1 %v1030_v38, %s3149_s8  ;;  %1135 = vrot.lane.b32.xlu0 %v3844_v34, %s3152_s11 }
 0x2e8   : > { %v1212_v39 = vpop.permute.xlu0 %1211 }
 0x2e9   : > { %v1227_v57 = vsel %vm4686_vm8, %v1210_v41, %v1212_v39 }
 0x2ea   : > { %1137 = vrot.lane.b32.xlu1 %v3851_v35, %s3152_s11  ;;  %1333 = vrot.lane.b32.xlu0 %v3862_v36, %s3150_s9 }
 0x2ee   : > { %1335 = vrot.lane.b32.xlu1 %v1030_v38, %s3150_s9  ;;  %1181 = vrot.lane.b32.xlu0 %v3862_v36, %s3151_s10 }
 0x2f2   : > { %1183 = vrot.lane.b32.xlu1 %v1030_v38, %s3151_s10  ;;  %1295 = vrot.lane.b32.xlu0 %v3844_v34, %s3153_s12 }
 0x2f6   : > { %1297 = vrot.lane.b32.xlu1 %v3851_v35, %s3153_s12  ;;  %1093 = vrot.lane.b32.xlu0 %v3844_v34, %s3154_s13 }
 0x2fa   : > { %1095 = vrot.lane.b32.xlu1 %v3851_v35, %s3154_s13  ;;  %1139 = vrot.lane.b32.xlu0 %v3862_v36, %s3152_s11 }
 0x2fe   : > { %1141 = vrot.lane.b32.xlu1 %v1030_v38, %s3152_s11  ;;  %1051 = vrot.lane.b32.xlu0 %v3844_v34, %s3155_s14 }
 0x302   : > { %1053 = vrot.lane.b32.xlu1 %v3851_v35, %s3155_s14  ;;  %1299 = vrot.lane.b32.xlu0 %v3862_v36, %s3153_s12 }
 0x306   : > { %1301 = vrot.lane.b32.xlu1 %v1030_v38, %s3153_s12  ;;  %1097 = vrot.lane.b32.xlu0 %v3862_v36, %s3154_s13 }
 0x30a   : > { %1099 = vrot.lane.b32.xlu1 %v1030_v38, %s3154_s13  ;;  %1261 = vrot.lane.b32.xlu0 %v3844_v34, %s3156_s15 }
 0x30c   : > { %v3903_v46 = vpop.permute.xlu0 %1323  ;;  %v3905_v49 = vpop.permute.xlu1 %1213 }
 0x30d   : > { %v1228_v54 = vsel %vm4685_vm11, %v1212_v39, %v3905_v49  ;;  %vm4689_vm11 = vcmask 523264  }
 0x30e   : > { %1263 = vrot.lane.b32.xlu1 %v3851_v35, %s3156_s15  ;;  %1055 = vrot.lane.b32.xlu0 %v3862_v36, %s3155_s14  ;;  %vm4690_vm8 = vmmov %vm4689_vm11 }
 0x30f   : > { %2924 = vmatprep.subr.msk.mxu0 %vm3373_vm2, %v1228_v54 }
 0x310   : > { %2925 = vmatpush1.msk.msra.mxu0 %vm3386_vm3, %v1227_v57  ;;  %v1170_v43 = vpop.permute.xlu0 %1169  ;;  %v1322_v58 = vpop.permute.xlu1 %1321 }
 0x311   : > { %v1338_v60 = vsel %vm4687_vm10, %v1322_v58, %v3903_v46  ;;  %v1337_v28 = vsel %vm4688_vm4, %v1320_v11, %v1322_v58  ;;  %v1185_v5 = vsel %vm4690_vm8, %v1168_v42, %v1170_v43  ;;  %vm4691_vm10 = vcmask 769024  }
 0x312   : > { %1057 = vrot.lane.b32.xlu1 %v1030_v38, %s3155_s14  ;;  %1265 = vrot.lane.b32.xlu0 %v3862_v36, %s3156_s15  ;;  %vm4692_vm4 = vmmov %vm4691_vm10 }
 0x313   : > { %1372 = vmatprep.subr.mxu0 %v1338_v60 }
 0x314   : > { %1373 = vmatpush1.msra.mxu0 %v1337_v28  ;;  %v1216_v63 = vpop.permute.xlu0 %1215  ;;  %v1172_v1 = vpop.permute.xlu1 %1171 }
 0x315   : > { %v1186_v31 = vsel %vm4689_vm11, %v1170_v43, %v1172_v1  ;;  %vm4693_vm11 = vcmask 777216  }
 0x316   : > { %1267 = vrot.lane.b32.xlu1 %v1030_v38, %s3156_s15  ;;  %2926 = vmatprep.subr.msk.mxu0 %vm3408_vm6, %v1186_v31  ;;  %vm4694_vm8 = vmmov %vm4693_vm11 }
 0x317   : > { %2927 = vmatpush1.msk.msra.mxu0 %vm3420_vm7, %v1185_v5 }
 0x318   : > { %v1130_v8 = vpop.permute.xlu0 %1129  ;;  %v1128_v10 = vpop.permute.xlu1 %1127 }
 0x319   : > { %v1143_v16 = vsel %vm4691_vm10, %v1126_v47, %v1128_v10  ;;  %v1144_v20 = vsel %vm4692_vm4, %v1128_v10, %v1130_v8  ;;  %vm4695_vm10 = vcmask 785408  }
 0x31a   : > { %2928 = vmatprep.subr.msk.mxu0 %vm3373_vm2, %v1144_v20  ;;  %vm4696_vm4 = vmmov %vm4695_vm10 }
 0x31b   : > { %2929 = vmatpush1.msk.msra.mxu0 %vm3386_vm3, %v1143_v16 }
 0x31c   : > { %v1174_v22 = vpop.permute.xlu0 %1173  ;;  %v1326_v62 = vpop.permute.xlu1 %1325 }
 0x320   : > { %v1288_v56 = vpop.permute.xlu0 %1287  ;;  %v1290_v0 = vpop.permute.xlu1 %1289 }
 0x321   : > { %v1304_v53 = vsel %vm4693_vm11, %v1288_v56, %v1290_v0  ;;  %v1303_v38 = vsel %vm4694_vm8, %v1286_v29, %v1288_v56  ;;  %vm4697_vm11 = vcmask 1031168  }
 0x322   : > { %1378 = vmatprep.subr.mxu0 %v1304_v53  ;;  %vm4698_vm8 = vmmov %vm4697_vm11 }
 0x323   : > { %1379 = vmatpush1.msra.mxu0 %v1303_v38 }
 0x324   : > { %v1088_v41 = vpop.permute.xlu0 %1087  ;;  %v1086_v42 = vpop.permute.xlu1 %1085 }
 0x325   : > { %v1101_v11 = vsel %vm4695_vm10, %v1084_v48, %v1086_v42  ;;  %v1102_v47 = vsel %vm4696_vm4, %v1086_v42, %v1088_v41  ;;  %vm4699_vm10 = vcmask 1039360  }
 0x326   : > { %2930 = vmatprep.subr.msk.mxu0 %vm3408_vm6, %v1102_v47  ;;  %vm4700_vm4 = vmmov %vm4699_vm10 }
 0x327   : > { %2931 = vmatpush1.msk.msra.mxu0 %vm3420_vm7, %v1101_v11 }
 0x328   : > { %v1044_v39 = vpop.permute.xlu0 %1043  ;;  %v1132_v54 = vpop.permute.xlu1 %1131 }
 0x329   : > { %v1059_v58 = vsel %vm4698_vm8, %v1042_v4, %v1044_v39  ;;  %v3956_v4 = vld [vmem:[%s4571_s3] sm:$0xff] }
 0x32c   : > { %v1292_v57 = vpop.permute.xlu0 %1291  ;;  %v1046_v43 = vpop.permute.xlu1 %1045 }
 0x32d   : > { %v1060_v29 = vsel %vm4697_vm11, %v1044_v39, %v1046_v43  ;;  %vm4701_vm11 = vcmask 506880  }
 0x32e   : > { %2932 = vmatprep.subr.msk.mxu0 %vm3373_vm2, %v1060_v29  ;;  %vm4702_vm8 = vmmov %vm4701_vm11 }
 0x32f   : > { %2933 = vmatpush1.msk.msra.mxu0 %vm3386_vm3, %v1059_v58 }
 0x330   : > { %v1256_v48 = vpop.permute.xlu0 %1255  ;;  %v1090_v60 = vpop.permute.xlu1 %1089 }
 0x334   : > { %v1048_v28 = vpop.permute.xlu0 %1047  ;;  %v1254_v31 = vpop.permute.xlu1 %1253 }
 0x335   : > { %v1270_v5 = vsel %vm4699_vm10, %v1254_v31, %v1256_v48  ;;  %v1269_v10 = vsel %vm4700_vm4, %v1252_v40, %v1254_v31  ;;  %v1229_v40 = vsel %vm4702_vm8, %v3905_v49, %v1216_v63  ;;  %vm4703_vm10 = vcmask 588800  }
 0x336   : > { %1384 = vmatprep.subr.mxu0 %v1270_v5  ;;  %vm4704_vm4 = vcmask 515072   ;;  %vm4706_vm8 = vcmask 523264  }
 0x337   : > { %1385 = vmatpush1.msra.mxu0 %v1269_v10 }
 0x338   : > { %v1258_v16 = vpop.permute.xlu0 %1257  ;;  %2934 = vmatprep.subr.msk.mxu0 %vm3408_vm6, %v3770_v52  ;;  %v1218_v20 = vpop.permute.xlu1 %1217 }
 0x339   : > { %2935 = vmatpush1.msk.msra.mxu0 %vm3420_vm7, %v3751_v14  ;;  %v1230_v56 = vsel %vm4701_vm11, %v1216_v63, %v1218_v20  ;;  %vm4705_vm11 = vmmov %vm4704_vm4 }
 0x33a   : > { %2937 = vmatprep.subr.msk.mxu1 %vm3476_vm12, %v1230_v56  ;;  %2936 = vmatmul.mubr.msk.f32.vlgmr.msra.gmra.mxu0 %vm4703_vm10, %v3956_v4  ;;  %v1339_v38 = vsel %vm4705_vm11, %v3903_v46, %v1326_v62  ;;  %vm4707_vm7 = vmmov %vm4706_vm8  ;;  %vm4708_vm10 = vcmask 769024  }
 0x33b   : > { %2938 = vmatpush1.msk.msra.mxu1 %vm3480_vm13, %v1229_v40  ;;  %1562 = vmatprep.mubr.f32.mxu0 %v3157_v18  ;;  %v1187_v63 = vsel %vm4707_vm7, %v1172_v1, %v1174_v22  ;;  %vm4710_vm7 = vcmask 777216  }
 0x33c   : > { %v1328_v52 = vpop.permute.xlu0 %1327  ;;  %v1176_v53 = vpop.permute.xlu1 %1175  ;;  %vm4711_vm11 = vmmov %vm4710_vm7 }
 0x33d   : > { %v1340_v14 = vsel %vm4704_vm4, %v1326_v62, %v1328_v52  ;;  %v1188_v49 = vsel %vm4706_vm8, %v1174_v22, %v1176_v53  ;;  %vm4709_vm4 = vmmov %vm4708_vm10  ;;  %v1305_v62 = vsel %vm4711_vm11, %v1290_v0, %v1292_v57  ;;  %vm4712_vm8 = vcmask 785408  }
 0x33e   : > { %1443 = vmatprep.subr.mxu1 %v1340_v14  ;;  %v1145_v39 = vsel %vm4709_vm4, %v1130_v8, %v1132_v54  ;;  %vm4714_vm4 = vcmask 1031168   ;;  %vm4716_vm11 = vcmask 1039360  }
 0x33f   : > { %1444 = vmatpush1.msra.mxu1 %v1339_v38 }
 0x340   : > { %v1134_v42 = vpop.permute.xlu0 %1133  ;;  %2939 = vmatprep.subr.msk.mxu1 %vm3514_vm0, %v1188_v49  ;;  %v3981_v11 = vpop.permute.xlu1 %1293 }
 0x341   : > { %2940 = vmatpush1.msk.msra.mxu1 %vm3519_vm14, %v1187_v63  ;;  %v1146_v47 = vsel %vm4708_vm10, %v1132_v54, %v1134_v42  ;;  %v1306_v46 = vsel %vm4710_vm7, %v1292_v57, %v3981_v11  ;;  %vm4713_vm10 = vmmov %vm4712_vm8 }
 0x342   : > { %2941 = vmatprep.subr.msk.mxu1 %vm3476_vm12, %v1146_v47  ;;  %v1103_v54 = vsel %vm4713_vm10, %v1088_v41, %v1090_v60  ;;  %vm4715_vm7 = vmmov %vm4714_vm4  ;;  %vm4718_vm10 = vcmask 506880  }
 0x343   : > { %2942 = vmatpush1.msk.msra.mxu1 %vm3480_vm13, %v1145_v39  ;;  %v1061_v58 = vsel %vm4715_vm7, %v1046_v43, %v1048_v28  ;;  %vm4720_vm7 = vnez %v4630_v51 }
 0x344   : > { %v3993_v1 = vpop.permute.xlu0 %1091  ;;  %1449 = vmatprep.subr.mxu1 %v1306_v46  ;;  %v3995_v22 = vpop.permute.xlu1 %1049 }
 0x345   : > { %1450 = vmatpush1.msra.mxu1 %v1305_v62  ;;  %v1104_v8 = vsel %vm4712_vm8, %v1090_v60, %v3993_v1  ;;  %v1062_v29 = vsel %vm4714_vm4, %v1048_v28, %v3995_v22  ;;  %vm4717_vm8 = vmmov %vm4716_vm11 }
 0x346   : > { %2943 = vmatprep.subr.msk.mxu1 %vm3514_vm0, %v1104_v8  ;;  %v1271_v57 = vsel %vm4717_vm8, %v1256_v48, %v1258_v16  ;;  %vm4719_vm4 = vmmov %vm4718_vm10  ;;  %vm4722_vm8 = vnez %v4632_v55 }
 0x347   : > { %2944 = vmatpush1.msk.msra.mxu1 %vm3519_vm14, %v1103_v54 }
 0x348   : > { %v1220_v31 = vpop.permute.xlu0 %1219  ;;  %2945 = vmatprep.subr.msk.mxu1 %vm3476_vm12, %v1062_v29  ;;  %v4010_v0 = vpop.permute.xlu1 %1259  ;;  %vm4729_vm12 = vcmask 506880  }
 0x349   : > { %2946 = vmatpush1.msk.msra.mxu1 %vm3480_vm13, %v1061_v58  ;;  %v1272_v41 = vsel %vm4716_vm11, %v1258_v16, %v4010_v0  ;;  %v1231_v5 = vsel %vm4719_vm4, %v1218_v20, %v1220_v31  ;;  %vm4721_vm11 = vcmask 588800   ;;  %vm4728_vm13 = vnez %v4636_v6 }
 0x34a   : > { %1455 = vmatprep.subr.mxu1 %v1272_v41 }
 0x34b   : > { %1456 = vmatpush1.msra.mxu1 %v1271_v57 }
 0x34c   : > { %v1330_v60 = vpop.permute.xlu0 %1329  ;;  %2947 = vmatprep.subr.msk.mxu1 %vm3514_vm0, %v3786_v27  ;;  %v1222_v43 = vpop.permute.xlu1 %1221  ;;  %vm4723_vm0 = vcmask 515072  }
 0x34d   : > { %2948 = vmatpush1.msk.msra.mxu1 %vm3519_vm14, %v3775_v23  ;;  %v1232_v28 = vsel %vm4718_vm10, %v1220_v31, %v1222_v43  ;;  %vm4724_vm14 = vmmov %vm4723_vm0  ;;  %vm4725_vm10 = vcmask 523264  }
 0x34e   : > { %2950 = vmatprep.subr.msk.mxu0 %vm4720_vm7, %v1232_v28  ;;  %2949 = vmatmul.mubr.msk.f32.vlgmr.msra.gmra.mxu1 %vm4721_vm11, %v3956_v4  ;;  %v1341_v23 = vsel %vm4724_vm14, %v1328_v52, %v1330_v60  ;;  %vm4726_vm4 = vmmov %vm4725_vm10  ;;  %vm4727_vm11 = vnez %v4634_v3  ;;  %vm4731_vm14 = vcmask 769024   ;;  %v2497_v3 = vld [vmem:[%s4573_s5] sm:$0xff] }
 0x34f   : > { %2951 = vmatpush1.msk.msra.mxu0 %vm4722_vm8, %v1231_v5  ;;  %1633 = vmatprep.mubr.f32.mxu1 %v3157_v18 }
 0x350   : > { %v1178_v27 = vpop.permute.xlu0 %1177  ;;  %v1332_v48 = vpop.permute.xlu1 %1331 }
 0x351   : > { %v1342_v10 = vsel %vm4723_vm0, %v1330_v60, %v1332_v48  ;;  %v1189_v40 = vsel %vm4726_vm4, %v1176_v53, %v1178_v27  ;;  %vm4730_vm0 = vmmov %vm4729_vm12 }
 0x352   : > { %1514 = vmatprep.subr.mxu0 %v1342_v10 }
 0x353   : > { %1515 = vmatpush1.msra.mxu0 %v1341_v23 }
 0x354   : > { %v1224_v16 = vpop.permute.xlu0 %1223  ;;  %v1180_v20 = vpop.permute.xlu1 %1179 }
 0x355   : > { %v1190_v56 = vsel %vm4725_vm10, %v1178_v27, %v1180_v20  ;;  %v1233_v63 = vsel %vm4730_vm0, %v1222_v43, %v1224_v16  ;;  %vm4732_vm10 = vmmov %vm4731_vm14  ;;  %vm4735_vm0 = vcmask 523264  }
 0x356   : > { %2952 = vmatprep.subr.msk.mxu0 %vm4727_vm11, %v1190_v56 }
 0x357   : > { %2953 = vmatpush1.msk.msra.mxu0 %vm4728_vm13, %v1189_v40 }
 0x358   : > { %v1136_v14 = vpop.permute.xlu0 %1135  ;;  %v1226_v38 = vpop.permute.xlu1 %1225 }
 0x359   : > { %v1234_v49 = vsel %vm4729_vm12, %v1224_v16, %v1226_v38  ;;  %v1147_v39 = vsel %vm4732_vm10, %v1134_v42, %v1136_v14  ;;  %vm4733_vm12 = vcmask 515072   ;;  %vm4737_vm10 = vcmask 777216  }
 0x35a   : > { %2963 = vmatprep.subr.msk.mxu1 %vm3638_vm5, %v1234_v49  ;;  %vm4734_vm4 = vmmov %vm4733_vm12 }
 0x35b   : > { %2964 = vmatpush1.msk.msra.mxu1 %vm3643_vm9, %v1233_v63 }
 0x35c   : > { %v1334_v52 = vpop.permute.xlu0 %1333  ;;  %v1138_v53 = vpop.permute.xlu1 %1137 }
 0x35d   : > { %v1148_v47 = vsel %vm4731_vm14, %v1136_v14, %v1138_v53  ;;  %v1343_v54 = vsel %vm4734_vm4, %v1332_v48, %v1334_v52  ;;  %vm4736_vm14 = vmmov %vm4735_vm0  ;;  %vm4739_vm4 = vcmask 785408  }
 0x35e   : > { %2954 = vmatprep.subr.msk.mxu0 %vm4720_vm7, %v1148_v47 }
 0x35f   : > { %2955 = vmatpush1.msk.msra.mxu0 %vm4722_vm8, %v1147_v39 }
 0x360   : > { %v1182_v46 = vpop.permute.xlu0 %1181  ;;  %v1336_v62 = vpop.permute.xlu1 %1335 }
 0x361   : > { %v1344_v8 = vsel %vm4733_vm12, %v1334_v52, %v1336_v62  ;;  %v1191_v42 = vsel %vm4736_vm14, %v1180_v20, %v1182_v46  ;;  %vm4738_vm12 = vmmov %vm4737_vm10  ;;  %vm4741_vm14 = vcmask 769024  }
 0x362   : > { %1585 = vmatprep.subr.mxu1 %v1344_v8 }
 0x363   : > { %1586 = vmatpush1.msra.mxu1 %v1343_v54 }
 0x364   : > { %v1296_v29 = vpop.permute.xlu0 %1295  ;;  %v1184_v58 = vpop.permute.xlu1 %1183 }
 0x365   : > { %v1192_v31 = vsel %vm4735_vm0, %v1182_v46, %v1184_v58  ;;  %v1307_v43 = vsel %vm4738_vm12, %v3981_v11, %v1296_v29  ;;  %vm4740_vm0 = vmmov %vm4739_vm4  ;;  %vm4743_vm12 = vcmask 1031168  }
 0x366   : > { %2965 = vmatprep.subr.msk.mxu1 %vm3667_vm15, %v1192_v31 }
 0x367   : > { %2966 = vmatpush1.msk.msra.mxu1 %vm3672_vm1, %v1191_v42 }
 0x368   : > { %v1094_v41 = vpop.permute.xlu0 %1093  ;;  %v1298_v57 = vpop.permute.xlu1 %1297 }
 0x369   : > { %v1308_v60 = vsel %vm4737_vm10, %v1296_v29, %v1298_v57  ;;  %v1105_v48 = vsel %vm4740_vm0, %v3993_v1, %v1094_v41  ;;  %vm4742_vm10 = vmmov %vm4741_vm14  ;;  %vm4745_vm0 = vcmask 777216  }
 0x36a   : > { %1520 = vmatprep.subr.mxu0 %v1308_v60 }
 0x36b   : > { %1521 = vmatpush1.msra.mxu0 %v1307_v43 }
 0x36c   : > { %v1140_v28 = vpop.permute.xlu0 %1139  ;;  %v1096_v5 = vpop.permute.xlu1 %1095 }
 0x36d   : > { %v1106_v27 = vsel %vm4739_vm4, %v1094_v41, %v1096_v5  ;;  %v1149_v11 = vsel %vm4742_vm10, %v1138_v53, %v1140_v28  ;;  %vm4744_vm4 = vmmov %vm4743_vm12  ;;  %vm4747_vm10 = vcmask 785408  }
 0x36e   : > { %2956 = vmatprep.subr.msk.mxu0 %vm4727_vm11, %v1106_v27 }
 0x36f   : > { %2957 = vmatpush1.msk.msra.mxu0 %vm4728_vm13, %v1105_v48 }
 0x370   : > { %v1052_v10 = vpop.permute.xlu0 %1051  ;;  %v1142_v23 = vpop.permute.xlu1 %1141 }
 0x371   : > { %v1150_v16 = vsel %vm4741_vm14, %v1140_v28, %v1142_v23  ;;  %v1063_v40 = vsel %vm4744_vm4, %v3995_v22, %v1052_v10  ;;  %vm4746_vm14 = vmmov %vm4745_vm0  ;;  %vm4749_vm4 = vcmask 1039360  }
 0x372   : > { %2967 = vmatprep.subr.msk.mxu1 %vm3638_vm5, %v1150_v16 }
 0x373   : > { %2968 = vmatpush1.msk.msra.mxu1 %vm3643_vm9, %v1149_v11 }
 0x374   : > { %v1300_v20 = vpop.permute.xlu0 %1299  ;;  %v1054_v1 = vpop.permute.xlu1 %1053 }
 0x375   : > { %v1064_v56 = vsel %vm4743_vm12, %v1052_v10, %v1054_v1  ;;  %v1309_v63 = vsel %vm4746_vm14, %v1298_v57, %v1300_v20  ;;  %vm4748_vm12 = vmmov %vm4747_vm10  ;;  %vm4751_vm14 = vcmask 1031168  }
 0x376   : > { %2958 = vmatprep.subr.msk.mxu0 %vm4720_vm7, %v1064_v56 }
 0x377   : > { %2959 = vmatpush1.msk.msra.mxu0 %vm4722_vm8, %v1063_v40 }
 0x378   : > { %v1098_v14 = vpop.permute.xlu0 %1097  ;;  %v1302_v38 = vpop.permute.xlu1 %1301 }
 0x379   : > { %v1310_v49 = vsel %vm4745_vm0, %v1300_v20, %v1302_v38  ;;  %v1107_v22 = vsel %vm4748_vm12, %v1096_v5, %v1098_v14  ;;  %vm4750_vm0 = vmmov %vm4749_vm4  ;;  %vm4753_vm12 = vcmask 588800  }
 0x37a   : > { %1591 = vmatprep.subr.mxu1 %v1310_v49 }
 0x37b   : > { %1592 = vmatpush1.msra.mxu1 %v1309_v63 }
 0x37c   : > { %v1262_v52 = vpop.permute.xlu0 %1261  ;;  %v1100_v53 = vpop.permute.xlu1 %1099 }
 0x37d   : > { %v1108_v47 = vsel %vm4747_vm10, %v1098_v14, %v1100_v53  ;;  %v1273_v8 = vsel %vm4750_vm0, %v4010_v0, %v1262_v52  ;;  %vm4752_vm10 = vmmov %vm4751_vm14 }
 0x37e   : > { %2969 = vmatprep.subr.msk.mxu1 %vm3667_vm15, %v1108_v47 }
 0x37f   : > { %2970 = vmatpush1.msk.msra.mxu1 %vm3672_vm1, %v1107_v22 }
 0x380   : > { %v1264_v39 = vpop.permute.xlu1 %1263  ;;  %v1056_v46 = vpop.permute.xlu0 %1055 }
 0x381   : > { %v1274_v62 = vsel %vm4749_vm4, %v1262_v52, %v1264_v39  ;;  %v1065_v58 = vsel %vm4752_vm10, %v1054_v1, %v1056_v46  ;;  %vm4754_vm4 = vmmov %vm4750_vm0  ;;  %vm4756_vm10 = vcmask 269312  }
 0x382   : > { %1526 = vmatprep.subr.mxu0 %v1274_v62 }
 0x383   : > { %1527 = vmatpush1.msra.mxu0 %v1273_v8 }
 0x384   : > { %2960 = vmatprep.subr.msk.mxu0 %vm4727_vm11, %v3844_v34  ;;  %v1058_v54 = vpop.permute.xlu1 %1057  ;;  %v1266_v0 = vpop.permute.xlu0 %1265 }
 0x385   : > { %v1066_v29 = vsel %vm4751_vm14, %v1056_v46, %v1058_v54  ;;  %2961 = vmatpush1.msk.msra.mxu0 %vm4728_vm13, %v3825_v33  ;;  %v1275_v42 = vsel %vm4750_vm0, %v1264_v39, %v1266_v0  ;;  %vm4755_vm14 = vmmov %vm4753_vm12  ;;  %vm4784_vm13 = vcmask 785408  }
 0x386   : > { %2962 = vmatmul.mubr.msk.f32.vlgmr.msra.gmra.mxu0 %vm4753_vm12, %v3956_v4  ;;  %2971 = vmatprep.subr.msk.mxu1 %vm3638_vm5, %v1066_v29  ;;  %vm4757_vm12 = vmmov %vm4756_vm10 }
 0x387   : > { %2972 = vmatpush1.msk.msra.mxu1 %vm3643_vm9, %v1065_v58  ;;  %2175 = vmatprep.mubr.f32.mxu0 %v3157_v18  ;;  %vm4781_vm9 = vnez %v4628_v13 }
 0x388   : > { %v1268_v34 = vpop.permute.xlu1 %1267 }
 0x389   : > { %v1276_v31 = vsel %vm4754_vm4, %v1266_v0, %v1268_v34  ;;  %vm4758_vm4 = vmmov %vm4756_vm10 }
 0x38a   : > { %1597 = vmatprep.subr.mxu1 %v1276_v31  ;;  %vm4759_vm0 = vmmov %vm4758_vm4 }
 0x38b   : > { %1598 = vmatpush1.msra.mxu1 %v1275_v42 }
 0x38c   : > { %2973 = vmatprep.subr.msk.mxu1 %vm3667_vm15, %v3862_v36  ;;  %vm4778_vm15 = vcmask 523264  }
 0x38d   : > { %2974 = vmatpush1.msk.msra.mxu1 %vm3672_vm1, %v3851_v35  ;;  %vm4774_vm1 = vnez %v4624_v25 }
 0x38e   : > { %2975 = vmatmul.mubr.msk.f32.vlgmr.msra.gmra.mxu1 %vm4755_vm14, %v3956_v4  ;;  %vm4760_vm14 = vmmov %vm4759_vm0 }
 0x38f   : > { %2246 = vmatprep.mubr.f32.mxu1 %v3157_v18 }
 0x3fa   : > { %v1422_v33 = vpop.f32.mrf.mxu0 }
 0x3fc   : > { %v1424_v41 = vpop.f32.mrf.mxu0 }
 0x3fd   : > { %v1640_v57 = vadd.f32 %v1424_v41, %v1422_v33 }
 0x40e   : > { %v1493_v60 = vpop.f32.mrf.mxu1 }
 0x40f   : > { %v1641_v43 = vadd.f32 %v1640_v57, %v1493_v60 }
 0x410   : > { %v1495_v28 = vpop.f32.mrf.mxu1 }
 0x411   : > { %v1642_v27 = vadd.f32 %v1641_v43, %v1495_v28 }
 0x446   : > { %v1564_v5 = vpop.f32.mrf.mxu0 }
 0x447   : > { %v1643_v48 = vadd.f32 %v1642_v27, %v1564_v5 }
 0x448   : > { %v1566_v10 = vpop.f32.mrf.mxu0 }
 0x449   : > { %v1644_v36 = vadd.f32 %v1643_v48, %v1566_v10 }
 0x44e   : > { %v1635_v23 = vpop.f32.mrf.mxu1 }
 0x44f   : > { %v1645_v16 = vadd.f32 %v1644_v36, %v1635_v23 }
 0x450   : > { %v1637_v11 = vpop.f32.mrf.mxu1 }
 0x451   : > { %v1646_v35 = vadd.f32 %v1645_v16, %v1637_v11 }
 0x453   : > { %1647 = vadd.xlane.f32.xlu0 %v1646_v35 }
 0x4dc   : > { %v1648_v20 = vpop.xlane.xlu0 %1647 }
 0x4dd   : > { %v1650_v4 = vmul.f32 0.0009765625, %v1648_v20 }
 0x4df   : > { %v1651_v1 = vsub.f32 %v1422_v33, %v1650_v4  ;;  %v1652_v56 = vsub.f32 %v1424_v41, %v1650_v4  ;;  %v1653_v40 = vsub.f32 %v1493_v60, %v1650_v4  ;;  %v1654_v14 = vsub.f32 %v1495_v28, %v1650_v4 }
 0x4e0   : > { %v1655_v63 = vsub.f32 %v1564_v5, %v1650_v4  ;;  %v1656_v47 = vsub.f32 %v1566_v10, %v1650_v4  ;;  %v1657_v46 = vsub.f32 %v1635_v23, %v1650_v4  ;;  %v1658_v54 = vsub.f32 %v1637_v11, %v1650_v4 }
 0x4e1   : > { %v1659_v38 = vmul.f32 %v1651_v1, %v1651_v1  ;;  %v1660_v49 = vmul.f32 %v1652_v56, %v1652_v56  ;;  %v1661_v52 = vmul.f32 %v1653_v40, %v1653_v40  ;;  %v1662_v22 = vmul.f32 %v1654_v14, %v1654_v14 }
 0x4e2   : > { %v1663_v62 = vmul.f32 %v1655_v63, %v1655_v63  ;;  %v1664_v29 = vmul.f32 %v1656_v47, %v1656_v47  ;;  %v1665_v0 = vmul.f32 %v1657_v46, %v1657_v46  ;;  %v1666_v31 = vmul.f32 %v1658_v54, %v1658_v54 }
 0x4e3   : > { %v1667_v53 = vadd.f32 %v1660_v49, %v1659_v38 }
 0x4e5   : > { %v1668_v39 = vadd.f32 %v1667_v53, %v1661_v52 }
 0x4e7   : > { %v1669_v8 = vadd.f32 %v1668_v39, %v1662_v22 }
 0x4e9   : > { %v1670_v58 = vadd.f32 %v1669_v8, %v1663_v62 }
 0x4eb   : > { %v1671_v34 = vadd.f32 %v1670_v58, %v1664_v29 }
 0x4ed   : > { %v1672_v42 = vadd.f32 %v1671_v34, %v1665_v0 }
 0x4ef   : > { %v1673_v33 = vadd.f32 %v1672_v42, %v1666_v31 }
 0x4f1   : > { %1674 = vadd.xlane.f32.xlu1 %v1673_v33 }
 0x57a   : > { %v1675_v41 = vpop.xlane.xlu1 %1674 }
 0x57b   : > { %v1676_v57 = vmul.f32 0.0009765625, %v1675_v41 }
 0x57d   : > { %v1677_v60 = vadd.f32 1e-05, %v1676_v57 }
 0x57f   : > { %3072 = vrsqrt.f32 %v1677_v60 }
 0x58c   : > { %v3073_v43 = vpop.eup %3072 }
 0x58d   : > { %v1680_v28 = vmul.f32 %v3073_v43, %v1652_v56  ;;  %v1679_v5 = vmul.f32 %v3073_v43, %v1651_v1  ;;  %v1682_v27 = vmul.f32 %v3073_v43, %v1654_v14  ;;  %v1681_v48 = vmul.f32 %v3073_v43, %v1653_v40 }
 0x58e   : > { %v1684_v10 = vmul.f32 %v3073_v43, %v1656_v47  ;;  %v1683_v36 = vmul.f32 %v3073_v43, %v1655_v63  ;;  %v1686_v35 = vmul.f32 %v3073_v43, %v1658_v54  ;;  %v1685_v4 = vmul.f32 %v3073_v43, %v1657_v46 }
 0x58f   : > { %v2977_v23 = vmul.f32 -1.442695, %v1680_v28  ;;  %v2976_v16 = vmul.f32 -1.442695, %v1679_v5  ;;  %v2979_v11 = vmul.f32 -1.442695, %v1682_v27 }
 0x590   : > { %v2978_v20 = vmul.f32 -1.442695, %v1681_v48  ;;  %v2981_v38 = vmul.f32 -1.442695, %v1684_v10  ;;  %v2980_v49 = vmul.f32 -1.442695, %v1683_v36 }
 0x591   : > { %3074 = vpow2.f32 %v2977_v23  ;;  %v2983_v52 = vmul.f32 -1.442695, %v1686_v35  ;;  %v2982_v53 = vmul.f32 -1.442695, %v1685_v4 }
 0x592   : > { %3076 = vpow2.f32 %v2976_v16 }
 0x593   : > { %3078 = vpow2.f32 %v2979_v11 }
 0x594   : > { %3080 = vpow2.f32 %v2978_v20 }
 0x595   : > { %3082 = vpow2.f32 %v2981_v38 }
 0x596   : > { %3084 = vpow2.f32 %v2980_v49 }
 0x597   : > { %3086 = vpow2.f32 %v2983_v52 }
 0x598   : > { %3088 = vpow2.f32 %v2982_v53 }
 0x59e   : > { %v3075_v1 = vpop.eup %3074 }
 0x59f   : > { %v3077_v56 = vpop.eup %3076  ;;  %v1712_v40 = vadd.f32 1.0, %v3075_v1 }
 0x5a0   : > { %v3079_v14 = vpop.eup %3078  ;;  %v1711_v63 = vadd.f32 1.0, %v3077_v56 }
 0x5a1   : > { %v3081_v47 = vpop.eup %3080  ;;  %3090 = vrcp.f32 %v1712_v40  ;;  %v1714_v22 = vadd.f32 1.0, %v3079_v14 }
 0x5a2   : > { %v3083_v39 = vpop.eup %3082  ;;  %3092 = vrcp.f32 %v1711_v63  ;;  %v1713_v46 = vadd.f32 1.0, %v3081_v47 }
 0x5a3   : > { %v3085_v62 = vpop.eup %3084  ;;  %3094 = vrcp.f32 %v1714_v22  ;;  %v1716_v8 = vadd.f32 1.0, %v3083_v39 }
 0x5a4   : > { %v3087_v54 = vpop.eup %3086  ;;  %3096 = vrcp.f32 %v1713_v46  ;;  %v1715_v29 = vadd.f32 1.0, %v3085_v62 }
 0x5a5   : > { %v3089_v58 = vpop.eup %3088  ;;  %3098 = vrcp.f32 %v1716_v8  ;;  %v1718_v0 = vadd.f32 1.0, %v3087_v54 }
 0x5a6   : > { %3100 = vrcp.f32 %v1715_v29  ;;  %v1717_v34 = vadd.f32 1.0, %v3089_v58 }
 0x5a7   : > { %3102 = vrcp.f32 %v1718_v0 }
 0x5a8   : > { %3104 = vrcp.f32 %v1717_v34 }
 0x5ae   : > { %v3091_v31 = vpop.eup %3090 }
 0x5af   : > { %v3093_v42 = vpop.eup %3092  ;;  %v1736_v33 = vmul.f32 %v3091_v31, %v1680_v28 }
 0x5b0   : > { %v3095_v41 = vpop.eup %3094  ;;  %v1735_v57 = vmul.f32 %v3093_v42, %v1679_v5 }
 0x5b1   : > { %v3097_v60 = vpop.eup %3096  ;;  %1754 = vrot.lane.b32.xlu1 %v1736_v33, %s3148_s30  ;;  %v1738_v43 = vmul.f32 %v3095_v41, %v1682_v27 }
 0x5b2   : > { %1752 = vrot.lane.b32.xlu0 %v1735_v57, %s3148_s30  ;;  %v3099_v23 = vpop.eup %3098  ;;  %v1737_v16 = vmul.f32 %v3097_v60, %v1681_v48 }
 0x5b3   : > { %v3101_v11 = vpop.eup %3100  ;;  %v1740_v20 = vmul.f32 %v3099_v23, %v1684_v10 }
 0x5b4   : > { %v3103_v38 = vpop.eup %3102  ;;  %v1739_v49 = vmul.f32 %v3101_v11, %v1683_v36 }
 0x5b5   : > { %1758 = vrot.lane.b32.xlu1 %v1738_v43, %s3148_s30  ;;  %v3105_v52 = vpop.eup %3104  ;;  %v1742_v28 = vmul.f32 %v3103_v38, %v1686_v35 }
 0x5b6   : > { %1756 = vrot.lane.b32.xlu0 %v1737_v16, %s3148_s30  ;;  %v1741_v5 = vmul.f32 %v3105_v52, %v1685_v4 }
 0x5b9   : > { %1762 = vrot.lane.b32.xlu1 %v1740_v20, %s3148_s30 }
 0x5ba   : > { %1760 = vrot.lane.b32.xlu0 %v1739_v49, %s3148_s30 }
 0x5bd   : > { %1766 = vrot.lane.b32.xlu1 %v1742_v28, %s3148_s30 }
 0x5be   : > { %1764 = vrot.lane.b32.xlu0 %v1741_v5, %s3148_s30 }
 0x623   : > { %v1755_v27 = vpop.permute.xlu1 %1754 }
 0x624   : > { %v1753_v48 = vpop.permute.xlu0 %1752 }
 0x625   : > { %v4129_v53 = vsel %vm4756_vm10, %v1753_v48, %v1755_v27  ;;  %v4134_v36 = vsel %vm4757_vm12, 0.0, %v1753_v48  ;;  %vm4761_vm10 = vmmov %vm4759_vm0 }
 0x626   : > { %1966 = vrot.lane.b32.xlu0 %v4129_v53, %s3149_s8  ;;  %vm4762_vm12 = vmmov %vm4759_vm0 }
 0x627   : > { %v1759_v35 = vpop.permute.xlu1 %1758 }
 0x628   : > { %v1757_v10 = vpop.permute.xlu0 %1756 }
 0x629   : > { %v4137_v1 = vsel %vm4758_vm4, %v1755_v27, %v1757_v10  ;;  %v4152_v4 = vsel %vm4759_vm0, %v1757_v10, %v1759_v35  ;;  %vm4763_vm4 = vmmov %vm4759_vm0 }
 0x62a   : > { %1964 = vrot.lane.b32.xlu0 %v4134_v36, %s3149_s8  ;;  %1968 = vrot.lane.b32.xlu1 %v4137_v1, %s3149_s8 }
 0x62b   : > { %v1763_v14 = vpop.permute.xlu1 %1762 }
 0x62c   : > { %v1761_v56 = vpop.permute.xlu0 %1760 }
 0x62d   : > { %v4159_v40 = vsel %vm4760_vm14, %v1759_v35, %v1761_v56  ;;  %v4218_v63 = vsel %vm4761_vm10, %v1761_v56, %v1763_v14  ;;  %vm4764_vm14 = vcmask 506880  }
 0x62e   : > { %2078 = vrot.lane.b32.xlu0 %v4137_v1, %s3150_s9  ;;  %2076 = vrot.lane.b32.xlu1 %v4129_v53, %s3150_s9  ;;  %vm4765_vm10 = vmmov %vm4764_vm14 }
 0x62f   : > { %v1767_v39 = vpop.permute.xlu1 %1766 }
 0x630   : > { %v1765_v47 = vpop.permute.xlu0 %1764  ;;  %v1785_v62 = vsel %vm4759_vm0, %v1767_v39, 0.0  ;;  %vm4768_vm0 = vcmask 523264  }
 0x631   : > { %v4225_v22 = vsel %vm4762_vm12, %v1763_v14, %v1765_v47  ;;  %v4240_v46 = vsel %vm4763_vm4, %v1765_v47, %v1767_v39  ;;  %vm4766_vm12 = vcmask 515072  }
 0x632   : > { %1924 = vrot.lane.b32.xlu0 %v4129_v53, %s3151_s10  ;;  %2074 = vrot.lane.b32.xlu1 %v4134_v36, %s3150_s9  ;;  %vm4767_vm4 = vmmov %vm4766_vm12 }
 0x636   : > { %1970 = vrot.lane.b32.xlu0 %v4152_v4, %s3149_s8  ;;  %1926 = vrot.lane.b32.xlu1 %v4137_v1, %s3151_s10 }
 0x63a   : > { %1922 = vrot.lane.b32.xlu0 %v4134_v36, %s3151_s10  ;;  %1972 = vrot.lane.b32.xlu1 %v4159_v40, %s3149_s8 }
 0x63e   : > { %1884 = vrot.lane.b32.xlu0 %v4137_v1, %s3152_s11  ;;  %1882 = vrot.lane.b32.xlu1 %v4129_v53, %s3152_s11 }
 0x642   : > { %2082 = vrot.lane.b32.xlu0 %v4159_v40, %s3150_s9  ;;  %2080 = vrot.lane.b32.xlu1 %v4152_v4, %s3150_s9 }
 0x646   : > { %1928 = vrot.lane.b32.xlu0 %v4152_v4, %s3151_s10  ;;  %1880 = vrot.lane.b32.xlu1 %v4134_v36, %s3152_s11 }
 0x64a   : > { %2042 = vrot.lane.b32.xlu0 %v4129_v53, %s3153_s12  ;;  %1930 = vrot.lane.b32.xlu1 %v4159_v40, %s3151_s10 }
 0x64e   : > { %2040 = vrot.lane.b32.xlu0 %v4134_v36, %s3153_s12  ;;  %2044 = vrot.lane.b32.xlu1 %v4137_v1, %s3153_s12 }
 0x652   : > { %1842 = vrot.lane.b32.xlu0 %v4137_v1, %s3154_s13  ;;  %1840 = vrot.lane.b32.xlu1 %v4129_v53, %s3154_s13 }
 0x656   : > { %1888 = vrot.lane.b32.xlu0 %v4159_v40, %s3152_s11  ;;  %1886 = vrot.lane.b32.xlu1 %v4152_v4, %s3152_s11 }
 0x65a   : > { %1798 = vrot.lane.b32.xlu0 %v4129_v53, %s3155_s14  ;;  %1838 = vrot.lane.b32.xlu1 %v4134_v36, %s3154_s13 }
 0x65e   : > { %2046 = vrot.lane.b32.xlu0 %v4152_v4, %s3153_s12  ;;  %1800 = vrot.lane.b32.xlu1 %v4137_v1, %s3155_s14 }
 0x662   : > { %1796 = vrot.lane.b32.xlu0 %v4134_v36, %s3155_s14  ;;  %2048 = vrot.lane.b32.xlu1 %v4159_v40, %s3153_s12 }
 0x666   : > { %1846 = vrot.lane.b32.xlu0 %v4159_v40, %s3154_s13  ;;  %1844 = vrot.lane.b32.xlu1 %v4152_v4, %s3154_s13 }
 0x66a   : > { %2010 = vrot.lane.b32.xlu0 %v4137_v1, %s3156_s15  ;;  %2008 = vrot.lane.b32.xlu1 %v4129_v53, %s3156_s15 }
 0x66e   : > { %1802 = vrot.lane.b32.xlu0 %v4152_v4, %s3155_s14  ;;  %2006 = vrot.lane.b32.xlu1 %v4134_v36, %s3156_s15 }
 0x672   : > { %1974 = vrot.lane.b32.xlu0 %v4218_v63, %s3149_s8  ;;  %1804 = vrot.lane.b32.xlu1 %v4159_v40, %s3155_s14 }
 0x676   : > { %2012 = vrot.lane.b32.xlu0 %v4152_v4, %s3156_s15  ;;  %1976 = vrot.lane.b32.xlu1 %v4225_v22, %s3149_s8 }
 0x67a   : > { %2084 = vrot.lane.b32.xlu0 %v4218_v63, %s3150_s9  ;;  %2014 = vrot.lane.b32.xlu1 %v4159_v40, %s3156_s15 }
 0x67e   : > { %1932 = vrot.lane.b32.xlu0 %v4218_v63, %s3151_s10  ;;  %2086 = vrot.lane.b32.xlu1 %v4225_v22, %s3150_s9 }
 0x682   : > { %1978 = vrot.lane.b32.xlu0 %v4240_v46, %s3149_s8  ;;  %1934 = vrot.lane.b32.xlu1 %v4225_v22, %s3151_s10 }
 0x686   : > { %1890 = vrot.lane.b32.xlu0 %v4218_v63, %s3152_s11  ;;  %1980 = vrot.lane.b32.xlu1 %v1785_v62, %s3149_s8 }
 0x68a   : > { %2088 = vrot.lane.b32.xlu0 %v4240_v46, %s3150_s9  ;;  %1892 = vrot.lane.b32.xlu1 %v4225_v22, %s3152_s11 }
 0x68e   : > { %1936 = vrot.lane.b32.xlu0 %v4240_v46, %s3151_s10  ;;  %2090 = vrot.lane.b32.xlu1 %v1785_v62, %s3150_s9 }
 0x692   : > { %2050 = vrot.lane.b32.xlu0 %v4218_v63, %s3153_s12  ;;  %1938 = vrot.lane.b32.xlu1 %v1785_v62, %s3151_s10  ;;  %s4549_s10 = scalar_lea.vmem %s4575_s7, %s3050_s26 }
 0x696   : > { %1848 = vrot.lane.b32.xlu0 %v4218_v63, %s3154_s13  ;;  %2052 = vrot.lane.b32.xlu1 %v4225_v22, %s3153_s12 }
 0x698   : > { %v1967_v8 = vpop.permute.xlu0 %1966 }
 0x69a   : > { %1894 = vrot.lane.b32.xlu0 %v4240_v46, %s3152_s11  ;;  %1850 = vrot.lane.b32.xlu1 %v4225_v22, %s3154_s13 }
 0x69c   : > { %v1969_v54 = vpop.permute.xlu1 %1968  ;;  %v1965_v29 = vpop.permute.xlu0 %1964 }
 0x69d   : > { %v1983_v58 = vsel %vm4764_vm14, %v1967_v8, %v1969_v54  ;;  %v1982_v0 = vsel %vm4765_vm10, %v1965_v29, %v1967_v8  ;;  %vm4769_vm14 = vmmov %vm4765_vm10 }
 0x69e   : > { %1806 = vrot.lane.b32.xlu0 %v4218_v63, %s3155_s14  ;;  %1896 = vrot.lane.b32.xlu1 %v1785_v62, %s3152_s11  ;;  %vm4770_vm10 = vmmov %vm4768_vm0 }
 0x69f   : > { %2984 = vmatprep.subr.msk.mxu0 %vm3373_vm2, %v1983_v58 }
 0x6a0   : > { %2985 = vmatpush1.msk.msra.mxu0 %vm3386_vm3, %v1982_v0  ;;  %v2077_v34 = vpop.permute.xlu1 %2076  ;;  %v2079_v31 = vpop.permute.xlu0 %2078 }
 0x6a1   : > { %v2093_v42 = vsel %vm4766_vm12, %v2077_v34, %v2079_v31  ;;  %vm4771_vm12 = vmmov %vm4769_vm14 }
 0x6a2   : > { %2054 = vrot.lane.b32.xlu0 %v4240_v46, %s3153_s12  ;;  %1808 = vrot.lane.b32.xlu1 %v4225_v22, %s3155_s14 }
 0x6a3   : > { %2127 = vmatprep.subr.mxu0 %v2093_v42 }
 0x6a4   : > { %v2075_v33 = vpop.permute.xlu1 %2074  ;;  %v1925_v41 = vpop.permute.xlu0 %1924 }
 0x6a5   : > { %v2092_v57 = vsel %vm4767_vm4, %v2075_v33, %v2077_v34  ;;  %vm4772_vm4 = vnez %v4620_v50 }
 0x6a6   : > { %1852 = vrot.lane.b32.xlu0 %v4240_v46, %s3154_s13  ;;  %2056 = vrot.lane.b32.xlu1 %v1785_v62, %s3153_s12 }
 0x6a7   : > { %2128 = vmatpush1.msra.mxu0 %v2092_v57 }
 0x6a8   : > { %v1927_v60 = vpop.permute.xlu1 %1926  ;;  %v1971_v43 = vpop.permute.xlu0 %1970 }
 0x6a9   : > { %v1941_v23 = vsel %vm4768_vm0, %v1925_v41, %v1927_v60  ;;  %v1984_v49 = vsel %vm4771_vm12, %v1969_v54, %v1971_v43  ;;  %vm4773_vm0 = vnez %v4622_v19 }
 0x6aa   : > { %2016 = vrot.lane.b32.xlu0 %v4218_v63, %s3156_s15  ;;  %1854 = vrot.lane.b32.xlu1 %v1785_v62, %s3154_s13 }
 0x6ab   : > { %2986 = vmatprep.subr.msk.mxu0 %vm3408_vm6, %v1941_v23 }
 0x6ac   : > { %v4292_v16 = vpop.permute.xlu1 %1972  ;;  %v1923_v11 = vpop.permute.xlu0 %1922 }
 0x6ad   : > { %v1985_v20 = vsel %vm4769_vm14, %v1971_v43, %v4292_v16  ;;  %v1940_v38 = vsel %vm4770_vm10, %v1923_v11, %v1925_v41  ;;  %vm4775_vm14 = vcmask 769024   ;;  %vm4776_vm10 = vcmask 515072  }
 0x6ae   : > { %1810 = vrot.lane.b32.xlu0 %v4240_v46, %s3155_s14  ;;  %2018 = vrot.lane.b32.xlu1 %v4225_v22, %s3156_s15  ;;  %vm4777_vm12 = vmmov %vm4776_vm10 }
 0x6af   : > { %2987 = vmatpush1.msk.msra.mxu0 %vm4772_vm4, %v1940_v38  ;;  %2997 = vmatprep.subr.msk.mxu1 %vm4773_vm0, %v1985_v20 }
 0x6b0   : > { %2998 = vmatpush1.msk.msra.mxu1 %vm4774_vm1, %v1984_v49  ;;  %v1883_v52 = vpop.permute.xlu1 %1882  ;;  %v1885_v28 = vpop.permute.xlu0 %1884 }
 0x6b1   : > { %v1899_v5 = vsel %vm4775_vm14, %v1883_v52, %v1885_v28 }
 0x6b2   : > { %2020 = vrot.lane.b32.xlu0 %v4240_v46, %s3156_s15  ;;  %1812 = vrot.lane.b32.xlu1 %v1785_v62, %s3155_s14 }
 0x6b3   : > { %2988 = vmatprep.subr.msk.mxu0 %vm3373_vm2, %v1899_v5 }
 0x6b4   : > { %v2081_v27 = vpop.permute.xlu1 %2080  ;;  %v4314_v48 = vpop.permute.xlu0 %2082 }
 0x6b5   : > { %v2094_v10 = vsel %vm4776_vm10, %v2079_v31, %v2081_v27  ;;  %v2095_v35 = vsel %vm4777_vm12, %v2081_v27, %v4314_v48  ;;  %vm4779_vm10 = vmmov %vm4778_vm15  ;;  %vm4780_vm12 = vnez %v4626_v44 }
 0x6b6   : > { %2022 = vrot.lane.b32.xlu1 %v1785_v62, %s3156_s15  ;;  %2198 = vmatprep.subr.mxu1 %v2095_v35 }
 0x6b7   : > { %2199 = vmatpush1.msra.mxu1 %v2094_v10 }
 0x6b8   : > { %v1881_v56 = vpop.permute.xlu1 %1880  ;;  %v1929_v14 = vpop.permute.xlu0 %1928 }
 0x6b9   : > { %v1898_v47 = vsel %vm4775_vm14, %v1881_v56, %v1883_v52  ;;  %v1942_v29 = vsel %vm4779_vm10, %v1927_v60, %v1929_v14  ;;  %vm4782_vm14 = vcmask 777216  }
 0x6ba   : > { %2989 = vmatpush1.msk.msra.mxu0 %vm3386_vm3, %v1898_v47  ;;  %vm4783_vm5 = vmmov %vm4782_vm14 }
 0x6bc   : > { %v4323_v39 = vpop.permute.xlu1 %1930  ;;  %v2043_v8 = vpop.permute.xlu0 %2042 }
 0x6bd   : > { %v1943_v54 = vsel %vm4778_vm15, %v1929_v14, %v4323_v39  ;;  %vm4785_vm15 = vcmask 769024  }
 0x6be   : > { %2999 = vmatprep.subr.msk.mxu1 %vm4780_vm12, %v1943_v54  ;;  %vm4786_vm10 = vmmov %vm4785_vm15 }
 0x6bf   : > { %3000 = vmatpush1.msk.msra.mxu1 %vm4781_vm9, %v1942_v29 }
 0x6c0   : > { %v2045_v62 = vpop.permute.xlu1 %2044  ;;  %v2041_v58 = vpop.permute.xlu0 %2040 }
 0x6c1   : > { %v2058_v0 = vsel %vm4782_vm14, %v2041_v58, %v2043_v8  ;;  %v2059_v34 = vsel %vm4783_vm5, %v2043_v8, %v2045_v62  ;;  %vm4787_vm5 = vcmask 1031168  }
 0x6c2   : > { %2133 = vmatprep.subr.mxu0 %v2059_v34  ;;  %vm4788_vm14 = vmmov %vm4787_vm5 }
 0x6c3   : > { %2134 = vmatpush1.msra.mxu0 %v2058_v0  ;;  %v4374_v0 = vld [vmem:[%s4572_s4] sm:$0xff] }
 0x6c4   : > { %v1841_v31 = vpop.permute.xlu1 %1840  ;;  %v1843_v42 = vpop.permute.xlu0 %1842 }
 0x6c5   : > { %v1857_v33 = vsel %vm4784_vm13, %v1841_v31, %v1843_v42 }
 0x6c6   : > { %2990 = vmatprep.subr.msk.mxu0 %vm3408_vm6, %v1857_v33 }
 0x6c8   : > { %v1887_v41 = vpop.permute.xlu1 %1886  ;;  %v4337_v57 = vpop.permute.xlu0 %1888 }
 0x6c9   : > { %v1900_v60 = vsel %vm4785_vm15, %v1885_v28, %v1887_v41  ;;  %v1901_v43 = vsel %vm4786_vm10, %v1887_v41, %v4337_v57  ;;  %vm4789_vm15 = vcmask 777216  }
 0x6ca   : > { %3001 = vmatprep.subr.msk.mxu1 %vm4773_vm0, %v1901_v43  ;;  %vm4790_vm10 = vmmov %vm4789_vm15 }
 0x6cb   : > { %3002 = vmatpush1.msk.msra.mxu1 %vm4774_vm1, %v1900_v60 }
 0x6cc   : > { %v1839_v23 = vpop.permute.xlu1 %1838  ;;  %v1799_v11 = vpop.permute.xlu0 %1798 }
 0x6cd   : > { %v1856_v20 = vsel %vm4784_vm13, %v1839_v23, %v1841_v31 }
 0x6ce   : > { %2991 = vmatpush1.msk.msra.mxu0 %vm4772_vm4, %v1856_v20 }
 0x6d0   : > { %v1801_v38 = vpop.permute.xlu1 %1800  ;;  %v2047_v49 = vpop.permute.xlu0 %2046 }
 0x6d1   : > { %v1815_v52 = vsel %vm4787_vm5, %v1799_v11, %v1801_v38  ;;  %v2060_v35 = vsel %vm4790_vm10, %v2045_v62, %v2047_v49  ;;  %vm4792_vm5 = vcmask 1039360   ;;  %vm4795_vm10 = vmmov %vm4788_vm14 }
 0x6d2   : > { %2992 = vmatprep.subr.msk.mxu0 %vm3373_vm2, %v1815_v52  ;;  %vm4791_vm2 = vmmov %vm4784_vm13 }
 0x6d4   : > { %v4352_v28 = vpop.permute.xlu1 %2048  ;;  %v1797_v5 = vpop.permute.xlu0 %1796 }
 0x6d5   : > { %v1814_v27 = vsel %vm4788_vm14, %v1797_v5, %v1799_v11  ;;  %v2061_v10 = vsel %vm4789_vm15, %v2047_v49, %v4352_v28  ;;  %vm4794_vm15 = vcmask 588800  }
 0x6d6   : > { %2993 = vmatpush1.msk.msra.mxu0 %vm3386_vm3, %v1814_v27  ;;  %2204 = vmatprep.subr.mxu1 %v2061_v10  ;;  %vm4793_vm3 = vmmov %vm4792_vm5 }
 0x6d7   : > { %2205 = vmatpush1.msra.mxu1 %v2060_v35 }
 0x6d8   : > { %v1845_v56 = vpop.permute.xlu1 %1844  ;;  %v4360_v14 = vpop.permute.xlu0 %1846 }
 0x6d9   : > { %v1858_v32 = vsel %vm4784_vm13, %v1843_v42, %v1845_v56  ;;  %v1859_v47 = vsel %vm4791_vm2, %v1845_v56, %v4360_v14  ;;  %vm4800_vm13 = vcmask 515072  }
 0x6da   : > { %3003 = vmatprep.subr.msk.mxu1 %vm4780_vm12, %v1859_v47  ;;  %vm4801_vm2 = vmmov %vm4800_vm13 }
 0x6db   : > { %3004 = vmatpush1.msk.msra.mxu1 %vm4781_vm9, %v1858_v32 }
 0x6dc   : > { %v2009_v8 = vpop.permute.xlu1 %2008  ;;  %v2011_v54 = vpop.permute.xlu0 %2010 }
 0x6dd   : > { %v2025_v37 = vsel %vm4792_vm5, %v2009_v8, %v2011_v54  ;;  %vm4802_vm5 = vmmov %vm4794_vm15 }
 0x6de   : > { %2139 = vmatprep.subr.mxu0 %v2025_v37 }
 0x6e0   : > { %v2007_v29 = vpop.permute.xlu1 %2006  ;;  %v1803_v62 = vpop.permute.xlu0 %1802 }
 0x6e1   : > { %v2024_v58 = vsel %vm4793_vm3, %v2007_v29, %v2009_v8  ;;  %v1816_v33 = vsel %vm4795_vm10, %v1801_v38, %v1803_v62  ;;  %vm4808_vm10 = vnez %v4651_v15 }
 0x6e2   : > { %2140 = vmatpush1.msra.mxu0 %v2024_v58 }
 0x6e3   : > { %2994 = vmatprep.subr.msk.mxu0 %vm3408_vm6, %v4129_v53  ;;  %vm4796_vm6 = vcmask 506880  }
 0x6e4   : > { %v4379_v34 = vpop.permute.xlu1 %1804  ;;  %2995 = vmatpush1.msk.msra.mxu0 %vm4772_vm4, %v4134_v36  ;;  %v1975_v31 = vpop.permute.xlu0 %1974  ;;  %vm4797_vm4 = vmmov %vm4796_vm6 }
 0x6e5   : > { %v1817_v42 = vsel %vm4788_vm14, %v1803_v62, %v4379_v34  ;;  %2996 = vmatmul.mubr.msk.f32.vlgmr.msra.gmra.mxu0 %vm4794_vm15, %v4374_v0  ;;  %v1986_v36 = vsel %vm4797_vm4, %v4292_v16, %v1975_v31  ;;  %vm4806_vm14 = vmmov %vm4797_vm4 }
 0x6e6   : > { %3005 = vmatprep.subr.msk.mxu1 %vm4773_vm0, %v1817_v42  ;;  %2317 = vmatprep.mubr.f32.mxu0 %v3157_v18  ;;  %vm4798_vm0 = vmmov %vm4793_vm3 }
 0x6e7   : > { %3006 = vmatpush1.msk.msra.mxu1 %vm4774_vm1, %v1816_v33  ;;  %vm4799_vm1 = vmmov %vm4798_vm0 }
 0x6e8   : > { %v1977_v45 = vpop.permute.xlu1 %1976  ;;  %v2013_v50 = vpop.permute.xlu0 %2012  ;;  %vm4807_vm15 = vmmov %vm4797_vm4  ;;  %vm4810_vm4 = vcmask 769024  }
 0x6e9   : > { %v1987_v53 = vsel %vm4796_vm6, %v1975_v31, %v1977_v45  ;;  %v2026_v60 = vsel %vm4799_vm1, %v2011_v54, %v2013_v50  ;;  %vm4809_vm6 = vnez %v4653_v2  ;;  %vm4812_vm1 = vmmov %vm4801_vm2 }
 0x6ea   : > { %3010 = vmatprep.subr.msk.mxu0 %vm4720_vm7, %v1987_v53 }
 0x6eb   : > { %3011 = vmatpush1.msk.msra.mxu0 %vm4722_vm8, %v1986_v36 }
 0x6ec   : > { %v4401_v19 = vpop.permute.xlu1 %2014  ;;  %v2085_v41 = vpop.permute.xlu0 %2084 }
 0x6ed   : > { %v2027_v25 = vsel %vm4798_vm0, %v2013_v50, %v4401_v19  ;;  %v2096_v11 = vsel %vm4801_vm2, %v4314_v48, %v2085_v41  ;;  %vm4811_vm0 = vmmov %vm4810_vm4 }
 0x6ee   : > { %2210 = vmatprep.subr.mxu1 %v2027_v25 }
 0x6ef   : > { %2211 = vmatpush1.msra.mxu1 %v2026_v60 }
 0x6f0   : > { %v2087_v43 = vpop.permute.xlu1 %2086  ;;  %3007 = vmatprep.subr.msk.mxu1 %vm4780_vm12, %v4152_v4  ;;  %v1933_v16 = vpop.permute.xlu0 %1932  ;;  %vm4803_vm12 = vcmask 523264  }
 0x6f1   : > { %3008 = vmatpush1.msk.msra.mxu1 %vm4781_vm9, %v4137_v1  ;;  %v2097_v23 = vsel %vm4800_vm13, %v2085_v41, %v2087_v43  ;;  %vm4804_vm3 = vmmov %vm4803_vm12  ;;  %vm4805_vm9 = vnez %v4636_v6 }
 0x6f2   : > { %2269 = vmatprep.subr.mxu0 %v2097_v23  ;;  %3009 = vmatmul.mubr.msk.f32.vlgmr.msra.gmra.mxu1 %vm4802_vm5, %v4374_v0  ;;  %v1944_v13 = vsel %vm4804_vm3, %v4323_v39, %v1933_v16  ;;  %vm4813_vm13 = vmmov %vm4812_vm1 }
 0x6f3   : > { %2270 = vmatpush1.msra.mxu0 %v2096_v11  ;;  %2388 = vmatprep.mubr.f32.mxu1 %v3157_v18  ;;  %vm4814_vm2 = vmmov %vm4804_vm3  ;;  %vm4817_vm3 = vnez %v4664_v17 }
 0x6f4   : > { %v1935_v20 = vpop.permute.xlu1 %1934  ;;  %v1979_v44 = vpop.permute.xlu0 %1978  ;;  %vm4815_vm5 = vmmov %vm4814_vm2 }
 0x6f5   : > { %v1945_v4 = vsel %vm4803_vm12, %v1933_v16, %v1935_v20  ;;  %v1988_v49 = vsel %vm4807_vm15, %v1977_v45, %v1979_v44  ;;  %vm4816_vm12 = vnez %v4662_v26 }
 0x6f6   : > { %3012 = vmatprep.subr.msk.mxu0 %vm4727_vm11, %v1945_v4 }
 0x6f7   : > { %3013 = vmatpush1.msk.msra.mxu0 %vm4805_vm9, %v1944_v13 }
 0x6f8   : > { %v1981_v1 = vpop.permute.xlu1 %1980  ;;  %v1891_v48 = vpop.permute.xlu0 %1890 }
 0x6f9   : > { %v1989_v38 = vsel %vm4806_vm14, %v1979_v44, %v1981_v1  ;;  %v1902_v27 = vsel %vm4811_vm0, %v4337_v57, %v1891_v48  ;;  %vm4818_vm14 = vcmask 777216  }
 0x6fa   : > { %3023 = vmatprep.subr.msk.mxu1 %vm4808_vm10, %v1989_v38  ;;  %vm4819_vm15 = vmmov %vm4818_vm14 }
 0x6fb   : > { %3024 = vmatpush1.msk.msra.mxu1 %vm4809_vm6, %v1988_v49 }
 0x6fc   : > { %v1893_v52 = vpop.permute.xlu1 %1892  ;;  %v2089_v39 = vpop.permute.xlu0 %2088 }
 0x6fd   : > { %v1903_v5 = vsel %vm4810_vm4, %v1891_v48, %v1893_v52  ;;  %v2098_v32 = vsel %vm4813_vm13, %v2087_v43, %v2089_v39  ;;  %vm4820_vm4 = vcmask 785408  }
 0x6fe   : > { %3014 = vmatprep.subr.msk.mxu0 %vm4720_vm7, %v1903_v5  ;;  %vm4821_vm0 = vmmov %vm4820_vm4 }
 0x6ff   : > { %3015 = vmatpush1.msk.msra.mxu0 %vm4722_vm8, %v1902_v27 }
 0x700   : > { %v2091_v10 = vpop.permute.xlu1 %2090  ;;  %v1937_v35 = vpop.permute.xlu0 %1936 }
 0x701   : > { %v2099_v56 = vsel %vm4812_vm1, %v2089_v39, %v2091_v10  ;;  %v1946_v57 = vsel %vm4815_vm5, %v1935_v20, %v1937_v35  ;;  %vm4822_vm1 = vcmask 769024  }
 0x702   : > { %2340 = vmatprep.subr.mxu1 %v2099_v56  ;;  %vm4823_vm13 = vmmov %vm4822_vm1 }
 0x703   : > { %2341 = vmatpush1.msra.mxu1 %v2098_v32 }
 0x704   : > { %v1939_v47 = vpop.permute.xlu1 %1938  ;;  %v2051_v8 = vpop.permute.xlu0 %2050 }
 0x705   : > { %v1947_v54 = vsel %vm4814_vm2, %v1937_v35, %v1939_v47  ;;  %v2062_v58 = vsel %vm4819_vm15, %v4352_v28, %v2051_v8  ;;  %vm4824_vm2 = vcmask 1031168   ;;  %vm4826_vm15 = vmmov %vm4818_vm14 }
 0x706   : > { %3025 = vmatprep.subr.msk.mxu1 %vm4816_vm12, %v1947_v54  ;;  %vm4825_vm5 = vmmov %vm4824_vm2 }
 0x707   : > { %3026 = vmatpush1.msk.msra.mxu1 %vm4817_vm3, %v1946_v57 }
 0x708   : > { %v2053_v37 = vpop.permute.xlu1 %2052  ;;  %v1849_v29 = vpop.permute.xlu0 %1848 }
 0x709   : > { %v2063_v62 = vsel %vm4818_vm14, %v2051_v8, %v2053_v37  ;;  %v1860_v45 = vsel %vm4821_vm0, %v4360_v14, %v1849_v29 }
 0x70a   : > { %2275 = vmatprep.subr.mxu0 %v2063_v62 }
 0x70b   : > { %2276 = vmatpush1.msra.mxu0 %v2062_v58 }
 0x70c   : > { %v1851_v31 = vpop.permute.xlu1 %1850  ;;  %v1895_v42 = vpop.permute.xlu0 %1894 }
 0x70d   : > { %v1861_v33 = vsel %vm4820_vm4, %v1849_v29, %v1851_v31  ;;  %v1904_v28 = vsel %vm4823_vm13, %v1893_v52, %v1895_v42  ;;  %vm4827_vm4 = vmmov %vm4821_vm0 }
 0x70e   : > { %3016 = vmatprep.subr.msk.mxu0 %vm4727_vm11, %v1861_v33 }
 0x70f   : > { %3017 = vmatpush1.msk.msra.mxu0 %vm4805_vm9, %v1860_v45 }
 0x710   : > { %v1897_v50 = vpop.permute.xlu1 %1896  ;;  %v1807_v53 = vpop.permute.xlu0 %1806 }
 0x711   : > { %v1905_v36 = vsel %vm4822_vm1, %v1895_v42, %v1897_v50  ;;  %v1818_v60 = vsel %vm4825_vm5, %v4379_v34, %v1807_v53  ;;  %vm4830_vm1 = vmmov %vm4824_vm2 }
 0x712   : > { %3027 = vmatprep.subr.msk.mxu1 %vm4808_vm10, %v1905_v36  ;;  %vm4831_vm13 = vmmov %vm4830_vm1 }
 0x713   : > { %3028 = vmatpush1.msk.msra.mxu1 %vm4809_vm6, %v1904_v28 }
 0x714   : > { %v1809_v41 = vpop.permute.xlu1 %1808  ;;  %v2055_v14 = vpop.permute.xlu0 %2054 }
 0x715   : > { %v1819_v25 = vsel %vm4824_vm2, %v1807_v53, %v1809_v41  ;;  %v2064_v11 = vsel %vm4826_vm15, %v2053_v37, %v2055_v14  ;;  %vm4832_vm2 = vcmask 588800  }
 0x716   : > { %3018 = vmatprep.subr.msk.mxu0 %vm4720_vm7, %v1819_v25  ;;  %vm4828_vm7 = vcmask 1039360  }
 0x717   : > { %3019 = vmatpush1.msk.msra.mxu0 %vm4722_vm8, %v1818_v60  ;;  %vm4829_vm8 = vmmov %vm4828_vm7 }
 0x718   : > { %v2057_v43 = vpop.permute.xlu1 %2056  ;;  %v1853_v16 = vpop.permute.xlu0 %1852 }
 0x719   : > { %v2065_v23 = vsel %vm4818_vm14, %v2055_v14, %v2057_v43  ;;  %v1862_v34 = vsel %vm4821_vm0, %v1851_v31, %v1853_v16 }
 0x71a   : > { %2346 = vmatprep.subr.mxu1 %v2065_v23 }
 0x71b   : > { %2347 = vmatpush1.msra.mxu1 %v2064_v11 }
 0x71c   : > { %v1855_v20 = vpop.permute.xlu1 %1854  ;;  %v2017_v44 = vpop.permute.xlu0 %2016 }
 0x71d   : > { %v1863_v4 = vsel %vm4827_vm4, %v1853_v16, %v1855_v20  ;;  %v2028_v1 = vsel %vm4829_vm8, %v4401_v19, %v2017_v44 }
 0x71e   : > { %3029 = vmatprep.subr.msk.mxu1 %vm4816_vm12, %v1863_v4 }
 0x71f   : > { %3030 = vmatpush1.msk.msra.mxu1 %vm4817_vm3, %v1862_v34 }
 0x720   : > { %v2019_v51 = vpop.permute.xlu1 %2018  ;;  %v1811_v55 = vpop.permute.xlu0 %1810 }
 0x721   : > { %v2029_v13 = vsel %vm4828_vm7, %v2017_v44, %v2019_v51  ;;  %v1820_v49 = vsel %vm4831_vm13, %v1809_v41, %v1811_v55 }
 0x722   : > { %2281 = vmatprep.subr.mxu0 %v2029_v13 }
 0x723   : > { %2282 = vmatpush1.msra.mxu0 %v2028_v1 }
 0x724   : > { %v1813_v48 = vpop.permute.xlu1 %1812  ;;  %3020 = vmatprep.subr.msk.mxu0 %vm4727_vm11, %v4218_v63  ;;  %v2021_v19 = vpop.permute.xlu0 %2020  ;;  %vm2504_vm11 = vcmask 64512  }
 0x725   : > { %v1821_v38 = vsel %vm4830_vm1, %v1811_v55, %v1813_v48  ;;  %3021 = vmatpush1.msk.msra.mxu0 %vm4805_vm9, %v4159_v40  ;;  %vm4833_vm9 = vmmov %vm4828_vm7 }
 0x726   : > { %3022 = vmatmul.mubr.msk.f32.vlgmr.msra.gmra.mxu0 %vm4832_vm2, %v4374_v0  ;;  %3031 = vmatprep.subr.msk.mxu1 %vm4808_vm10, %v1821_v38  ;;  %vm4834_vm10 = vmmov %vm4828_vm7 }
 0x727   : > { %2538 = vmatprep.subr.mxu0 %v3722_v61  ;;  %3032 = vmatpush1.msk.msra.mxu1 %vm4809_vm6, %v1820_v49  ;;  %v2030_v40 = vsel %vm4834_vm10, %v2019_v51, %v2021_v19  ;;  %vm4835_vm6 = vmmov %vm4832_vm2 }
 0x728   : > { %2539 = vmatpush1.msra.mxu0 %v3718_v59  ;;  %v2023_v6 = vpop.permute.xlu1 %2022  ;;  %2572 = vmatprep.mubr.f32.mxu0 %v3157_v18 }
 0x729   : > { %2680 = vmatprep.subr.mxu0 %v3736_v12  ;;  %v2031_v15 = vsel %vm4833_vm9, %v2021_v19, %v2023_v6 }
 0x72a   : > { %2352 = vmatprep.subr.mxu1 %v2031_v15  ;;  %3044 = vmatmul.mubr.msk.f32.vlgmr.msra.gmra.mxu0 %vm2504_vm11, %v2497_v3 }
 0x72b   : > { %2681 = vmatpush1.msra.mxu0 %v3734_v24  ;;  %2353 = vmatpush1.msra.mxu1 %v2030_v40 }
 0x72c   : > { %3033 = vmatprep.subr.msk.mxu1 %vm4816_vm12, %v4240_v46  ;;  %2714 = vmatprep.mubr.f32.mxu0 %v3157_v18 }
 0x72d   : > { %3034 = vmatpush1.msk.msra.mxu1 %vm4817_vm3, %v4225_v22 }
 0x72e   : > { %3035 = vmatmul.mubr.msk.f32.vlgmr.msra.gmra.mxu1 %vm4835_vm6, %v4374_v0  ;;  %2609 = vmatprep.subr.mxu1 %v3728_v30 }
 0x72f   : > { %2610 = vmatpush1.msra.mxu1 %v3726_v21  ;;  %2643 = vmatprep.mubr.f32.mxu1 %v3157_v18 }
 0x730   : > { %2751 = vmatprep.subr.mxu1 %v3744_v9  ;;  %3046 = vmatmul.mubr.msk.f32.vlgmr.msra.gmra.mxu0 %vm2504_vm11, %v2497_v3 }
 0x732   : > { %3045 = vmatmul.mubr.msk.f32.vlgmr.msra.gmra.mxu1 %vm2504_vm11, %v2497_v3 }
 0x733   : > { %2752 = vmatpush1.msra.mxu1 %v3742_v7  ;;  %2785 = vmatprep.mubr.f32.mxu1 %v3157_v18  ;;  %v2498_v18 = vld [vmem:[%s4574_s6] sm:$0xff] }
 0x736   : > { %3047 = vmatmul.mubr.msk.f32.vlgmr.msra.gmra.mxu1 %vm2504_vm11, %v2497_v3 }
 0x7a5   : > { %v2177_v2 = vpop.f32.mrf.mxu0 }
 0x7a7   : > { %v2179_v26 = vpop.f32.mrf.mxu0 }
 0x7a8   : > { %v2395_v17 = vadd.f32 %v2179_v26, %v2177_v2 }
 0x7b2   : > { %v2248_v59 = vpop.f32.mrf.mxu1 }
 0x7b3   : > { %v2396_v61 = vadd.f32 %v2395_v17, %v2248_v59 }
 0x7b4   : > { %v2250_v21 = vpop.f32.mrf.mxu1 }
 0x7b5   : > { %v2397_v24 = vadd.f32 %v2396_v61, %v2250_v21 }
 0x7e6   : > { %v2319_v30 = vpop.f32.mrf.mxu0 }
 0x7e7   : > { %v2398_v12 = vadd.f32 %v2397_v24, %v2319_v30 }
 0x7e8   : > { %v2321_v9 = vpop.f32.mrf.mxu0 }
 0x7e9   : > { %v2399_v63 = vadd.f32 %v2398_v12, %v2321_v9 }
 0x7ee   : > { %v2390_v22 = vpop.f32.mrf.mxu1 }
 0x7ef   : > { %v2400_v46 = vadd.f32 %v2399_v63, %v2390_v22 }
 0x7f0   : > { %v2392_v0 = vpop.f32.mrf.mxu1 }
 0x7f1   : > { %v2401_v52 = vadd.f32 %v2400_v46, %v2392_v0 }
 0x7f3   : > { %2402 = vadd.xlane.f32.xlu0 %v2401_v52  ;;  %v2645_v52 = vpop.f32.mrf.mxu1 }
 0x809   : > { %2501 = vperm.xlu0 %3071, %v2498_v18  }
 0x87c   : > { %v2403_v7 = vpop.xlane.xlu0 %2402 }
 0x87d   : > { %v2404_v39 = vmul.f32 0.0009765625, %v2403_v7  ;;  %v2647_v7 = vpop.f32.mrf.mxu1 }
 0x87f   : > { %v2405_v5 = vsub.f32 %v2177_v2, %v2404_v39  ;;  %v2406_v27 = vsub.f32 %v2179_v26, %v2404_v39  ;;  %v2407_v10 = vsub.f32 %v2248_v59, %v2404_v39  ;;  %v2408_v32 = vsub.f32 %v2250_v21, %v2404_v39 }
 0x880   : > { %v2409_v8 = vsub.f32 %v2319_v30, %v2404_v39  ;;  %v2410_v57 = vsub.f32 %v2321_v9, %v2404_v39  ;;  %v2411_v62 = vsub.f32 %v2390_v22, %v2404_v39  ;;  %v2412_v42 = vsub.f32 %v2392_v0, %v2404_v39  ;;  %v2574_v22 = vpop.f32.mrf.mxu0 }
 0x881   : > { %v2413_v35 = vmul.f32 %v2405_v5, %v2405_v5  ;;  %v2414_v56 = vmul.f32 %v2406_v27, %v2406_v27  ;;  %v2415_v54 = vmul.f32 %v2407_v10, %v2407_v10  ;;  %v2416_v37 = vmul.f32 %v2408_v32, %v2408_v32 }
 0x882   : > { %v2417_v58 = vmul.f32 %v2409_v8, %v2409_v8  ;;  %v2418_v33 = vmul.f32 %v2410_v57, %v2410_v57  ;;  %v2419_v50 = vmul.f32 %v2411_v62, %v2411_v62  ;;  %v2420_v36 = vmul.f32 %v2412_v42, %v2412_v42  ;;  %v2576_v18 = vpop.f32.mrf.mxu0 }
 0x883   : > { %v2421_v47 = vadd.f32 %v2414_v56, %v2413_v35  ;;  %v2787_v35 = vpop.f32.mrf.mxu1 }
 0x884   : > { %v2502_v39 = vpop.permute.xlu0 %2501 }
 0x885   : > { %v2422_v29 = vadd.f32 %v2421_v47, %v2415_v54  ;;  %v2575_v56 = vadd.f32 %v2574_v22, %v2502_v39 }
 0x887   : > { %v2423_v31 = vadd.f32 %v2422_v29, %v2416_v37  ;;  %v2646_v29 = vadd.f32 %v2645_v52, %v2502_v39 }
 0x889   : > { %v2424_v45 = vadd.f32 %v2423_v31, %v2417_v58 }
 0x88b   : > { %v2425_v53 = vadd.f32 %v2424_v45, %v2418_v33 }
 0x88d   : > { %v2426_v28 = vadd.f32 %v2425_v53, %v2419_v50  ;;  %v2789_v53 = vpop.f32.mrf.mxu1 }
 0x88f   : > { %v2427_v41 = vadd.f32 %v2426_v28, %v2420_v36 }
 0x891   : > { %2428 = vadd.xlane.f32.xlu1 %v2427_v41 }
 0x91a   : > { %v2429_v14 = vpop.xlane.xlu1 %2428 }
 0x91b   : > { %v2430_v25 = vmul.f32 0.0009765625, %v2429_v14 }
 0x91d   : > { %v2431_v60 = vadd.f32 1e-05, %v2430_v25 }
 0x91f   : > { %3106 = vrsqrt.f32 %v2431_v60 }
 0x92c   : > { %v3107_v43 = vpop.eup %3106 }
 0x92d   : > { %v2433_v16 = vmul.f32 %v3107_v43, %v2405_v5  ;;  %v2434_v23 = vmul.f32 %v3107_v43, %v2406_v27  ;;  %v4526_v11 = vmul.f32 %v3107_v43, %v2407_v10  ;;  %v4528_v20 = vmul.f32 %v3107_v43, %v2408_v32  ;;  %v2716_v5 = vpop.f32.mrf.mxu0 }
 0x92e   : > { %v4530_v44 = vmul.f32 %v3107_v43, %v2409_v8  ;;  %v4532_v4 = vmul.f32 %v3107_v43, %v2410_v57  ;;  %v4534_v34 = vmul.f32 %v3107_v43, %v2411_v62  ;;  %v4537_v1 = vmul.f32 %v3107_v43, %v2412_v42 }
 0x92f   : > { %v3036_v51 = vmul.f32 -1.442695, %v2433_v16  ;;  %v3037_v55 = vmul.f32 -1.442695, %v2434_v23  ;;  %v3038_v13 = vmul.f32 -1.442695, %v4526_v11  ;;  %v2577_v8 = vadd.f32 %v2576_v18, %v2502_v39  ;;  %v2718_v37 = vpop.f32.mrf.mxu0 }
 0x930   : > { %v3039_v48 = vmul.f32 -1.442695, %v4528_v20  ;;  %v3040_v38 = vmul.f32 -1.442695, %v4530_v44  ;;  %v3041_v49 = vmul.f32 -1.442695, %v4532_v4  ;;  %v2648_v42 = vadd.f32 %v2647_v7, %v2502_v39 }
 0x931   : > { %3108 = vpow2.f32 %v3036_v51  ;;  %v3042_v19 = vmul.f32 -1.442695, %v4534_v34  ;;  %v3043_v3 = vmul.f32 -1.442695, %v4537_v1  ;;  %v2717_v36 = vadd.f32 %v2716_v5, %v2502_v39 }
 0x932   : > { %3110 = vpow2.f32 %v3037_v55  ;;  %v2719_v25 = vadd.f32 %v2718_v37, %v2502_v39 }
 0x933   : > { %3112 = vpow2.f32 %v3038_v13 }
 0x934   : > { %3114 = vpow2.f32 %v3039_v48 }
 0x935   : > { %3116 = vpow2.f32 %v3040_v38 }
 0x936   : > { %3118 = vpow2.f32 %v3041_v49 }
 0x937   : > { %3120 = vpow2.f32 %v3042_v19 }
 0x938   : > { %3122 = vpow2.f32 %v3043_v3 }
 0x93e   : > { %v3109_v6 = vpop.eup %3108 }
 0x93f   : > { %v3111_v15 = vpop.eup %3110  ;;  %v2465_v40 = vadd.f32 1.0, %v3109_v6 }
 0x940   : > { %v3113_v2 = vpop.eup %3112  ;;  %v2466_v26 = vadd.f32 1.0, %v3111_v15 }
 0x941   : > { %v3115_v17 = vpop.eup %3114  ;;  %v2467_v59 = vadd.f32 1.0, %v3113_v2  ;;  %3124 = vrcp.f32 %v2465_v40 }
 0x942   : > { %v3117_v61 = vpop.eup %3116  ;;  %v2468_v21 = vadd.f32 1.0, %v3115_v17  ;;  %3126 = vrcp.f32 %v2466_v26 }
 0x943   : > { %v3119_v30 = vpop.eup %3118  ;;  %v2469_v24 = vadd.f32 1.0, %v3117_v61  ;;  %3128 = vrcp.f32 %v2467_v59 }
 0x944   : > { %v3121_v12 = vpop.eup %3120  ;;  %v2470_v9 = vadd.f32 1.0, %v3119_v30  ;;  %3130 = vrcp.f32 %v2468_v21 }
 0x945   : > { %v3123_v63 = vpop.eup %3122  ;;  %v2471_v46 = vadd.f32 1.0, %v3121_v12  ;;  %3132 = vrcp.f32 %v2469_v24 }
 0x946   : > { %v2472_v0 = vadd.f32 1.0, %v3123_v63  ;;  %3134 = vrcp.f32 %v2470_v9 }
 0x947   : > { %3136 = vrcp.f32 %v2471_v46 }
 0x948   : > { %3138 = vrcp.f32 %v2472_v0 }
 0x94e   : > { %v3125_v27 = vpop.eup %3124 }
 0x94f   : > { %v3127_v10 = vpop.eup %3126  ;;  %v2489_v32 = vmul.f32 %v3125_v27, %v2433_v16 }
 0x950   : > { %v3129_v47 = vpop.eup %3128  ;;  %v2490_v54 = vmul.f32 %v3127_v10, %v2434_v23  ;;  %v2788_v23 = vadd.f32 %v2787_v35, %v2502_v39 }
 0x951   : > { %v3131_v57 = vpop.eup %3130  ;;  %v2491_v62 = vmul.f32 %v3129_v47, %v4526_v11  ;;  %v2792_v58 = vadd.f32 %v2575_v56, %v2489_v32 }
 0x952   : > { %v3133_v31 = vpop.eup %3132  ;;  %v2492_v33 = vmul.f32 %v3131_v57, %v4528_v20  ;;  %v2793_v45 = vadd.f32 %v2577_v8, %v2490_v54 }
 0x953   : > { %v3135_v50 = vpop.eup %3134  ;;  %v2493_v28 = vmul.f32 %v3133_v31, %v4530_v44  ;;  %v2794_v41 = vadd.f32 %v2646_v29, %v2491_v62  ;;  %2800 = vst [vmem:[%s4549_s10] sm:$0xff] %v2792_v58  ;;  %v2790_v44 = vadd.f32 %v2789_v53, %v2502_v39 }
 0x954   : > { %v3137_v14 = vpop.eup %3136  ;;  %v2494_v60 = vmul.f32 %v3135_v50, %v4532_v4  ;;  %v2795_v43 = vadd.f32 %v2648_v42, %v2492_v33  ;;  %2801 = vst [vmem:[%s4549_s10 + $0x8] sm:$0xff] %v2793_v45 }
 0x955   : > { %v3139_v16 = vpop.eup %3138  ;;  %v2495_v11 = vmul.f32 %v3137_v14, %v4534_v34  ;;  %v2796_v20 = vadd.f32 %v2717_v36, %v2493_v28  ;;  %2802 = vst [vmem:[%s4549_s10 + $0x10] sm:$0xff] %v2794_v41 }
 0x956   : > { %v2496_v51 = vmul.f32 %v3139_v16, %v4537_v1  ;;  %v2797_v55 = vadd.f32 %v2719_v25, %v2494_v60  ;;  %2803 = vst [vmem:[%s4549_s10 + $0x18] sm:$0xff] %v2795_v43 }
 0x957   : > { %v2798_v13 = vadd.f32 %v2788_v23, %v2495_v11  ;;  %2804 = vst [vmem:[%s4549_s10 + $0x20] sm:$0xff] %v2796_v20 }
 0x958   : > { %v2799_v48 = vadd.f32 %v2790_v44, %v2496_v51  ;;  %2805 = vst [vmem:[%s4549_s10 + $0x28] sm:$0xff] %v2797_v55 }
 0x959   : > { %2806 = vst [vmem:[%s4549_s10 + $0x30] sm:$0xff] %v2798_v13 }
 0x95a   : > { %2807 = vst [vmem:[%s4549_s10 + $0x38] sm:$0xff] %v2799_v48 }
 0x95b PF: > { %s17_s24 = sadd.s32 1, %s3146_s24  }
 0x95c   : > { %p14_p4 = scmp.ge.s32.totalorder %s17_s24, 4  }
 0x95e   :  { %16 = sbr.rel (!%p14_p4) target bundleno = 1 (0x1), region = 78 }

// kernel: generator_forward.9
= control target key start
LH: loop header
LB: loop body
LE: loop exit
PB: predicated region body
PF: predicated region fallthrough
CT: control target
= control target key end

     0   :  { %s4090_s18 = smov 0   ;;  %s6174_s0 = inlined_call_operand.vmem [shape: f32[2,8,4096], index: 0, kind: input, shape index: {}]   ;;  %s6175_s1 = inlined_call_operand.vmem [shape: f32[8,72], index: 1, kind: input, shape index: {}]   ;;  %s6176_s2 = inlined_call_operand.vmem [shape: f32[8,1], index: 2, kind: input, shape index: {}]   ;;  %s6177_s3 = inlined_call_operand.vmem [shape: f32[8,8], index: 3, kind: input, shape index: {}]   ;;  %s6178_s4 = inlined_call_operand.vmem [shape: f32[8,1], index: 4, kind: input, shape index: {}]   ;;  %s6179_s5 = inlined_call_operand.vmem [shape: f32[2,8,4096], index: 5, kind: output, shape index: {}]  }
   0x1 LB: > { %s3788_s19 = sadd.s32 4294967295, %s4050_s18   ;;  %p3792_p0 = scmp.ge.s32.totalorder %s4050_s18, 1  ;;  %s4050_s18 = sphi %s4090_s18, %s15_s18  }
   0x2   : > { %p187_p1 = scmp.lt.s32.totalorder %s4050_s18, 3 }
   0x4   : > { %p188_p2 = pnand %p3792_p0, %p187_p1 }
   0x5   : > { %p215_p3 = scmp.lt.s32.totalorder (!%p188_p2), %s3788_s19, 1  ;;  %s4052_s24 = smov (!%p188_p2), 65  }
   0x6   : > { %191 = sbr.rel (%p188_p2) target bundleno = 1010 (0x3f2), region = 40  ;;  %s4053_s25 = smov (!%p188_p2), 126  }
   0x7   : > { %s4054_s26 = smov (!%p188_p2), 127   ;;  %s4055_s27 = smov (!%p188_p2), 62  }
   0x8   : > { %s4056_s28 = smov (!%p188_p2), 63   ;;  %s4057_s29 = smov (!%p188_p2), 64  }
   0xb   : > { %s6309_s19 = smov (!%p215_p3, %s3788_s19), 1  ;;  %vm355_vm0 = vcmask 531456   ;;  %v4058_v34 = vmov 0.0   ;;  %v422_v55 = vlaneseq  ;;  %vm651_vm1 = vcmask 1031168  }
   0xc   : > { %s4023_s20 = sshll.u32 %s6309_s19, 8  ;;  %1482 = vmatprep.mubr.f32.mxu0 %v4058_v34  ;;  %1553 = vmatprep.mubr.f32.mxu1 %v4058_v34  ;;  %vm1209_vm6 = vcmask 1039360   ;;  %vm977_vm10 = vcmask 506880   ;;  %vm1340_vm12 = vcmask 515072   ;;  %vm814_vm13 = vcmask 523264  }
   0xd   : > { %s4106_s23 = scalar_lea.vmem %s6174_s0, %s4023_s20  ;;  %v4303_v58 = vand.u32 127, %v422_v55  ;;  %vm1414_vm14 = vcmask 588800   ;;  %s6105_s17 = scalar_lea.vmem %s6179_s5, %s4023_s20 }
   0xe   : > { %v228_v0 = vld [vmem:[%s4106_s23 + $0x18] sm:$0xff]  ;;  %v226_v1 = vld [vmem:[%s4106_s23 + $0x8] sm:$0xff]  ;;  %v229_v2 = vld [vmem:[%s4106_s23 + $0x20] sm:$0xff] }
   0xf   : > { %297 = vrot.lane.b32.xlu1 %v228_v0, %s4052_s24  ;;  %293 = vrot.lane.b32.xlu0 %v226_v1, %s4052_s24  ;;  %v227_v3 = vld [vmem:[%s4106_s23 + $0x10] sm:$0xff]  ;;  %v230_v4 = vld [vmem:[%s4106_s23 + $0x28] sm:$0xff]  ;;  %v424_v62 = vadd.s32 128, %v4303_v58 }
  0x10   : > { %v225_v5 = vld [vmem:[%s4106_s23] sm:$0xff]  ;;  %v231_v6 = vld [vmem:[%s4106_s23 + $0x30] sm:$0xff]  ;;  %v232_v7 = vld [vmem:[%s4106_s23 + $0x38] sm:$0xff] }
  0x11   : > { %v233_v8 = vld [vmem:[%s4106_s23 + $0x40] sm:$0xff]  ;;  %v234_v9 = vld [vmem:[%s4106_s23 + $0x48] sm:$0xff]  ;;  %v235_v10 = vld [vmem:[%s4106_s23 + $0x50] sm:$0xff] }
  0x12   : > { %v236_v11 = vld [vmem:[%s4106_s23 + $0x58] sm:$0xff]  ;;  %v238_v12 = vld [vmem:[%s4106_s23 + $0x68] sm:$0xff]  ;;  %v237_v13 = vld [vmem:[%s4106_s23 + $0x60] sm:$0xff] }
  0x13   : > { %299 = vrot.lane.b32.xlu1 %v229_v2, %s4052_s24  ;;  %295 = vrot.lane.b32.xlu0 %v227_v3, %s4052_s24  ;;  %v240_v14 = vld [vmem:[%s4106_s23 + $0x78] sm:$0xff]  ;;  %v239_v15 = vld [vmem:[%s4106_s23 + $0x70] sm:$0xff]  ;;  %v456_v2 = vand.u32 63, %v424_v62  ;;  %v426_v3 = vadd.s32 384, %v4303_v58 }
  0x14   : > { %v242_v16 = vld [vmem:[%s4106_s23 + $0x88] sm:$0xff]  ;;  %v241_v17 = vld [vmem:[%s4106_s23 + $0x80] sm:$0xff]  ;;  %v243_v18 = vld [vmem:[%s4106_s23 + $0x90] sm:$0xff] }
  0x15   : > { %v244_v19 = vld [vmem:[%s4106_s23 + $0x98] sm:$0xff]  ;;  %v245_v20 = vld [vmem:[%s4106_s23 + $0xa0] sm:$0xff]  ;;  %v246_v21 = vld [vmem:[%s4106_s23 + $0xa8] sm:$0xff]  ;;  %vm4336_vm2 = vcmp.lt.s32.totalorder %v456_v2, 63  ;;  %vm4415_vm7 = vcmp.gt.s32.totalorder %v456_v2, 0 }
  0x16   : > { %v247_v47 = vld [vmem:[%s4106_s23 + $0xb0] sm:$0xff]  ;;  %v249_v50 = vld [vmem:[%s4106_s23 + $0xc0] sm:$0xff]  ;;  %v248_v51 = vld [vmem:[%s4106_s23 + $0xb8] sm:$0xff] }
  0x17   : > { %301 = vrot.lane.b32.xlu0 %v230_v4, %s4052_s24  ;;  %291 = vrot.lane.b32.xlu1 %v225_v5, %s4052_s24  ;;  %v250_v53 = vld [vmem:[%s4106_s23 + $0xc8] sm:$0xff]  ;;  %v425_v4 = vadd.s32 256, %v4303_v58 }
  0x1b   : > { %303 = vrot.lane.b32.xlu0 %v231_v6, %s4052_s24  ;;  %305 = vrot.lane.b32.xlu1 %v232_v7, %s4052_s24 }
  0x1f   : > { %307 = vrot.lane.b32.xlu0 %v233_v8, %s4052_s24  ;;  %309 = vrot.lane.b32.xlu1 %v234_v9, %s4052_s24  ;;  %v458_v8 = vand.u32 63, %v426_v3  ;;  %v253_v3 = vld [vmem:[%s4106_s23 + $0xe0] sm:$0xff] }
  0x21   : > { %vm4352_vm3 = vcmp.lt.s32.totalorder %v458_v8, 63  ;;  %vm4427_vm9 = vcmp.gt.s32.totalorder %v458_v8, 0 }
  0x23   : > { %311 = vrot.lane.b32.xlu0 %v235_v10, %s4052_s24  ;;  %313 = vrot.lane.b32.xlu1 %v236_v11, %s4052_s24  ;;  %v457_v10 = vand.u32 63, %v425_v4 }
  0x25   : > { %vm4361_vm4 = vcmp.lt.s32.totalorder %v457_v10, 63  ;;  %vm4436_vm11 = vcmp.gt.s32.totalorder %v457_v10, 0 }
  0x27   : > { %317 = vrot.lane.b32.xlu1 %v238_v12, %s4052_s24  ;;  %315 = vrot.lane.b32.xlu0 %v237_v13, %s4052_s24  ;;  %v4552_v13 = vadd.s32 896, %v4303_v58 }
  0x2b   : > { %321 = vrot.lane.b32.xlu1 %v240_v14, %s4052_s24  ;;  %319 = vrot.lane.b32.xlu0 %v239_v15, %s4052_s24  ;;  %v455_v14 = vand.u32 63, %v4303_v58 }
  0x2d   : > { %vm4380_vm5 = vcmp.lt.s32.totalorder %v455_v14, 63  ;;  %vm4423_vm8 = vcmp.gt.s32.totalorder %v455_v14, 0  ;;  %v254_v14 = vld [vmem:[%s4106_s23 + $0xe8] sm:$0xff] }
  0x2f   : > { %325 = vrot.lane.b32.xlu1 %v242_v16, %s4052_s24  ;;  %323 = vrot.lane.b32.xlu0 %v241_v17, %s4052_s24 }
  0x33   : > { %327 = vrot.lane.b32.xlu1 %v243_v18, %s4052_s24  ;;  %329 = vrot.lane.b32.xlu0 %v244_v19, %s4052_s24 }
  0x37   : > { %331 = vrot.lane.b32.xlu1 %v245_v20, %s4052_s24  ;;  %333 = vrot.lane.b32.xlu0 %v246_v21, %s4052_s24  ;;  %v462_v20 = vand.u32 63, %v4552_v13 }
  0x81   : > { %v298_v22 = vpop.permute.xlu1 %297  ;;  %v294_v23 = vpop.permute.xlu0 %293 }
  0x85   : > { %v300_v24 = vpop.permute.xlu1 %299  ;;  %v296_v25 = vpop.permute.xlu0 %295 }
  0x86   : > { %v4153_v26 = vsel %vm355_vm0, %v294_v23, %v296_v25  ;;  %v4156_v27 = vsel %vm355_vm0, %v296_v25, %v298_v22  ;;  %v4163_v29 = vsel %vm355_vm0, %v298_v22, %v300_v24 }
  0x87   : > { %589 = vrot.lane.b32.xlu0 %v4153_v26, %s4053_s25  ;;  %591 = vrot.lane.b32.xlu1 %v4156_v27, %s4053_s25 }
  0x89   : > { %v302_v28 = vpop.permute.xlu0 %301  ;;  %v292_v31 = vpop.permute.xlu1 %291 }
  0x8a   : > { %v4166_v30 = vsel %vm355_vm0, %v300_v24, %v302_v28  ;;  %v4173_v32 = vsel %vm355_vm0, %v292_v31, %v294_v23  ;;  %v4196_v33 = vsel %vm355_vm0, 0.0, %v292_v31 }
  0x8b   : > { %593 = vrot.lane.b32.xlu0 %v4163_v29, %s4053_s25  ;;  %595 = vrot.lane.b32.xlu1 %v4166_v30, %s4053_s25 }
  0x8d   : > { %v304_v35 = vpop.permute.xlu0 %303  ;;  %v306_v36 = vpop.permute.xlu1 %305 }
  0x8e   : > { %v4225_v38 = vsel %vm355_vm0, %v302_v28, %v304_v35  ;;  %v4232_v39 = vsel %vm355_vm0, %v304_v35, %v306_v36 }
  0x8f   : > { %1147 = vrot.lane.b32.xlu1 %v4153_v26, %s4054_s26  ;;  %587 = vrot.lane.b32.xlu0 %v4173_v32, %s4053_s25 }
  0x91   : > { %v308_v37 = vpop.permute.xlu0 %307  ;;  %v310_v41 = vpop.permute.xlu1 %309 }
  0x92   : > { %v4235_v40 = vsel %vm355_vm0, %v306_v36, %v308_v37  ;;  %v4242_v42 = vsel %vm355_vm0, %v308_v37, %v310_v41 }
  0x93   : > { %1151 = vrot.lane.b32.xlu1 %v4163_v29, %s4054_s26  ;;  %1149 = vrot.lane.b32.xlu0 %v4156_v27, %s4054_s26 }
  0x95   : > { %v312_v43 = vpop.permute.xlu0 %311  ;;  %v314_v44 = vpop.permute.xlu1 %313 }
  0x96   : > { %v4296_v56 = vsel %vm355_vm0, %v310_v41, %v312_v43  ;;  %v4306_v59 = vsel %vm355_vm0, %v312_v43, %v314_v44 }
  0x97   : > { %1145 = vrot.lane.b32.xlu1 %v4173_v32, %s4054_s26  ;;  %1153 = vrot.lane.b32.xlu0 %v4166_v30, %s4054_s26 }
  0x99   : > { %v316_v45 = vpop.permute.xlu0 %315  ;;  %v4272_v46 = vpop.permute.xlu1 %317 }
  0x9a   : > { %v4309_v60 = vsel %vm355_vm0, %v314_v44, %v316_v45  ;;  %v4320_v63 = vsel %vm355_vm0, %v316_v45, %v4272_v46 }
  0x9b   : > { %915 = vrot.lane.b32.xlu1 %v4153_v26, %s4055_s27  ;;  %913 = vrot.lane.b32.xlu0 %v4173_v32, %s4055_s27 }
  0x9d   : > { %v4279_v48 = vpop.permute.xlu0 %319  ;;  %v4284_v49 = vpop.permute.xlu1 %321 }
  0x9f   : > { %919 = vrot.lane.b32.xlu1 %v4163_v29, %s4055_s27  ;;  %917 = vrot.lane.b32.xlu0 %v4156_v27, %s4055_s27 }
  0xa1   : > { %v4290_v52 = vpop.permute.xlu0 %323  ;;  %v4293_v54 = vpop.permute.xlu1 %325 }
  0xa3   : > { %1276 = vrot.lane.b32.xlu1 %v4173_v32, %s4056_s28  ;;  %911 = vrot.lane.b32.xlu0 %v4196_v33, %s4055_s27 }
  0xa5   : > { %v4301_v57 = vpop.permute.xlu0 %329  ;;  %v4311_v61 = vpop.permute.xlu1 %327 }
  0xa7   : > { %1280 = vrot.lane.b32.xlu1 %v4156_v27, %s4056_s28  ;;  %1278 = vrot.lane.b32.xlu0 %v4153_v26, %s4056_s28 }
  0xa9   : > { %v4326_v0 = vpop.permute.xlu0 %333  ;;  %v4328_v1 = vpop.permute.xlu1 %331 }
  0xab   : > { %1274 = vrot.lane.b32.xlu1 %v4196_v33, %s4056_s28  ;;  %1282 = vrot.lane.b32.xlu0 %v4163_v29, %s4056_s28 }
  0xaf   : > { %752 = vrot.lane.b32.xlu1 %v4153_v26, %s4057_s29  ;;  %750 = vrot.lane.b32.xlu0 %v4173_v32, %s4057_s29 }
  0xb3   : > { %756 = vrot.lane.b32.xlu1 %v4163_v29, %s4057_s29  ;;  %754 = vrot.lane.b32.xlu0 %v4156_v27, %s4057_s29 }
  0xb7   : > { %585 = vrot.lane.b32.xlu1 %v4196_v33, %s4053_s25  ;;  %748 = vrot.lane.b32.xlu0 %v4196_v33, %s4057_s29 }
  0xbb   : > { %597 = vrot.lane.b32.xlu1 %v4225_v38, %s4053_s25  ;;  %1143 = vrot.lane.b32.xlu0 %v4196_v33, %s4054_s26 }
  0xbf   : > { %601 = vrot.lane.b32.xlu1 %v4235_v40, %s4053_s25  ;;  %599 = vrot.lane.b32.xlu0 %v4232_v39, %s4053_s25 }
  0xc3   : > { %1155 = vrot.lane.b32.xlu1 %v4225_v38, %s4054_s26  ;;  %603 = vrot.lane.b32.xlu0 %v4242_v42, %s4053_s25 }
  0xc7   : > { %1159 = vrot.lane.b32.xlu1 %v4235_v40, %s4054_s26  ;;  %1157 = vrot.lane.b32.xlu0 %v4232_v39, %s4054_s26 }
  0xcb   : > { %921 = vrot.lane.b32.xlu1 %v4166_v30, %s4055_s27  ;;  %1161 = vrot.lane.b32.xlu0 %v4242_v42, %s4054_s26 }
  0xcf   : > { %925 = vrot.lane.b32.xlu1 %v4232_v39, %s4055_s27  ;;  %923 = vrot.lane.b32.xlu0 %v4225_v38, %s4055_s27 }
  0xd3   : > { %1284 = vrot.lane.b32.xlu1 %v4166_v30, %s4056_s28  ;;  %927 = vrot.lane.b32.xlu0 %v4235_v40, %s4055_s27 }
  0xd7   : > { %1288 = vrot.lane.b32.xlu1 %v4232_v39, %s4056_s28  ;;  %1286 = vrot.lane.b32.xlu0 %v4225_v38, %s4056_s28 }
  0xdb   : > { %758 = vrot.lane.b32.xlu1 %v4166_v30, %s4057_s29  ;;  %1290 = vrot.lane.b32.xlu0 %v4235_v40, %s4056_s28 }
  0xdf   : > { %762 = vrot.lane.b32.xlu1 %v4232_v39, %s4057_s29  ;;  %760 = vrot.lane.b32.xlu0 %v4225_v38, %s4057_s29 }
  0xe3   : > { %335 = vrot.lane.b32.xlu1 %v247_v47, %s4052_s24  ;;  %764 = vrot.lane.b32.xlu0 %v4235_v40, %s4057_s29 }
  0xe7   : > { %339 = vrot.lane.b32.xlu1 %v249_v50, %s4052_s24  ;;  %337 = vrot.lane.b32.xlu0 %v248_v51, %s4052_s24  ;;  %v251_v51 = vld [vmem:[%s4106_s23 + $0xd0] sm:$0xff] }
  0xeb   : > { %605 = vrot.lane.b32.xlu1 %v4296_v56, %s4053_s25  ;;  %341 = vrot.lane.b32.xlu0 %v250_v53, %s4052_s24 }
  0xef   : > { %609 = vrot.lane.b32.xlu1 %v4309_v60, %s4053_s25  ;;  %607 = vrot.lane.b32.xlu0 %v4306_v59, %s4053_s25 }
  0xf3   : > { %1163 = vrot.lane.b32.xlu1 %v4296_v56, %s4054_s26  ;;  %611 = vrot.lane.b32.xlu0 %v4320_v63, %s4053_s25 }
  0xf7   : > { %1167 = vrot.lane.b32.xlu1 %v4309_v60, %s4054_s26  ;;  %1165 = vrot.lane.b32.xlu0 %v4306_v59, %s4054_s26 }
  0xf9   : > { %v590_v5 = vpop.permute.xlu0 %589  ;;  %v592_v6 = vpop.permute.xlu1 %591 }
  0xfa   : > { %v4341_v9 = vsel %vm651_vm1, %v590_v5, %v592_v6 }
  0xfb   : > { %929 = vrot.lane.b32.xlu1 %v4242_v42, %s4055_s27  ;;  %1169 = vrot.lane.b32.xlu0 %v4320_v63, %s4054_s26 }
  0xfc   : > { %3797 = vmatprep.subr.msk.mxu0 %vm4336_vm2, %v4341_v9 }
  0xfd   : > { %v594_v11 = vpop.permute.xlu0 %593  ;;  %v4350_v12 = vpop.permute.xlu1 %595 }
  0xfe   : > { %v4359_v15 = vsel %vm651_vm1, %v594_v11, %v4350_v12  ;;  %v4366_v17 = vsel %vm651_vm1, %v592_v6, %v594_v11  ;;  %v252_v6 = vld [vmem:[%s4106_s23 + $0xd8] sm:$0xff] }
  0xff   : > { %933 = vrot.lane.b32.xlu1 %v4306_v59, %s4055_s27  ;;  %931 = vrot.lane.b32.xlu0 %v4296_v56, %s4055_s27 }
 0x100   : > { %3810 = vmatprep.subr.msk.mxu1 %vm4352_vm3, %v4359_v15 }
 0x101   : > { %3811 = vmatpush1.msk.msra.mxu1 %vm4361_vm4, %v4366_v17  ;;  %v4378_v18 = vpop.permute.xlu0 %587  ;;  %v1148_v19 = vpop.permute.xlu1 %1147 }
 0x102   : > { %v4386_v21 = vsel %vm651_vm1, %v4378_v18, %v590_v5 }
 0x103   : > { %1292 = vrot.lane.b32.xlu1 %v4242_v42, %s4056_s28  ;;  %935 = vrot.lane.b32.xlu0 %v4309_v60, %s4055_s27 }
 0x104   : > { %3798 = vmatpush1.msk.msra.mxu0 %vm4380_vm5, %v4386_v21 }
 0x105   : > { %v1150_v22 = vpop.permute.xlu0 %1149  ;;  %v1152_v23 = vpop.permute.xlu1 %1151 }
 0x106   : > { %v4396_v24 = vsel %vm1209_vm6, %v1148_v19, %v1150_v22  ;;  %v4434_v43 = vsel %vm1209_vm6, %v1150_v22, %v1152_v23 }
 0x107   : > { %1296 = vrot.lane.b32.xlu1 %v4306_v59, %s4056_s28  ;;  %1294 = vrot.lane.b32.xlu0 %v4296_v56, %s4056_s28 }
 0x108   : > { %1434 = vmatprep.subr.mxu0 %v4396_v24 }
 0x109   : > { %v4403_v25 = vpop.permute.xlu0 %1153  ;;  %v4405_v28 = vpop.permute.xlu1 %1145 }
 0x10a   : > { %v4409_v31 = vsel %vm1209_vm6, %v4405_v28, %v1148_v19  ;;  %v4413_v35 = vsel %vm1209_vm6, %v1152_v23, %v4403_v25  ;;  %v4484_v19 = vsel %vm355_vm0, %v4272_v46, %v4279_v48 }
 0x10b   : > { %766 = vrot.lane.b32.xlu1 %v4242_v42, %s4057_s29  ;;  %1298 = vrot.lane.b32.xlu0 %v4309_v60, %s4056_s28 }
 0x10c   : > { %1435 = vmatpush1.msra.mxu0 %v4409_v31  ;;  %1505 = vmatprep.subr.mxu1 %v4413_v35 }
 0x10d   : > { %3799 = vmatprep.subr.msk.mxu0 %vm4415_vm7, %v4153_v26  ;;  %1506 = vmatpush1.msra.mxu1 %v4434_v43  ;;  %v914_v45 = vpop.permute.xlu0 %913  ;;  %v916_v47 = vpop.permute.xlu1 %915 }
 0x10e   : > { %3800 = vmatpush1.msk.msra.mxu0 %vm4423_vm8, %v4173_v32  ;;  %3812 = vmatprep.subr.msk.mxu1 %vm4427_vm9, %v4163_v29  ;;  %v979_v50 = vsel %vm977_vm10, %v914_v45, %v916_v47 }
 0x10f   : > { %3813 = vmatpush1.msk.msra.mxu1 %vm4436_vm11, %v4156_v27  ;;  %770 = vrot.lane.b32.xlu1 %v4306_v59, %s4057_s29 }
 0x110   : > { %768 = vrot.lane.b32.xlu0 %v4296_v56, %s4057_s29  ;;  %3801 = vmatprep.subr.msk.mxu0 %vm4336_vm2, %v979_v50 }
 0x111   : > { %v918_v53 = vpop.permute.xlu0 %917  ;;  %v4461_v55 = vpop.permute.xlu1 %919 }
 0x112   : > { %v981_v62 = vsel %vm977_vm10, %v918_v53, %v4461_v55  ;;  %v980_v2 = vsel %vm977_vm10, %v916_v47, %v918_v53  ;;  %v4495_v47 = vsel %vm355_vm0, %v4284_v49, %v4290_v52 }
 0x113   : > { %343 = vrot.lane.b32.xlu1 %v251_v51, %s4052_s24  ;;  %3814 = vmatprep.subr.msk.mxu1 %vm4352_vm3, %v981_v62  ;;  %v4503_v51 = vsel %vm355_vm0, %v4279_v48, %v4284_v49  ;;  %v4514_v48 = vsel %vm355_vm0, %v4290_v52, %v4293_v54 }
 0x114   : > { %772 = vrot.lane.b32.xlu0 %v4309_v60, %s4057_s29  ;;  %3815 = vmatpush1.msk.msra.mxu1 %vm4361_vm4, %v980_v2 }
 0x115   : > { %v912_v4 = vpop.permute.xlu0 %911  ;;  %v1277_v5 = vpop.permute.xlu1 %1276 }
 0x116   : > { %v978_v8 = vsel %vm977_vm10, %v912_v4, %v914_v45 }
 0x117   : > { %347 = vrot.lane.b32.xlu1 %v253_v3, %s4052_s24  ;;  %3802 = vmatpush1.msk.msra.mxu0 %vm4380_vm5, %v978_v8 }
 0x118   : > { %345 = vrot.lane.b32.xlu0 %v252_v6, %s4052_s24 }
 0x119   : > { %v1279_v10 = vpop.permute.xlu0 %1278  ;;  %v1281_v11 = vpop.permute.xlu1 %1280 }
 0x11a   : > { %v1342_v22 = vsel %vm1340_vm12, %v1277_v5, %v1279_v10  ;;  %v1343_v53 = vsel %vm1340_vm12, %v1279_v10, %v1281_v11 }
 0x11b   : > { %613 = vrot.lane.b32.xlu1 %v4484_v19, %s4053_s25  ;;  %1440 = vmatprep.subr.mxu0 %v1342_v22 }
 0x11c   : > { %349 = vrot.lane.b32.xlu0 %v254_v14, %s4052_s24  ;;  %v427_v14 = vadd.s32 512, %v4303_v58 }
 0x11d   : > { %v4490_v23 = vpop.permute.xlu0 %1282  ;;  %v1275_v45 = vpop.permute.xlu1 %1274 }
 0x11e   : > { %v1341_v50 = vsel %vm1340_vm12, %v1275_v45, %v1277_v5  ;;  %v1344_v46 = vsel %vm1340_vm12, %v1281_v11, %v4490_v23  ;;  %v428_v11 = vadd.s32 640, %v4303_v58  ;;  %v459_v7 = vand.u32 63, %v427_v14  ;;  %v255_v14 = vld [vmem:[%s4106_s23 + $0xf0] sm:$0xff] }
 0x11f   : > { %617 = vrot.lane.b32.xlu1 %v4495_v47, %s4053_s25  ;;  %1441 = vmatpush1.msra.mxu0 %v1341_v50 }
 0x120   : > { %615 = vrot.lane.b32.xlu0 %v4503_v51, %s4053_s25  ;;  %1511 = vmatprep.subr.mxu1 %v1344_v46  ;;  %v460_v22 = vand.u32 63, %v428_v11 }
 0x121   : > { %1512 = vmatpush1.msra.mxu1 %v1343_v53  ;;  %v751_v62 = vpop.permute.xlu0 %750  ;;  %v753_v2 = vpop.permute.xlu1 %752 }
 0x122   : > { %v816_v3 = vsel %vm814_vm13, %v751_v62, %v753_v2  ;;  %vm4587_vm15 = vcmp.lt.s32.totalorder %v460_v22, 63 }
 0x123   : > { %1171 = vrot.lane.b32.xlu1 %v4484_v19, %s4054_s26  ;;  %3803 = vmatprep.subr.msk.mxu0 %vm4415_vm7, %v816_v3 }
 0x124   : > { %619 = vrot.lane.b32.xlu0 %v4514_v48, %s4053_s25 }
 0x125   : > { %v755_v49 = vpop.permute.xlu0 %754  ;;  %v4522_v4 = vpop.permute.xlu1 %756 }
 0x126   : > { %v818_v5 = vsel %vm814_vm13, %v755_v49, %v4522_v4  ;;  %v817_v6 = vsel %vm814_vm13, %v753_v2, %v755_v49 }
 0x127   : > { %1175 = vrot.lane.b32.xlu1 %v4495_v47, %s4054_s26  ;;  %3816 = vmatprep.subr.msk.mxu1 %vm4427_vm9, %v818_v5 }
 0x128   : > { %1173 = vrot.lane.b32.xlu0 %v4503_v51, %s4054_s26  ;;  %3817 = vmatpush1.msk.msra.mxu1 %vm4436_vm11, %v817_v6 }
 0x129   : > { %v749_v52 = vpop.permute.xlu0 %748  ;;  %3818 = vmatprep.subr.msk.mxu1 %vm4352_vm3, %v4366_v17  ;;  %v586_v8 = vpop.permute.xlu1 %585  ;;  %vm4606_vm3 = vcmp.lt.s32.totalorder %v462_v20, 63 }
 0x12a   : > { %v815_v10 = vsel %vm814_vm13, %v749_v52, %v751_v62  ;;  %3819 = vmatpush1.msk.msra.mxu1 %vm4361_vm4, %v4341_v9  ;;  %v652_v9 = vsel %vm651_vm1, %v586_v8, %v4378_v18  ;;  %v429_v18 = vadd.s32 768, %v4303_v58 }
 0x12b   : > { %937 = vrot.lane.b32.xlu1 %v4320_v63, %s4055_s27  ;;  %3804 = vmatpush1.msk.msra.mxu0 %vm4423_vm8, %v815_v10 }
 0x12c   : > { %1177 = vrot.lane.b32.xlu0 %v4514_v48, %s4054_s26  ;;  %1517 = vmatprep.subr.mxu1 %v4434_v43 }
 0x12d   : > { %3805 = vmatprep.subr.msk.mxu0 %vm4336_vm2, %v4386_v21  ;;  %1518 = vmatpush1.msra.mxu1 %v4396_v24  ;;  %v1144_v16 = vpop.permute.xlu0 %1143  ;;  %v598_v17 = vpop.permute.xlu1 %597  ;;  %vm4598_vm2 = vcmp.lt.s32.totalorder %v459_v7, 63 }
 0x12e   : > { %3806 = vmatpush1.msk.msra.mxu0 %vm4380_vm5, %v652_v9  ;;  %3820 = vmatprep.subr.msk.mxu1 %vm4427_vm9, %v4156_v27  ;;  %v1210_v43 = vsel %vm1209_vm6, %v1144_v16, %v4405_v28  ;;  %v4579_v27 = vld [vmem:[%s6175_s1] sm:$0xff]  ;;  %v4612_v36 = vsel %vm651_vm1, %v4350_v12, %v598_v17  ;;  %vm4650_vm5 = vcmp.gt.s32.totalorder %v460_v22, 0 }
 0x12f   : > { %1446 = vmatprep.subr.mxu0 %v4409_v31  ;;  %3821 = vmatpush1.msk.msra.mxu1 %vm4436_vm11, %v4153_v26  ;;  %v461_v31 = vand.u32 63, %v429_v18  ;;  %v4721_v18 = vsel %vm355_vm0, %v4293_v54, %v4311_v61  ;;  %v4735_v54 = vsel %vm355_vm0, %v4311_v61, %v4301_v57  ;;  %v432_v26 = vadd.s32 1152, %v4303_v58 }
 0x130   : > { %941 = vrot.lane.b32.xlu1 %v4503_v51, %s4055_s27  ;;  %939 = vrot.lane.b32.xlu0 %v4484_v19, %s4055_s27 }
 0x131   : > { %1447 = vmatpush1.msra.mxu0 %v1210_v43  ;;  %v600_v21 = vpop.permute.xlu0 %599  ;;  %v602_v24 = vpop.permute.xlu1 %601  ;;  %3822 = vmatmul.mubr.msk.f32.vlgmr.msra.gmra.mxu1 %vm1414_vm14, %v4579_v27  ;;  %vm4628_vm4 = vcmp.lt.s32.totalorder %v461_v31, 63  ;;  %vm4691_vm9 = vcmp.gt.s32.totalorder %v461_v31, 0  ;;  %v256_v43 = vld [vmem:[%s4106_s23 + $0xf8] sm:$0xff] }
 0x132   : > { %3807 = vmatprep.subr.msk.mxu0 %vm4415_vm7, %v4173_v32  ;;  %v4592_v28 = vsel %vm651_vm1, %v598_v17, %v600_v21  ;;  %1695 = vmatprep.mubr.f32.mxu1 %v4058_v34  ;;  %v4637_v45 = vsel %vm651_vm1, %v600_v21, %v602_v24  ;;  %vm4662_vm7 = vcmp.gt.s32.totalorder %v459_v7, 0 }
 0x133   : > { %3808 = vmatpush1.msk.msra.mxu0 %vm4423_vm8, %v4196_v33  ;;  %vm4680_vm8 = vcmp.gt.s32.totalorder %v462_v20, 0 }
 0x134   : > { %1300 = vrot.lane.b32.xlu1 %v4320_v63, %s4056_s28  ;;  %943 = vrot.lane.b32.xlu0 %v4495_v47, %s4055_s27 }
 0x135   : > { %3823 = vmatprep.subr.msk.mxu0 %vm4587_vm15, %v4592_v28  ;;  %3809 = vmatmul.mubr.msk.f32.vlgmr.msra.gmra.mxu0 %vm1414_vm14, %v4579_v27  ;;  %v4619_v33 = vpop.permute.xlu0 %603  ;;  %v1156_v37 = vpop.permute.xlu1 %1155 }
 0x136   : > { %3824 = vmatpush1.msk.msra.mxu0 %vm4598_vm2, %v4612_v36  ;;  %v4626_v44 = vsel %vm651_vm1, %v602_v24, %v4619_v33  ;;  %1624 = vmatprep.mubr.f32.mxu0 %v4058_v34  ;;  %v4660_v2 = vsel %vm1209_vm6, %v4403_v25, %v1156_v37  ;;  %v4740_v24 = vsel %vm355_vm0, %v4301_v57, %v4328_v1 }
 0x137   : > { %3836 = vmatprep.subr.msk.mxu1 %vm4606_vm3, %v4626_v44  ;;  %v4755_v57 = vsel %vm355_vm0, %v4328_v1, %v4326_v0 }
 0x138   : > { %1304 = vrot.lane.b32.xlu1 %v4503_v51, %s4056_s28  ;;  %1302 = vrot.lane.b32.xlu0 %v4484_v19, %s4056_s28 }
 0x139   : > { %3837 = vmatpush1.msk.msra.mxu1 %vm4628_vm4, %v4637_v45  ;;  %v1158_v50 = vpop.permute.xlu0 %1157  ;;  %v1160_v46 = vpop.permute.xlu1 %1159 }
 0x13a   : > { %v4647_v53 = vsel %vm1209_vm6, %v1156_v37, %v1158_v50  ;;  %v4689_v52 = vsel %vm1209_vm6, %v1158_v50, %v1160_v46 }
 0x13b   : > { %1576 = vmatprep.subr.mxu0 %v4647_v53 }
 0x13c   : > { %774 = vrot.lane.b32.xlu1 %v4320_v63, %s4057_s29  ;;  %1306 = vrot.lane.b32.xlu0 %v4495_v47, %s4056_s28 }
 0x13d   : > { %1577 = vmatpush1.msra.mxu0 %v4660_v2  ;;  %v4667_v49 = vpop.permute.xlu0 %1161  ;;  %v922_v5 = vpop.permute.xlu1 %921 }
 0x13e   : > { %3825 = vmatprep.subr.msk.mxu0 %vm4650_vm5, %v4225_v38  ;;  %v4674_v6 = vsel %vm1209_vm6, %v1160_v46, %v4667_v49  ;;  %v982_v9 = vsel %vm977_vm10, %v4461_v55, %v922_v5 }
 0x13f   : > { %3826 = vmatpush1.msk.msra.mxu0 %vm4662_vm7, %v4166_v30  ;;  %1647 = vmatprep.subr.mxu1 %v4674_v6 }
 0x140   : > { %776 = vrot.lane.b32.xlu0 %v4484_v19, %s4057_s29  ;;  %778 = vrot.lane.b32.xlu1 %v4503_v51, %s4057_s29 }
 0x141   : > { %1648 = vmatpush1.msra.mxu1 %v4689_v52  ;;  %v924_v10 = vpop.permute.xlu0 %923  ;;  %v926_v11 = vpop.permute.xlu1 %925 }
 0x142   : > { %3838 = vmatprep.subr.msk.mxu1 %vm4680_vm8, %v4235_v40  ;;  %v983_v13 = vsel %vm977_vm10, %v922_v5, %v924_v10  ;;  %v984_v55 = vsel %vm977_vm10, %v924_v10, %v926_v11 }
 0x143   : > { %3839 = vmatpush1.msk.msra.mxu1 %vm4691_vm9, %v4232_v39  ;;  %3827 = vmatprep.subr.msk.mxu0 %vm4587_vm15, %v983_v13 }
 0x144   : > { %780 = vrot.lane.b32.xlu0 %v4495_v47, %s4057_s29  ;;  %351 = vrot.lane.b32.xlu1 %v255_v14, %s4052_s24 }
 0x145   : > { %3828 = vmatpush1.msk.msra.mxu0 %vm4598_vm2, %v982_v9  ;;  %v4713_v16 = vpop.permute.xlu0 %927  ;;  %v1285_v17 = vpop.permute.xlu1 %1284 }
 0x146   : > { %v985_v22 = vsel %vm977_vm10, %v926_v11, %v4713_v16  ;;  %v1345_v31 = vsel %vm1340_vm12, %v4490_v23, %v1285_v17 }
 0x147   : > { %3840 = vmatprep.subr.msk.mxu1 %vm4606_vm3, %v985_v22 }
 0x148   : > { %353 = vrot.lane.b32.xlu0 %v256_v43, %s4052_s24  ;;  %621 = vrot.lane.b32.xlu1 %v4721_v18, %s4053_s25 }
 0x149   : > { %3841 = vmatpush1.msk.msra.mxu1 %vm4628_vm4, %v984_v55  ;;  %v1287_v7 = vpop.permute.xlu0 %1286  ;;  %v1289_v20 = vpop.permute.xlu1 %1288 }
 0x14a   : > { %v1346_v21 = vsel %vm1340_vm12, %v1285_v17, %v1287_v7  ;;  %v1347_v23 = vsel %vm1340_vm12, %v1287_v7, %v1289_v20 }
 0x14b   : > { %1582 = vmatprep.subr.mxu0 %v1346_v21 }
 0x14c   : > { %623 = vrot.lane.b32.xlu0 %v4735_v54, %s4053_s25  ;;  %625 = vrot.lane.b32.xlu1 %v4740_v24, %s4053_s25 }
 0x14d   : > { %1583 = vmatpush1.msra.mxu0 %v1345_v31  ;;  %v4748_v37 = vpop.permute.xlu0 %1290  ;;  %v759_v61 = vpop.permute.xlu1 %758 }
 0x14e   : > { %v1348_v50 = vsel %vm1340_vm12, %v1289_v20, %v4748_v37  ;;  %v819_v1 = vsel %vm814_vm13, %v4522_v4, %v759_v61  ;;  %v438_v20 = vadd.s32 1920, %v4303_v58 }
 0x14f   : > { %1653 = vmatprep.subr.mxu1 %v1348_v50 }
 0x150   : > { %627 = vrot.lane.b32.xlu0 %v4755_v57, %s4053_s25  ;;  %1179 = vrot.lane.b32.xlu1 %v4721_v18, %s4054_s26 }
 0x151   : > { %1654 = vmatpush1.msra.mxu1 %v1347_v23  ;;  %v761_v46 = vpop.permute.xlu0 %760  ;;  %v763_v5 = vpop.permute.xlu1 %762 }
 0x152   : > { %v820_v10 = vsel %vm814_vm13, %v759_v61, %v761_v46  ;;  %v821_v13 = vsel %vm814_vm13, %v761_v46, %v763_v5 }
 0x153   : > { %3829 = vmatprep.subr.msk.mxu0 %vm4650_vm5, %v820_v10 }
 0x154   : > { %1181 = vrot.lane.b32.xlu0 %v4735_v54, %s4054_s26  ;;  %1183 = vrot.lane.b32.xlu1 %v4740_v24, %s4054_s26 }
 0x155   : > { %3830 = vmatpush1.msk.msra.mxu0 %vm4662_vm7, %v819_v1  ;;  %v4773_v11 = vpop.permute.xlu0 %764  ;;  %v4775_v14 = vpop.permute.xlu1 %335 }
 0x156   : > { %3831 = vmatprep.subr.msk.mxu0 %vm4587_vm15, %v4612_v36  ;;  %v822_v4 = vsel %vm814_vm13, %v763_v5, %v4773_v11  ;;  %v431_v36 = vadd.s32 1024, %v4303_v58  ;;  %v4940_v10 = vsel %vm355_vm0, %v4326_v0, %v4775_v14 }
 0x157   : > { %3832 = vmatpush1.msk.msra.mxu0 %vm4598_vm2, %v4359_v15  ;;  %3842 = vmatprep.subr.msk.mxu1 %vm4680_vm8, %v822_v4 }
 0x158   : > { %1185 = vrot.lane.b32.xlu0 %v4755_v57, %s4054_s26  ;;  %945 = vrot.lane.b32.xlu1 %v4514_v48, %s4055_s27  ;;  %v463_v12 = vand.u32 63, %v431_v36 }
 0x159   : > { %1588 = vmatprep.subr.mxu0 %v4660_v2  ;;  %3843 = vmatpush1.msk.msra.mxu1 %vm4691_vm9, %v821_v13  ;;  %v4796_v41 = vpop.permute.xlu0 %337  ;;  %v4798_v15 = vpop.permute.xlu1 %339  ;;  %v434_v2 = vadd.s32 1408, %v4303_v58 }
 0x15a   : > { %1589 = vmatpush1.msra.mxu0 %v4413_v35  ;;  %3844 = vmatprep.subr.msk.mxu1 %vm4606_vm3, %v4637_v45  ;;  %v464_v35 = vand.u32 63, %v432_v26  ;;  %vm4841_vm15 = vcmp.lt.s32.totalorder %v463_v12, 63  ;;  %v4957_v13 = vsel %vm355_vm0, %v4775_v14, %v4796_v41  ;;  %v4966_v36 = vsel %vm355_vm0, %v4796_v41, %v4798_v15 }
 0x15b   : > { %3833 = vmatprep.subr.msk.mxu0 %vm4650_vm5, %v4166_v30  ;;  %3845 = vmatpush1.msk.msra.mxu1 %vm4628_vm4, %v4592_v28  ;;  %v433_v28 = vadd.s32 1280, %v4303_v58  ;;  %v466_v45 = vand.u32 63, %v434_v2  ;;  %vm4904_vm5 = vcmp.gt.s32.totalorder %v463_v12, 0 }
 0x15c   : > { %3834 = vmatpush1.msk.msra.mxu0 %vm4662_vm7, %v4163_v29  ;;  %947 = vrot.lane.b32.xlu0 %v4721_v18, %s4055_s27  ;;  %vm4835_vm11 = vcmp.lt.s32.totalorder %v464_v35, 63  ;;  %vm4895_vm4 = vcmp.gt.s32.totalorder %v464_v35, 0 }
 0x15d   : > { %949 = vrot.lane.b32.xlu1 %v4735_v54, %s4055_s27  ;;  %1659 = vmatprep.subr.mxu1 %v4689_v52  ;;  %v4820_v30 = vpop.permute.xlu0 %341  ;;  %v606_v32 = vpop.permute.xlu1 %605  ;;  %vm4863_vm2 = vcmp.lt.s32.totalorder %v466_v45, 63  ;;  %vm4925_vm7 = vcmp.gt.s32.totalorder %v466_v45, 0 }
 0x15e   : > { %1660 = vmatpush1.msra.mxu1 %v4647_v53  ;;  %3835 = vmatmul.mubr.msk.f32.vlgmr.msra.gmra.mxu0 %vm1414_vm14, %v4579_v27  ;;  %v4853_v25 = vsel %vm651_vm1, %v4619_v33, %v606_v32  ;;  %v4981_v41 = vsel %vm355_vm0, %v4798_v15, %v4820_v30 }
 0x15f   : > { %3846 = vmatprep.subr.msk.mxu1 %vm4680_vm8, %v4232_v39  ;;  %1766 = vmatprep.mubr.f32.mxu0 %v4058_v34 }
 0x160   : > { %3847 = vmatpush1.msk.msra.mxu1 %vm4691_vm9, %v4225_v38  ;;  %951 = vrot.lane.b32.xlu0 %v4740_v24, %s4055_s27  ;;  %v465_v38 = vand.u32 63, %v433_v28 }
 0x161   : > { %1308 = vrot.lane.b32.xlu1 %v4514_v48, %s4056_s28  ;;  %v608_v53 = vpop.permute.xlu0 %607  ;;  %v610_v62 = vpop.permute.xlu1 %609  ;;  %3848 = vmatmul.mubr.msk.f32.vlgmr.msra.gmra.mxu1 %vm1414_vm14, %v4579_v27 }
 0x162   : > { %v4848_v3 = vsel %vm651_vm1, %v606_v32, %v608_v53  ;;  %1837 = vmatprep.mubr.f32.mxu1 %v4058_v34  ;;  %vm4871_vm3 = vcmp.lt.s32.totalorder %v465_v38, 63  ;;  %v4880_v43 = vsel %vm651_vm1, %v608_v53, %v610_v62  ;;  %vm4933_vm8 = vcmp.gt.s32.totalorder %v465_v38, 0 }
 0x163   : > { %3849 = vmatprep.subr.msk.mxu0 %vm4835_vm11, %v4848_v3 }
 0x164   : > { %1310 = vrot.lane.b32.xlu0 %v4721_v18, %s4056_s28  ;;  %3850 = vmatpush1.msk.msra.mxu0 %vm4841_vm15, %v4853_v25 }
 0x165   : > { %1312 = vrot.lane.b32.xlu1 %v4735_v54, %s4056_s28  ;;  %v4869_v33 = vpop.permute.xlu0 %611  ;;  %v1164_v8 = vpop.permute.xlu1 %1163 }
 0x166   : > { %v4877_v17 = vsel %vm651_vm1, %v610_v62, %v4869_v33  ;;  %v4902_v21 = vsel %vm1209_vm6, %v4667_v49, %v1164_v8 }
 0x167   : > { %3862 = vmatprep.subr.msk.mxu1 %vm4863_vm2, %v4877_v17 }
 0x168   : > { %1314 = vrot.lane.b32.xlu0 %v4740_v24, %s4056_s28  ;;  %3863 = vmatpush1.msk.msra.mxu1 %vm4871_vm3, %v4880_v43 }
 0x169   : > { %782 = vrot.lane.b32.xlu1 %v4514_v48, %s4057_s29  ;;  %v1166_v22 = vpop.permute.xlu0 %1165  ;;  %v1168_v55 = vpop.permute.xlu1 %1167 }
 0x16a   : > { %v4893_v7 = vsel %vm1209_vm6, %v1164_v8, %v1166_v22  ;;  %v4931_v46 = vsel %vm1209_vm6, %v1166_v22, %v1168_v55 }
 0x16b   : > { %1718 = vmatprep.subr.mxu0 %v4893_v7 }
 0x16c   : > { %784 = vrot.lane.b32.xlu0 %v4721_v18, %s4057_s29  ;;  %1719 = vmatpush1.msra.mxu0 %v4902_v21 }
 0x16d   : > { %786 = vrot.lane.b32.xlu1 %v4735_v54, %s4057_s29  ;;  %v4913_v61 = vpop.permute.xlu0 %1169  ;;  %3851 = vmatprep.subr.msk.mxu0 %vm4895_vm4, %v4296_v56  ;;  %v930_v49 = vpop.permute.xlu1 %929 }
 0x16e   : > { %3852 = vmatpush1.msk.msra.mxu0 %vm4904_vm5, %v4242_v42  ;;  %v4923_v50 = vsel %vm1209_vm6, %v1168_v55, %v4913_v61  ;;  %v986_v26 = vsel %vm977_vm10, %v4713_v16, %v930_v49 }
 0x16f   : > { %1789 = vmatprep.subr.mxu1 %v4923_v50 }
 0x170   : > { %788 = vrot.lane.b32.xlu0 %v4740_v24, %s4057_s29  ;;  %1790 = vmatpush1.msra.mxu1 %v4931_v46 }
 0x171   : > { %629 = vrot.lane.b32.xlu1 %v4940_v10, %s4053_s25  ;;  %v932_v1 = vpop.permute.xlu0 %931  ;;  %3864 = vmatprep.subr.msk.mxu1 %vm4925_vm7, %v4309_v60  ;;  %v934_v4 = vpop.permute.xlu1 %933 }
 0x172   : > { %3865 = vmatpush1.msk.msra.mxu1 %vm4933_vm8, %v4306_v59  ;;  %v987_v0 = vsel %vm977_vm10, %v930_v49, %v932_v1  ;;  %v988_v2 = vsel %vm977_vm10, %v932_v1, %v934_v4 }
 0x173   : > { %3853 = vmatprep.subr.msk.mxu0 %vm4835_vm11, %v987_v0 }
 0x174   : > { %631 = vrot.lane.b32.xlu0 %v4957_v13, %s4053_s25  ;;  %3854 = vmatpush1.msk.msra.mxu0 %vm4841_vm15, %v986_v26 }
 0x175   : > { %633 = vrot.lane.b32.xlu1 %v4966_v36, %s4053_s25  ;;  %v4974_v14 = vpop.permute.xlu0 %935  ;;  %v1293_v16 = vpop.permute.xlu1 %1292 }
 0x176   : > { %v989_v35 = vsel %vm977_vm10, %v934_v4, %v4974_v14  ;;  %v1349_v15 = vsel %vm1340_vm12, %v4748_v37, %v1293_v16 }
 0x177   : > { %3866 = vmatprep.subr.msk.mxu1 %vm4863_vm2, %v989_v35 }
 0x178   : > { %635 = vrot.lane.b32.xlu0 %v4981_v41, %s4053_s25  ;;  %3867 = vmatpush1.msk.msra.mxu1 %vm4871_vm3, %v988_v2 }
 0x179   : > { %1187 = vrot.lane.b32.xlu1 %v4940_v10, %s4054_s26  ;;  %v1295_v32 = vpop.permute.xlu0 %1294  ;;  %v1297_v12 = vpop.permute.xlu1 %1296 }
 0x17a   : > { %v1350_v28 = vsel %vm1340_vm12, %v1293_v16, %v1295_v32  ;;  %v1351_v38 = vsel %vm1340_vm12, %v1295_v32, %v1297_v12 }
 0x17b   : > { %1724 = vmatprep.subr.mxu0 %v1350_v28 }
 0x17c   : > { %1189 = vrot.lane.b32.xlu0 %v4957_v13, %s4054_s26  ;;  %1725 = vmatpush1.msra.mxu0 %v1349_v15 }
 0x17d   : > { %1191 = vrot.lane.b32.xlu1 %v4966_v36, %s4054_s26  ;;  %v4999_v45 = vpop.permute.xlu0 %1298  ;;  %v767_v53 = vpop.permute.xlu1 %766 }
 0x17e   : > { %v1352_v62 = vsel %vm1340_vm12, %v1297_v12, %v4999_v45  ;;  %v823_v55 = vsel %vm814_vm13, %v4773_v11, %v767_v53 }
 0x17f   : > { %1795 = vmatprep.subr.mxu1 %v1352_v62 }
 0x180   : > { %1193 = vrot.lane.b32.xlu0 %v4981_v41, %s4054_s26  ;;  %1796 = vmatpush1.msra.mxu1 %v1351_v38 }
 0x181   : > { %953 = vrot.lane.b32.xlu1 %v4755_v57, %s4055_s27  ;;  %v771_v37 = vpop.permute.xlu1 %770 }
 0x182   : > { %v769_v8 = vpop.permute.xlu0 %768 }
 0x183   : > { %v824_v22 = vsel %vm814_vm13, %v767_v53, %v769_v8  ;;  %v825_v4 = vsel %vm814_vm13, %v769_v8, %v771_v37 }
 0x184   : > { %955 = vrot.lane.b32.xlu0 %v4940_v10, %s4055_s27  ;;  %3855 = vmatprep.subr.msk.mxu0 %vm4895_vm4, %v824_v22 }
 0x185   : > { %957 = vrot.lane.b32.xlu1 %v4957_v13, %s4055_s27  ;;  %3856 = vmatpush1.msk.msra.mxu0 %vm4904_vm5, %v823_v55  ;;  %v5019_v49 = vpop.permute.xlu1 %343 }
 0x186   : > { %v5021_v1 = vpop.permute.xlu0 %772  ;;  %3857 = vmatprep.subr.msk.mxu0 %vm4835_vm11, %v4853_v25  ;;  %v435_v25 = vadd.s32 1536, %v4303_v58  ;;  %v5132_v35 = vsel %vm355_vm0, %v4820_v30, %v5019_v49 }
 0x187   : > { %3858 = vmatpush1.msk.msra.mxu0 %vm4841_vm15, %v4626_v44  ;;  %v826_v11 = vsel %vm814_vm13, %v771_v37, %v5021_v1  ;;  %v436_v44 = vadd.s32 1664, %v4303_v58 }
 0x188   : > { %959 = vrot.lane.b32.xlu0 %v4966_v36, %s4055_s27  ;;  %1730 = vmatprep.subr.mxu0 %v4902_v21  ;;  %v470_v21 = vand.u32 63, %v438_v20 }
 0x189   : > { %1316 = vrot.lane.b32.xlu1 %v4755_v57, %s4056_s28  ;;  %3868 = vmatprep.subr.msk.mxu1 %vm4925_vm7, %v826_v11  ;;  %v5039_v29 = vpop.permute.xlu1 %347 }
 0x18a   : > { %1731 = vmatpush1.msra.mxu0 %v4674_v6  ;;  %3869 = vmatpush1.msk.msra.mxu1 %vm4933_vm8, %v825_v4  ;;  %v346_v39 = vpop.permute.xlu0 %345  ;;  %vm5107_vm15 = vcmp.lt.s32.totalorder %v470_v21, 63 }
 0x18b   : > { %3859 = vmatprep.subr.msk.mxu0 %vm4895_vm4, %v4242_v42  ;;  %3870 = vmatprep.subr.msk.mxu1 %vm4863_vm2, %v4880_v43  ;;  %v468_v42 = vand.u32 63, %v436_v44  ;;  %v5150_v30 = vsel %vm355_vm0, %v5019_v49, %v346_v39  ;;  %v5163_v62 = vsel %vm355_vm0, %v346_v39, %v5039_v29 }
 0x18c   : > { %3860 = vmatpush1.msk.msra.mxu0 %vm4904_vm5, %v4235_v40  ;;  %3871 = vmatpush1.msk.msra.mxu1 %vm4871_vm3, %v4848_v3  ;;  %v467_v40 = vand.u32 63, %v435_v25  ;;  %v437_v3 = vadd.s32 1792, %v4303_v58  ;;  %vm5182_vm5 = vcmp.gt.s32.totalorder %v470_v21, 0 }
 0x18d   : > { %1318 = vrot.lane.b32.xlu0 %v4940_v10, %s4056_s28  ;;  %1320 = vrot.lane.b32.xlu1 %v4957_v13, %s4056_s28  ;;  %v614_v6 = vpop.permute.xlu1 %613  ;;  %vm5079_vm9 = vcmp.lt.s32.totalorder %v468_v42, 63  ;;  %vm5144_vm3 = vcmp.gt.s32.totalorder %v468_v42, 0 }
 0x18e   : > { %1801 = vmatprep.subr.mxu1 %v4931_v46  ;;  %v5064_v52 = vpop.permute.xlu0 %349  ;;  %3861 = vmatmul.mubr.msk.f32.vlgmr.msra.gmra.mxu0 %vm1414_vm14, %v4579_v27  ;;  %vm5085_vm11 = vcmp.lt.s32.totalorder %v467_v40, 63  ;;  %v5097_v23 = vsel %vm651_vm1, %v4869_v33, %v614_v6  ;;  %vm5157_vm4 = vcmp.gt.s32.totalorder %v467_v40, 0 }
 0x18f   : > { %1802 = vmatpush1.msra.mxu1 %v4893_v7  ;;  %1908 = vmatprep.mubr.f32.mxu0 %v4058_v34  ;;  %v5189_v22 = vsel %vm355_vm0, %v5039_v29, %v5064_v52 }
 0x190   : > { %3872 = vmatprep.subr.msk.mxu1 %vm4925_vm7, %v4306_v59 }
 0x191   : > { %3873 = vmatpush1.msk.msra.mxu1 %vm4933_vm8, %v4296_v56  ;;  %1322 = vrot.lane.b32.xlu0 %v4966_v36, %s4056_s28  ;;  %v618_v9 = vpop.permute.xlu1 %617  ;;  %v469_v56 = vand.u32 63, %v437_v3  ;;  %v4059_v3 = vmov 0  }
 0x192   : > { %790 = vrot.lane.b32.xlu1 %v4755_v57, %s4057_s29  ;;  %v616_v7 = vpop.permute.xlu0 %615  ;;  %3874 = vmatmul.mubr.msk.f32.vlgmr.msra.gmra.mxu1 %vm1414_vm14, %v4579_v27 }
 0x193   : > { %v5092_v59 = vsel %vm651_vm1, %v614_v6, %v616_v7  ;;  %1979 = vmatprep.mubr.f32.mxu1 %v4058_v34  ;;  %vm5115_vm2 = vcmp.lt.s32.totalorder %v469_v56, 63  ;;  %v5124_v16 = vsel %vm651_vm1, %v616_v7, %v618_v9  ;;  %vm5195_vm7 = vcmp.gt.s32.totalorder %v469_v56, 0  ;;  %4041 = vset.pattern.permute.xlu1 %v4059_v3 }
 0x194   : > { %3875 = vmatprep.subr.msk.mxu0 %vm5079_vm9, %v5092_v59  ;;  %4042 = vset.pattern.permute.xlu0 %v4059_v3 }
 0x195   : > { %792 = vrot.lane.b32.xlu0 %v4940_v10, %s4057_s29  ;;  %3876 = vmatpush1.msk.msra.mxu0 %vm5085_vm11, %v5097_v23  ;;  %v1172_v46 = vpop.permute.xlu1 %1171 }
 0x196   : > { %794 = vrot.lane.b32.xlu1 %v4957_v13, %s4057_s29  ;;  %v5113_v33 = vpop.permute.xlu0 %619  ;;  %v5155_v15 = vsel %vm1209_vm6, %v4913_v61, %v1172_v46 }
 0x197   : > { %v5121_v26 = vsel %vm651_vm1, %v618_v9, %v5113_v33 }
 0x198   : > { %3888 = vmatprep.subr.msk.mxu1 %vm5107_vm15, %v5121_v26 }
 0x199   : > { %796 = vrot.lane.b32.xlu0 %v4966_v36, %s4057_s29  ;;  %3889 = vmatpush1.msk.msra.mxu1 %vm5115_vm2, %v5124_v16  ;;  %v1176_v2 = vpop.permute.xlu1 %1175 }
 0x19a   : > { %637 = vrot.lane.b32.xlu1 %v5132_v35, %s4053_s25  ;;  %v1174_v32 = vpop.permute.xlu0 %1173 }
 0x19b   : > { %v5142_v12 = vsel %vm1209_vm6, %v1172_v46, %v1174_v32  ;;  %v5192_v55 = vsel %vm1209_vm6, %v1174_v32, %v1176_v2 }
 0x19c   : > { %1860 = vmatprep.subr.mxu0 %v5142_v12 }
 0x19d   : > { %639 = vrot.lane.b32.xlu0 %v5150_v30, %s4053_s25  ;;  %1861 = vmatpush1.msra.mxu0 %v5155_v15  ;;  %v938_v38 = vpop.permute.xlu1 %937 }
 0x19e   : > { %641 = vrot.lane.b32.xlu1 %v5163_v62, %s4053_s25  ;;  %v5170_v37 = vpop.permute.xlu0 %1177  ;;  %3877 = vmatprep.subr.msk.mxu0 %vm5144_vm3, %v4484_v19  ;;  %v990_v44 = vsel %vm977_vm10, %v4974_v14, %v938_v38 }
 0x19f   : > { %3878 = vmatpush1.msk.msra.mxu0 %vm5157_vm4, %v4320_v63  ;;  %v5180_v61 = vsel %vm1209_vm6, %v1176_v2, %v5170_v37 }
 0x1a0   : > { %1931 = vmatprep.subr.mxu1 %v5180_v61 }
 0x1a1   : > { %643 = vrot.lane.b32.xlu0 %v5189_v22, %s4053_s25  ;;  %1932 = vmatpush1.msra.mxu1 %v5192_v55 }
 0x1a2   : > { %1195 = vrot.lane.b32.xlu1 %v5132_v35, %s4054_s26  ;;  %v940_v11 = vpop.permute.xlu0 %939  ;;  %3890 = vmatprep.subr.msk.mxu1 %vm5182_vm5, %v4495_v47  ;;  %v942_v4 = vpop.permute.xlu1 %941 }
 0x1a3   : > { %v991_v29 = vsel %vm977_vm10, %v938_v38, %v940_v11  ;;  %3891 = vmatpush1.msk.msra.mxu1 %vm5195_vm7, %v4503_v51  ;;  %v992_v14 = vsel %vm977_vm10, %v940_v11, %v942_v4  ;;  %v5260_v11 = vadd.s32 2176, %v4303_v58 }
 0x1a4   : > { %3879 = vmatprep.subr.msk.mxu0 %vm5079_vm9, %v991_v29  ;;  %v439_v29 = vadd.s32 2048, %v4303_v58 }
 0x1a5   : > { %1197 = vrot.lane.b32.xlu0 %v5150_v30, %s4054_s26  ;;  %3880 = vmatpush1.msk.msra.mxu0 %vm5085_vm11, %v990_v44  ;;  %v472_v43 = vand.u32 63, %v5260_v11 }
 0x1a6   : > { %1199 = vrot.lane.b32.xlu1 %v5163_v62, %s4054_s26  ;;  %v5221_v39 = vpop.permute.xlu0 %943  ;;  %v1301_v25 = vpop.permute.xlu1 %1300 }
 0x1a7   : > { %v993_v6 = vsel %vm977_vm10, %v942_v4, %v5221_v39  ;;  %v1353_v9 = vsel %vm1340_vm12, %v4999_v45, %v1301_v25  ;;  %vm5304_vm8 = vcmp.lt.s32.totalorder %v472_v43, 63 }
 0x1a8   : > { %3892 = vmatprep.subr.msk.mxu1 %vm5107_vm15, %v993_v6  ;;  %v441_v6 = vadd.s32 2304, %v4303_v58 }
 0x1a9   : > { %1201 = vrot.lane.b32.xlu0 %v5189_v22, %s4054_s26  ;;  %3893 = vmatpush1.msk.msra.mxu1 %vm5115_vm2, %v992_v14 }
 0x1aa   : > { %961 = vrot.lane.b32.xlu1 %v4981_v41, %s4055_s27  ;;  %v1303_v42 = vpop.permute.xlu0 %1302  ;;  %v1305_v20 = vpop.permute.xlu1 %1304 }
 0x1ab   : > { %v1354_v40 = vsel %vm1340_vm12, %v1301_v25, %v1303_v42  ;;  %v1355_v46 = vsel %vm1340_vm12, %v1303_v42, %v1305_v20 }
 0x1ac   : > { %1866 = vmatprep.subr.mxu0 %v1354_v40 }
 0x1ad   : > { %963 = vrot.lane.b32.xlu0 %v5132_v35, %s4055_s27  ;;  %1867 = vmatpush1.msra.mxu0 %v1353_v9 }
 0x1ae   : > { %965 = vrot.lane.b32.xlu1 %v5150_v30, %s4055_s27  ;;  %v5241_v21 = vpop.permute.xlu0 %1306  ;;  %v775_v7 = vpop.permute.xlu1 %774 }
 0x1af   : > { %v1356_v56 = vsel %vm1340_vm12, %v1305_v20, %v5241_v21  ;;  %v827_v38 = vsel %vm814_vm13, %v5021_v1, %v775_v7 }
 0x1b0   : > { %1937 = vmatprep.subr.mxu1 %v1356_v56 }
 0x1b1   : > { %967 = vrot.lane.b32.xlu0 %v5163_v62, %s4055_s27  ;;  %1938 = vmatpush1.msra.mxu1 %v1355_v46 }
 0x1b2   : > { %1324 = vrot.lane.b32.xlu1 %v4981_v41, %s4056_s28  ;;  %v777_v45 = vpop.permute.xlu0 %776  ;;  %v779_v2 = vpop.permute.xlu1 %778 }
 0x1b3   : > { %v828_v32 = vsel %vm814_vm13, %v775_v7, %v777_v45  ;;  %v829_v25 = vsel %vm814_vm13, %v777_v45, %v779_v2 }
 0x1b4   : > { %3881 = vmatprep.subr.msk.mxu0 %vm5144_vm3, %v828_v32 }
 0x1b5   : > { %1326 = vrot.lane.b32.xlu0 %v5132_v35, %s4056_s28  ;;  %3882 = vmatpush1.msk.msra.mxu0 %vm5157_vm4, %v827_v38 }
 0x1b6   : > { %1328 = vrot.lane.b32.xlu1 %v5150_v30, %s4056_s28  ;;  %v5264_v4 = vpop.permute.xlu0 %780  ;;  %3883 = vmatprep.subr.msk.mxu0 %vm5079_vm9, %v5097_v23  ;;  %v352_v1 = vpop.permute.xlu1 %351  ;;  %v442_v23 = vadd.s32 2432, %v4303_v58 }
 0x1b7   : > { %v830_v44 = vsel %vm814_vm13, %v779_v2, %v5264_v4  ;;  %3884 = vmatpush1.msk.msra.mxu0 %vm5085_vm11, %v4877_v17  ;;  %v5335_v28 = vsel %vm355_vm0, %v5064_v52, %v352_v1  ;;  %v258_v52 = vld [vmem:[%s6176_s2] sm:$0xff] }
 0x1b8   : > { %1872 = vmatprep.subr.mxu0 %v5155_v15  ;;  %3894 = vmatprep.subr.msk.mxu1 %vm5182_vm5, %v830_v44  ;;  %v471_v15 = vand.u32 63, %v439_v29 }
 0x1b9   : > { %1330 = vrot.lane.b32.xlu0 %v5163_v62, %s4056_s28  ;;  %1873 = vmatpush1.msra.mxu0 %v4923_v50  ;;  %v445_v50 = vadd.s32 2816, %v4303_v58 }
 0x1ba   : > { %798 = vrot.lane.b32.xlu1 %v4981_v41, %s4057_s29  ;;  %3895 = vmatpush1.msk.msra.mxu1 %vm5195_vm7, %v829_v25  ;;  %v354_v17 = vpop.permute.xlu0 %353  ;;  %v622_v31 = vpop.permute.xlu1 %621  ;;  %vm5311_vm9 = vcmp.lt.s32.totalorder %v471_v15, 63 }
 0x1bb   : > { %3885 = vmatprep.subr.msk.mxu0 %vm5144_vm3, %v4320_v63  ;;  %3896 = vmatprep.subr.msk.mxu1 %vm5107_vm15, %v5124_v16  ;;  %v474_v63 = vand.u32 63, %v442_v23  ;;  %v5363_v8 = vsel %vm355_vm0, %v352_v1, %v354_v17 }
 0x1bc   : > { %3886 = vmatpush1.msk.msra.mxu0 %vm5157_vm4, %v4309_v60  ;;  %3897 = vmatpush1.msk.msra.mxu1 %vm5115_vm2, %v5092_v59  ;;  %v473_v59 = vand.u32 63, %v441_v6  ;;  %vm5384_vm2 = vcmp.gt.s32.totalorder %v472_v43, 0 }
 0x1bd   : > { %800 = vrot.lane.b32.xlu0 %v5132_v35, %s4057_s29  ;;  %1943 = vmatprep.subr.mxu1 %v5192_v55  ;;  %vm5342_vm11 = vcmp.lt.s32.totalorder %v474_v63, 63  ;;  %vm5414_vm3 = vcmp.gt.s32.totalorder %v474_v63, 0 }
 0x1be   : > { %802 = vrot.lane.b32.xlu1 %v5150_v30, %s4057_s29  ;;  %1944 = vmatpush1.msra.mxu1 %v5142_v12  ;;  %v624_v60 = vpop.permute.xlu0 %623  ;;  %v626_v5 = vpop.permute.xlu1 %625  ;;  %v5325_v12 = vsel %vm651_vm1, %v5113_v33, %v622_v31  ;;  %vm5352_vm15 = vcmp.lt.s32.totalorder %v473_v59, 63  ;;  %vm5422_vm4 = vcmp.gt.s32.totalorder %v473_v59, 0  ;;  %v444_v59 = vadd.s32 2688, %v4303_v58 }
 0x1bf   : > { %v5316_v16 = vsel %vm651_vm1, %v622_v31, %v624_v60  ;;  %3898 = vmatprep.subr.msk.mxu1 %vm5182_vm5, %v4503_v51  ;;  %3887 = vmatmul.mubr.msk.f32.vlgmr.msra.gmra.mxu0 %vm1414_vm14, %v4579_v27  ;;  %v5366_v55 = vsel %vm651_vm1, %v624_v60, %v626_v5  ;;  %v477_v51 = vand.u32 63, %v445_v50 }
 0x1c0   : > { %3899 = vmatpush1.msk.msra.mxu1 %vm5195_vm7, %v4484_v19  ;;  %3901 = vmatprep.subr.msk.mxu0 %vm5304_vm8, %v5316_v16 }
 0x1c1   : > { %804 = vrot.lane.b32.xlu0 %v5163_v62, %s4057_s29  ;;  %3902 = vmatpush1.msk.msra.mxu0 %vm5311_vm9, %v5325_v12 }
 0x1c2   : > { %645 = vrot.lane.b32.xlu1 %v5335_v28, %s4053_s25  ;;  %v5348_v19 = vpop.permute.xlu0 %627  ;;  %v1180_v33 = vpop.permute.xlu1 %1179  ;;  %3900 = vmatmul.mubr.msk.f32.vlgmr.msra.gmra.mxu1 %vm1414_vm14, %v4579_v27  ;;  %v5372_v27 = vsel %vm355_vm0, %v354_v17, 0.0  ;;  %vm5393_vm0 = vcmp.gt.s32.totalorder %v471_v15, 0 }
 0x1c3   : > { %v5358_v53 = vsel %vm651_vm1, %v626_v5, %v5348_v19  ;;  %2050 = vmatprep.mubr.f32.mxu0 %v4058_v34  ;;  %2121 = vmatprep.mubr.f32.mxu1 %v4058_v34  ;;  %v5390_v40 = vsel %vm1209_vm6, %v5170_v37, %v1180_v33 }
 0x1c4   : > { %3914 = vmatprep.subr.msk.mxu1 %vm5342_vm11, %v5358_v53 }
 0x1c5   : > { %647 = vrot.lane.b32.xlu0 %v5363_v8, %s4053_s25  ;;  %3915 = vmatpush1.msk.msra.mxu1 %vm5352_vm15, %v5366_v55 }
 0x1c6   : > { %649 = vrot.lane.b32.xlu1 %v5372_v27, %s4053_s25  ;;  %v1182_v49 = vpop.permute.xlu0 %1181  ;;  %v1184_v14 = vpop.permute.xlu1 %1183 }
 0x1c7   : > { %v5382_v42 = vsel %vm1209_vm6, %v1180_v33, %v1182_v49  ;;  %v5419_v46 = vsel %vm1209_vm6, %v1182_v49, %v1184_v14  ;;  %v443_v49 = vadd.s32 2560, %v4303_v58 }
 0x1c8   : > { %2002 = vmatprep.subr.mxu0 %v5382_v42 }
 0x1c9   : > { %1107 = vrot.lane.b32.xlu0 %v4058_v34, %s4053_s25  ;;  %2003 = vmatpush1.msra.mxu0 %v5390_v40 }
 0x1ca   : > { %1203 = vrot.lane.b32.xlu1 %v5335_v28, %s4054_s26  ;;  %v5402_v9 = vpop.permute.xlu0 %1185  ;;  %3903 = vmatprep.subr.msk.mxu0 %vm5384_vm2, %v4721_v18  ;;  %v946_v37 = vpop.permute.xlu1 %945 }
 0x1cb   : > { %3904 = vmatpush1.msk.msra.mxu0 %vm5393_vm0, %v4514_v48  ;;  %v5412_v7 = vsel %vm1209_vm6, %v1184_v14, %v5402_v9  ;;  %v994_v11 = vsel %vm977_vm10, %v5221_v39, %v946_v37 }
 0x1cc   : > { %2073 = vmatprep.subr.mxu1 %v5412_v7 }
 0x1cd   : > { %1205 = vrot.lane.b32.xlu0 %v5363_v8, %s4054_s26  ;;  %2074 = vmatpush1.msra.mxu1 %v5419_v46 }
 0x1ce   : > { %1207 = vrot.lane.b32.xlu1 %v5372_v27, %s4054_s26  ;;  %v948_v2 = vpop.permute.xlu0 %947  ;;  %3916 = vmatprep.subr.msk.mxu1 %vm5414_vm3, %v4740_v24 }
 0x1cf   : > { %v995_v32 = vsel %vm977_vm10, %v946_v37, %v948_v2  ;;  %v950_v38 = vpop.permute.xlu1 %949  ;;  %3917 = vmatpush1.msk.msra.mxu1 %vm5422_vm4, %v4735_v54 }
 0x1d0   : > { %3905 = vmatprep.subr.msk.mxu0 %vm5304_vm8, %v995_v32  ;;  %v996_v39 = vsel %vm977_vm10, %v948_v2, %v950_v38  ;;  %v476_v2 = vand.u32 63, %v444_v59  ;;  %v446_v32 = vadd.s32 2944, %v4303_v58 }
 0x1d1   : > { %1405 = vrot.lane.b32.xlu0 %v4058_v34, %s4054_s26  ;;  %3906 = vmatpush1.msk.msra.mxu0 %vm5311_vm9, %v994_v11 }
 0x1d2   : > { %969 = vrot.lane.b32.xlu1 %v5189_v22, %s4055_s27  ;;  %v5448_v1 = vpop.permute.xlu0 %951  ;;  %vm5522_vm5 = vcmp.lt.s32.totalorder %v476_v2, 63  ;;  %v478_v11 = vand.u32 63, %v446_v32 }
 0x1d3   : > { %v997_v29 = vsel %vm977_vm10, %v950_v38, %v5448_v1  ;;  %v1309_v44 = vpop.permute.xlu1 %1308  ;;  %v475_v38 = vand.u32 63, %v443_v49 }
 0x1d4   : > { %3918 = vmatprep.subr.msk.mxu1 %vm5342_vm11, %v997_v29  ;;  %v1357_v17 = vsel %vm1340_vm12, %v5241_v21, %v1309_v44 }
 0x1d5   : > { %971 = vrot.lane.b32.xlu0 %v5335_v28, %s4055_s27  ;;  %3919 = vmatpush1.msk.msra.mxu1 %vm5352_vm15, %v996_v39  ;;  %vm5532_vm7 = vcmp.lt.s32.totalorder %v475_v38, 63 }
 0x1d6   : > { %973 = vrot.lane.b32.xlu1 %v5363_v8, %s4055_s27  ;;  %v1311_v25 = vpop.permute.xlu0 %1310 }
 0x1d7   : > { %v1313_v43 = vpop.permute.xlu1 %1312  ;;  %v1358_v23 = vsel %vm1340_vm12, %v1309_v44, %v1311_v25 }
 0x1d8   : > { %2008 = vmatprep.subr.mxu0 %v1358_v23  ;;  %v1359_v63 = vsel %vm1340_vm12, %v1311_v25, %v1313_v43 }
 0x1d9   : > { %975 = vrot.lane.b32.xlu0 %v5372_v27, %s4055_s27  ;;  %2009 = vmatpush1.msra.mxu0 %v1357_v17 }
 0x1da   : > { %1332 = vrot.lane.b32.xlu1 %v5189_v22, %s4056_s28  ;;  %v5468_v31 = vpop.permute.xlu0 %1314 }
 0x1db   : > { %v783_v15 = vpop.permute.xlu1 %782  ;;  %v1360_v6 = vsel %vm1340_vm12, %v1313_v43, %v5468_v31 }
 0x1dc   : > { %2079 = vmatprep.subr.mxu1 %v1360_v6  ;;  %v831_v33 = vsel %vm814_vm13, %v5264_v4, %v783_v15 }
 0x1dd   : > { %1334 = vrot.lane.b32.xlu0 %v5335_v28, %s4056_s28  ;;  %2080 = vmatpush1.msra.mxu1 %v1359_v63 }
 0x1de   : > { %1336 = vrot.lane.b32.xlu1 %v5363_v8, %s4056_s28  ;;  %v785_v21 = vpop.permute.xlu0 %784 }
 0x1df   : > { %v832_v60 = vsel %vm814_vm13, %v783_v15, %v785_v21  ;;  %v787_v5 = vpop.permute.xlu1 %786 }
 0x1e0   : > { %3907 = vmatprep.subr.msk.mxu0 %vm5384_vm2, %v832_v60 }
 0x1e1   : > { %1338 = vrot.lane.b32.xlu0 %v5372_v27, %s4056_s28  ;;  %3908 = vmatpush1.msk.msra.mxu0 %vm5393_vm0, %v831_v33 }
 0x1e2   : > { %806 = vrot.lane.b32.xlu1 %v5189_v22, %s4057_s29  ;;  %v5490_v14 = vpop.permute.xlu0 %788  ;;  %3909 = vmatprep.subr.msk.mxu0 %vm5304_vm8, %v5325_v12  ;;  %v833_v12 = vsel %vm814_vm13, %v785_v21, %v787_v5  ;;  %vm5566_vm8 = vcmp.lt.s32.totalorder %v478_v11, 63 }
 0x1e3   : > { %v834_v4 = vsel %vm814_vm13, %v787_v5, %v5490_v14  ;;  %v630_v37 = vpop.permute.xlu1 %629  ;;  %3910 = vmatpush1.msk.msra.mxu0 %vm5311_vm9, %v5121_v26  ;;  %vm5573_vm9 = vcmp.lt.s32.totalorder %v477_v51, 63 }
 0x1e4   : > { %2014 = vmatprep.subr.mxu0 %v5390_v40  ;;  %3920 = vmatprep.subr.msk.mxu1 %vm5414_vm3, %v834_v4 }
 0x1e5   : > { %808 = vrot.lane.b32.xlu0 %v5335_v28, %s4057_s29  ;;  %2015 = vmatpush1.msra.mxu0 %v5180_v61 }
 0x1e6   : > { %810 = vrot.lane.b32.xlu1 %v5363_v8, %s4057_s29  ;;  %3921 = vmatpush1.msk.msra.mxu1 %vm5422_vm4, %v833_v12  ;;  %v632_v26 = vpop.permute.xlu0 %631  ;;  %v448_v12 = vadd.s32 3200, %v4303_v58 }
 0x1e7   : > { %v5514_v0 = vsel %vm651_vm1, %v630_v37, %v632_v26  ;;  %3911 = vmatprep.subr.msk.mxu0 %vm5384_vm2, %v4514_v48  ;;  %3922 = vmatprep.subr.msk.mxu1 %vm5342_vm11, %v5366_v55  ;;  %v634_v40 = vpop.permute.xlu1 %633  ;;  %v5541_v55 = vsel %vm651_vm1, %v5348_v19, %v630_v37  ;;  %vm5595_vm11 = vcmp.gt.s32.totalorder %v476_v2, 0  ;;  %vm5619_vm2 = vcmp.gt.s32.totalorder %v478_v11, 0 }
 0x1e8   : > { %3912 = vmatpush1.msk.msra.mxu0 %vm5393_vm0, %v4495_v47  ;;  %3923 = vmatpush1.msk.msra.mxu1 %vm5352_vm15, %v5316_v16  ;;  %v5549_v47 = vld [vmem:[%s6175_s1] sm:$0xff]  ;;  %vm5603_vm15 = vcmp.gt.s32.totalorder %v475_v38, 0  ;;  %vm5625_vm0 = vcmp.gt.s32.totalorder %v477_v51, 0 }
 0x1e9   : > { %812 = vrot.lane.b32.xlu0 %v5372_v27, %s4057_s29  ;;  %2085 = vmatprep.subr.mxu1 %v5419_v46 }
 0x1ea   : > { %3927 = vmatprep.subr.msk.mxu0 %vm5522_vm5, %v5514_v0  ;;  %3913 = vmatmul.mubr.msk.f32.vlgmr.msra.gmra.mxu0 %vm1414_vm14, %v5549_v47  ;;  %v5553_v16 = vpop.permute.xlu0 %635 }
 0x1eb   : > { %2086 = vmatpush1.msra.mxu1 %v5382_v42  ;;  %3928 = vmatpush1.msk.msra.mxu0 %vm5532_vm7, %v5541_v55  ;;  %v5564_v19 = vsel %vm651_vm1, %v634_v40, %v5553_v16  ;;  %v1188_v20 = vpop.permute.xlu1 %1187  ;;  %v5582_v42 = vsel %vm651_vm1, %v632_v26, %v634_v40 }
 0x1ec   : > { %3924 = vmatprep.subr.msk.mxu1 %vm5414_vm3, %v4735_v54  ;;  %2192 = vmatprep.mubr.f32.mxu0 %v4058_v34  ;;  %v1231_v29 = vsel %vm1209_vm6, %v5402_v9, %v1188_v20 }
 0x1ed   : > { %3925 = vmatpush1.msk.msra.mxu1 %vm5422_vm4, %v4721_v18  ;;  %1411 = vperm.xlu1 %4041, %v258_v52   ;;  %v480_v52 = vand.u32 63, %v448_v12 }
 0x1ee   : > { %3940 = vmatprep.subr.msk.mxu1 %vm5566_vm8, %v5564_v19  ;;  %3926 = vmatmul.mubr.msk.f32.vlgmr.msra.gmra.mxu1 %vm1414_vm14, %v5549_v47  ;;  %v1190_v54 = vpop.permute.xlu0 %1189 }
 0x1ef   : > { %3941 = vmatpush1.msk.msra.mxu1 %vm5573_vm9, %v5582_v42  ;;  %v1192_v56 = vpop.permute.xlu1 %1191  ;;  %v5593_v45 = vsel %vm1209_vm6, %v1188_v20, %v1190_v54  ;;  %2263 = vmatprep.mubr.f32.mxu1 %v4058_v34  ;;  %v450_v20 = vadd.s32 3456, %v4303_v58  ;;  %vm5686_vm3 = vcmp.lt.s32.totalorder %v480_v52, 63 }
 0x1f0   : > { %2144 = vmatprep.subr.mxu0 %v5593_v45  ;;  %v1233_v23 = vsel %vm1209_vm6, %v1190_v54, %v1192_v56 }
 0x1f1   : > { %2145 = vmatpush1.msra.mxu0 %v1231_v29 }
 0x1f2   : > { %v5607_v39 = vpop.permute.xlu0 %1193  ;;  %3929 = vmatprep.subr.msk.mxu0 %vm5595_vm11, %v4940_v10 }
 0x1f3   : > { %v954_v25 = vpop.permute.xlu1 %953  ;;  %3930 = vmatpush1.msk.msra.mxu0 %vm5603_vm15, %v4755_v57  ;;  %v5617_v9 = vsel %vm1209_vm6, %v1192_v56, %v5607_v39  ;;  %v449_v56 = vadd.s32 3328, %v4303_v58 }
 0x1f4   : > { %2215 = vmatprep.subr.mxu1 %v5617_v9  ;;  %v998_v21 = vsel %vm977_vm10, %v5448_v1, %v954_v25 }
 0x1f5   : > { %2216 = vmatpush1.msra.mxu1 %v1233_v23 }
 0x1f6   : > { %v956_v15 = vpop.permute.xlu0 %955  ;;  %3942 = vmatprep.subr.msk.mxu1 %vm5619_vm2, %v4966_v36 }
 0x1f7   : > { %v999_v6 = vsel %vm977_vm10, %v954_v25, %v956_v15  ;;  %v958_v63 = vpop.permute.xlu1 %957  ;;  %3943 = vmatpush1.msk.msra.mxu1 %vm5625_vm0, %v4957_v13 }
 0x1f8   : > { %3931 = vmatprep.subr.msk.mxu0 %vm5522_vm5, %v999_v6  ;;  %v1000_v33 = vsel %vm977_vm10, %v956_v15, %v958_v63 }
 0x1f9   : > { %3932 = vmatpush1.msk.msra.mxu0 %vm5532_vm7, %v998_v21 }
 0x1fa   : > { %v5642_v60 = vpop.permute.xlu0 %959 }
 0x1fb   : > { %v1001_v5 = vsel %vm977_vm10, %v958_v63, %v5642_v60  ;;  %v1317_v59 = vpop.permute.xlu1 %1316 }
 0x1fc   : > { %3944 = vmatprep.subr.msk.mxu1 %vm5566_vm8, %v1001_v5  ;;  %v1361_v37 = vsel %vm1340_vm12, %v5468_v31, %v1317_v59  ;;  %v447_v31 = vadd.s32 3072, %v4303_v58 }
 0x1fd   : > { %3945 = vmatpush1.msk.msra.mxu1 %vm5573_vm9, %v1000_v33 }
 0x1fe   : > { %v479_v15 = vand.u32 63, %v447_v31 }
 0x1ff   : > { %v1319_v1 = vpop.permute.xlu0 %1318  ;;  %v1321_v49 = vpop.permute.xlu1 %1320 }
 0x200   : > { %v1362_v4 = vsel %vm1340_vm12, %v1317_v59, %v1319_v1  ;;  %v1363_v50 = vsel %vm1340_vm12, %v1319_v1, %v1321_v49  ;;  %vm5705_vm4 = vcmp.lt.s32.totalorder %v479_v15, 63 }
 0x201   : > { %2150 = vmatprep.subr.mxu0 %v1362_v4 }
 0x202   : > { %2151 = vmatpush1.msra.mxu0 %v1361_v37 }
 0x203   : > { %v5654_v2 = vpop.permute.xlu0 %1322 }
 0x204   : > { %v791_v32 = vpop.permute.xlu1 %790  ;;  %v1364_v38 = vsel %vm1340_vm12, %v1321_v49, %v5654_v2 }
 0x205   : > { %2221 = vmatprep.subr.mxu1 %v1364_v38  ;;  %v835_v51 = vsel %vm814_vm13, %v5490_v14, %v791_v32 }
 0x206   : > { %2222 = vmatpush1.msra.mxu1 %v1363_v50 }
 0x207   : > { %v793_v26 = vpop.permute.xlu0 %792 }
 0x208   : > { %v836_v40 = vsel %vm814_vm13, %v791_v32, %v793_v26  ;;  %v795_v11 = vpop.permute.xlu1 %794 }
 0x209   : > { %3933 = vmatprep.subr.msk.mxu0 %vm5595_vm11, %v836_v40  ;;  %v837_v6 = vsel %vm814_vm13, %v793_v26, %v795_v11 }
 0x20a   : > { %3934 = vmatpush1.msk.msra.mxu0 %vm5603_vm15, %v835_v51 }
 0x20b   : > { %v5669_v54 = vpop.permute.xlu0 %796  ;;  %3935 = vmatprep.subr.msk.mxu0 %vm5522_vm5, %v5541_v55  ;;  %v482_v55 = vand.u32 63, %v450_v20  ;;  %v452_v20 = vadd.s32 3712, %v4303_v58 }
 0x20c   : > { %v838_v14 = vsel %vm814_vm13, %v795_v11, %v5669_v54  ;;  %v638_v25 = vpop.permute.xlu1 %637  ;;  %3936 = vmatpush1.msk.msra.mxu0 %vm5532_vm7, %v5358_v53  ;;  %v481_v53 = vand.u32 63, %v449_v56 }
 0x20d   : > { %2156 = vmatprep.subr.mxu0 %v1231_v29  ;;  %3946 = vmatprep.subr.msk.mxu1 %vm5619_vm2, %v838_v14  ;;  %vm5719_vm5 = vcmp.lt.s32.totalorder %v482_v55, 63 }
 0x20e   : > { %2157 = vmatpush1.msra.mxu0 %v5412_v7  ;;  %3947 = vmatpush1.msk.msra.mxu1 %vm5625_vm0, %v837_v6  ;;  %vm5731_vm7 = vcmp.lt.s32.totalorder %v481_v53, 63  ;;  %v484_v6 = vand.u32 63, %v452_v20 }
 0x20f   : > { %v640_v63 = vpop.permute.xlu0 %639  ;;  %3937 = vmatprep.subr.msk.mxu0 %vm5595_vm11, %v4755_v57  ;;  %3948 = vmatprep.subr.msk.mxu1 %vm5566_vm8, %v5582_v42  ;;  %v5714_v57 = vsel %vm651_vm1, %v5553_v16, %v638_v25  ;;  %vm5758_vm8 = vcmp.gt.s32.totalorder %v480_v52, 0  ;;  %vm5781_vm11 = vcmp.gt.s32.totalorder %v482_v55, 0  ;;  %v454_v55 = vadd.s32 3968, %v4303_v58 }
 0x210   : > { %v5697_v7 = vsel %vm651_vm1, %v638_v25, %v640_v63  ;;  %v642_v48 = vpop.permute.xlu1 %641  ;;  %3938 = vmatpush1.msk.msra.mxu0 %vm5603_vm15, %v4740_v24  ;;  %3949 = vmatpush1.msk.msra.mxu1 %vm5573_vm9, %v5514_v0  ;;  %vm5765_vm9 = vcmp.gt.s32.totalorder %v479_v15, 0  ;;  %vm5787_vm15 = vcmp.gt.s32.totalorder %v481_v53, 0  ;;  %v453_v53 = vadd.s32 3840, %v4303_v58 }
 0x211   : > { %2227 = vmatprep.subr.mxu1 %v1233_v23  ;;  %3953 = vmatprep.subr.msk.mxu0 %vm5686_vm3, %v5697_v7  ;;  %v5744_v42 = vsel %vm651_vm1, %v640_v63, %v642_v48  ;;  %v486_v61 = vand.u32 63, %v454_v55 }
 0x212   : > { %3939 = vmatmul.mubr.msk.f32.vlgmr.msra.gmra.mxu0 %vm1414_vm14, %v5549_v47  ;;  %2228 = vmatpush1.msra.mxu1 %v5593_v45 }
 0x213   : > { %3954 = vmatpush1.msk.msra.mxu0 %vm5705_vm4, %v5714_v57  ;;  %v5726_v0 = vpop.permute.xlu0 %643  ;;  %3950 = vmatprep.subr.msk.mxu1 %vm5619_vm2, %v4957_v13  ;;  %vm5848_vm2 = vcmp.lt.s32.totalorder %v484_v6, 63 }
 0x214   : > { %v5737_v3 = vsel %vm651_vm1, %v642_v48, %v5726_v0  ;;  %v1196_v46 = vpop.permute.xlu1 %1195  ;;  %3951 = vmatpush1.msk.msra.mxu1 %vm5625_vm0, %v4940_v10  ;;  %2334 = vmatprep.mubr.f32.mxu0 %v4058_v34 }
 0x215   : > { %3966 = vmatprep.subr.msk.mxu1 %vm5719_vm5, %v5737_v3  ;;  %3952 = vmatmul.mubr.msk.f32.vlgmr.msra.gmra.mxu1 %vm1414_vm14, %v5549_v47  ;;  %v1235_v44 = vsel %vm1209_vm6, %v5607_v39, %v1196_v46 }
 0x216   : > { %3967 = vmatpush1.msk.msra.mxu1 %vm5731_vm7, %v5744_v42  ;;  %2405 = vmatprep.mubr.f32.mxu1 %v4058_v34 }
 0x217   : > { %v1198_v13 = vpop.permute.xlu0 %1197 }
 0x218   : > { %v1200_v10 = vpop.permute.xlu1 %1199  ;;  %v5756_v45 = vsel %vm1209_vm6, %v1196_v46, %v1198_v13 }
 0x219   : > { %2286 = vmatprep.subr.mxu0 %v5756_v45  ;;  %v1237_v5 = vsel %vm1209_vm6, %v1198_v13, %v1200_v10 }
 0x21a   : > { %2287 = vmatpush1.msra.mxu0 %v1235_v44 }
 0x21b   : > { %v5769_v23 = vpop.permute.xlu0 %1201  ;;  %3955 = vmatprep.subr.msk.mxu0 %vm5758_vm8, %v5132_v35 }
 0x21c   : > { %v962_v17 = vpop.permute.xlu1 %961  ;;  %3956 = vmatpush1.msk.msra.mxu0 %vm5765_vm9, %v4981_v41  ;;  %v5779_v39 = vsel %vm1209_vm6, %v1200_v10, %v5769_v23 }
 0x21d   : > { %2357 = vmatprep.subr.mxu1 %v5779_v39  ;;  %v1002_v4 = vsel %vm977_vm10, %v5642_v60, %v962_v17 }
 0x21e   : > { %2358 = vmatpush1.msra.mxu1 %v1237_v5 }
 0x21f   : > { %v964_v33 = vpop.permute.xlu0 %963  ;;  %3968 = vmatprep.subr.msk.mxu1 %vm5781_vm11, %v5163_v62 }
 0x220   : > { %v1003_v1 = vsel %vm977_vm10, %v962_v17, %v964_v33  ;;  %v966_v49 = vpop.permute.xlu1 %965  ;;  %3969 = vmatpush1.msk.msra.mxu1 %vm5787_vm15, %v5150_v30 }
 0x221   : > { %3957 = vmatprep.subr.msk.mxu0 %vm5686_vm3, %v1003_v1  ;;  %v1004_v50 = vsel %vm977_vm10, %v964_v33, %v966_v49 }
 0x222   : > { %3958 = vmatpush1.msk.msra.mxu0 %vm5705_vm4, %v1002_v4 }
 0x223   : > { %v5804_v37 = vpop.permute.xlu0 %967 }
 0x224   : > { %v1005_v32 = vsel %vm977_vm10, %v966_v49, %v5804_v37  ;;  %v1325_v38 = vpop.permute.xlu1 %1324 }
 0x225   : > { %3970 = vmatprep.subr.msk.mxu1 %vm5719_vm5, %v1005_v32  ;;  %v1365_v40 = vsel %vm1340_vm12, %v5654_v2, %v1325_v38  ;;  %v451_v2 = vadd.s32 3584, %v4303_v58 }
 0x226   : > { %3971 = vmatpush1.msk.msra.mxu1 %vm5731_vm7, %v1004_v50 }
 0x227   : > { %v1327_v60 = vpop.permute.xlu0 %1326  ;;  %v483_v46 = vand.u32 63, %v451_v2 }
 0x228   : > { %v1329_v12 = vpop.permute.xlu1 %1328  ;;  %v1366_v26 = vsel %vm1340_vm12, %v1325_v38, %v1327_v60 }
 0x229   : > { %2292 = vmatprep.subr.mxu0 %v1366_v26  ;;  %v1367_v52 = vsel %vm1340_vm12, %v1327_v60, %v1329_v12  ;;  %vm5867_vm0 = vcmp.lt.s32.totalorder %v483_v46, 63 }
 0x22a   : > { %2293 = vmatpush1.msra.mxu0 %v1365_v40 }
 0x22b   : > { %v5816_v11 = vpop.permute.xlu0 %1330 }
 0x22c   : > { %v799_v31 = vpop.permute.xlu1 %798  ;;  %v1368_v51 = vsel %vm1340_vm12, %v1329_v12, %v5816_v11 }
 0x22d   : > { %2363 = vmatprep.subr.mxu1 %v1368_v51  ;;  %v839_v15 = vsel %vm814_vm13, %v5669_v54, %v799_v31 }
 0x22e   : > { %2364 = vmatpush1.msra.mxu1 %v1367_v52 }
 0x22f   : > { %v801_v56 = vpop.permute.xlu0 %800 }
 0x230   : > { %v840_v14 = vsel %vm814_vm13, %v799_v31, %v801_v56  ;;  %v803_v25 = vpop.permute.xlu1 %802 }
 0x231   : > { %3959 = vmatprep.subr.msk.mxu0 %vm5758_vm8, %v840_v14  ;;  %v841_v13 = vsel %vm814_vm13, %v801_v56, %v803_v25 }
 0x232   : > { %3960 = vmatpush1.msk.msra.mxu0 %vm5765_vm9, %v839_v15  ;;  %v1484_v15 = vpop.f32.mrf.mxu0 }
 0x233   : > { %v5831_v63 = vpop.permute.xlu0 %804  ;;  %3961 = vmatprep.subr.msk.mxu0 %vm5686_vm3, %v5714_v57  ;;  %vm5881_vm3 = vcmp.lt.s32.totalorder %v486_v61, 63 }
 0x234   : > { %v842_v54 = vsel %vm814_vm13, %v803_v25, %v5831_v63  ;;  %v646_v48 = vpop.permute.xlu1 %645  ;;  %3962 = vmatpush1.msk.msra.mxu0 %vm5705_vm4, %v5564_v19  ;;  %v485_v19 = vand.u32 63, %v453_v53  ;;  %v1486_v53 = vpop.f32.mrf.mxu0 }
 0x235   : > { %2298 = vmatprep.subr.mxu0 %v1235_v44  ;;  %3972 = vmatprep.subr.msk.mxu1 %vm5781_vm11, %v842_v54 }
 0x236   : > { %2299 = vmatpush1.msra.mxu0 %v5617_v9  ;;  %3973 = vmatpush1.msk.msra.mxu1 %vm5787_vm15, %v841_v13  ;;  %vm5891_vm4 = vcmp.lt.s32.totalorder %v485_v19, 63 }
 0x237   : > { %v648_v57 = vpop.permute.xlu0 %647  ;;  %3963 = vmatprep.subr.msk.mxu0 %vm5758_vm8, %v4981_v41  ;;  %3974 = vmatprep.subr.msk.mxu1 %vm5719_vm5, %v5744_v42  ;;  %v5876_v41 = vsel %vm651_vm1, %v5726_v0, %v646_v48  ;;  %vm5914_vm5 = vcmp.gt.s32.totalorder %v484_v6, 0  ;;  %vm5937_vm8 = vcmp.gt.s32.totalorder %v485_v19, 0 }
 0x238   : > { %v5859_v9 = vsel %vm651_vm1, %v646_v48, %v648_v57  ;;  %v650_v18 = vpop.permute.xlu1 %649  ;;  %3964 = vmatpush1.msk.msra.mxu0 %vm5765_vm9, %v4966_v36  ;;  %3975 = vmatpush1.msk.msra.mxu1 %vm5731_vm7, %v5697_v7  ;;  %vm5932_vm7 = vcmp.gt.s32.totalorder %v486_v61, 0 }
 0x239   : > { %2369 = vmatprep.subr.mxu1 %v1237_v5  ;;  %3979 = vmatprep.subr.msk.mxu0 %vm5848_vm2, %v5859_v9  ;;  %v5901_v42 = vsel %vm651_vm1, %v648_v57, %v650_v18 }
 0x23a   : > { %3965 = vmatmul.mubr.msk.f32.vlgmr.msra.gmra.mxu0 %vm1414_vm14, %v5549_v47  ;;  %2370 = vmatpush1.msra.mxu1 %v5756_v45 }
 0x23b   : > { %3980 = vmatpush1.msk.msra.mxu0 %vm5867_vm0, %v5876_v41  ;;  %v1108_v7 = vpop.permute.xlu0 %1107  ;;  %3976 = vmatprep.subr.msk.mxu1 %vm5781_vm11, %v5150_v30 }
 0x23c   : > { %v1109_v0 = vsel %vm651_vm1, %v650_v18, %v1108_v7  ;;  %v1204_v16 = vpop.permute.xlu1 %1203  ;;  %3977 = vmatpush1.msk.msra.mxu1 %vm5787_vm15, %v5132_v35  ;;  %2476 = vmatprep.mubr.f32.mxu0 %v4058_v34  ;;  %vm5921_vm1 = vcmp.gt.s32.totalorder %v483_v46, 0 }
 0x23d   : > { %3992 = vmatprep.subr.msk.mxu1 %vm5881_vm3, %v1109_v0  ;;  %3978 = vmatmul.mubr.msk.f32.vlgmr.msra.gmra.mxu1 %vm1414_vm14, %v5549_v47  ;;  %v1239_v44 = vsel %vm1209_vm6, %v5769_v23, %v1204_v16  ;;  %v2555_v23 = vld [vmem:[%s6178_s4] sm:$0xff] }
 0x23e   : > { %3993 = vmatpush1.msk.msra.mxu1 %vm5891_vm4, %v5901_v42  ;;  %2547 = vmatprep.mubr.f32.mxu1 %v4058_v34 }
 0x23f   : > { %v1206_v30 = vpop.permute.xlu0 %1205  ;;  %2558 = vperm.xlu0 %4042, %v2555_v23  }
 0x240   : > { %v1208_v45 = vpop.permute.xlu1 %1207  ;;  %v5912_v35 = vsel %vm1209_vm6, %v1204_v16, %v1206_v30 }
 0x241   : > { %2428 = vmatprep.subr.mxu0 %v5912_v35  ;;  %v1241_v59 = vsel %vm1209_vm6, %v1206_v30, %v1208_v45 }
 0x242   : > { %2429 = vmatpush1.msra.mxu0 %v1239_v44 }
 0x243   : > { %v1406_v17 = vpop.permute.xlu0 %1405  ;;  %3981 = vmatprep.subr.msk.mxu0 %vm5914_vm5, %v5335_v28 }
 0x244   : > { %v970_v21 = vpop.permute.xlu1 %969  ;;  %3982 = vmatpush1.msk.msra.mxu0 %vm5921_vm1, %v5189_v22  ;;  %v1407_v5 = vsel %vm1209_vm6, %v1208_v45, %v1406_v17  ;;  %vm2561_vm6 = vcmask 64512  }
 0x245   : > { %2499 = vmatprep.subr.mxu1 %v1407_v5  ;;  %v1006_v32 = vsel %vm977_vm10, %v5804_v37, %v970_v21 }
 0x246   : > { %2500 = vmatpush1.msra.mxu1 %v1241_v59 }
 0x247   : > { %v972_v1 = vpop.permute.xlu0 %971  ;;  %3994 = vmatprep.subr.msk.mxu1 %vm5932_vm7, %v5372_v27 }
 0x248   : > { %v1007_v49 = vsel %vm977_vm10, %v970_v21, %v972_v1  ;;  %v974_v4 = vpop.permute.xlu1 %973  ;;  %3995 = vmatpush1.msk.msra.mxu1 %vm5937_vm8, %v5363_v8 }
 0x249   : > { %3983 = vmatprep.subr.msk.mxu0 %vm5848_vm2, %v1007_v49  ;;  %v1008_v60 = vsel %vm977_vm10, %v972_v1, %v974_v4 }
 0x24a   : > { %3984 = vmatpush1.msk.msra.mxu0 %vm5867_vm0, %v1006_v32 }
 0x24b   : > { %v976_v38 = vpop.permute.xlu0 %975 }
 0x24c   : > { %v1009_v50 = vsel %vm977_vm10, %v974_v4, %v976_v38  ;;  %v1333_v27 = vpop.permute.xlu1 %1332 }
 0x24d   : > { %3996 = vmatprep.subr.msk.mxu1 %vm5881_vm3, %v1009_v50  ;;  %v1369_v40 = vsel %vm1340_vm12, %v5816_v11, %v1333_v27  ;;  %v1555_v11 = vpop.f32.mrf.mxu1 }
 0x24e   : > { %3997 = vmatpush1.msk.msra.mxu1 %vm5891_vm4, %v1008_v60 }
 0x24f   : > { %v1335_v12 = vpop.permute.xlu0 %1334  ;;  %v1557_v54 = vpop.f32.mrf.mxu1 }
 0x250   : > { %v1337_v37 = vpop.permute.xlu1 %1336  ;;  %v1370_v26 = vsel %vm1340_vm12, %v1333_v27, %v1335_v12 }
 0x251   : > { %2434 = vmatprep.subr.mxu0 %v1370_v26  ;;  %v1371_v20 = vsel %vm1340_vm12, %v1335_v12, %v1337_v37 }
 0x252   : > { %2435 = vmatpush1.msra.mxu0 %v1369_v40 }
 0x253   : > { %v1339_v31 = vpop.permute.xlu0 %1338 }
 0x254   : > { %v807_v51 = vpop.permute.xlu1 %806  ;;  %v1372_v52 = vsel %vm1340_vm12, %v1337_v37, %v1339_v31 }
 0x255   : > { %2505 = vmatprep.subr.mxu1 %v1372_v52  ;;  %v843_v25 = vsel %vm814_vm13, %v5831_v63, %v807_v51 }
 0x256   : > { %2506 = vmatpush1.msra.mxu1 %v1371_v20 }
 0x257   : > { %v809_v56 = vpop.permute.xlu0 %808 }
 0x258   : > { %v844_v14 = vsel %vm814_vm13, %v807_v51, %v809_v56  ;;  %v811_v2 = vpop.permute.xlu1 %810 }
 0x259   : > { %3985 = vmatprep.subr.msk.mxu0 %vm5914_vm5, %v844_v14  ;;  %v845_v63 = vsel %vm814_vm13, %v809_v56, %v811_v2 }
 0x25a   : > { %3986 = vmatpush1.msk.msra.mxu0 %vm5921_vm1, %v843_v25 }
 0x25b   : > { %v813_v6 = vpop.permute.xlu0 %812  ;;  %3987 = vmatprep.subr.msk.mxu0 %vm5848_vm2, %v5876_v41  ;;  %v6023_v41 = vld [vmem:[%s6177_s3] sm:$0xff] }
 0x25c   : > { %v846_v55 = vsel %vm814_vm13, %v811_v2, %v813_v6  ;;  %3988 = vmatpush1.msk.msra.mxu0 %vm5867_vm0, %v5737_v3  ;;  %v1626_v3 = vpop.f32.mrf.mxu0 }
 0x25d   : > { %2440 = vmatprep.subr.mxu0 %v1239_v44  ;;  %3998 = vmatprep.subr.msk.mxu1 %vm5932_vm7, %v846_v55 }
 0x25e   : > { %2441 = vmatpush1.msra.mxu0 %v5779_v39  ;;  %3999 = vmatpush1.msk.msra.mxu1 %vm5937_vm8, %v845_v63  ;;  %v1697_v39 = vpop.f32.mrf.mxu1 }
 0x25f   : > { %3989 = vmatprep.subr.msk.mxu0 %vm5914_vm5, %v5189_v22  ;;  %4000 = vmatprep.subr.msk.mxu1 %vm5881_vm3, %v5901_v42 }
 0x260   : > { %3990 = vmatpush1.msk.msra.mxu0 %vm5921_vm1, %v5163_v62  ;;  %4001 = vmatpush1.msk.msra.mxu1 %vm5891_vm4, %v5859_v9  ;;  %v1628_v62 = vpop.f32.mrf.mxu0  ;;  %v1699_v22 = vpop.f32.mrf.mxu1 }
 0x261   : > { %3991 = vmatmul.mubr.msk.f32.vlgmr.msra.gmra.mxu0 %vm1414_vm14, %v5549_v47  ;;  %2511 = vmatprep.subr.mxu1 %v1241_v59 }
 0x262   : > { %2512 = vmatpush1.msra.mxu1 %v5912_v35  ;;  %2629 = vmatprep.mubr.f32.mxu0 %v4058_v34  ;;  %v1768_v48 = vpop.f32.mrf.mxu0  ;;  %v1839_v46 = vpop.f32.mrf.mxu1 }
 0x263   : > { %4002 = vmatprep.subr.msk.mxu1 %vm5932_vm7, %v5363_v8 }
 0x264   : > { %4003 = vmatpush1.msk.msra.mxu1 %vm5937_vm8, %v5335_v28  ;;  %v1770_v9 = vpop.f32.mrf.mxu0 }
 0x265   : > { %4004 = vmatmul.mubr.msk.f32.vlgmr.msra.gmra.mxu1 %vm1414_vm14, %v5549_v47  ;;  %v1841_v47 = vpop.f32.mrf.mxu1 }
 0x266   : > { %2700 = vmatprep.mubr.f32.mxu1 %v4058_v34 }
 0x268   : > { %v6010_v13 = vpop.permute.xlu1 %1411 }
 0x269   : > { %v1487_v58 = vadd.f32 %v1486_v53, %v6010_v13  ;;  %v1558_v61 = vadd.f32 %v1557_v54, %v6010_v13  ;;  %v1485_v8 = vadd.f32 %v1484_v15, %v6010_v13  ;;  %v1556_v57 = vadd.f32 %v1555_v11, %v6010_v13 }
 0x26a   : > { %v1629_v28 = vadd.f32 %v1628_v62, %v6010_v13  ;;  %v1700_v19 = vadd.f32 %v1699_v22, %v6010_v13  ;;  %v1627_v18 = vadd.f32 %v1626_v3, %v6010_v13  ;;  %v1698_v10 = vadd.f32 %v1697_v39, %v6010_v13 }
 0x26b   : > { %2595 = vmatprep.subr.mxu0 %v1487_v58  ;;  %2666 = vmatprep.subr.mxu1 %v1558_v61  ;;  %v1771_v36 = vadd.f32 %v1770_v9, %v6010_v13  ;;  %v1842_v7 = vadd.f32 %v1841_v47, %v6010_v13  ;;  %v1769_v24 = vadd.f32 %v1768_v48, %v6010_v13 }
 0x26c   : > { %2596 = vmatpush1.msra.mxu0 %v1485_v8  ;;  %2667 = vmatpush1.msra.mxu1 %v1556_v57  ;;  %v1840_v0 = vadd.f32 %v1839_v46, %v6010_v13 }
 0x26d   : > { %2737 = vmatprep.subr.mxu0 %v1629_v28  ;;  %2808 = vmatprep.subr.mxu1 %v1700_v19 }
 0x26e   : > { %4005 = vmatmul.mubr.msk.f32.vlgmr.msra.gmra.mxu0 %vm2561_vm6, %v6023_v41  ;;  %4006 = vmatmul.mubr.msk.f32.vlgmr.msra.gmra.mxu1 %vm2561_vm6, %v6023_v41 }
 0x26f   : > { %2738 = vmatpush1.msra.mxu0 %v1627_v18  ;;  %2809 = vmatpush1.msra.mxu1 %v1698_v10 }
 0x270   : > { %2771 = vmatprep.mubr.f32.mxu0 %v4058_v34  ;;  %2842 = vmatprep.mubr.f32.mxu1 %v4058_v34 }
 0x271   : > { %2879 = vmatprep.subr.mxu0 %v1771_v36  ;;  %2950 = vmatprep.subr.mxu1 %v1842_v7 }
 0x272   : > { %4007 = vmatmul.mubr.msk.f32.vlgmr.msra.gmra.mxu0 %vm2561_vm6, %v6023_v41  ;;  %4008 = vmatmul.mubr.msk.f32.vlgmr.msra.gmra.mxu1 %vm2561_vm6, %v6023_v41 }
 0x273   : > { %2880 = vmatpush1.msra.mxu0 %v1769_v24  ;;  %2951 = vmatpush1.msra.mxu1 %v1840_v0 }
 0x274   : > { %2913 = vmatprep.mubr.f32.mxu0 %v4058_v34  ;;  %2984 = vmatprep.mubr.f32.mxu1 %v4058_v34 }
 0x276   : > { %4009 = vmatmul.mubr.msk.f32.vlgmr.msra.gmra.mxu0 %vm2561_vm6, %v6023_v41  ;;  %4010 = vmatmul.mubr.msk.f32.vlgmr.msra.gmra.mxu1 %vm2561_vm6, %v6023_v41 }
 0x277   : > { %3055 = vmatprep.mubr.f32.mxu0 %v4058_v34  ;;  %3126 = vmatprep.mubr.f32.mxu1 %v4058_v34 }
 0x27f   : > { %v1910_v16 = vpop.f32.mrf.mxu0 }
 0x280   : > { %v1911_v42 = vadd.f32 %v1910_v16, %v6010_v13 }
 0x281   : > { %v1912_v30 = vpop.f32.mrf.mxu0 }
 0x282   : > { %v1981_v45 = vpop.f32.mrf.mxu1  ;;  %v1913_v35 = vadd.f32 %v1912_v30, %v6010_v13 }
 0x283   : > { %v1982_v29 = vadd.f32 %v1981_v45, %v6010_v13 }
 0x284   : > { %v1983_v44 = vpop.f32.mrf.mxu1  ;;  %3021 = vmatprep.subr.mxu0 %v1913_v35 }
 0x285   : > { %v1984_v43 = vadd.f32 %v1983_v44, %v6010_v13  ;;  %3022 = vmatpush1.msra.mxu0 %v1911_v42 }
 0x286   : > { %4011 = vmatmul.mubr.msk.f32.vlgmr.msra.gmra.mxu0 %vm2561_vm6, %v6023_v41 }
 0x287   : > { %3092 = vmatprep.subr.mxu1 %v1984_v43  ;;  %3197 = vmatprep.mubr.f32.mxu0 %v4058_v34 }
 0x288   : > { %3093 = vmatpush1.msra.mxu1 %v1982_v29 }
 0x289   : > { %4012 = vmatmul.mubr.msk.f32.vlgmr.msra.gmra.mxu1 %vm2561_vm6, %v6023_v41 }
 0x28a   : > { %3268 = vmatprep.mubr.f32.mxu1 %v4058_v34 }
 0x2aa   : > { %v2052_v17 = vpop.f32.mrf.mxu0 }
 0x2ab   : > { %v2053_v21 = vadd.f32 %v2052_v17, %v6010_v13 }
 0x2ac   : > { %v2054_v5 = vpop.f32.mrf.mxu0 }
 0x2ad   : > { %v2055_v59 = vadd.f32 %v2054_v5, %v6010_v13 }
 0x2ae   : > { %v2123_v33 = vpop.f32.mrf.mxu1 }
 0x2af   : > { %3163 = vmatprep.subr.mxu0 %v2055_v59  ;;  %v2124_v1 = vadd.f32 %v2123_v33, %v6010_v13 }
 0x2b0   : > { %v2125_v49 = vpop.f32.mrf.mxu1  ;;  %3164 = vmatpush1.msra.mxu0 %v2053_v21 }
 0x2b1   : > { %v2126_v4 = vadd.f32 %v2125_v49, %v6010_v13  ;;  %4013 = vmatmul.mubr.msk.f32.vlgmr.msra.gmra.mxu0 %vm2561_vm6, %v6023_v41 }
 0x2b2   : > { %3339 = vmatprep.mubr.f32.mxu0 %v4058_v34 }
 0x2b3   : > { %3234 = vmatprep.subr.mxu1 %v2126_v4 }
 0x2b4   : > { %3235 = vmatpush1.msra.mxu1 %v2124_v1 }
 0x2b5   : > { %4014 = vmatmul.mubr.msk.f32.vlgmr.msra.gmra.mxu1 %vm2561_vm6, %v6023_v41 }
 0x2b6   : > { %3410 = vmatprep.mubr.f32.mxu1 %v4058_v34 }
 0x2d2   : > { %v2194_v32 = vpop.f32.mrf.mxu0 }
 0x2d3   : > { %v2195_v38 = vadd.f32 %v2194_v32, %v6010_v13 }
 0x2d4   : > { %v2196_v50 = vpop.f32.mrf.mxu0 }
 0x2d5   : > { %v2265_v27 = vpop.f32.mrf.mxu1  ;;  %v2197_v60 = vadd.f32 %v2196_v50, %v6010_v13 }
 0x2d6   : > { %v2266_v12 = vadd.f32 %v2265_v27, %v6010_v13 }
 0x2d7   : > { %v2267_v37 = vpop.f32.mrf.mxu1  ;;  %3305 = vmatprep.subr.mxu0 %v2197_v60 }
 0x2d8   : > { %v2268_v26 = vadd.f32 %v2267_v37, %v6010_v13  ;;  %3306 = vmatpush1.msra.mxu0 %v2195_v38 }
 0x2d9   : > { %4015 = vmatmul.mubr.msk.f32.vlgmr.msra.gmra.mxu0 %vm2561_vm6, %v6023_v41 }
 0x2da   : > { %3376 = vmatprep.subr.mxu1 %v2268_v26  ;;  %3481 = vmatprep.mubr.f32.mxu0 %v4058_v34 }
 0x2db   : > { %3377 = vmatpush1.msra.mxu1 %v2266_v12 }
 0x2dc   : > { %4016 = vmatmul.mubr.msk.f32.vlgmr.msra.gmra.mxu1 %vm2561_vm6, %v6023_v41 }
 0x2dd   : > { %3552 = vmatprep.mubr.f32.mxu1 %v4058_v34 }
 0x2fa   : > { %v2336_v40 = vpop.f32.mrf.mxu0 }
 0x2fb   : > { %v2337_v31 = vadd.f32 %v2336_v40, %v6010_v13 }
 0x2fc   : > { %v2338_v51 = vpop.f32.mrf.mxu0 }
 0x2fd   : > { %v2407_v52 = vpop.f32.mrf.mxu1  ;;  %v2339_v20 = vadd.f32 %v2338_v51, %v6010_v13 }
 0x2fe   : > { %v2408_v56 = vadd.f32 %v2407_v52, %v6010_v13 }
 0x2ff   : > { %v2409_v14 = vpop.f32.mrf.mxu1  ;;  %3447 = vmatprep.subr.mxu0 %v2339_v20 }
 0x300   : > { %v2410_v25 = vadd.f32 %v2409_v14, %v6010_v13  ;;  %3448 = vmatpush1.msra.mxu0 %v2337_v31 }
 0x301   : > { %4017 = vmatmul.mubr.msk.f32.vlgmr.msra.gmra.mxu0 %vm2561_vm6, %v6023_v41 }
 0x302   : > { %3518 = vmatprep.subr.mxu1 %v2410_v25  ;;  %3623 = vmatprep.mubr.f32.mxu0 %v4058_v34 }
 0x303   : > { %3519 = vmatpush1.msra.mxu1 %v2408_v56 }
 0x304   : > { %4018 = vmatmul.mubr.msk.f32.vlgmr.msra.gmra.mxu1 %vm2561_vm6, %v6023_v41 }
 0x305   : > { %3694 = vmatprep.mubr.f32.mxu1 %v4058_v34  ;;  %v6098_v34 = vpop.permute.xlu0 %2558 }
 0x321   : > { %v2478_v11 = vpop.f32.mrf.mxu0 }
 0x322   : > { %v2479_v6 = vadd.f32 %v2478_v11, %v6010_v13 }
 0x323   : > { %v2480_v2 = vpop.f32.mrf.mxu0 }
 0x324   : > { %v2481_v15 = vadd.f32 %v2480_v2, %v6010_v13 }
 0x325   : > { %v2549_v55 = vpop.f32.mrf.mxu1 }
 0x326   : > { %3589 = vmatprep.subr.mxu0 %v2481_v15  ;;  %v2550_v54 = vadd.f32 %v2549_v55, %v6010_v13 }
 0x327   : > { %v2551_v63 = vpop.f32.mrf.mxu1  ;;  %3590 = vmatpush1.msra.mxu0 %v2479_v6 }
 0x328   : > { %v2552_v53 = vadd.f32 %v2551_v63, %v6010_v13  ;;  %4019 = vmatmul.mubr.msk.f32.vlgmr.msra.gmra.mxu0 %vm2561_vm6, %v6023_v41 }
 0x32a   : > { %3660 = vmatprep.subr.mxu1 %v2552_v53 }
 0x32b   : > { %3661 = vmatpush1.msra.mxu1 %v2550_v54 }
 0x32c   : > { %4020 = vmatmul.mubr.msk.f32.vlgmr.msra.gmra.mxu1 %vm2561_vm6, %v6023_v41 }
 0x32e   : > { %v2631_v3 = vpop.f32.mrf.mxu0  ;;  %v2702_v39 = vpop.f32.mrf.mxu1 }
 0x32f   : > { %v2632_v62 = vadd.f32 %v2631_v3, %v6098_v34  ;;  %v2703_v22 = vadd.f32 %v2702_v39, %v6098_v34 }
 0x330   : > { %v2633_v48 = vpop.f32.mrf.mxu0  ;;  %v2704_v46 = vpop.f32.mrf.mxu1 }
 0x331   : > { %3701 = vst [vmem:[%s6105_s17] sm:$0xff] %v2632_v62  ;;  %3703 = vst [vmem:[%s6105_s17 + $0x10] sm:$0xff] %v2703_v22  ;;  %v2634_v13 = vadd.f32 %v2633_v48, %v6098_v34  ;;  %v2705_v58 = vadd.f32 %v2704_v46, %v6098_v34 }
 0x332   : > { %v2773_v61 = vpop.f32.mrf.mxu0  ;;  %v2844_v8 = vpop.f32.mrf.mxu1 }
 0x333   : > { %3702 = vst [vmem:[%s6105_s17 + $0x8] sm:$0xff] %v2634_v13  ;;  %3704 = vst [vmem:[%s6105_s17 + $0x18] sm:$0xff] %v2705_v58  ;;  %v2774_v57 = vadd.f32 %v2773_v61, %v6098_v34  ;;  %v2845_v28 = vadd.f32 %v2844_v8, %v6098_v34 }
 0x334   : > { %v2775_v19 = vpop.f32.mrf.mxu0  ;;  %v2846_v9 = vpop.f32.mrf.mxu1 }
 0x335   : > { %3705 = vst [vmem:[%s6105_s17 + $0x20] sm:$0xff] %v2774_v57  ;;  %3707 = vst [vmem:[%s6105_s17 + $0x30] sm:$0xff] %v2845_v28  ;;  %v2776_v47 = vadd.f32 %v2775_v19, %v6098_v34  ;;  %v2847_v18 = vadd.f32 %v2846_v9, %v6098_v34 }
 0x336   : > { %v2915_v10 = vpop.f32.mrf.mxu0  ;;  %v2986_v41 = vpop.f32.mrf.mxu1 }
 0x337   : > { %3706 = vst [vmem:[%s6105_s17 + $0x28] sm:$0xff] %v2776_v47  ;;  %3708 = vst [vmem:[%s6105_s17 + $0x38] sm:$0xff] %v2847_v18  ;;  %v2916_v36 = vadd.f32 %v2915_v10, %v6098_v34  ;;  %v2987_v7 = vadd.f32 %v2986_v41, %v6098_v34 }
 0x338   : > { %v2917_v24 = vpop.f32.mrf.mxu0  ;;  %v2988_v0 = vpop.f32.mrf.mxu1 }
 0x339   : > { %3709 = vst [vmem:[%s6105_s17 + $0x40] sm:$0xff] %v2916_v36  ;;  %3711 = vst [vmem:[%s6105_s17 + $0x50] sm:$0xff] %v2987_v7  ;;  %v2918_v16 = vadd.f32 %v2917_v24, %v6098_v34  ;;  %v2989_v42 = vadd.f32 %v2988_v0, %v6098_v34 }
 0x33b   : > { %3710 = vst [vmem:[%s6105_s17 + $0x48] sm:$0xff] %v2918_v16  ;;  %3712 = vst [vmem:[%s6105_s17 + $0x58] sm:$0xff] %v2989_v42 }
 0x346   : > { %v3057_v30 = vpop.f32.mrf.mxu0 }
 0x347   : > { %v3058_v45 = vadd.f32 %v3057_v30, %v6098_v34 }
 0x348   : > { %v3059_v35 = vpop.f32.mrf.mxu0 }
 0x349   : > { %3713 = vst [vmem:[%s6105_s17 + $0x60] sm:$0xff] %v3058_v45  ;;  %v3128_v29 = vpop.f32.mrf.mxu1  ;;  %v3060_v44 = vadd.f32 %v3059_v35, %v6098_v34 }
 0x34a   : > { %v3129_v43 = vadd.f32 %v3128_v29, %v6098_v34 }
 0x34b   : > { %3714 = vst [vmem:[%s6105_s17 + $0x68] sm:$0xff] %v3060_v44  ;;  %v3130_v17 = vpop.f32.mrf.mxu1 }
 0x34c   : > { %3715 = vst [vmem:[%s6105_s17 + $0x70] sm:$0xff] %v3129_v43  ;;  %v3131_v21 = vadd.f32 %v3130_v17, %v6098_v34 }
 0x34e   : > { %3716 = vst [vmem:[%s6105_s17 + $0x78] sm:$0xff] %v3131_v21 }
 0x371   : > { %v3199_v5 = vpop.f32.mrf.mxu0 }
 0x372   : > { %v3200_v23 = vadd.f32 %v3199_v5, %v6098_v34 }
 0x373   : > { %v3201_v59 = vpop.f32.mrf.mxu0 }
 0x374   : > { %3717 = vst [vmem:[%s6105_s17 + $0x80] sm:$0xff] %v3200_v23  ;;  %v3202_v33 = vadd.f32 %v3201_v59, %v6098_v34 }
 0x375   : > { %v3270_v1 = vpop.f32.mrf.mxu1 }
 0x376   : > { %v3271_v49 = vadd.f32 %v3270_v1, %v6098_v34  ;;  %3718 = vst [vmem:[%s6105_s17 + $0x88] sm:$0xff] %v3202_v33 }
 0x377   : > { %v3272_v4 = vpop.f32.mrf.mxu1 }
 0x378   : > { %3719 = vst [vmem:[%s6105_s17 + $0x90] sm:$0xff] %v3271_v49  ;;  %v3273_v32 = vadd.f32 %v3272_v4, %v6098_v34 }
 0x37a   : > { %3720 = vst [vmem:[%s6105_s17 + $0x98] sm:$0xff] %v3273_v32 }
 0x399   : > { %v3341_v38 = vpop.f32.mrf.mxu0 }
 0x39a   : > { %v3342_v50 = vadd.f32 %v3341_v38, %v6098_v34 }
 0x39b   : > { %v3343_v27 = vpop.f32.mrf.mxu0 }
 0x39c   : > { %3721 = vst [vmem:[%s6105_s17 + $0xa0] sm:$0xff] %v3342_v50  ;;  %v3412_v60 = vpop.f32.mrf.mxu1  ;;  %v3344_v12 = vadd.f32 %v3343_v27, %v6098_v34 }
 0x39d   : > { %v3413_v37 = vadd.f32 %v3412_v60, %v6098_v34 }
 0x39e   : > { %3722 = vst [vmem:[%s6105_s17 + $0xa8] sm:$0xff] %v3344_v12  ;;  %v3414_v26 = vpop.f32.mrf.mxu1 }
 0x39f   : > { %3723 = vst [vmem:[%s6105_s17 + $0xb0] sm:$0xff] %v3413_v37  ;;  %v3415_v40 = vadd.f32 %v3414_v26, %v6098_v34 }
 0x3a1   : > { %3724 = vst [vmem:[%s6105_s17 + $0xb8] sm:$0xff] %v3415_v40 }
 0x3c1   : > { %v3483_v31 = vpop.f32.mrf.mxu0 }
 0x3c2   : > { %v3484_v51 = vadd.f32 %v3483_v31, %v6098_v34 }
 0x3c3   : > { %v3485_v52 = vpop.f32.mrf.mxu0 }
 0x3c4   : > { %3725 = vst [vmem:[%s6105_s17 + $0xc0] sm:$0xff] %v3484_v51  ;;  %v3554_v20 = vpop.f32.mrf.mxu1  ;;  %v3486_v56 = vadd.f32 %v3485_v52, %v6098_v34 }
 0x3c5   : > { %v3555_v14 = vadd.f32 %v3554_v20, %v6098_v34 }
 0x3c6   : > { %3726 = vst [vmem:[%s6105_s17 + $0xc8] sm:$0xff] %v3486_v56  ;;  %v3556_v25 = vpop.f32.mrf.mxu1 }
 0x3c7   : > { %3727 = vst [vmem:[%s6105_s17 + $0xd0] sm:$0xff] %v3555_v14  ;;  %v3557_v11 = vadd.f32 %v3556_v25, %v6098_v34 }
 0x3c9   : > { %3728 = vst [vmem:[%s6105_s17 + $0xd8] sm:$0xff] %v3557_v11 }
 0x3e8   : > { %v3625_v2 = vpop.f32.mrf.mxu0 }
 0x3e9   : > { %v3626_v15 = vadd.f32 %v3625_v2, %v6098_v34 }
 0x3ea   : > { %v3627_v6 = vpop.f32.mrf.mxu0 }
 0x3eb   : > { %3729 = vst [vmem:[%s6105_s17 + $0xe0] sm:$0xff] %v3626_v15  ;;  %v3628_v55 = vadd.f32 %v3627_v6, %v6098_v34 }
 0x3ec   : > { %v3696_v63 = vpop.f32.mrf.mxu1 }
 0x3ed   : > { %v3697_v53 = vadd.f32 %v3696_v63, %v6098_v34  ;;  %3730 = vst [vmem:[%s6105_s17 + $0xe8] sm:$0xff] %v3628_v55 }
 0x3ee   : > { %v3698_v54 = vpop.f32.mrf.mxu1 }
 0x3ef   : > { %3731 = vst [vmem:[%s6105_s17 + $0xf0] sm:$0xff] %v3697_v53  ;;  %v3699_v3 = vadd.f32 %v3698_v54, %v6098_v34 }
 0x3f1   : > { %3732 = vst [vmem:[%s6105_s17 + $0xf8] sm:$0xff] %v3699_v3 }
 0x3f2 PF: > { %s15_s18 = sadd.s32 1, %s4050_s18  }
 0x3f3   : > { %p12_p4 = scmp.ge.s32.totalorder %s15_s18, 4  }
 0x3f5   :  { %14 = sbr.rel (!%p12_p4) target bundleno = 1 (0x1), region = 70 }

</bundles_post_ra>
